<compile_context>
chip_gen: v5e
topology: v5e:2x2
jax: 0.10.0
libtpu: 0.0.40
codegen_flags: <defaults>
</compile_context>

<pallas_src>
import functools

import jax
import jax.numpy as jnp
from jax.experimental import pallas as pl
from jax.experimental.pallas import tpu as pltpu

C_IN, C_STEM, C_EXP, C_SE, C_HEAD, NUM_CLASSES = 3, 32, 128, 8, 64, 18
K_STEM = 9 * C_IN          # 27 im2col columns for the 3x3 stem conv
K_PAD = 32                 # padded to a sublane-friendly multiple of 8
COFF = 8                   # aligned sublane offset of the image interior
                           # inside the depthwise padding scratch


def _silu(v):
  return v * jax.nn.sigmoid(v)


def _broadcast_spec(shape):
  zeros = (0,) * len(shape)
  return pl.BlockSpec(shape, lambda n, _z=zeros: _z)


# ---------------------------------------------------------------------------
# One fused kernel: entire forward pass for one image per grid step.
# ---------------------------------------------------------------------------
def _fused_forward_kernel(
    patch_ref,                      # [1, HW, K_PAD]  bf16 im2col patches
    stem_w_ref, stem_b_ref,         # [K_PAD,C_STEM] bf16, [1,C_STEM] f32
    exp_w_ref, exp_b_ref,           # [C_STEM,C_EXP] bf16, [1,C_EXP]  f32
    dw_w_ref, dw_b_ref,             # [9,C_EXP] f32,       [1,C_EXP]  f32
    se_w1_ref, se_b1_ref,           # [C_EXP,C_SE] f32,    [1,C_SE]   f32
    se_w2_ref, se_b2_ref,           # [C_SE,C_EXP] f32,    [1,C_EXP]  f32
    proj_w_ref, proj_b_ref,         # [C_EXP,C_STEM] bf16, [1,C_STEM] f32
    head_w_ref, head_b_ref,         # [C_STEM,C_HEAD] bf16,[1,C_HEAD] f32
    fc_w_ref, fc_b_ref,             # [C_HEAD,18] f32,     [1,18]     f32
    out_ref,                        # [1, 1, 18] f32
    pad_ref,                        # VMEM scratch [hs+2, ws+2*COFF, C_EXP] f32
    *, hs, ws):
  f32 = jnp.float32
  bf16 = jnp.bfloat16
  hw = hs * ws

  # ---- Stem: 3x3/s2 conv (im2col matmul, BN scale pre-folded) + bias+SiLU --
  patches = patch_ref[0]                                      # [HW, K_PAD]
  y = jnp.dot(patches, stem_w_ref[...], preferred_element_type=f32)
  y = _silu(y + stem_b_ref[...])                              # [HW, C_STEM]

  # ---- MBConv expand 1x1 + bias + SiLU --------------------------------------
  h = jnp.dot(y.astype(bf16), exp_w_ref[...], preferred_element_type=f32)
  h = _silu(h + exp_b_ref[...])                               # [HW, C_EXP]

  # ---- Depthwise 3x3 (stride 1, pad 1): in-VMEM padded image, 9-tap MAC ----
  pad_ref[...] = jnp.zeros_like(pad_ref)
  pad_ref[1:hs + 1, COFF:COFF + ws, :] = h.reshape(hs, ws, C_EXP)
  acc = pad_ref[0:hs, COFF - 1:COFF - 1 + ws, :] * dw_w_ref[0:1, :]
  for k in range(1, 9):
    di, dj = k // 3, k % 3
    acc = acc + (pad_ref[di:di + hs, COFF - 1 + dj:COFF - 1 + dj + ws, :]
                 * dw_w_ref[k:k + 1, :])
  h = acc.reshape(hw, C_EXP)
  h = _silu(h + dw_b_ref[...])                                # [HW, C_EXP]

  # ---- Squeeze-excite --------------------------------------------------------
  pooled = jnp.mean(h, axis=0, keepdims=True)                 # [1, C_EXP]
  s = jnp.dot(pooled, se_w1_ref[...], preferred_element_type=f32) + se_b1_ref[...]
  s = _silu(s)
  s = jnp.dot(s, se_w2_ref[...], preferred_element_type=f32) + se_b2_ref[...]
  s = jax.nn.sigmoid(s)                                       # [1, C_EXP]
  h = h * s

  # ---- Project 1x1 (BN scale pre-folded) + bias + residual add --------------
  p = jnp.dot(h.astype(bf16), proj_w_ref[...], preferred_element_type=f32)
  y = p + proj_b_ref[...] + y                                 # [HW, C_STEM]

  # ---- Head 1x1 + bias + SiLU ------------------------------------------------
  hd = jnp.dot(y.astype(bf16), head_w_ref[...], preferred_element_type=f32)
  hd = _silu(hd + head_b_ref[...])                            # [HW, C_HEAD]

  # ---- Global average pool + Linear(18) + softmax(dim=1) ---------------------
  gp = jnp.mean(hd, axis=0, keepdims=True)                    # [1, C_HEAD]
  logits = jnp.dot(gp, fc_w_ref[...], preferred_element_type=f32) + fc_b_ref[...]
  m = jnp.max(logits, axis=1, keepdims=True)
  e = jnp.exp(logits - m)
  probs = e / jnp.sum(e, axis=1, keepdims=True)               # [1, 18]
  out_ref[...] = probs[None]


# ---------------------------------------------------------------------------
# Glue: im2col patch extraction for the stem conv (plain JAX, 3 input channels)
# ---------------------------------------------------------------------------
def im2col(x, k, stride, pad):
  N, H, W, C = x.shape
  xp = jnp.pad(x, ((0, 0), (pad, pad), (pad, pad), (0, 0)))
  Ho = (H + 2 * pad - k) // stride + 1
  Wo = (W + 2 * pad - k) // stride + 1
  cols = []
  for i in range(k):
    for j in range(k):
      cols.append(xp[:, i:i + stride * Ho:stride, j:j + stride * Wo:stride, :])
  patches = jnp.stack(cols, axis=3)                    # [N, Ho, Wo, KK, C]
  return patches, Ho, Wo


# ---------------------------------------------------------------------------
# Parameters (deterministic synthetic init) + host-side prep (fold/cast/pad)
# ---------------------------------------------------------------------------
def init_params(key):
  ks = jax.random.split(key, 16)

  def w(k, shape, fan_in):
    return jax.random.normal(k, shape, jnp.float32) / jnp.sqrt(float(fan_in))

  def bn(k, c):
    k1, k2 = jax.random.split(k)
    return (1.0 + 0.1 * jax.random.normal(k1, (c,), jnp.float32),
            0.1 * jax.random.normal(k2, (c,), jnp.float32))

  p = {}
  p['stem_w'] = w(ks[0], (K_STEM, C_STEM), K_STEM)
  p['stem_b'] = jnp.zeros((C_STEM,), jnp.float32)
  p['stem_bn_s'], p['stem_bn_b'] = bn(ks[1], C_STEM)
  p['exp_w'] = w(ks[2], (C_STEM, C_EXP), C_STEM)
  p['exp_b'] = jnp.zeros((C_EXP,), jnp.float32)
  p['exp_bn_s'], p['exp_bn_b'] = bn(ks[3], C_EXP)
  p['dw_w'] = w(ks[4], (9, C_EXP), 9)
  p['dw_bn_s'], p['dw_bn_b'] = bn(ks[5], C_EXP)
  p['se_w1'] = w(ks[6], (C_EXP, C_SE), C_EXP)
  p['se_b1'] = jnp.zeros((C_SE,), jnp.float32)
  p['se_w2'] = w(ks[7], (C_SE, C_EXP), C_SE)
  p['se_b2'] = jnp.zeros((C_EXP,), jnp.float32)
  p['proj_w'] = w(ks[8], (C_EXP, C_STEM), C_EXP)
  p['proj_b'] = jnp.zeros((C_STEM,), jnp.float32)
  p['proj_bn_s'], p['proj_bn_b'] = bn(ks[9], C_STEM)
  p['head_w'] = w(ks[10], (C_STEM, C_HEAD), C_STEM)
  p['head_b'] = jnp.zeros((C_HEAD,), jnp.float32)
  p['head_bn_s'], p['head_bn_b'] = bn(ks[11], C_HEAD)
  p['fc_w'] = w(ks[12], (C_HEAD, NUM_CLASSES), C_HEAD)
  p['fc_b'] = jnp.zeros((NUM_CLASSES,), jnp.float32)
  return p


def prepare_params(p):
  """Fold BN scale into conv weights, BN+conv bias into one vector, cast bf16,
  pad stem K 27 -> 32."""
  def fold_bias(bn_s, bn_b, conv_b):
    return (bn_b + conv_b * bn_s).reshape(1, -1)              # [1, C] f32

  kp = {}
  stem_w = jnp.pad(p['stem_w'], ((0, K_PAD - K_STEM), (0, 0)))
  kp['stem_w'] = (stem_w * p['stem_bn_s'][None, :]).astype(jnp.bfloat16)
  kp['stem_b'] = fold_bias(p['stem_bn_s'], p['stem_bn_b'], p['stem_b'])
  kp['exp_w'] = (p['exp_w'] * p['exp_bn_s'][None, :]).astype(jnp.bfloat16)
  kp['exp_b'] = fold_bias(p['exp_bn_s'], p['exp_bn_b'], p['exp_b'])
  kp['dw_w'] = p['dw_w'] * p['dw_bn_s'][None, :]              # f32 taps
  kp['dw_b'] = p['dw_bn_b'].reshape(1, C_EXP)
  kp['se_w1'] = p['se_w1']
  kp['se_b1'] = p['se_b1'].reshape(1, C_SE)
  kp['se_w2'] = p['se_w2']
  kp['se_b2'] = p['se_b2'].reshape(1, C_EXP)
  kp['proj_w'] = (p['proj_w'] * p['proj_bn_s'][None, :]).astype(jnp.bfloat16)
  kp['proj_b'] = fold_bias(p['proj_bn_s'], p['proj_bn_b'], p['proj_b'])
  kp['head_w'] = (p['head_w'] * p['head_bn_s'][None, :]).astype(jnp.bfloat16)
  kp['head_b'] = fold_bias(p['head_bn_s'], p['head_bn_b'], p['head_b'])
  kp['fc_w'] = p['fc_w']
  kp['fc_b'] = p['fc_b'].reshape(1, NUM_CLASSES)
  return kp


# ---------------------------------------------------------------------------
# Forward pass (MyEfficientNet.forward: EFF(x) then softmax over classes)
# ---------------------------------------------------------------------------
def my_efficientnet_forward(x_nchw, kp):
  x = jnp.transpose(x_nchw, (0, 2, 3, 1)).astype(jnp.float32)  # NCHW -> NHWC
  N = x.shape[0]

  # Stem im2col (only 3 input channels -> cheap), pad K 27 -> 32, cast bf16.
  patches, Ho, Wo = im2col(x, 3, 2, 1)                         # [N,Ho,Wo,9,3]
  HW = Ho * Wo
  a = patches.reshape(N, HW, K_STEM)
  a = jnp.pad(a, ((0, 0), (0, 0), (0, K_PAD - K_STEM))).astype(jnp.bfloat16)

  kernel = functools.partial(_fused_forward_kernel, hs=Ho, ws=Wo)

  probs = pl.pallas_call(
      kernel,
      grid=(N,),
      in_specs=[
          pl.BlockSpec((1, HW, K_PAD), lambda n: (n, 0, 0)),   # patches
          _broadcast_spec((K_PAD, C_STEM)),                    # stem_w
          _broadcast_spec((1, C_STEM)),                        # stem_b
          _broadcast_spec((C_STEM, C_EXP)),                    # exp_w
          _broadcast_spec((1, C_EXP)),                         # exp_b
          _broadcast_spec((9, C_EXP)),                         # dw_w
          _broadcast_spec((1, C_EXP)),                         # dw_b
          _broadcast_spec((C_EXP, C_SE)),                      # se_w1
          _broadcast_spec((1, C_SE)),                          # se_b1
          _broadcast_spec((C_SE, C_EXP)),                      # se_w2
          _broadcast_spec((1, C_EXP)),                         # se_b2
          _broadcast_spec((C_EXP, C_STEM)),                    # proj_w
          _broadcast_spec((1, C_STEM)),                        # proj_b
          _broadcast_spec((C_STEM, C_HEAD)),                   # head_w
          _broadcast_spec((1, C_HEAD)),                        # head_b
          _broadcast_spec((C_HEAD, NUM_CLASSES)),              # fc_w
          _broadcast_spec((1, NUM_CLASSES)),                   # fc_b
      ],
      out_specs=pl.BlockSpec((1, 1, NUM_CLASSES), lambda n: (n, 0, 0)),
      out_shape=jax.ShapeDtypeStruct((N, 1, NUM_CLASSES), jnp.float32),
      scratch_shapes=[pltpu.VMEM((Ho + 2, Wo + 2 * COFF, C_EXP), jnp.float32)],
      compiler_params=pltpu.CompilerParams(
          dimension_semantics=("parallel",),          # both v7x TCs get images
          vmem_limit_bytes=32 * 1024 * 1024),
  )(a, kp['stem_w'], kp['stem_b'], kp['exp_w'], kp['exp_b'],
    kp['dw_w'], kp['dw_b'], kp['se_w1'], kp['se_b1'], kp['se_w2'],
    kp['se_b2'], kp['proj_w'], kp['proj_b'], kp['head_w'], kp['head_b'],
    kp['fc_w'], kp['fc_b'])

  return probs.reshape(N, NUM_CLASSES)                         # [N, 18]


if __name__ == "__main__":
  key = jax.random.PRNGKey(0)
  pkey, xkey = jax.random.split(key)
  params = init_params(pkey)
  kparams = prepare_params(params)
  x = jax.random.normal(xkey, (2, 3, 32, 32), dtype=jnp.float32)  # NCHW

  fwd = jax.jit(lambda inp: my_efficientnet_forward(inp, kparams))
  probs = jax.block_until_ready(fwd(x))

  assert probs.shape == (2, NUM_CLASSES)
  assert bool(jnp.all(jnp.isfinite(probs)))
  assert bool(jnp.allclose(jnp.sum(probs, axis=1), 1.0, atol=1e-5))
  print("KERNEL_OK")
</pallas_src>

<mosaic_0001>
module attributes {stable_mosaic.version = 11 : i64} {
  func.func @_fused_forward_kernel(%arg0: i32, %arg1: memref<1x256x32xbf16, #tpu.memory_space<vmem>>, %arg2: memref<32x32xbf16, #tpu.memory_space<vmem>>, %arg3: memref<1x32xf32, #tpu.memory_space<vmem>>, %arg4: memref<32x128xbf16, #tpu.memory_space<vmem>>, %arg5: memref<1x128xf32, #tpu.memory_space<vmem>>, %arg6: memref<9x128xf32, #tpu.memory_space<vmem>>, %arg7: memref<1x128xf32, #tpu.memory_space<vmem>>, %arg8: memref<128x8xf32, #tpu.memory_space<vmem>>, %arg9: memref<1x8xf32, #tpu.memory_space<vmem>>, %arg10: memref<8x128xf32, #tpu.memory_space<vmem>>, %arg11: memref<1x128xf32, #tpu.memory_space<vmem>>, %arg12: memref<128x32xbf16, #tpu.memory_space<vmem>>, %arg13: memref<1x32xf32, #tpu.memory_space<vmem>>, %arg14: memref<32x64xbf16, #tpu.memory_space<vmem>>, %arg15: memref<1x64xf32, #tpu.memory_space<vmem>>, %arg16: memref<64x18xf32, #tpu.memory_space<vmem>>, %arg17: memref<1x18xf32, #tpu.memory_space<vmem>>, %arg18: memref<1x1x18xf32, #tpu.memory_space<vmem>>, %arg19: memref<18x32x128xf32, #tpu.memory_space<vmem>>) attributes {dimension_semantics = [#tpu.dimension_semantics<parallel>], iteration_bounds = array<i64: 2>, scalar_prefetch = 0 : i64, scratch_operands = 1 : i64, tpu.core_type = #tpu.core_type<tc>, window_params = [{transform_indices = @transform_0, window_bounds = array<i64: 1, 256, 32>}, {pipeline_mode = #tpu.pipeline_mode<synchronous>, transform_indices = @transform_1, window_bounds = array<i64: 32, 32>}, {pipeline_mode = #tpu.pipeline_mode<synchronous>, transform_indices = @transform_2, window_bounds = array<i64: 1, 32>}, {pipeline_mode = #tpu.pipeline_mode<synchronous>, transform_indices = @transform_3, window_bounds = array<i64: 32, 128>}, {pipeline_mode = #tpu.pipeline_mode<synchronous>, transform_indices = @transform_4, window_bounds = array<i64: 1, 128>}, {pipeline_mode = #tpu.pipeline_mode<synchronous>, transform_indices = @transform_5, window_bounds = array<i64: 9, 128>}, {pipeline_mode = #tpu.pipeline_mode<synchronous>, transform_indices = @transform_6, window_bounds = array<i64: 1, 128>}, {pipeline_mode = #tpu.pipeline_mode<synchronous>, transform_indices = @transform_7, window_bounds = array<i64: 128, 8>}, {pipeline_mode = #tpu.pipeline_mode<synchronous>, transform_indices = @transform_8, window_bounds = array<i64: 1, 8>}, {pipeline_mode = #tpu.pipeline_mode<synchronous>, transform_indices = @transform_9, window_bounds = array<i64: 8, 128>}, {pipeline_mode = #tpu.pipeline_mode<synchronous>, transform_indices = @transform_10, window_bounds = array<i64: 1, 128>}, {pipeline_mode = #tpu.pipeline_mode<synchronous>, transform_indices = @transform_11, window_bounds = array<i64: 128, 32>}, {pipeline_mode = #tpu.pipeline_mode<synchronous>, transform_indices = @transform_12, window_bounds = array<i64: 1, 32>}, {pipeline_mode = #tpu.pipeline_mode<synchronous>, transform_indices = @transform_13, window_bounds = array<i64: 32, 64>}, {pipeline_mode = #tpu.pipeline_mode<synchronous>, transform_indices = @transform_14, window_bounds = array<i64: 1, 64>}, {pipeline_mode = #tpu.pipeline_mode<synchronous>, transform_indices = @transform_15, window_bounds = array<i64: 64, 18>}, {pipeline_mode = #tpu.pipeline_mode<synchronous>, transform_indices = @transform_16, window_bounds = array<i64: 1, 18>}, {transform_indices = @transform_17, window_bounds = array<i64: 1, 1, 18>}]} {
    %c0 = arith.constant 0 : index
    %c0_0 = arith.constant 0 : index
    %c0_1 = arith.constant 0 : index
    %0 = vector.load %arg1[%c0, %c0_0, %c0_1] : memref<1x256x32xbf16, #tpu.memory_space<vmem>>, vector<1x256x32xbf16>
    %1 = vector.shape_cast %0 : vector<1x256x32xbf16> to vector<256x32xbf16>
    %c0_2 = arith.constant 0 : index
    %c0_3 = arith.constant 0 : index
    %2 = vector.load %arg2[%c0_2, %c0_3] : memref<32x32xbf16, #tpu.memory_space<vmem>>, vector<32x32xbf16>
    %cst = arith.constant dense<0.000000e+00> : vector<256x32xf32>
    %3 = tpu.matmul %1, %2, %cst {dimension_numbers = #tpu.dot_dimension_numbers<[1], [0], [0], [1], [0, 0, 1, 1], [], []>} : vector<256x32xbf16>, vector<32x32xbf16>, vector<256x32xf32> -> vector<256x32xf32>
    %c0_4 = arith.constant 0 : index
    %c0_5 = arith.constant 0 : index
    %4 = vector.load %arg3[%c0_4, %c0_5] : memref<1x32xf32, #tpu.memory_space<vmem>>, vector<1x32xf32>
    %5 = vector.broadcast %4 : vector<1x32xf32> to vector<256x32xf32>
    %6 = arith.addf %3, %5 : vector<256x32xf32>
    %7 = arith.negf %6 : vector<256x32xf32>
    %8 = math.exp %7 : vector<256x32xf32>
    %cst_6 = arith.constant 1.000000e+00 : f32
    %9 = vector.broadcast %cst_6 : f32 to vector<256x32xf32>
    %10 = arith.addf %9, %8 : vector<256x32xf32>
    %11 = arith.divf %9, %10 : vector<256x32xf32>
    %12 = arith.mulf %6, %11 : vector<256x32xf32>
    %13 = arith.truncf %12 : vector<256x32xf32> to vector<256x32xbf16>
    %c0_7 = arith.constant 0 : index
    %c0_8 = arith.constant 0 : index
    %14 = vector.load %arg4[%c0_7, %c0_8] : memref<32x128xbf16, #tpu.memory_space<vmem>>, vector<32x128xbf16>
    %cst_9 = arith.constant dense<0.000000e+00> : vector<256x128xf32>
    %15 = tpu.matmul %13, %14, %cst_9 {dimension_numbers = #tpu.dot_dimension_numbers<[1], [0], [0], [1], [0, 0, 1, 1], [], []>} : vector<256x32xbf16>, vector<32x128xbf16>, vector<256x128xf32> -> vector<256x128xf32>
    %c0_10 = arith.constant 0 : index
    %c0_11 = arith.constant 0 : index
    %16 = vector.load %arg5[%c0_10, %c0_11] : memref<1x128xf32, #tpu.memory_space<vmem>>, vector<1x128xf32>
    %17 = vector.broadcast %16 : vector<1x128xf32> to vector<256x128xf32>
    %18 = arith.addf %15, %17 : vector<256x128xf32>
    %19 = arith.negf %18 : vector<256x128xf32>
    %20 = math.exp %19 : vector<256x128xf32>
    %cst_12 = arith.constant 1.000000e+00 : f32
    %21 = vector.broadcast %cst_12 : f32 to vector<256x128xf32>
    %22 = arith.addf %21, %20 : vector<256x128xf32>
    %23 = arith.divf %21, %22 : vector<256x128xf32>
    %24 = arith.mulf %18, %23 : vector<256x128xf32>
    %cst_13 = arith.constant 0.000000e+00 : f32
    %25 = vector.broadcast %cst_13 : f32 to vector<18x32x128xf32>
    %c0_14 = arith.constant 0 : index
    %c0_15 = arith.constant 0 : index
    %c0_16 = arith.constant 0 : index
    %26 = vector.load %arg19[%c0_14, %c0_15, %c0_16] : memref<18x32x128xf32, #tpu.memory_space<vmem>>, vector<18x32x128xf32>
    tpu.vector_store %arg19[%c0_14, %c0_15, %c0_16], %25 {strides = array<i32>} : memref<18x32x128xf32, #tpu.memory_space<vmem>>, vector<18x32x128xf32>,
    %27 = vector.shape_cast %24 : vector<256x128xf32> to vector<16x16x128xf32>
    %c1 = arith.constant 1 : index
    %c8 = arith.constant 8 : index
    %c0_17 = arith.constant 0 : index
    %28 = vector.load %arg19[%c1, %c8, %c0_17] : memref<18x32x128xf32, #tpu.memory_space<vmem>>, vector<16x16x128xf32>
    tpu.vector_store %arg19[%c1, %c8, %c0_17], %27 {strides = array<i32>} : memref<18x32x128xf32, #tpu.memory_space<vmem>>, vector<16x16x128xf32>,
    %c0_18 = arith.constant 0 : index
    %c7 = arith.constant 7 : index
    %c0_19 = arith.constant 0 : index
    %29 = vector.load %arg19[%c0_18, %c7, %c0_19] : memref<18x32x128xf32, #tpu.memory_space<vmem>>, vector<16x16x128xf32>
    %c0_20 = arith.constant 0 : index
    %c0_21 = arith.constant 0 : index
    %30 = vector.load %arg6[%c0_20, %c0_21] : memref<9x128xf32, #tpu.memory_space<vmem>>, vector<1x128xf32>
    %31 = vector.shape_cast %30 : vector<1x128xf32> to vector<1x1x128xf32>
    %32 = vector.broadcast %31 : vector<1x1x128xf32> to vector<16x16x128xf32>
    %33 = arith.mulf %29, %32 : vector<16x16x128xf32>
    %c0_22 = arith.constant 0 : index
    %c8_23 = arith.constant 8 : index
    %c0_24 = arith.constant 0 : index
    %34 = vector.load %arg19[%c0_22, %c8_23, %c0_24] : memref<18x32x128xf32, #tpu.memory_space<vmem>>, vector<16x16x128xf32>
    %c1_25 = arith.constant 1 : index
    %c0_26 = arith.constant 0 : index
    %35 = vector.load %arg6[%c1_25, %c0_26] : memref<9x128xf32, #tpu.memory_space<vmem>>, vector<1x128xf32>
    %36 = vector.shape_cast %35 : vector<1x128xf32> to vector<1x1x128xf32>
    %37 = vector.broadcast %36 : vector<1x1x128xf32> to vector<16x16x128xf32>
    %38 = arith.mulf %34, %37 : vector<16x16x128xf32>
    %39 = arith.addf %33, %38 : vector<16x16x128xf32>
    %c0_27 = arith.constant 0 : index
    %c9 = arith.constant 9 : index
    %c0_28 = arith.constant 0 : index
    %40 = vector.load %arg19[%c0_27, %c9, %c0_28] : memref<18x32x128xf32, #tpu.memory_space<vmem>>, vector<16x16x128xf32>
    %c2 = arith.constant 2 : index
    %c0_29 = arith.constant 0 : index
    %41 = vector.load %arg6[%c2, %c0_29] : memref<9x128xf32, #tpu.memory_space<vmem>>, vector<1x128xf32>
    %42 = vector.shape_cast %41 : vector<1x128xf32> to vector<1x1x128xf32>
    %43 = vector.broadcast %42 : vector<1x1x128xf32> to vector<16x16x128xf32>
    %44 = arith.mulf %40, %43 : vector<16x16x128xf32>
    %45 = arith.addf %39, %44 : vector<16x16x128xf32>
    %c1_30 = arith.constant 1 : index
    %c7_31 = arith.constant 7 : index
    %c0_32 = arith.constant 0 : index
    %46 = vector.load %arg19[%c1_30, %c7_31, %c0_32] : memref<18x32x128xf32, #tpu.memory_space<vmem>>, vector<16x16x128xf32>
    %c3 = arith.constant 3 : index
    %c0_33 = arith.constant 0 : index
    %47 = vector.load %arg6[%c3, %c0_33] : memref<9x128xf32, #tpu.memory_space<vmem>>, vector<1x128xf32>
    %48 = vector.shape_cast %47 : vector<1x128xf32> to vector<1x1x128xf32>
    %49 = vector.broadcast %48 : vector<1x1x128xf32> to vector<16x16x128xf32>
    %50 = arith.mulf %46, %49 : vector<16x16x128xf32>
    %51 = arith.addf %45, %50 : vector<16x16x128xf32>
    %c1_34 = arith.constant 1 : index
    %c8_35 = arith.constant 8 : index
    %c0_36 = arith.constant 0 : index
    %52 = vector.load %arg19[%c1_34, %c8_35, %c0_36] : memref<18x32x128xf32, #tpu.memory_space<vmem>>, vector<16x16x128xf32>
    %c4 = arith.constant 4 : index
    %c0_37 = arith.constant 0 : index
    %53 = vector.load %arg6[%c4, %c0_37] : memref<9x128xf32, #tpu.memory_space<vmem>>, vector<1x128xf32>
    %54 = vector.shape_cast %53 : vector<1x128xf32> to vector<1x1x128xf32>
    %55 = vector.broadcast %54 : vector<1x1x128xf32> to vector<16x16x128xf32>
    %56 = arith.mulf %52, %55 : vector<16x16x128xf32>
    %57 = arith.addf %51, %56 : vector<16x16x128xf32>
    %c1_38 = arith.constant 1 : index
    %c9_39 = arith.constant 9 : index
    %c0_40 = arith.constant 0 : index
    %58 = vector.load %arg19[%c1_38, %c9_39, %c0_40] : memref<18x32x128xf32, #tpu.memory_space<vmem>>, vector<16x16x128xf32>
    %c5 = arith.constant 5 : index
    %c0_41 = arith.constant 0 : index
    %59 = vector.load %arg6[%c5, %c0_41] : memref<9x128xf32, #tpu.memory_space<vmem>>, vector<1x128xf32>
    %60 = vector.shape_cast %59 : vector<1x128xf32> to vector<1x1x128xf32>
    %61 = vector.broadcast %60 : vector<1x1x128xf32> to vector<16x16x128xf32>
    %62 = arith.mulf %58, %61 : vector<16x16x128xf32>
    %63 = arith.addf %57, %62 : vector<16x16x128xf32>
    %c2_42 = arith.constant 2 : index
    %c7_43 = arith.constant 7 : index
    %c0_44 = arith.constant 0 : index
    %64 = vector.load %arg19[%c2_42, %c7_43, %c0_44] : memref<18x32x128xf32, #tpu.memory_space<vmem>>, vector<16x16x128xf32>
    %c6 = arith.constant 6 : index
    %c0_45 = arith.constant 0 : index
    %65 = vector.load %arg6[%c6, %c0_45] : memref<9x128xf32, #tpu.memory_space<vmem>>, vector<1x128xf32>
    %66 = vector.shape_cast %65 : vector<1x128xf32> to vector<1x1x128xf32>
    %67 = vector.broadcast %66 : vector<1x1x128xf32> to vector<16x16x128xf32>
    %68 = arith.mulf %64, %67 : vector<16x16x128xf32>
    %69 = arith.addf %63, %68 : vector<16x16x128xf32>
    %c2_46 = arith.constant 2 : index
    %c8_47 = arith.constant 8 : index
    %c0_48 = arith.constant 0 : index
    %70 = vector.load %arg19[%c2_46, %c8_47, %c0_48] : memref<18x32x128xf32, #tpu.memory_space<vmem>>, vector<16x16x128xf32>
    %c7_49 = arith.constant 7 : index
    %c0_50 = arith.constant 0 : index
    %71 = vector.load %arg6[%c7_49, %c0_50] : memref<9x128xf32, #tpu.memory_space<vmem>>, vector<1x128xf32>
    %72 = vector.shape_cast %71 : vector<1x128xf32> to vector<1x1x128xf32>
    %73 = vector.broadcast %72 : vector<1x1x128xf32> to vector<16x16x128xf32>
    %74 = arith.mulf %70, %73 : vector<16x16x128xf32>
    %75 = arith.addf %69, %74 : vector<16x16x128xf32>
    %c2_51 = arith.constant 2 : index
    %c9_52 = arith.constant 9 : index
    %c0_53 = arith.constant 0 : index
    %76 = vector.load %arg19[%c2_51, %c9_52, %c0_53] : memref<18x32x128xf32, #tpu.memory_space<vmem>>, vector<16x16x128xf32>
    %c8_54 = arith.constant 8 : index
    %c0_55 = arith.constant 0 : index
    %77 = vector.load %arg6[%c8_54, %c0_55] : memref<9x128xf32, #tpu.memory_space<vmem>>, vector<1x128xf32>
    %78 = vector.shape_cast %77 : vector<1x128xf32> to vector<1x1x128xf32>
    %79 = vector.broadcast %78 : vector<1x1x128xf32> to vector<16x16x128xf32>
    %80 = arith.mulf %76, %79 : vector<16x16x128xf32>
    %81 = arith.addf %75, %80 : vector<16x16x128xf32>
    %82 = vector.shape_cast %81 : vector<16x16x128xf32> to vector<256x128xf32>
    %c0_56 = arith.constant 0 : index
    %c0_57 = arith.constant 0 : index
    %83 = vector.load %arg7[%c0_56, %c0_57] : memref<1x128xf32, #tpu.memory_space<vmem>>, vector<1x128xf32>
    %84 = vector.broadcast %83 : vector<1x128xf32> to vector<256x128xf32>
    %85 = arith.addf %82, %84 : vector<256x128xf32>
    %86 = arith.negf %85 : vector<256x128xf32>
    %87 = math.exp %86 : vector<256x128xf32>
    %cst_58 = arith.constant 1.000000e+00 : f32
    %88 = vector.broadcast %cst_58 : f32 to vector<256x128xf32>
    %89 = arith.addf %88, %87 : vector<256x128xf32>
    %90 = arith.divf %88, %89 : vector<256x128xf32>
    %91 = arith.mulf %85, %90 : vector<256x128xf32>
    %cst_59 = arith.constant dense<0.000000e+00> : vector<128xf32>
    %92 = vector.multi_reduction <add>, %91, %cst_59 [0] : vector<256x128xf32> to vector<128xf32>
    %93 = vector.shape_cast %92 : vector<128xf32> to vector<1x128xf32>
    %cst_60 = arith.constant 2.560000e+02 : f32
    %94 = vector.broadcast %cst_60 : f32 to vector<1x128xf32>
    %95 = arith.divf %93, %94 : vector<1x128xf32>
    %c0_61 = arith.constant 0 : index
    %c0_62 = arith.constant 0 : index
    %96 = vector.load %arg8[%c0_61, %c0_62] : memref<128x8xf32, #tpu.memory_space<vmem>>, vector<128x8xf32>
    %cst_63 = arith.constant dense<0.000000e+00> : vector<1x8xf32>
    %97 = tpu.matmul %95, %96, %cst_63 {dimension_numbers = #tpu.dot_dimension_numbers<[1], [0], [0], [1], [0, 0, 1, 1], [], []>} : vector<1x128xf32>, vector<128x8xf32>, vector<1x8xf32> -> vector<1x8xf32>
    %c0_64 = arith.constant 0 : index
    %c0_65 = arith.constant 0 : index
    %98 = vector.load %arg9[%c0_64, %c0_65] : memref<1x8xf32, #tpu.memory_space<vmem>>, vector<1x8xf32>
    %99 = arith.addf %97, %98 : vector<1x8xf32>
    %100 = arith.negf %99 : vector<1x8xf32>
    %101 = math.exp %100 : vector<1x8xf32>
    %cst_66 = arith.constant 1.000000e+00 : f32
    %102 = vector.broadcast %cst_66 : f32 to vector<1x8xf32>
    %103 = arith.addf %102, %101 : vector<1x8xf32>
    %104 = arith.divf %102, %103 : vector<1x8xf32>
    %105 = arith.mulf %99, %104 : vector<1x8xf32>
    %c0_67 = arith.constant 0 : index
    %c0_68 = arith.constant 0 : index
    %106 = vector.load %arg10[%c0_67, %c0_68] : memref<8x128xf32, #tpu.memory_space<vmem>>, vector<8x128xf32>
    %cst_69 = arith.constant dense<0.000000e+00> : vector<1x128xf32>
    %107 = tpu.matmul %105, %106, %cst_69 {dimension_numbers = #tpu.dot_dimension_numbers<[1], [0], [0], [1], [0, 0, 1, 1], [], []>} : vector<1x8xf32>, vector<8x128xf32>, vector<1x128xf32> -> vector<1x128xf32>
    %c0_70 = arith.constant 0 : index
    %c0_71 = arith.constant 0 : index
    %108 = vector.load %arg11[%c0_70, %c0_71] : memref<1x128xf32, #tpu.memory_space<vmem>>, vector<1x128xf32>
    %109 = arith.addf %107, %108 : vector<1x128xf32>
    %110 = arith.negf %109 : vector<1x128xf32>
    %111 = math.exp %110 : vector<1x128xf32>
    %cst_72 = arith.constant 1.000000e+00 : f32
    %112 = vector.broadcast %cst_72 : f32 to vector<1x128xf32>
    %113 = arith.addf %112, %111 : vector<1x128xf32>
    %114 = arith.divf %112, %113 : vector<1x128xf32>
    %115 = vector.broadcast %114 : vector<1x128xf32> to vector<256x128xf32>
    %116 = arith.mulf %91, %115 : vector<256x128xf32>
    %117 = arith.truncf %116 : vector<256x128xf32> to vector<256x128xbf16>
    %c0_73 = arith.constant 0 : index
    %c0_74 = arith.constant 0 : index
    %118 = vector.load %arg12[%c0_73, %c0_74] : memref<128x32xbf16, #tpu.memory_space<vmem>>, vector<128x32xbf16>
    %cst_75 = arith.constant dense<0.000000e+00> : vector<256x32xf32>
    %119 = tpu.matmul %117, %118, %cst_75 {dimension_numbers = #tpu.dot_dimension_numbers<[1], [0], [0], [1], [0, 0, 1, 1], [], []>} : vector<256x128xbf16>, vector<128x32xbf16>, vector<256x32xf32> -> vector<256x32xf32>
    %c0_76 = arith.constant 0 : index
    %c0_77 = arith.constant 0 : index
    %120 = vector.load %arg13[%c0_76, %c0_77] : memref<1x32xf32, #tpu.memory_space<vmem>>, vector<1x32xf32>
    %121 = vector.broadcast %120 : vector<1x32xf32> to vector<256x32xf32>
    %122 = arith.addf %119, %121 : vector<256x32xf32>
    %123 = arith.addf %122, %12 : vector<256x32xf32>
    %124 = arith.truncf %123 : vector<256x32xf32> to vector<256x32xbf16>
    %c0_78 = arith.constant 0 : index
    %c0_79 = arith.constant 0 : index
    %125 = vector.load %arg14[%c0_78, %c0_79] : memref<32x64xbf16, #tpu.memory_space<vmem>>, vector<32x64xbf16>
    %cst_80 = arith.constant dense<0.000000e+00> : vector<256x64xf32>
    %126 = tpu.matmul %124, %125, %cst_80 {dimension_numbers = #tpu.dot_dimension_numbers<[1], [0], [0], [1], [0, 0, 1, 1], [], []>} : vector<256x32xbf16>, vector<32x64xbf16>, vector<256x64xf32> -> vector<256x64xf32>
    %c0_81 = arith.constant 0 : index
    %c0_82 = arith.constant 0 : index
    %127 = vector.load %arg15[%c0_81, %c0_82] : memref<1x64xf32, #tpu.memory_space<vmem>>, vector<1x64xf32>
    %128 = vector.broadcast %127 : vector<1x64xf32> to vector<256x64xf32>
    %129 = arith.addf %126, %128 : vector<256x64xf32>
    %130 = arith.negf %129 : vector<256x64xf32>
    %131 = math.exp %130 : vector<256x64xf32>
    %cst_83 = arith.constant 1.000000e+00 : f32
    %132 = vector.broadcast %cst_83 : f32 to vector<256x64xf32>
    %133 = arith.addf %132, %131 : vector<256x64xf32>
    %134 = arith.divf %132, %133 : vector<256x64xf32>
    %135 = arith.mulf %129, %134 : vector<256x64xf32>
    %cst_84 = arith.constant dense<0.000000e+00> : vector<64xf32>
    %136 = vector.multi_reduction <add>, %135, %cst_84 [0] : vector<256x64xf32> to vector<64xf32>
    %137 = vector.shape_cast %136 : vector<64xf32> to vector<1x64xf32>
    %cst_85 = arith.constant 2.560000e+02 : f32
    %138 = vector.broadcast %cst_85 : f32 to vector<1x64xf32>
    %139 = arith.divf %137, %138 : vector<1x64xf32>
    %c0_86 = arith.constant 0 : index
    %c0_87 = arith.constant 0 : index
    %140 = vector.load %arg16[%c0_86, %c0_87] : memref<64x18xf32, #tpu.memory_space<vmem>>, vector<64x18xf32>
    %cst_88 = arith.constant dense<0.000000e+00> : vector<1x18xf32>
    %141 = tpu.matmul %139, %140, %cst_88 {dimension_numbers = #tpu.dot_dimension_numbers<[1], [0], [0], [1], [0, 0, 1, 1], [], []>} : vector<1x64xf32>, vector<64x18xf32>, vector<1x18xf32> -> vector<1x18xf32>
    %c0_89 = arith.constant 0 : index
    %c0_90 = arith.constant 0 : index
    %142 = vector.load %arg17[%c0_89, %c0_90] : memref<1x18xf32, #tpu.memory_space<vmem>>, vector<1x18xf32>
    %143 = arith.addf %141, %142 : vector<1x18xf32>
    %cst_91 = arith.constant dense<0xFF800000> : vector<1xf32>
    %144 = vector.multi_reduction <maximumf>, %143, %cst_91 [1] : vector<1x18xf32> to vector<1xf32>
    %145 = vector.shape_cast %144 : vector<1xf32> to vector<1x1xf32>
    %146 = vector.broadcast %145 : vector<1x1xf32> to vector<1x18xf32>
    %147 = arith.subf %143, %146 : vector<1x18xf32>
    %148 = math.exp %147 : vector<1x18xf32>
    %cst_92 = arith.constant dense<0.000000e+00> : vector<1xf32>
    %149 = vector.multi_reduction <add>, %148, %cst_92 [1] : vector<1x18xf32> to vector<1xf32>
    %150 = vector.shape_cast %149 : vector<1xf32> to vector<1x1xf32>
    %151 = vector.broadcast %150 : vector<1x1xf32> to vector<1x18xf32>
    %152 = arith.divf %148, %151 : vector<1x18xf32>
    %153 = vector.shape_cast %152 : vector<1x18xf32> to vector<1x1x18xf32>
    %c0_93 = arith.constant 0 : index
    %c0_94 = arith.constant 0 : index
    %c0_95 = arith.constant 0 : index
    %154 = vector.load %arg18[%c0_93, %c0_94, %c0_95] : memref<1x1x18xf32, #tpu.memory_space<vmem>>, vector<1x1x18xf32>
    tpu.vector_store %arg18[%c0_93, %c0_94, %c0_95], %153 {strides = array<i32>} : memref<1x1x18xf32, #tpu.memory_space<vmem>>, vector<1x1x18xf32>,
    return
  }
  func.func @transform_0(%arg0: i32) -> (i32, i32, i32) {
    %c0_i32 = arith.constant 0 : i32
    %c0_i32_0 = arith.constant 0 : i32
    %c0_i32_1 = arith.constant 0 : i32
    return %arg0, %c0_i32, %c0_i32_0 : i32, i32, i32
  }
  func.func @transform_1(%arg0: i32) -> (i32, i32) {
    %c0_i32 = arith.constant 0 : i32
    %c0_i32_0 = arith.constant 0 : i32
    %c0_i32_1 = arith.constant 0 : i32
    return %c0_i32, %c0_i32_0 : i32, i32
  }
  func.func @transform_2(%arg0: i32) -> (i32, i32) {
    %c0_i32 = arith.constant 0 : i32
    %c0_i32_0 = arith.constant 0 : i32
    %c0_i32_1 = arith.constant 0 : i32
    return %c0_i32, %c0_i32_0 : i32, i32
  }
  func.func @transform_3(%arg0: i32) -> (i32, i32) {
    %c0_i32 = arith.constant 0 : i32
    %c0_i32_0 = arith.constant 0 : i32
    %c0_i32_1 = arith.constant 0 : i32
    return %c0_i32, %c0_i32_0 : i32, i32
  }
  func.func @transform_4(%arg0: i32) -> (i32, i32) {
    %c0_i32 = arith.constant 0 : i32
    %c0_i32_0 = arith.constant 0 : i32
    %c0_i32_1 = arith.constant 0 : i32
    return %c0_i32, %c0_i32_0 : i32, i32
  }
  func.func @transform_5(%arg0: i32) -> (i32, i32) {
    %c0_i32 = arith.constant 0 : i32
    %c0_i32_0 = arith.constant 0 : i32
    %c0_i32_1 = arith.constant 0 : i32
    return %c0_i32, %c0_i32_0 : i32, i32
  }
  func.func @transform_6(%arg0: i32) -> (i32, i32) {
    %c0_i32 = arith.constant 0 : i32
    %c0_i32_0 = arith.constant 0 : i32
    %c0_i32_1 = arith.constant 0 : i32
    return %c0_i32, %c0_i32_0 : i32, i32
  }
  func.func @transform_7(%arg0: i32) -> (i32, i32) {
    %c0_i32 = arith.constant 0 : i32
    %c0_i32_0 = arith.constant 0 : i32
    %c0_i32_1 = arith.constant 0 : i32
    return %c0_i32, %c0_i32_0 : i32, i32
  }
  func.func @transform_8(%arg0: i32) -> (i32, i32) {
    %c0_i32 = arith.constant 0 : i32
    %c0_i32_0 = arith.constant 0 : i32
    %c0_i32_1 = arith.constant 0 : i32
    return %c0_i32, %c0_i32_0 : i32, i32
  }
  func.func @transform_9(%arg0: i32) -> (i32, i32) {
    %c0_i32 = arith.constant 0 : i32
    %c0_i32_0 = arith.constant 0 : i32
    %c0_i32_1 = arith.constant 0 : i32
    return %c0_i32, %c0_i32_0 : i32, i32
  }
  func.func @transform_10(%arg0: i32) -> (i32, i32) {
    %c0_i32 = arith.constant 0 : i32
    %c0_i32_0 = arith.constant 0 : i32
    %c0_i32_1 = arith.constant 0 : i32
    return %c0_i32, %c0_i32_0 : i32, i32
  }
  func.func @transform_11(%arg0: i32) -> (i32, i32) {
    %c0_i32 = arith.constant 0 : i32
    %c0_i32_0 = arith.constant 0 : i32
    %c0_i32_1 = arith.constant 0 : i32
    return %c0_i32, %c0_i32_0 : i32, i32
  }
  func.func @transform_12(%arg0: i32) -> (i32, i32) {
    %c0_i32 = arith.constant 0 : i32
    %c0_i32_0 = arith.constant 0 : i32
    %c0_i32_1 = arith.constant 0 : i32
    return %c0_i32, %c0_i32_0 : i32, i32
  }
  func.func @transform_13(%arg0: i32) -> (i32, i32) {
    %c0_i32 = arith.constant 0 : i32
    %c0_i32_0 = arith.constant 0 : i32
    %c0_i32_1 = arith.constant 0 : i32
    return %c0_i32, %c0_i32_0 : i32, i32
  }
  func.func @transform_14(%arg0: i32) -> (i32, i32) {
    %c0_i32 = arith.constant 0 : i32
    %c0_i32_0 = arith.constant 0 : i32
    %c0_i32_1 = arith.constant 0 : i32
    return %c0_i32, %c0_i32_0 : i32, i32
  }
  func.func @transform_15(%arg0: i32) -> (i32, i32) {
    %c0_i32 = arith.constant 0 : i32
    %c0_i32_0 = arith.constant 0 : i32
    %c0_i32_1 = arith.constant 0 : i32
    return %c0_i32, %c0_i32_0 : i32, i32
  }
  func.func @transform_16(%arg0: i32) -> (i32, i32) {
    %c0_i32 = arith.constant 0 : i32
    %c0_i32_0 = arith.constant 0 : i32
    %c0_i32_1 = arith.constant 0 : i32
    return %c0_i32, %c0_i32_0 : i32, i32
  }
  func.func @transform_17(%arg0: i32) -> (i32, i32, i32) {
    %c0_i32 = arith.constant 0 : i32
    %c0_i32_0 = arith.constant 0 : i32
    %c0_i32_1 = arith.constant 0 : i32
    return %arg0, %c0_i32, %c0_i32_0 : i32, i32, i32
  }
}

</mosaic_0001>

<bundles_post_ra>
// kernel: _lambda_.1
= control target key start
LH: loop header
LB: loop body
LE: loop exit
PB: predicated region body
PF: predicated region fallthrough
CT: control target
= control target key end

     0   :  { %s10923_s0 = inlined_call_operand.vmem [shape: bf16[2,256,32], index: 0, kind: input, shape index: {}]   ;;  %s10924_s1 = inlined_call_operand.vmem [shape: bf16[32,32], index: 1, kind: input, shape index: {}]   ;;  %s10925_s2 = inlined_call_operand.vmem [shape: f32[1,32], index: 2, kind: input, shape index: {}]   ;;  %s10926_s3 = inlined_call_operand.vmem [shape: bf16[32,128], index: 3, kind: input, shape index: {}]   ;;  %s10927_s4 = inlined_call_operand.vmem [shape: f32[1,128], index: 4, kind: input, shape index: {}]   ;;  %s10928_s5 = inlined_call_operand.vmem [shape: f32[9,128], index: 5, kind: input, shape index: {}]   ;;  %s10929_s6 = inlined_call_operand.vmem [shape: f32[1,128], index: 6, kind: input, shape index: {}]   ;;  %s10930_s7 = inlined_call_operand.vmem [shape: f32[128,8], index: 7, kind: input, shape index: {}]   ;;  %s10931_s8 = inlined_call_operand.vmem [shape: f32[1,8], index: 8, kind: input, shape index: {}]   ;;  %s10932_s9 = inlined_call_operand.vmem [shape: f32[8,128], index: 9, kind: input, shape index: {}]   ;;  %s10933_s10 = inlined_call_operand.vmem [shape: f32[1,128], index: 10, kind: input, shape index: {}]   ;;  %s10934_s11 = inlined_call_operand.vmem [shape: bf16[128,32], index: 11, kind: input, shape index: {}]   ;;  %s10935_s12 = inlined_call_operand.vmem [shape: f32[1,32], index: 12, kind: input, shape index: {}]   ;;  %s10936_s13 = inlined_call_operand.vmem [shape: bf16[32,64], index: 13, kind: input, shape index: {}]   ;;  %s10937_s14 = inlined_call_operand.vmem [shape: f32[1,64], index: 14, kind: input, shape index: {}]   ;;  %s10938_s15 = inlined_call_operand.vmem [shape: f32[64,18], index: 15, kind: input, shape index: {}]   ;;  %s10939_s16 = inlined_call_operand.vmem [shape: f32[1,18], index: 16, kind: input, shape index: {}]   ;;  %s10940_s17 = inlined_call_operand.hbm [shape: f32[2,1,18], index: 17, kind: output, shape index: {}]  }
   0x1   :  { %10999 = sst [smem:[#allocation63_spill]] %s10923_s0 }
   0x2   :  { %11000 = sst [smem:[#allocation64_spill]] %s10924_s1 }
   0x3   :  { %11001 = sst [smem:[#allocation65_spill]] %s10925_s2 }
   0x4   :  { %11002 = sst [smem:[#allocation66_spill]] %s10926_s3 }
   0x5   :  { %22 = vsyncpa [#allocation4], 0 }
   0x6   :  { %24 = vsyncpa [#allocation4 + $0x1], 0  ;;  %s6410_s24 = smov 0   ;;  %s6412_s25 = smov 0  }
   0x7   :  { %s6414_s26 = smov 0   ;;  %s6416_s27 = smov 0  }
   0x8 LB: > { %11003 = sst [smem:[#allocation6_spill]] %s6304_s24  ;;  %s6431_s28 = sadd.s32 4294967295, %s6316_s27   ;;  %s6316_s27 = sphi %s6416_s27, %s11324_s27   ;;  %s6312_s26 = sphi %s6414_s26, %s11326_s26   ;;  %s6308_s25 = sphi %s6412_s25, %s11328_s25   ;;  %s6304_s24 = sphi %s6410_s24, %s11327_s24  }
   0x9   : > { %11004 = sst [smem:[#allocation7_spill]] %s6312_s26  ;;  %s5297_s29 = sadd.s32 4294967294, %s6316_s27  }
   0xa   : > { %s6435_s0 = sadd.s32 1, %s6316_s27   ;;  %s399_s30 = sadd.s32 1, %s6312_s26 }
   0xb   : > { %11005 = sst [smem:[#allocation8_spill]] %s6435_s0  ;;  %s396_s18 = ssub.s32 %s6316_s27, %s6435_s0 }
   0xc   : > { %p409_p0 = scmp.ne.s32.totalorder %s6312_s26, %s6308_s25  ;;  %p397_p1 = scmp.eq.s32.totalorder %s396_s18, 0 }
   0xd   : > { %p410_p2 = scmp.eq.s32.totalorder %s6431_s28, 1  ;;  %p415_p3 = scmp.ne.s32.totalorder %s6308_s25, %s6304_s24 }
   0xe   : > { %p416_p4 = scmp.eq.s32.totalorder %s5297_s29, 1  ;;  %p5300_p7 = scmp.ge.s32.totalorder %s6316_s27, 1 }
   0xf   : > { %s6446_s19 = scalar_select %p397_p1, %s6312_s26, %s399_s30  }
  0x10   : > { %p6448_p5 = por %p410_p2, %p409_p0  ;;  %p6452_p6 = por %p416_p4, %p415_p3 }
  0x11   : > { %11006 = sst [smem:[#allocation9_spill]] %s6446_s19  ;;  %p490_p8 = scmp.lt.s32.totalorder %s6316_s27, 3 }
  0x12   : > { %s11008_s20 = scalar_select %p6452_p6, 1, 0 }
  0x13   : > { %p491_p9 = pnand %p5300_p7, %p490_p8 }
  0x14   : > { %11009 = sst [smem:[#allocation10_spill]] %s11008_s20 }
  0x15   : > { %494 = sbr.rel (%p491_p9) target bundleno = 2160 (0x870), region = 88 }
  0x1a   : > { %s11010_s23 = sld [smem:[#allocation64_spill]]  ;;  %p541_p10 = scmp.lt.s32.totalorder %s6431_s28, 1  ;;  %vm679_vm0 = vcmask 261120  }
  0x1b   : > { %s11011_s20 = sld [smem:[#allocation63_spill]]  ;;  %s539_s26 = sand.u32 1, %s6308_s25  }
  0x1c   : > { %s542_s18 = scalar_select %p541_p10, %s6431_s28, 1 }
  0x1d   : > { %s11012_s2 = sld [smem:[#allocation65_spill]]  ;;  %s540_s21 = scalar_lea.vmem [#allocation3], %s539_s26 }
  0x1e   : > { %s5605_s19 = sshll.u32 %s542_s18, 7  ;;  %s11013_s3 = sld [smem:[#allocation66_spill]] }
  0x1f   : > { %s5240_s22 = sshll.u32 %s540_s21, 4  ;;  %s5230_s29 = scalar_lea.sflag [#allocation4], %s539_s26  ;;  %s5241_s22 = int_to_ptr.vmem [resolvable:$true] %s5240_s22 }
  0x20   : > { %v5623_v0 = vld [vmem:[%s11010_s23 + $0x8] sm:$0xff]  ;;  %v5622_v1 = vld [vmem:[%s11010_s23] sm:$0xff] }
  0x21   : > { %734 = vmatpush.bf16.msra.mxu0 %v5623_v0  ;;  %s6469_s24 = scalar_lea.vmem %s11011_s20, %s5605_s19  ;;  %s5238_s20 = scalar_lea.hbm %s10940_s17, %s6431_s28 }
  0x22   : > { %v5606_v2 = vld [vmem:[%s6469_s24] sm:$0xff]  ;;  %v5607_v3 = vld [vmem:[%s6469_s24 + $0x8] sm:$0xff]  ;;  %v5608_v4 = vld [vmem:[%s6469_s24 + $0x10] sm:$0xff]  ;;  %s6274_s19 = scalar_lea.hbm %s10940_s17, 2 }
  0x23   : > { %v5609_v5 = vld [vmem:[%s6469_s24 + $0x18] sm:$0xff]  ;;  %v5610_v6 = vld [vmem:[%s6469_s24 + $0x20] sm:$0xff]  ;;  %v5611_v7 = vld [vmem:[%s6469_s24 + $0x28] sm:$0xff] }
  0x24   : > { %v5612_v8 = vld [vmem:[%s6469_s24 + $0x30] sm:$0xff]  ;;  %v5613_v9 = vld [vmem:[%s6469_s24 + $0x38] sm:$0xff]  ;;  %v6490_v10 = vld [vmem:[%s11012_s2] ss:$0 sm:$0xff] }
  0x25   : > { %735 = vmatpush.bf16.msra.mxu0 %v5622_v1  ;;  %v5614_v11 = vld [vmem:[%s6469_s24 + $0x40] sm:$0xff]  ;;  %v5625_v15 = vld [vmem:[%s11013_s3 + $0x8] sm:$0xff]  ;;  %v5616_v43 = vld [vmem:[%s6469_s24 + $0x50] sm:$0xff] }
  0x26   : > { %1547 = vmatpush.bf16.msra.mxu1 %v5625_v15  ;;  %v5624_v16 = vld [vmem:[%s11013_s3] sm:$0xff]  ;;  %v5615_v22 = vld [vmem:[%s6469_s24 + $0x48] sm:$0xff]  ;;  %v5617_v15 = vld [vmem:[%s6469_s24 + $0x58] sm:$0xff] }
  0x28   : > { %5375 = vmatmul.msk.bf16.vlgmr.msra.gmra.mxu0 %vm679_vm0, %v5606_v2 }
  0x2a   : > { %1548 = vmatpush.bf16.msra.mxu1 %v5624_v16 }
  0x38   : > { %5376 = vmatmul.msk.bf16.gmra.mxu0 %vm679_vm0, %v5607_v3 }
  0x48   : > { %5377 = vmatmul.msk.bf16.gmra.mxu0 %vm679_vm0, %v5608_v4 }
  0x58   : > { %5378 = vmatmul.msk.bf16.gmra.mxu0 %vm679_vm0, %v5609_v5 }
  0x68   : > { %5379 = vmatmul.msk.bf16.gmra.mxu0 %vm679_vm0, %v5610_v6 }
  0x78   : > { %5380 = vmatmul.msk.bf16.gmra.mxu0 %vm679_vm0, %v5611_v7 }
  0x88   : > { %5381 = vmatmul.msk.bf16.gmra.mxu0 %vm679_vm0, %v5612_v8 }
  0x98   : > { %5382 = vmatmul.msk.bf16.gmra.mxu0 %vm679_vm0, %v5613_v9 }
  0xa5   : > { %v737_v12 = vpop.f32.mrf.mxu0 }
  0xa6   : > { %v6494_v13 = vadd.f32 %v6490_v10, %v737_v12 }
  0xa8   : > { %v5391_v14 = vmul.f32 -1.442695, %v6494_v13  ;;  %5383 = vmatmul.msk.bf16.gmra.mxu0 %vm679_vm0, %v5614_v11 }
  0xaa   : > { %5691 = vpow2.f32 %v5391_v14 }
  0xad   : > { %v739_v17 = vpop.f32.mrf.mxu0 }
  0xae   : > { %v6505_v18 = vadd.f32 %v6490_v10, %v739_v17 }
  0xb0   : > { %v5692_v19 = vpop.eup %5691  ;;  %v5392_v20 = vmul.f32 -1.442695, %v6505_v18 }
  0xb1   : > { %v913_v21 = vadd.f32 1.0, %v5692_v19 }
  0xb2   : > { %5693 = vpow2.f32 %v5392_v20 }
  0xb3   : > { %5695 = vrcp.f32 %v913_v21  ;;  %v956_v40 = vand.u32 2147483648, %v913_v21  ;;  %vm950_vm2 = vweird.f32 %v913_v21  ;;  %v954_v41 = vand.u32 2147483647, %v913_v21 }
  0xb5   : > { %v742_v23 = vpop.f32.mrf.mxu0  ;;  %v957_v51 = vor.u32 1.1754944e-38, %v956_v40  ;;  %vm955_vm5 = vcmp.eq.f32.partialorder %v954_v41, 8.507059e+37 }
  0xb6   : > { %v6510_v24 = vadd.f32 %v6490_v10, %v742_v23 }
  0xb8   : > { %v5694_v25 = vpop.eup %5693  ;;  %v5393_v26 = vmul.f32 -1.442695, %v6510_v24  ;;  %5384 = vmatmul.msk.bf16.gmra.mxu0 %vm679_vm0, %v5615_v22 }
  0xb9   : > { %v5696_v27 = vpop.eup %5695  ;;  %v914_v28 = vadd.f32 1.0, %v5694_v25 }
  0xba   : > { %v946_v29 = vmul.f32 %v5696_v27, %v913_v21  ;;  %5697 = vpow2.f32 %v5393_v26  ;;  %vm951_vm1 = vweird.f32 %v5696_v27 }
  0xbb   : > { %5699 = vrcp.f32 %v914_v28  ;;  %vm6522_vm3 = vmor %vm950_vm2, %vm951_vm1  ;;  %v969_v45 = vand.u32 2147483647, %v914_v28  ;;  %v971_v46 = vand.u32 2147483648, %v914_v28  ;;  %vm965_vm6 = vweird.f32 %v914_v28 }
  0xbc   : > { %v947_v30 = vsub.f32 1.0, %v946_v29 }
  0xbd   : > { %v744_v31 = vpop.f32.mrf.mxu0  ;;  %v972_v57 = vor.u32 1.1754944e-38, %v971_v46  ;;  %vm970_vm8 = vcmp.eq.f32.partialorder %v969_v45, 8.507059e+37 }
  0xbe   : > { %v948_v32 = vmul.f32 %v5696_v27, %v947_v30  ;;  %v6515_v33 = vadd.f32 %v6490_v10, %v744_v31 }
  0xc0   : > { %v5698_v34 = vpop.eup %5697  ;;  %v5394_v35 = vmul.f32 -1.442695, %v6515_v33  ;;  %v949_v38 = vadd.f32 %v5696_v27, %v948_v32 }
  0xc1   : > { %v5700_v36 = vpop.eup %5699  ;;  %v6518_v37 = vadd.f32 1.0, %v5698_v34 }
  0xc2   : > { %v961_v39 = vmul.f32 %v5700_v36, %v914_v28  ;;  %5701 = vpow2.f32 %v5394_v35  ;;  %v953_v48 = vsel %vm6522_vm3, %v5696_v27, %v949_v38  ;;  %vm966_vm4 = vweird.f32 %v5700_v36 }
  0xc3   : > { %5703 = vrcp.f32 %v6518_v37  ;;  %v958_v56 = vsel %vm955_vm5, %v957_v51, %v953_v48  ;;  %vm967_vm7 = vmor %vm965_vm6, %vm966_vm4  ;;  %v986_v12 = vand.u32 2147483648, %v6518_v37  ;;  %vm980_vm10 = vweird.f32 %v6518_v37  ;;  %v5618_v51 = vld [vmem:[%s6469_s24 + $0x60] sm:$0xff] }
  0xc4   : > { %v962_v42 = vsub.f32 1.0, %v961_v39  ;;  %v6535_v62 = vmul.f32 %v958_v56, %v6494_v13  ;;  %v984_v13 = vand.u32 2147483647, %v6518_v37 }
  0xc5   : > { %v747_v47 = vpop.f32.mrf.mxu0  ;;  %v987_v23 = vor.u32 1.1754944e-38, %v986_v12 }
  0xc6   : > { %v963_v49 = vmul.f32 %v5700_v36, %v962_v42  ;;  %v6529_v50 = vadd.f32 %v6490_v10, %v747_v47  ;;  %11016 = vst [vmem:[#allocation11_spill] sm:$0xff] %v6535_v62  ;;  %vm985_vm13 = vcmp.eq.f32.partialorder %v984_v13, 8.507059e+37 }
  0xc8   : > { %v5702_v52 = vpop.eup %5701  ;;  %v964_v53 = vadd.f32 %v5700_v36, %v963_v49  ;;  %v5395_v54 = vmul.f32 -1.442695, %v6529_v50  ;;  %5385 = vmatmul.msk.bf16.gmra.mxu0 %vm679_vm0, %v5616_v43 }
  0xc9   : > { %v5704_v55 = vpop.eup %5703  ;;  %v916_v58 = vadd.f32 1.0, %v5702_v52 }
  0xca   : > { %v968_v59 = vsel %vm967_vm7, %v5700_v36, %v964_v53  ;;  %v976_v60 = vmul.f32 %v5704_v55, %v6518_v37  ;;  %5705 = vpow2.f32 %v5395_v54  ;;  %vm981_vm9 = vweird.f32 %v5704_v55 }
  0xcb   : > { %v973_v61 = vsel %vm970_vm8, %v972_v57, %v968_v59  ;;  %5707 = vrcp.f32 %v916_v58  ;;  %vm6554_vm11 = vmor %vm980_vm10, %vm981_vm9  ;;  %v999_v17 = vand.u32 2147483647, %v916_v58  ;;  %vm995_vm14 = vweird.f32 %v916_v58 }
  0xcc   : > { %v6538_v63 = vmul.f32 %v973_v61, %v6505_v18  ;;  %v977_v0 = vsub.f32 1.0, %v976_v60  ;;  %v1001_v18 = vand.u32 2147483648, %v916_v58 }
  0xcd   : > { %v749_v1 = vpop.f32.mrf.mxu0  ;;  %vm1000_vm1 = vcmp.eq.f32.partialorder %v999_v17, 8.507059e+37 }
  0xce   : > { %11017 = vst [vmem:[#allocation12_spill] sm:$0xff] %v6538_v63  ;;  %v978_v2 = vmul.f32 %v5704_v55, %v977_v0  ;;  %v6541_v3 = vadd.f32 %v6490_v10, %v749_v1  ;;  %v1457_v4 = vpack.c.bf16 %v6538_v63, %v6535_v62  ;;  %v1002_v30 = vor.u32 1.1754944e-38, %v1001_v18 }
  0xd0   : > { %v5706_v5 = vpop.eup %5705  ;;  %v5396_v6 = vmul.f32 -1.442695, %v6541_v3  ;;  %5431 = vmatmul.msk.bf16.vlgmr.msra.gmra.mxu1 %vm679_vm0, %v1457_v4  ;;  %v979_v9 = vadd.f32 %v5704_v55, %v978_v2 }
  0xd1   : > { %v5708_v7 = vpop.eup %5707  ;;  %v6547_v8 = vadd.f32 1.0, %v5706_v5 }
  0xd2   : > { %v991_v11 = vmul.f32 %v5708_v7, %v916_v58  ;;  %5709 = vpow2.f32 %v5396_v6  ;;  %v983_v20 = vsel %vm6554_vm11, %v5704_v55, %v979_v9  ;;  %vm996_vm12 = vweird.f32 %v5708_v7 }
  0xd3   : > { %5711 = vrcp.f32 %v6547_v8  ;;  %v988_v29 = vsel %vm985_vm13, %v987_v23, %v983_v20  ;;  %vm997_vm15 = vmor %vm995_vm14, %vm996_vm12  ;;  %v1016_v47 = vand.u32 2147483648, %v6547_v8  ;;  %vm1010_vm3 = vweird.f32 %v6547_v8 }
  0xd4   : > { %v992_v14 = vsub.f32 1.0, %v991_v11  ;;  %v6567_v36 = vmul.f32 %v988_v29, %v6510_v24  ;;  %v1014_v48 = vand.u32 2147483647, %v6547_v8 }
  0xd5   : > { %v752_v19 = vpop.f32.mrf.mxu0  ;;  %v1017_v59 = vor.u32 1.1754944e-38, %v1016_v47 }
  0xd6   : > { %v993_v21 = vmul.f32 %v5708_v7, %v992_v14  ;;  %v6561_v22 = vadd.f32 %v6490_v10, %v752_v19  ;;  %11020 = vst [vmem:[#allocation13_spill] sm:$0xff] %v6567_v36  ;;  %vm1015_vm6 = vcmp.eq.f32.partialorder %v1014_v48, 8.507059e+37 }
  0xd8   : > { %v5710_v25 = vpop.eup %5709  ;;  %v994_v26 = vadd.f32 %v5708_v7, %v993_v21  ;;  %v5397_v27 = vmul.f32 -1.442695, %v6561_v22  ;;  %5386 = vmatmul.msk.bf16.gmra.mxu0 %vm679_vm0, %v5617_v15 }
  0xd9   : > { %v5712_v28 = vpop.eup %5711  ;;  %v918_v31 = vadd.f32 1.0, %v5710_v25 }
  0xda   : > { %v998_v32 = vsel %vm997_vm15, %v5708_v7, %v994_v26  ;;  %v1006_v34 = vmul.f32 %v5712_v28, %v6547_v8  ;;  %5713 = vpow2.f32 %v5397_v27  ;;  %vm1011_vm2 = vweird.f32 %v5712_v28  ;;  %v5619_v26 = vld [vmem:[%s6469_s24 + $0x68] sm:$0xff] }
  0xdb   : > { %v1003_v35 = vsel %vm1000_vm1, %v1002_v30, %v998_v32  ;;  %5715 = vrcp.f32 %v918_v31  ;;  %vm6586_vm4 = vmor %vm1010_vm3, %vm1011_vm2  ;;  %v1029_v53 = vand.u32 2147483647, %v918_v31  ;;  %v1031_v54 = vand.u32 2147483648, %v918_v31 }
  0xdc   : > { %v6570_v37 = vmul.f32 %v1003_v35, %v6515_v33  ;;  %v1007_v38 = vsub.f32 1.0, %v1006_v34  ;;  %vm1025_vm7 = vweird.f32 %v918_v31 }
  0xdd   : > { %v754_v39 = vpop.f32.mrf.mxu0  ;;  %v1032_v4 = vor.u32 1.1754944e-38, %v1031_v54  ;;  %vm1030_vm9 = vcmp.eq.f32.partialorder %v1029_v53, 8.507059e+37 }
  0xde   : > { %11021 = vst [vmem:[#allocation14_spill] sm:$0xff] %v6570_v37  ;;  %v1008_v40 = vmul.f32 %v5712_v28, %v1007_v38  ;;  %v6573_v41 = vadd.f32 %v6490_v10, %v754_v39  ;;  %v1458_v42 = vpack.c.bf16 %v6570_v37, %v6567_v36 }
  0xe0   : > { %v5714_v43 = vpop.eup %5713  ;;  %v5398_v44 = vmul.f32 -1.442695, %v6573_v41  ;;  %5432 = vmatmul.msk.bf16.gmra.mxu1 %vm679_vm0, %v1458_v42  ;;  %v1009_v33 = vadd.f32 %v5712_v28, %v1008_v40 }
  0xe1   : > { %v5716_v24 = vpop.eup %5715  ;;  %v6579_v45 = vadd.f32 1.0, %v5714_v43 }
  0xe2   : > { %v1021_v46 = vmul.f32 %v5716_v24, %v918_v31  ;;  %5717 = vpow2.f32 %v5398_v44  ;;  %v1013_v56 = vsel %vm6586_vm4, %v5712_v28, %v1009_v33  ;;  %vm1026_vm5 = vweird.f32 %v5716_v24 }
  0xe3   : > { %5719 = vrcp.f32 %v6579_v45  ;;  %v1018_v2 = vsel %vm1015_vm6, %v1017_v59, %v1013_v56  ;;  %vm1027_vm8 = vmor %vm1025_vm7, %vm1026_vm5  ;;  %v1046_v21 = vand.u32 2147483648, %v6579_v45  ;;  %vm1040_vm11 = vweird.f32 %v6579_v45 }
  0xe4   : > { %v1022_v49 = vsub.f32 1.0, %v1021_v46  ;;  %v6599_v9 = vmul.f32 %v1018_v2, %v6529_v50  ;;  %v1044_v23 = vand.u32 2147483647, %v6579_v45 }
  0xe5   : > { %v757_v55 = vpop.f32.mrf.mxu0  ;;  %v1047_v35 = vor.u32 1.1754944e-38, %v1046_v21 }
  0xe6   : > { %v1023_v57 = vmul.f32 %v5716_v24, %v1022_v49  ;;  %v6593_v58 = vadd.f32 %v6490_v10, %v757_v55  ;;  %11024 = vst [vmem:[#allocation15_spill] sm:$0xff] %v6599_v9  ;;  %vm1045_vm14 = vcmp.eq.f32.partialorder %v1044_v23, 8.507059e+37 }
  0xe8   : > { %v5718_v60 = vpop.eup %5717  ;;  %v1024_v61 = vadd.f32 %v5716_v24, %v1023_v57  ;;  %v5399_v0 = vmul.f32 -1.442695, %v6593_v58  ;;  %5387 = vmatmul.msk.bf16.gmra.mxu0 %vm679_vm0, %v5618_v51 }
  0xe9   : > { %v5720_v1 = vpop.eup %5719  ;;  %v920_v5 = vadd.f32 1.0, %v5718_v60 }
  0xea   : > { %v1028_v6 = vsel %vm1027_vm8, %v5716_v24, %v1024_v61  ;;  %v1036_v7 = vmul.f32 %v5720_v1, %v6579_v45  ;;  %5721 = vpow2.f32 %v5399_v0  ;;  %vm1041_vm10 = vweird.f32 %v5720_v1 }
  0xeb   : > { %v1033_v8 = vsel %vm1030_vm9, %v1032_v4, %v1028_v6  ;;  %5723 = vrcp.f32 %v920_v5  ;;  %vm6618_vm12 = vmor %vm1040_vm11, %vm1041_vm10  ;;  %v1059_v28 = vand.u32 2147483647, %v920_v5  ;;  %v1061_v29 = vand.u32 2147483648, %v920_v5 }
  0xec   : > { %v6602_v11 = vmul.f32 %v1033_v8, %v6541_v3  ;;  %v1037_v12 = vsub.f32 1.0, %v1036_v7  ;;  %vm1055_vm15 = vweird.f32 %v920_v5 }
  0xed   : > { %v759_v13 = vpop.f32.mrf.mxu0  ;;  %v1062_v44 = vor.u32 1.1754944e-38, %v1061_v29  ;;  %vm1060_vm2 = vcmp.eq.f32.partialorder %v1059_v28, 8.507059e+37 }
  0xee   : > { %11025 = vst [vmem:[#allocation16_spill] sm:$0xff] %v6602_v11  ;;  %v1038_v14 = vmul.f32 %v5720_v1, %v1037_v12  ;;  %v6605_v15 = vadd.f32 %v6490_v10, %v759_v13  ;;  %v1459_v16 = vpack.c.bf16 %v6602_v11, %v6599_v9 }
  0xf0   : > { %v5722_v17 = vpop.eup %5721  ;;  %v5400_v18 = vmul.f32 -1.442695, %v6605_v15  ;;  %5433 = vmatmul.msk.bf16.gmra.mxu1 %vm679_vm0, %v1459_v16  ;;  %v1039_v3 = vadd.f32 %v5720_v1, %v1038_v14 }
  0xf1   : > { %v5724_v50 = vpop.eup %5723  ;;  %v6611_v19 = vadd.f32 1.0, %v5722_v17 }
  0xf2   : > { %v1051_v20 = vmul.f32 %v5724_v50, %v920_v5  ;;  %5725 = vpow2.f32 %v5400_v18  ;;  %v1043_v31 = vsel %vm6618_vm12, %v5720_v1, %v1039_v3  ;;  %vm1056_vm13 = vweird.f32 %v5724_v50  ;;  %v5620_v1 = vld [vmem:[%s6469_s24 + $0x70] sm:$0xff] }
  0xf3   : > { %5727 = vrcp.f32 %v6611_v19  ;;  %v1048_v43 = vsel %vm1045_vm14, %v1047_v35, %v1043_v31  ;;  %vm1057_vm1 = vmor %vm1055_vm15, %vm1056_vm13  ;;  %v1076_v60 = vand.u32 2147483648, %v6611_v19  ;;  %vm1070_vm4 = vweird.f32 %v6611_v19 }
  0xf4   : > { %v1052_v25 = vsub.f32 1.0, %v1051_v20  ;;  %v6631_v47 = vmul.f32 %v1048_v43, %v6561_v22  ;;  %v1074_v61 = vand.u32 2147483647, %v6611_v19 }
  0xf5   : > { %v762_v30 = vpop.f32.mrf.mxu0  ;;  %v1077_v13 = vor.u32 1.1754944e-38, %v1076_v60 }
  0xf6   : > { %v1053_v32 = vmul.f32 %v5724_v50, %v1052_v25  ;;  %v6625_v34 = vadd.f32 %v6490_v10, %v762_v30  ;;  %11028 = vst [vmem:[#allocation17_spill] sm:$0xff] %v6631_v47  ;;  %vm1075_vm7 = vcmp.eq.f32.partialorder %v1074_v61, 8.507059e+37 }
  0xf8   : > { %v5726_v38 = vpop.eup %5725  ;;  %v1054_v39 = vadd.f32 %v5724_v50, %v1053_v32  ;;  %v5401_v40 = vmul.f32 -1.442695, %v6625_v34  ;;  %5388 = vmatmul.msk.bf16.gmra.mxu0 %vm679_vm0, %v5619_v26 }
  0xf9   : > { %v5728_v42 = vpop.eup %5727  ;;  %v922_v24 = vadd.f32 1.0, %v5726_v38 }
  0xfa   : > { %v1058_v45 = vsel %vm1057_vm1, %v5724_v50, %v1054_v39  ;;  %v1066_v33 = vmul.f32 %v5728_v42, %v6611_v19  ;;  %5729 = vpow2.f32 %v5401_v40  ;;  %vm1071_vm3 = vweird.f32 %v5728_v42 }
  0xfb   : > { %v1063_v46 = vsel %vm1060_vm2, %v1062_v44, %v1058_v45  ;;  %5731 = vrcp.f32 %v922_v24  ;;  %vm6650_vm5 = vmor %vm1070_vm4, %vm1071_vm3  ;;  %v1089_v4 = vand.u32 2147483647, %v922_v24  ;;  %v1091_v5 = vand.u32 2147483648, %v922_v24  ;;  %v5621_v44 = vld [vmem:[%s6469_s24 + $0x78] sm:$0xff]  ;;  %s5242_s24 = sshll.u32 %s5238_s20, 4  ;;  %s5243_s24 = int_to_ptr.hbm [resolvable:$true] %s5242_s24 }
  0xfc   : > { %v6634_v48 = vmul.f32 %v1063_v46, %v6573_v41  ;;  %v1067_v49 = vsub.f32 1.0, %v1066_v33  ;;  %vm1085_vm8 = vweird.f32 %v922_v24  ;;  %s6268_s30 = sshra.s32 %s5243_s24, 4  ;;  %s6269_s30 = int_to_ptr.hbm [resolvable:$true] %s6268_s30 }
  0xfd   : > { %v764_v51 = vpop.f32.mrf.mxu0  ;;  %v1092_v19 = vor.u32 1.1754944e-38, %v1091_v5  ;;  %vm1090_vm10 = vcmp.eq.f32.partialorder %v1089_v4, 8.507059e+37  ;;  %s6270_s28 = scalar_lea.hbm %s6269_s30, 1  ;;  %p6275_p0 = scmp.lt.s32.totalorder %s6269_s30, %s10940_s17 }
  0xfe   : > { %11029 = vst [vmem:[#allocation18_spill] sm:$0xff] %v6634_v48  ;;  %v1068_v52 = vmul.f32 %v5728_v42, %v1067_v49  ;;  %v6637_v53 = vadd.f32 %v6490_v10, %v764_v51  ;;  %v1460_v54 = vpack.c.bf16 %v6634_v48, %v6631_v47  ;;  %p6271_p11 = scmp.ne.s32.totalorder %s6269_s30, %s6270_s28  ;;  %p6276_p1 = scmp.lt.s32.totalorder %s6274_s19, %s6270_s28 }
 0x100   : > { %v5730_v55 = vpop.eup %5729  ;;  %v5402_v56 = vmul.f32 -1.442695, %v6637_v53  ;;  %5434 = vmatmul.msk.bf16.gmra.mxu1 %vm679_vm0, %v1460_v54  ;;  %v1069_v41 = vadd.f32 %v5728_v42, %v1068_v52  ;;  %p6272_p12 = pnand %p6271_p11, %p6448_p5  ;;  %p6277_p2 = por %p6276_p1, %p6275_p0 }
 0x101   : > { %v5732_v22 = vpop.eup %5731  ;;  %v6643_v57 = vadd.f32 1.0, %v5730_v55 }
 0x102   : > { %v1081_v59 = vmul.f32 %v5732_v22, %v922_v24  ;;  %5733 = vpow2.f32 %v5402_v56  ;;  %v1073_v7 = vsel %vm6650_vm5, %v5728_v42, %v1069_v41  ;;  %vm1086_vm6 = vweird.f32 %v5732_v22  ;;  %p6273_p13 = pneg %p6272_p12 }
 0x103   : > { %5735 = vrcp.f32 %v6643_v57  ;;  %v1078_v50 = vsel %vm1075_vm7, %v1077_v13, %v1073_v7  ;;  %vm1087_vm9 = vmor %vm1085_vm8, %vm1086_vm6  ;;  %v1106_v40 = vand.u32 2147483648, %v6643_v57  ;;  %vm1100_vm12 = vweird.f32 %v6643_v57 }
 0x104   : > { %v1082_v0 = vsub.f32 1.0, %v1081_v59  ;;  %v6663_v25 = vmul.f32 %v1078_v50, %v6593_v58  ;;  %v1104_v42 = vand.u32 2147483647, %v6643_v57  ;;  %p6278_p3 = pnand %p6277_p2, %p6273_p13 }
 0x105   : > { %v767_v6 = vpop.f32.mrf.mxu0  ;;  %v1107_v54 = vor.u32 1.1754944e-38, %v1106_v40 }
 0x106   : > { %v1083_v8 = vmul.f32 %v5732_v22, %v1082_v0  ;;  %v6657_v12 = vadd.f32 %v6490_v10, %v767_v6  ;;  %11032 = vst [vmem:[#allocation19_spill] sm:$0xff] %v6663_v25  ;;  %vm1105_vm15 = vcmp.eq.f32.partialorder %v1104_v42, 8.507059e+37 }
 0x108   : > { %v5734_v14 = vpop.eup %5733  ;;  %v1084_v16 = vadd.f32 %v5732_v22, %v1083_v8  ;;  %v5403_v17 = vmul.f32 -1.442695, %v6657_v12  ;;  %5389 = vmatmul.msk.bf16.gmra.mxu0 %vm679_vm0, %v5620_v1 }
 0x109   : > { %v5736_v18 = vpop.eup %5735  ;;  %v924_v3 = vadd.f32 1.0, %v5734_v14 }
 0x10a   : > { %v1088_v20 = vsel %vm1087_vm9, %v5732_v22, %v1084_v16  ;;  %v1096_v21 = vmul.f32 %v5736_v18, %v6643_v57  ;;  %5737 = vpow2.f32 %v5403_v17  ;;  %vm1101_vm11 = vweird.f32 %v5736_v18 }
 0x10b   : > { %v1093_v23 = vsel %vm1090_vm10, %v1092_v19, %v1088_v20  ;;  %5739 = vrcp.f32 %v924_v3  ;;  %vm6682_vm13 = vmor %vm1100_vm12, %vm1101_vm11  ;;  %v1119_v45 = vand.u32 2147483647, %v924_v3  ;;  %v1121_v33 = vand.u32 2147483648, %v924_v3 }
 0x10c   : > { %v6666_v26 = vmul.f32 %v1093_v23, %v6605_v15  ;;  %v1097_v27 = vsub.f32 1.0, %v1096_v21  ;;  %vm1115_vm1 = vweird.f32 %v924_v3 }
 0x10d   : > { %v769_v28 = vpop.f32.mrf.mxu0  ;;  %v1122_v59 = vor.u32 1.1754944e-38, %v1121_v33  ;;  %vm1120_vm3 = vcmp.eq.f32.partialorder %v1119_v45, 8.507059e+37 }
 0x10e   : > { %11033 = vst [vmem:[#allocation20_spill] sm:$0xff] %v6666_v26  ;;  %v1098_v29 = vmul.f32 %v5736_v18, %v1097_v27  ;;  %v6669_v30 = vadd.f32 %v6490_v10, %v769_v28  ;;  %v1461_v31 = vpack.c.bf16 %v6666_v26, %v6663_v25 }
 0x110   : > { %v5738_v32 = vpop.eup %5737  ;;  %v5404_v35 = vmul.f32 -1.442695, %v6669_v30  ;;  %5435 = vmatmul.msk.bf16.gmra.mxu1 %vm679_vm0, %v1461_v31  ;;  %v1099_v15 = vadd.f32 %v5736_v18, %v1098_v29 }
 0x111   : > { %v5740_v58 = vpop.eup %5739  ;;  %v6675_v38 = vadd.f32 1.0, %v5738_v32 }
 0x112   : > { %v1111_v39 = vmul.f32 %v5740_v58, %v924_v3  ;;  %5741 = vpow2.f32 %v5404_v35  ;;  %v1103_v49 = vsel %vm6682_vm13, %v5736_v18, %v1099_v15  ;;  %vm1116_vm14 = vweird.f32 %v5740_v58 }
 0x113   : > { %5743 = vrcp.f32 %v6675_v38  ;;  %v1108_v41 = vsel %vm1105_vm15, %v1107_v54, %v1103_v49  ;;  %vm1117_vm2 = vmor %vm1115_vm1, %vm1116_vm14  ;;  %v1136_v50 = vand.u32 2147483648, %v6675_v38  ;;  %vm1130_vm5 = vweird.f32 %v6675_v38 }
 0x114   : > { %v1112_v43 = vsub.f32 1.0, %v1111_v39  ;;  %v6695_v2 = vmul.f32 %v1108_v41, %v6625_v34  ;;  %v1134_v19 = vand.u32 2147483647, %v6675_v38 }
 0x115   : > { %v772_v46 = vpop.f32.mrf.mxu0  ;;  %v1137_v32 = vor.u32 1.1754944e-38, %v1136_v50 }
 0x116   : > { %v1113_v51 = vmul.f32 %v5740_v58, %v1112_v43  ;;  %v6689_v52 = vadd.f32 %v6490_v10, %v772_v46  ;;  %11036 = vst [vmem:[#allocation21_spill] sm:$0xff] %v6695_v2  ;;  %vm1135_vm8 = vcmp.eq.f32.partialorder %v1134_v19, 8.507059e+37 }
 0x118   : > { %v5742_v55 = vpop.eup %5741  ;;  %v1114_v56 = vadd.f32 %v5740_v58, %v1113_v51  ;;  %v5405_v22 = vmul.f32 -1.442695, %v6689_v52  ;;  %5390 = vmatmul.msk.bf16.gmra.mxu0 %vm679_vm0, %v5621_v44 }
 0x119   : > { %v5744_v57 = vpop.eup %5743  ;;  %v926_v60 = vadd.f32 1.0, %v5742_v55 }
 0x11a   : > { %v1118_v61 = vsel %vm1117_vm2, %v5740_v58, %v1114_v56  ;;  %v1126_v0 = vmul.f32 %v5744_v57, %v6675_v38  ;;  %5745 = vpow2.f32 %v5405_v22  ;;  %vm1131_vm4 = vweird.f32 %v5744_v57 }
 0x11b   : > { %v1123_v1 = vsel %vm1120_vm3, %v1122_v59, %v1118_v61  ;;  %5747 = vrcp.f32 %v926_v60  ;;  %vm6713_vm6 = vmor %vm1130_vm5, %vm1131_vm4  ;;  %v1149_v21 = vand.u32 2147483647, %v926_v60  ;;  %v1151_v23 = vand.u32 2147483648, %v926_v60 }
 0x11c   : > { %v6698_v4 = vmul.f32 %v1123_v1, %v6637_v53  ;;  %v1127_v5 = vsub.f32 1.0, %v1126_v0  ;;  %vm1145_vm9 = vweird.f32 %v926_v60 }
 0x11d   : > { %v774_v6 = vpop.f32.mrf.mxu0  ;;  %v1152_v40 = vor.u32 1.1754944e-38, %v1151_v23  ;;  %vm1150_vm11 = vcmp.eq.f32.partialorder %v1149_v21, 8.507059e+37 }
 0x11e   : > { %11037 = vst [vmem:[#allocation22_spill] sm:$0xff] %v6698_v4  ;;  %v1128_v7 = vmul.f32 %v5744_v57, %v1127_v5  ;;  %v6701_v8 = vadd.f32 %v6490_v10, %v774_v6  ;;  %v1462_v13 = vpack.c.bf16 %v6698_v4, %v6695_v2 }
 0x120   : > { %v5746_v14 = vpop.eup %5745  ;;  %v5406_v16 = vmul.f32 -1.442695, %v6701_v8  ;;  %5436 = vmatmul.msk.bf16.gmra.mxu1 %vm679_vm0, %v1462_v13  ;;  %v1129_v18 = vadd.f32 %v5744_v57, %v1128_v7 }
 0x121   : > { %v5748_v17 = vpop.eup %5747  ;;  %v6707_v34 = vadd.f32 1.0, %v5746_v14 }
 0x122   : > { %v1141_v53 = vmul.f32 %v5748_v17, %v926_v60  ;;  %5749 = vpow2.f32 %v5406_v16  ;;  %v1133_v28 = vsel %vm6713_vm6, %v5744_v57, %v1129_v18  ;;  %vm1146_vm7 = vweird.f32 %v5748_v17 }
 0x123   : > { %5751 = vrcp.f32 %v6707_v34  ;;  %v1138_v39 = vsel %vm1135_vm8, %v1137_v32, %v1133_v28  ;;  %vm1147_vm10 = vmor %vm1145_vm9, %vm1146_vm7  ;;  %v1166_v59 = vand.u32 2147483648, %v6707_v34  ;;  %vm1160_vm13 = vweird.f32 %v6707_v34 }
 0x124   : > { %v1142_v3 = vsub.f32 1.0, %v1141_v53  ;;  %v6725_v45 = vmul.f32 %v1138_v39, %v6657_v12  ;;  %v1164_v60 = vand.u32 2147483647, %v6707_v34 }
 0x125   : > { %v777_v27 = vpop.f32.mrf.mxu0  ;;  %v1167_v16 = vor.u32 1.1754944e-38, %v1166_v59 }
 0x126   : > { %v1143_v29 = vmul.f32 %v5748_v17, %v1142_v3  ;;  %v6720_v31 = vadd.f32 %v6490_v10, %v777_v27  ;;  %11040 = vst [vmem:[#allocation23_spill] sm:$0xff] %v6725_v45  ;;  %vm1165_vm1 = vcmp.eq.f32.partialorder %v1164_v60, 8.507059e+37 }
 0x128   : > { %v5750_v35 = vpop.eup %5749  ;;  %v1144_v58 = vadd.f32 %v5748_v17, %v1143_v29  ;;  %v5407_v38 = vmul.f32 -1.442695, %v6720_v31 }
 0x129   : > { %v5752_v15 = vpop.eup %5751  ;;  %v928_v42 = vadd.f32 1.0, %v5750_v35 }
 0x12a   : > { %v1148_v43 = vsel %vm1147_vm10, %v5748_v17, %v1144_v58  ;;  %v1156_v44 = vmul.f32 %v5752_v15, %v6707_v34  ;;  %5753 = vpow2.f32 %v5407_v38  ;;  %vm1161_vm12 = vweird.f32 %v5752_v15 }
 0x12b   : > { %v1153_v24 = vsel %vm1150_vm11, %v1152_v40, %v1148_v43  ;;  %5755 = vrcp.f32 %v928_v42  ;;  %vm6743_vm14 = vmor %vm1160_vm13, %vm1161_vm12  ;;  %v1179_v1 = vand.u32 2147483647, %v928_v42  ;;  %v1181_v5 = vand.u32 2147483648, %v928_v42 }
 0x12c   : > { %v6728_v33 = vmul.f32 %v1153_v24, %v6669_v30  ;;  %v1157_v46 = vsub.f32 1.0, %v1156_v44  ;;  %vm1175_vm2 = vweird.f32 %v928_v42 }
 0x12d   : > { %v779_v49 = vpop.f32.mrf.mxu0  ;;  %v1182_v19 = vor.u32 1.1754944e-38, %v1181_v5  ;;  %vm1180_vm4 = vcmp.eq.f32.partialorder %v1179_v1, 8.507059e+37 }
 0x12e   : > { %11041 = vst [vmem:[#allocation24_spill] sm:$0xff] %v6728_v33  ;;  %v1158_v51 = vmul.f32 %v5752_v15, %v1157_v46  ;;  %v6731_v54 = vadd.f32 %v6490_v10, %v779_v49  ;;  %v1463_v55 = vpack.c.bf16 %v6728_v33, %v6725_v45 }
 0x130   : > { %v5754_v56 = vpop.eup %5753  ;;  %v5408_v22 = vmul.f32 -1.442695, %v6731_v54  ;;  %5437 = vmatmul.msk.bf16.gmra.mxu1 %vm679_vm0, %v1463_v55  ;;  %v1159_v41 = vadd.f32 %v5752_v15, %v1158_v51 }
 0x131   : > { %v5756_v57 = vpop.eup %5755  ;;  %v6737_v12 = vadd.f32 1.0, %v5754_v56 }
 0x132   : > { %v1171_v30 = vmul.f32 %v5756_v57, %v928_v42  ;;  %5757 = vpow2.f32 %v5408_v22  ;;  %v1163_v7 = vsel %vm6743_vm14, %v5752_v15, %v1159_v41  ;;  %vm1176_vm15 = vweird.f32 %v5756_v57 }
 0x133   : > { %5759 = vrcp.f32 %v6737_v12  ;;  %v1168_v50 = vsel %vm1165_vm1, %v1167_v16, %v1163_v7  ;;  %vm1177_vm3 = vmor %vm1175_vm2, %vm1176_vm15  ;;  %v1196_v43 = vand.u32 2147483648, %v6737_v12  ;;  %vm1190_vm6 = vweird.f32 %v6737_v12  ;;  %v6792_v7 = vld [vmem:[%s10927_s4] ss:$0 sm:$0xff] }
 0x134   : > { %v1172_v61 = vsub.f32 1.0, %v1171_v30  ;;  %v6755_v27 = vmul.f32 %v1168_v50, %v6689_v52  ;;  %v1194_v24 = vand.u32 2147483647, %v6737_v12 }
 0x135   : > { %v782_v6 = vpop.f32.mrf.mxu0  ;;  %v1197_v30 = vor.u32 1.1754944e-38, %v1196_v43 }
 0x136   : > { %v1173_v13 = vmul.f32 %v5756_v57, %v1172_v61  ;;  %v6750_v14 = vadd.f32 %v6490_v10, %v782_v6  ;;  %11044 = vst [vmem:[#allocation25_spill] sm:$0xff] %v6755_v27  ;;  %vm1195_vm10 = vcmp.eq.f32.partialorder %v1194_v24, 8.507059e+37 }
 0x138   : > { %v5758_v17 = vpop.eup %5757  ;;  %v1174_v34 = vadd.f32 %v5756_v57, %v1173_v13  ;;  %v5409_v18 = vmul.f32 -1.442695, %v6750_v14 }
 0x139   : > { %v5760_v53 = vpop.eup %5759  ;;  %v930_v3 = vadd.f32 1.0, %v5758_v17 }
 0x13a   : > { %v1178_v20 = vsel %vm1177_vm3, %v5756_v57, %v1174_v34  ;;  %v1186_v21 = vmul.f32 %v5760_v53, %v6737_v12  ;;  %5761 = vpow2.f32 %v5409_v18  ;;  %vm1191_vm5 = vweird.f32 %v5760_v53 }
 0x13b   : > { %v1183_v23 = vsel %vm1180_vm4, %v1182_v19, %v1178_v20  ;;  %5763 = vrcp.f32 %v930_v3  ;;  %v1209_v46 = vand.u32 2147483647, %v930_v3  ;;  %v1211_v49 = vand.u32 2147483648, %v930_v3  ;;  %vm6773_vm7 = vmor %vm1190_vm6, %vm1191_vm5 }
 0x13c   : > { %v6758_v28 = vmul.f32 %v1183_v23, %v6701_v8  ;;  %v1187_v29 = vsub.f32 1.0, %v1186_v21  ;;  %vm1205_vm9 = vweird.f32 %v930_v3 }
 0x13d   : > { %v784_v32 = vpop.f32.mrf.mxu0  ;;  %vm1210_vm12 = vcmp.eq.f32.partialorder %v1209_v46, 8.507059e+37  ;;  %v1212_v61 = vor.u32 1.1754944e-38, %v1211_v49 }
 0x13e   : > { %11045 = vst [vmem:[#allocation26_spill] sm:$0xff] %v6758_v28  ;;  %v6761_v35 = vadd.f32 %v6490_v10, %v784_v32  ;;  %v1464_v58 = vpack.c.bf16 %v6758_v28, %v6755_v27  ;;  %v1188_v38 = vmul.f32 %v5760_v53, %v1187_v29 }
 0x140   : > { %v5762_v15 = vpop.eup %5761  ;;  %v5410_v39 = vmul.f32 -1.442695, %v6761_v35  ;;  %5438 = vmatmul.msk.bf16.gmra.mxu1 %vm679_vm0, %v1464_v58  ;;  %v1189_v8 = vadd.f32 %v5760_v53, %v1188_v38 }
 0x141   : > { %v5764_v40 = vpop.eup %5763  ;;  %v6767_v52 = vadd.f32 1.0, %v5762_v15 }
 0x142   : > { %v1201_v42 = vmul.f32 %v5764_v40, %v930_v3  ;;  %5765 = vpow2.f32 %v5410_v39  ;;  %vm1206_vm8 = vweird.f32 %v5764_v40  ;;  %v1193_v57 = vsel %vm6773_vm7, %v5760_v53, %v1189_v8 }
 0x143   : > { %5767 = vrcp.f32 %v6767_v52  ;;  %vm1207_vm11 = vmor %vm1205_vm9, %vm1206_vm8  ;;  %v1198_v1 = vsel %vm1195_vm10, %v1197_v30, %v1193_v57  ;;  %v6318_v3 = vmov 0.0   ;;  %vm1220_vm14 = vweird.f32 %v6767_v52 }
 0x144   : > { %v1202_v44 = vsub.f32 1.0, %v1201_v42  ;;  %v6799_v34 = vmul.f32 %v1198_v1, %v6720_v31  ;;  %2270 = vst [vmem:[#allocation2] sm:$0xff] %v6318_v3  ;;  %v1224_v39 = vand.u32 2147483647, %v6767_v52 }
 0x145   : > { %v787_v51 = vpop.f32.mrf.mxu0  ;;  %2271 = vst [vmem:[#allocation2 + $0x8] sm:$0xff] %v6318_v3 }
 0x146   : > { %v1203_v56 = vmul.f32 %v5764_v40, %v1202_v44  ;;  %v6778_v22 = vadd.f32 %v6490_v10, %v787_v51  ;;  %11049 = vst [vmem:[#allocation28_spill] sm:$0xff] %v6799_v34  ;;  %vm1225_vm4 = vcmp.eq.f32.partialorder %v1224_v39, 8.507059e+37 }
 0x147   : > { %2272 = vst [vmem:[#allocation2 + $0x10] sm:$0xff] %v6318_v3 }
 0x148   : > { %v5766_v41 = vpop.eup %5765  ;;  %v1204_v59 = vadd.f32 %v5764_v40, %v1203_v56  ;;  %v5411_v12 = vmul.f32 -1.442695, %v6778_v22  ;;  %2274 = vst [vmem:[#allocation2 + $0x20] sm:$0xff] %v6318_v3 }
 0x149   : > { %v6783_v60 = vpop.eup %5767  ;;  %v6785_v0 = vadd.f32 1.0, %v5766_v41  ;;  %2273 = vst [vmem:[#allocation2 + $0x18] sm:$0xff] %v6318_v3 }
 0x14a   : > { %v1208_v5 = vsel %vm1207_vm11, %v5764_v40, %v1204_v59  ;;  %v1216_v6 = vmul.f32 %v6783_v60, %v6767_v52  ;;  %5769 = vpow2.f32 %v5411_v12  ;;  %2277 = vst [vmem:[#allocation2 + $0x38] sm:$0xff] %v6318_v3  ;;  %vm1221_vm13 = vweird.f32 %v6783_v60 }
 0x14b   : > { %v1213_v13 = vsel %vm1210_vm12, %v1212_v61, %v1208_v5  ;;  %5771 = vrcp.f32 %v6785_v0  ;;  %2278 = vst [vmem:[#allocation2 + $0x40] sm:$0xff] %v6318_v3  ;;  %v1226_v40 = vand.u32 2147483648, %v6767_v52  ;;  %v1241_v42 = vand.u32 2147483648, %v6785_v0  ;;  %vm6838_vm1 = vmor %vm1220_vm14, %vm1221_vm13 }
 0x14c   : > { %v6796_v16 = vmul.f32 %v1213_v13, %v6731_v54  ;;  %v1217_v17 = vsub.f32 1.0, %v1216_v6  ;;  %2281 = vst [vmem:[#allocation2 + $0x58] sm:$0xff] %v6318_v3  ;;  %v1239_v24 = vand.u32 2147483647, %v6785_v0  ;;  %vm1235_vm2 = vweird.f32 %v6785_v0 }
 0x14d   : > { %v789_v18 = vpop.f32.mrf.mxu0  ;;  %v1550_v53 = vpop.f32.mrf.mxu1  ;;  %2282 = vst [vmem:[#allocation2 + $0x60] sm:$0xff] %v6318_v3  ;;  %v1227_v41 = vor.u32 1.1754944e-38, %v1226_v40  ;;  %v1242_v30 = vor.u32 1.1754944e-38, %v1241_v42 }
 0x14e   : > { %11048 = vst [vmem:[#allocation27_spill] sm:$0xff] %v6796_v16  ;;  %v6802_v50 = vadd.f32 %v6490_v10, %v789_v18  ;;  %v6805_v19 = vadd.f32 %v6792_v7, %v1550_v53  ;;  %v1465_v54 = vpack.c.bf16 %v6796_v16, %v6799_v34  ;;  %v1218_v31 = vmul.f32 %v6783_v60, %v1217_v17 }
 0x14f   : > { %2285 = vst [vmem:[#allocation2 + $0x78] sm:$0xff] %v6318_v3  ;;  %vm1240_vm5 = vcmp.eq.f32.partialorder %v1239_v24, 8.507059e+37 }
 0x150   : > { %v5770_v20 = vpop.eup %5769  ;;  %v5412_v21 = vmul.f32 -1.442695, %v6802_v50  ;;  %v5447_v23 = vmul.f32 -1.442695, %v6805_v19  ;;  %5439 = vmatmul.msk.bf16.gmra.mxu1 %vm679_vm0, %v1465_v54  ;;  %v1219_v38 = vadd.f32 %v6783_v60, %v1218_v31  ;;  %2286 = vst [vmem:[#allocation2 + $0x80] sm:$0xff] %v6318_v3 }
 0x151   : > { %v5772_v29 = vpop.eup %5771  ;;  %v6815_v32 = vadd.f32 1.0, %v5770_v20  ;;  %2289 = vst [vmem:[#allocation2 + $0x98] sm:$0xff] %v6318_v3 }
 0x152   : > { %v1231_v58 = vmul.f32 %v5772_v29, %v6785_v0  ;;  %5773 = vpow2.f32 %v5412_v21  ;;  %vm1236_vm15 = vweird.f32 %v5772_v29  ;;  %v1223_v55 = vsel %vm6838_vm1, %v6783_v60, %v1219_v38  ;;  %2290 = vst [vmem:[#allocation2 + $0xa0] sm:$0xff] %v6318_v3 }
 0x153   : > { %5775 = vrcp.f32 %v6815_v32  ;;  %vm1237_vm3 = vmor %vm1235_vm2, %vm1236_vm15  ;;  %v1228_v0 = vsel %vm1225_vm4, %v1227_v41, %v1223_v55  ;;  %2293 = vst [vmem:[#allocation2 + $0xb8] sm:$0xff] %v6318_v3  ;;  %vm1250_vm6 = vweird.f32 %v6815_v32  ;;  %v1256_v38 = vand.u32 2147483648, %v6815_v32 }
 0x154   : > { %v1232_v15 = vsub.f32 1.0, %v1231_v58  ;;  %5777 = vpow2.f32 %v5447_v23  ;;  %2294 = vst [vmem:[#allocation2 + $0xc0] sm:$0xff] %v6318_v3  ;;  %v6872_v53 = vmul.f32 %v1228_v0, %v6750_v14 }
 0x155   : > { %v792_v8 = vpop.f32.mrf.mxu0  ;;  %v1552_v43 = vpop.f32.mrf.mxu1  ;;  %2297 = vst [vmem:[#allocation2 + $0xd8] sm:$0xff] %v6318_v3 }
 0x156   : > { %v1233_v44 = vmul.f32 %v5772_v29, %v1232_v15  ;;  %v6834_v46 = vadd.f32 %v6490_v10, %v792_v8  ;;  %v6844_v52 = vadd.f32 %v6792_v7, %v1552_v43  ;;  %11053 = vst [vmem:[#allocation30_spill] sm:$0xff] %v6872_v53 }
 0x157   : > { %2298 = vst [vmem:[#allocation2 + $0xe0] sm:$0xff] %v6318_v3 }
 0x158   : > { %v5774_v51 = vpop.eup %5773  ;;  %v1234_v56 = vadd.f32 %v5772_v29, %v1233_v44  ;;  %v5413_v10 = vmul.f32 -1.442695, %v6834_v46  ;;  %v5448_v12 = vmul.f32 -1.442695, %v6844_v52  ;;  %2301 = vst [vmem:[#allocation2 + $0xf8] sm:$0xff] %v6318_v3 }
 0x159   : > { %v6852_v57 = vpop.eup %5775  ;;  %v6855_v59 = vadd.f32 1.0, %v5774_v51  ;;  %2302 = vst [vmem:[#allocation2 + $0x100] sm:$0xff] %v6318_v3 }
 0x15a   : > { %v5778_v60 = vpop.eup %5777  ;;  %v1238_v61 = vsel %vm1237_vm3, %v5772_v29, %v1234_v56  ;;  %5779 = vpow2.f32 %v5413_v10  ;;  %v1246_v13 = vmul.f32 %v6852_v57, %v6815_v32  ;;  %2305 = vst [vmem:[#allocation2 + $0x118] sm:$0xff] %v6318_v3  ;;  %vm1251_vm7 = vweird.f32 %v6852_v57 }
 0x15b   : > { %v1243_v1 = vsel %vm1240_vm5, %v1242_v30, %v1238_v61  ;;  %5781 = vrcp.f32 %v6855_v59  ;;  %v6865_v6 = vadd.f32 1.0, %v5778_v60  ;;  %2306 = vst [vmem:[#allocation2 + $0x120] sm:$0xff] %v6318_v3  ;;  %vm1265_vm8 = vweird.f32 %v6855_v59  ;;  %vm6958_vm13 = vmor %vm1250_vm6, %vm1251_vm7 }
 0x15c   : > { %v6863_v5 = vmul.f32 %v1243_v1, %v6761_v35  ;;  %5783 = vpow2.f32 %v5448_v12  ;;  %v6880_v35 = vld [vmem:[%s11012_s2] ss:$0 sm:$0xff]  ;;  %v1247_v21 = vsub.f32 1.0, %v1246_v13  ;;  %2309 = vst [vmem:[#allocation2 + $0x138] sm:$0xff] %v6318_v3  ;;  %v1269_v44 = vand.u32 2147483647, %v6855_v59 }
 0x15d   : > { %v794_v17 = vpop.f32.mrf.mxu0  ;;  %v1555_v18 = vpop.f32.mrf.mxu1  ;;  %5785 = vrcp.f32 %v6865_v6  ;;  %2310 = vst [vmem:[#allocation2 + $0x140] sm:$0xff] %v6318_v3  ;;  %v1271_v56 = vand.u32 2147483648, %v6855_v59  ;;  %v1767_v41 = vand.u32 2147483647, %v6865_v6  ;;  %v1769_v30 = vand.u32 2147483648, %v6865_v6 }
 0x15e   : > { %11052 = vst [vmem:[#allocation29_spill] sm:$0xff] %v6863_v5  ;;  %v6883_v54 = vadd.f32 %v6880_v35, %v794_v17  ;;  %v1466_v14 = vpack.c.bf16 %v6863_v5, %v6872_v53  ;;  %v6909_v8 = vadd.f32 %v6792_v7, %v1555_v18  ;;  %v1248_v43 = vmul.f32 %v6852_v57, %v1247_v21  ;;  %v2375_v18 = vld [vmem:[#allocation2 + $0x7] sm:$0xff] }
 0x15f   : > { %2313 = vst [vmem:[#allocation2 + $0x158] sm:$0xff] %v6318_v3  ;;  %v1254_v17 = vand.u32 2147483647, %v6815_v32  ;;  %vm1763_vm12 = vweird.f32 %v6865_v6  ;;  %vm1270_vm14 = vcmp.eq.f32.partialorder %v1269_v44, 8.507059e+37  ;;  %vm1768_vm1 = vcmp.eq.f32.partialorder %v1767_v41, 8.507059e+37 }
 0x160   : > { %v5780_v20 = vpop.eup %5779  ;;  %5440 = vmatmul.msk.bf16.gmra.mxu1 %vm679_vm0, %v1466_v14  ;;  %v5414_v15 = vmul.f32 -1.442695, %v6883_v54  ;;  %2314 = vst [vmem:[#allocation2 + $0x160] sm:$0xff] %v6318_v3  ;;  %v5449_v60 = vmul.f32 -1.442695, %v6909_v8  ;;  %v1249_v13 = vadd.f32 %v6852_v57, %v1248_v43  ;;  %v1257_v14 = vor.u32 1.1754944e-38, %v1256_v38 }
 0x161   : > { %v6888_v31 = vpop.eup %5781  ;;  %v6891_v23 = vadd.f32 1.0, %v5780_v20  ;;  %2317 = vst [vmem:[#allocation2 + $0x178] sm:$0xff] %v6318_v3  ;;  %v1770_v32 = vor.u32 1.1754944e-38, %v1769_v30  ;;  %vm1255_vm2 = vcmp.eq.f32.partialorder %v1254_v17, 8.507059e+37 }
 0x162   : > { %v1261_v29 = vmul.f32 %v6888_v31, %v6855_v59  ;;  %v5784_v58 = vpop.eup %5783  ;;  %vm1266_vm9 = vweird.f32 %v6888_v31  ;;  %2318 = vst [vmem:[#allocation2 + $0x180] sm:$0xff] %v6318_v3  ;;  %v1253_v43 = vsel %vm6958_vm13, %v6852_v57, %v1249_v13  ;;  %v6989_v57 = vld [vmem:[%s10928_s5 + $0x1] ss:$0 sm:$0xff] }
 0x163   : > { %5787 = vrcp.f32 %v6891_v23  ;;  %v6902_v39 = vpop.eup %5785  ;;  %v6906_v42 = vadd.f32 1.0, %v5784_v58  ;;  %vm6942_vm10 = vmor %vm1265_vm8, %vm1266_vm9  ;;  %2321 = vst [vmem:[#allocation2 + $0x198] sm:$0xff] %v6318_v3  ;;  %v1258_v13 = vsel %vm1255_vm2, %v1257_v14, %v1253_v43  ;;  %v2376_v14 = vld [vmem:[#allocation2 + $0xf] sm:$0xff]  ;;  %vm1280_vm8 = vweird.f32 %v6891_v23 }
 0x164   : > { %v1262_v40 = vsub.f32 1.0, %v1261_v29  ;;  %v1759_v24 = vmul.f32 %v6902_v39, %v6865_v6  ;;  %vm1764_vm11 = vweird.f32 %v6902_v39  ;;  %2322 = vst [vmem:[#allocation2 + $0x1a0] sm:$0xff] %v6318_v3  ;;  %v7025_v43 = vmul.f32 %v1258_v13, %v6778_v22  ;;  %v2540_v13 = vld [vmem:[#allocation2 + $0x11] sm:$0xff] }
 0x165   : > { %v797_v49 = vpop.f32.mrf.mxu0  ;;  %v1557_v51 = vpop.f32.mrf.mxu1  ;;  %5789 = vrcp.f32 %v6906_v42  ;;  %2325 = vst [vmem:[#allocation2 + $0x1b8] sm:$0xff] %v6318_v3  ;;  %vm1765_vm15 = vmor %vm1763_vm12, %vm1764_vm11  ;;  %vm1778_vm4 = vweird.f32 %v6906_v42 }
 0x166   : > { %v1263_v55 = vmul.f32 %v6888_v31, %v1262_v40  ;;  %v1760_v10 = vsub.f32 1.0, %v1759_v24  ;;  %5791 = vpow2.f32 %v5414_v15  ;;  %v6929_v61 = vadd.f32 %v6880_v35, %v797_v49  ;;  %2326 = vst [vmem:[#allocation2 + $0x1c0] sm:$0xff] %v6318_v3 }
 0x167   : > { %v6932_v0 = vadd.f32 %v6792_v7, %v1557_v51  ;;  %5793 = vpow2.f32 %v5449_v60  ;;  %v1272_v15 = vor.u32 1.1754944e-38, %v1271_v56  ;;  %2329 = vst [vmem:[#allocation2 + $0x1d8] sm:$0xff] %v6318_v3  ;;  %v6998_v60 = vld [vmem:[%s10928_s5] ss:$0 sm:$0xff] }
 0x168   : > { %v1264_v12 = vadd.f32 %v6888_v31, %v1263_v55  ;;  %v1761_v20 = vmul.f32 %v6902_v39, %v1760_v10  ;;  %v5415_v6 = vmul.f32 -1.442695, %v6929_v61  ;;  %2330 = vst [vmem:[#allocation2 + $0x1e0] sm:$0xff] %v6318_v3  ;;  %v2410_v22 = vmul.f32 %v6998_v60, %v2376_v14 }
 0x169   : > { %v6934_v1 = vpop.eup %5787  ;;  %v5450_v58 = vmul.f32 -1.442695, %v6932_v0  ;;  %2333 = vst [vmem:[#allocation2 + $0x1f8] sm:$0xff] %v6318_v3  ;;  %v1284_v14 = vand.u32 2147483647, %v6891_v23 }
 0x16a   : > { %v1268_v21 = vsel %vm6942_vm10, %v6888_v31, %v1264_v12  ;;  %v1762_v29 = vadd.f32 %v6902_v39, %v1761_v20  ;;  %v1276_v31 = vmul.f32 %v6934_v1, %v6891_v23  ;;  %5795 = vpow2.f32 %v5415_v6  ;;  %2334 = vst [vmem:[#allocation2 + $0x200] sm:$0xff] %v6318_v3  ;;  %v7007_v20 = vld [vmem:[%s10928_s5 + $0x2] ss:$0 sm:$0xff] }
 0x16b   : > { %v6968_v38 = vpop.eup %5789  ;;  %v1273_v51 = vsel %vm1270_vm14, %v1272_v15, %v1268_v21  ;;  %5797 = vpow2.f32 %v5450_v58  ;;  %v1782_v21 = vand.u32 2147483647, %v6906_v42  ;;  %2337 = vst [vmem:[#allocation2 + $0x218] sm:$0xff] %v6318_v3  ;;  %v2475_v15 = vmul.f32 0.0, %v6989_v57 }
 0x16c   : > { %v5792_v40 = vpop.eup %5791  ;;  %v1766_v24 = vsel %vm1765_vm15, %v6902_v39, %v1762_v29  ;;  %v1774_v44 = vmul.f32 %v6968_v38, %v6906_v42  ;;  %v1277_v39 = vsub.f32 1.0, %v1276_v31  ;;  %vm1779_vm3 = vweird.f32 %v6968_v38  ;;  %v2539_v29 = vld [vmem:[#allocation2 + $0x9] sm:$0xff]  ;;  %2338 = vst [vmem:[#allocation2 + $0x220] sm:$0xff] %v6318_v3 }
 0x16d   : > { %v799_v49 = vpop.f32.mrf.mxu0  ;;  %v1771_v55 = vsel %vm1768_vm1, %v1770_v32, %v1766_v24  ;;  %v6981_v56 = vadd.f32 1.0, %v5792_v40  ;;  %v5794_v12 = vpop.eup %5793  ;;  %v7013_v59 = vmul.f32 %v1273_v51, %v6802_v50  ;;  %11059 = vst [vmem:[#allocation32_spill] sm:$0xff] %v7025_v43  ;;  %v2409_v24 = vmul.f32 %v6998_v60, %v2375_v18  ;;  %vm1780_vm5 = vmor %vm1778_vm4, %vm1779_vm3 }
 0x16e   : > { %v6984_v10 = vmul.f32 %v1771_v55, %v6805_v19  ;;  %v1775_v41 = vsub.f32 1.0, %v1774_v44  ;;  %v6993_v30 = vadd.f32 %v6880_v35, %v799_v49  ;;  %v1784_v19 = vand.u32 2147483648, %v6906_v42  ;;  %2339 = vst [vmem:[#allocation2 + $0x228] sm:$0xff] %v6318_v3  ;;  %v1560_v51 = vpop.f32.mrf.mxu1 }
 0x16f   : > { %5799 = vrcp.f32 %v6981_v56  ;;  %11058 = vst [vmem:[#allocation31_spill] sm:$0xff] %v7013_v59  ;;  %v7016_v31 = vadd.f32 1.0, %v5794_v12  ;;  %v1278_v32 = vmul.f32 %v6934_v1, %v1277_v39  ;;  %v2573_v49 = vmul.f32 %v7007_v20, %v2539_v29 }
 0x170   : > { %2343 = vst [vmem:[#allocation2 + $0x28] sm:$0xff] %v6984_v10  ;;  %v1776_v17 = vmul.f32 %v6968_v38, %v1775_v41  ;;  %v5416_v6 = vmul.f32 -1.442695, %v6993_v30  ;;  %v5796_v58 = vpop.eup %5795  ;;  %v1785_v44 = vor.u32 1.1754944e-38, %v1784_v19  ;;  %vm1783_vm6 = vcmp.eq.f32.partialorder %v1782_v21, 8.507059e+37 }
 0x171   : > { %v5798_v50 = vpop.eup %5797  ;;  %5801 = vrcp.f32 %v7016_v31  ;;  %2340 = vst [vmem:[#allocation2 + $0x230] sm:$0xff] %v6318_v3  ;;  %v7039_v41 = vadd.f32 1.0, %v5796_v58  ;;  %v1467_v12 = vpack.c.bf16 %v7013_v59, %v7025_v43  ;;  %v1279_v19 = vadd.f32 %v6934_v1, %v1278_v32 }
 0x172   : > { %v1777_v40 = vadd.f32 %v6968_v38, %v1776_v17  ;;  %2341 = vst [vmem:[#allocation2 + $0x238] sm:$0xff] %v6318_v3  ;;  %5803 = vpow2.f32 %v5416_v6  ;;  %vm1281_vm7 = vweird.f32 %v6934_v1  ;;  %v7048_v18 = vadd.f32 1.0, %v5798_v50 }
 0x173   : > { %v2507_v17 = vadd.f32 %v2475_v15, %v2409_v24  ;;  %v1286_v3 = vand.u32 2147483648, %v6891_v23  ;;  %v7054_v29 = vadd.f32 %v6792_v7, %v1560_v51  ;;  %5441 = vmatmul.msk.bf16.gmra.mxu1 %vm679_vm0, %v1467_v12  ;;  %vm7060_vm9 = vmor %vm1280_vm8, %vm1281_vm7  ;;  %v2508_v58 = vadd.f32 %v2475_v15, %v2410_v22 }
 0x174   : > { %v1781_v42 = vsel %vm1780_vm5, %v6968_v38, %v1777_v40  ;;  %v2574_v32 = vmul.f32 %v7007_v20, %v2540_v13  ;;  %5805 = vrcp.f32 %v7039_v41  ;;  %v7069_v40 = vld [vmem:[%s10928_s5 + $0x3] ss:$0 sm:$0xff]  ;;  %v1283_v23 = vsel %vm7060_vm9, %v6934_v1, %v1279_v19 }
 0x175   : > { %v7036_v55 = vpop.eup %5799  ;;  %v1786_v39 = vsel %vm1783_vm6, %v1785_v44, %v1781_v42  ;;  %5807 = vrcp.f32 %v7048_v18  ;;  %v2605_v15 = vadd.f32 %v2573_v49, %v2507_v17  ;;  %v1287_v42 = vor.u32 1.1754944e-38, %v1286_v3 }
 0x176   : > { %v7046_v38 = vmul.f32 %v1786_v39, %v6844_v52  ;;  %v1291_v21 = vmul.f32 %v7036_v55, %v6981_v56  ;;  %v5451_v51 = vmul.f32 -1.442695, %v7054_v29  ;;  %v7080_v39 = vld [vmem:[%s10928_s5 + $0x4] ss:$0 sm:$0xff]  ;;  %vm1285_vm10 = vcmp.eq.f32.partialorder %v1284_v14, 8.507059e+37 }
 0x177   : > { %v5802_v52 = vpop.eup %5801  ;;  %v2377_v44 = vld [vmem:[#allocation2 + $0x27] sm:$0xff]  ;;  %v1301_v12 = vand.u32 2147483648, %v6981_v56  ;;  %v1288_v13 = vsel %vm1285_vm10, %v1287_v42, %v1283_v23  ;;  %v7085_v6 = vadd.f32 %v2574_v32, %v2508_v58  ;;  %v1299_v49 = vand.u32 2147483647, %v6981_v56 }
 0x178   : > { %2344 = vst [vmem:[#allocation2 + $0x30] sm:$0xff] %v7046_v38  ;;  %v1789_v50 = vmul.f32 %v5802_v52, %v7016_v31  ;;  %v5804_v24 = vpop.eup %5803  ;;  %v1292_v22 = vsub.f32 1.0, %v1291_v21  ;;  %v1797_v17 = vand.u32 2147483647, %v7016_v31  ;;  %v2671_v3 = vmul.f32 %v7069_v40, %v2377_v44 }
 0x179   : > { %v7083_v19 = vadd.f32 1.0, %v5804_v24  ;;  %v1799_v59 = vand.u32 2147483648, %v7016_v31  ;;  %vm1295_vm11 = vweird.f32 %v6981_v56  ;;  %vm1794_vm12 = vweird.f32 %v5802_v52 }
 0x17a   : > { %v1790_v1 = vsub.f32 1.0, %v1789_v50  ;;  %v7092_v14 = vpop.eup %5805  ;;  %v1293_v50 = vmul.f32 %v7036_v55, %v1292_v22  ;;  %v2477_v32 = vmul.f32 %v6989_v57, %v6984_v10  ;;  %v2769_v23 = vmul.f32 %v7080_v39, %v6984_v10  ;;  %v802_v22 = vpop.f32.mrf.mxu0 }
 0x17b   : > { %5809 = vrcp.f32 %v7083_v19  ;;  %v7096_v58 = vpop.eup %5807  ;;  %v7103_v24 = vmul.f32 %v1288_v13, %v6834_v46  ;;  %v1302_v42 = vor.u32 1.1754944e-38, %v1301_v12  ;;  %vm1296_vm13 = vweird.f32 %v7036_v55 }
 0x17c   : > { %v1791_v21 = vmul.f32 %v5802_v52, %v1790_v1  ;;  %5811 = vpow2.f32 %v5451_v51  ;;  %vm1793_vm14 = vweird.f32 %v7016_v31  ;;  %vm1798_vm15 = vcmp.eq.f32.partialorder %v1797_v17, 8.507059e+37  ;;  %vm7139_vm3 = vmor %vm1295_vm11, %vm1296_vm13 }
 0x17d   : > { %11062 = vst [vmem:[#allocation33_spill] sm:$0xff] %v7103_v24  ;;  %v2411_v51 = vmul.f32 %v6998_v60, %v2377_v44  ;;  %v2703_v43 = vadd.f32 %v2671_v3, %v2605_v15  ;;  %vm7108_vm1 = vcmp.eq.f32.partialorder %v1299_v49, 8.507059e+37  ;;  %vm1795_vm2 = vmor %vm1793_vm14, %vm1794_vm12  ;;  %v1800_v10 = vor.u32 1.1754944e-38, %v1799_v59  ;;  %v1562_v44 = vpop.f32.mrf.mxu1 }
 0x17e   : > { %v1792_v1 = vadd.f32 %v5802_v52, %v1791_v21  ;;  %v1316_v46 = vand.u32 2147483648, %v7039_v41  ;;  %v1294_v12 = vadd.f32 %v7036_v55, %v1293_v50  ;;  %v1306_v31 = vmul.f32 %v7092_v14, %v7039_v41 }
 0x17f   : > { %v1804_v17 = vmul.f32 %v7096_v58, %v7048_v18  ;;  %v2478_v49 = vmul.f32 %v6989_v57, %v7046_v38  ;;  %v1314_v59 = vand.u32 2147483647, %v7039_v41  ;;  %v7125_v21 = vadd.f32 %v6880_v35, %v802_v22  ;;  %v2378_v28 = vld [vmem:[#allocation2 + $0x2f] sm:$0xff] }
 0x180   : > { %v1796_v13 = vsel %vm1795_vm2, %v5802_v52, %v1792_v1  ;;  %v7129_v52 = vmul.f32 %v7080_v39, %v7046_v38  ;;  %v1812_v16 = vand.u32 2147483647, %v7048_v18  ;;  %v2509_v34 = vadd.f32 %v2477_v32, %v2411_v51  ;;  %v2541_v27 = vld [vmem:[#allocation2 + $0x29] sm:$0xff]  ;;  %v7151_v32 = vld [vmem:[%s10928_s5 + $0x5] ss:$0 sm:$0xff] }
 0x181   : > { %v7119_v15 = vpop.eup %5809  ;;  %v1801_v3 = vsel %vm1798_vm15, %v1800_v10, %v1796_v13  ;;  %v1805_v53 = vsub.f32 1.0, %v1804_v17  ;;  %v7143_v10 = vor.u32 1.1754944e-38, %v1316_v46  ;;  %vm1808_vm4 = vweird.f32 %v7048_v18 }
 0x182   : > { %v5812_v50 = vpop.eup %5811  ;;  %v7132_v1 = vmul.f32 %v1801_v3, %v6909_v8  ;;  %v1321_v8 = vmul.f32 %v7119_v15, %v7083_v19  ;;  %v2801_v38 = vadd.f32 %v2769_v23, %v2703_v43  ;;  %v1298_v56 = vsel %vm7139_vm3, %v7036_v55, %v1294_v12 }
 0x183   : > { %v1307_v51 = vsub.f32 1.0, %v1306_v31  ;;  %v1814_v46 = vand.u32 2147483648, %v7048_v18  ;;  %v1806_v13 = vmul.f32 %v7096_v58, %v1805_v53  ;;  %vm1809_vm5 = vweird.f32 %v7096_v58 }
 0x184   : > { %2345 = vst [vmem:[#allocation2 + $0x48] sm:$0xff] %v7132_v1  ;;  %v7160_v17 = vadd.f32 1.0, %v5812_v50  ;;  %v5417_v43 = vmul.f32 -1.442695, %v7125_v21  ;;  %v2412_v23 = vmul.f32 %v6998_v60, %v2378_v28  ;;  %v2575_v3 = vmul.f32 %v7007_v20, %v2541_v27  ;;  %vm1810_vm9 = vmor %vm1808_vm4, %vm1809_vm5 }
 0x185   : > { %vm7165_vm6 = vcmp.eq.f32.partialorder %v1812_v16, 8.507059e+37  ;;  %v7170_v55 = vadd.f32 %v6792_v7, %v1562_v44  ;;  %v2672_v12 = vmul.f32 %v7069_v40, %v2378_v28  ;;  %v1807_v53 = vadd.f32 %v7096_v58, %v1806_v13  ;;  %v7181_v16 = vld [vmem:[%s10928_s5 + $0x6] ss:$0 sm:$0xff]  ;;  %v804_v13 = vpop.f32.mrf.mxu0  ;;  %v1565_v45 = vpop.f32.mrf.mxu1 }
 0x186   : > { %v1322_v31 = vsub.f32 1.0, %v1321_v8  ;;  %5813 = vrcp.f32 %v7160_v17  ;;  %v2867_v50 = vmul.f32 %v7151_v32, %v2541_v27  ;;  %v1303_v33 = vsel %vm7108_vm1, %v1302_v42, %v1298_v56  ;;  %v7192_v27 = vld [vmem:[%s10928_s5 + $0x7] ss:$0 sm:$0xff] }
 0x187   : > { %vm1310_vm7 = vweird.f32 %v7039_v41  ;;  %vm1311_vm8 = vweird.f32 %v7092_v14  ;;  %v1815_v28 = vor.u32 1.1754944e-38, %v1814_v46  ;;  %v1308_v5 = vmul.f32 %v7092_v14, %v1307_v51 }
 0x188   : > { %v1811_v42 = vsel %vm1810_vm9, %v7096_v58, %v1807_v53  ;;  %vm1325_vm10 = vweird.f32 %v7083_v19  ;;  %v1331_v44 = vand.u32 2147483648, %v7083_v19  ;;  %5815 = vpow2.f32 %v5417_v43  ;;  %vm7252_vm13 = vmor %vm1310_vm7, %vm1311_vm8 }
 0x189   : > { %v2510_v8 = vadd.f32 %v2478_v49, %v2412_v23  ;;  %v2607_v56 = vadd.f32 %v2575_v3, %v2509_v34  ;;  %v1816_v18 = vsel %vm7165_vm6, %v1815_v28, %v1811_v42  ;;  %v5452_v46 = vmul.f32 -1.442695, %v7170_v55 }
 0x18a   : > { %v2704_v4 = vadd.f32 %v2672_v12, %v7085_v6  ;;  %v7203_v51 = vmul.f32 %v1303_v33, %v6883_v54  ;;  %v7208_v53 = vmul.f32 %v1816_v18, %v6932_v0  ;;  %v1323_v49 = vmul.f32 %v7119_v15, %v1322_v31  ;;  %v2542_v12 = vld [vmem:[#allocation2 + $0x31] sm:$0xff] }
 0x18b   : > { %v7205_v58 = vld [vmem:[#allocation2 + $0x47] sm:$0xff]  ;;  %v2899_v34 = vadd.f32 %v2867_v50, %v2801_v38  ;;  %v2771_v23 = vmul.f32 %v7080_v39, %v7132_v1  ;;  %vm7217_vm11 = vcmp.eq.f32.partialorder %v1314_v59, 8.507059e+37  ;;  %v3064_v0 = vmul.f32 %v7192_v27, %v7132_v1 }
 0x18c   : > { %11069 = vst [vmem:[#allocation34_spill] sm:$0xff] %v7203_v51  ;;  %v2673_v43 = vmul.f32 %v7069_v40, %v7205_v58  ;;  %v2966_v6 = vmul.f32 %v7181_v16, %v7205_v58  ;;  %v7221_v54 = vpop.eup %5813  ;;  %v1309_v38 = vadd.f32 %v7092_v14, %v1308_v5  ;;  %v7228_v3 = vadd.f32 %v6880_v35, %v804_v13 }
 0x18d   : > { %2346 = vst [vmem:[#allocation2 + $0x50] sm:$0xff] %v7208_v53  ;;  %v7231_v22 = vadd.f32 %v6792_v7, %v1565_v45  ;;  %v1819_v50 = vmul.f32 %v7221_v54, %v7160_v17  ;;  %5817 = vpow2.f32 %v5452_v46  ;;  %v2802_v42 = vadd.f32 %v7129_v52, %v2704_v4 }
 0x18e   : > { %v2705_v59 = vadd.f32 %v2673_v43, %v2607_v56  ;;  %v2998_v31 = vadd.f32 %v2966_v6, %v2899_v34  ;;  %v5816_v28 = vpop.eup %5815  ;;  %v1324_v5 = vadd.f32 %v7119_v15, %v1323_v49  ;;  %vm1326_vm12 = vweird.f32 %v7119_v15 }
 0x18f   : > { %v1468_v18 = vpack.c.bf16 %v7203_v51, %v7103_v24  ;;  %v1820_v56 = vsub.f32 1.0, %v1819_v50  ;;  %v7244_v34 = vadd.f32 1.0, %v5816_v28  ;;  %v2576_v43 = vmul.f32 %v7007_v20, %v2542_v12  ;;  %vm7264_vm14 = vmor %vm1325_vm10, %vm1326_vm12 }
 0x190   : > { %v7240_v13 = vadd.f32 %v2771_v23, %v2705_v59  ;;  %v7242_v45 = vadd.f32 %v3064_v0, %v2998_v31  ;;  %v2868_v46 = vmul.f32 %v7151_v32, %v2542_v12  ;;  %v1329_v52 = vand.u32 2147483647, %v7083_v19 }
 0x191   : > { %v5418_v49 = vmul.f32 -1.442695, %v7228_v3  ;;  %5442 = vmatmul.msk.bf16.gmra.mxu1 %vm679_vm0, %v1468_v18  ;;  %v1313_v23 = vsel %vm7252_vm13, %v7092_v14, %v1309_v38  ;;  %v1821_v41 = vmul.f32 %v7221_v54, %v1820_v56  ;;  %5819 = vrcp.f32 %v7244_v34 }
 0x192   : > { %v5453_v0 = vmul.f32 -1.442695, %v7231_v22  ;;  %v2608_v12 = vadd.f32 %v2576_v43, %v2510_v8  ;;  %v2900_v59 = vadd.f32 %v2868_v46, %v2802_v42  ;;  %v1328_v31 = vsel %vm7264_vm14, %v7119_v15, %v1324_v5 }
 0x193   : > { %v1829_v14 = vand.u32 2147483648, %v7160_v17  ;;  %v5818_v38 = vpop.eup %5817  ;;  %v1332_v50 = vor.u32 1.1754944e-38, %v1331_v44  ;;  %v1822_v28 = vadd.f32 %v7221_v54, %v1821_v41  ;;  %vm1824_vm15 = vweird.f32 %v7221_v54 }
 0x194   : > { %v7275_v19 = vld [vmem:[#allocation2 + $0x4f] sm:$0xff]  ;;  %v1827_v18 = vand.u32 2147483647, %v7160_v17  ;;  %v1318_v8 = vsel %vm7217_vm11, %v7143_v10, %v1313_v23  ;;  %vm1330_vm1 = vcmp.eq.f32.partialorder %v1329_v52, 8.507059e+37  ;;  %5821 = vpow2.f32 %v5418_v49 }
 0x195   : > { %v2674_v42 = vmul.f32 %v7069_v40, %v7275_v19  ;;  %v2967_v15 = vmul.f32 %v7181_v16, %v7275_v19  ;;  %v1333_v5 = vsel %vm1330_vm1, %v1332_v50, %v1328_v31  ;;  %vm1823_vm2 = vweird.f32 %v7160_v17  ;;  %v7313_v31 = vld [vmem:[#allocation2 + $0x49] sm:$0xff] }
 0x196   : > { %5823 = vpow2.f32 %v5453_v0  ;;  %v2772_v56 = vmul.f32 %v7080_v39, %v7208_v53  ;;  %vm1825_vm3 = vmor %vm1823_vm2, %vm1824_vm15  ;;  %v1830_v43 = vor.u32 1.1754944e-38, %v1829_v14  ;;  %v7290_v33 = vadd.f32 1.0, %v5818_v38 }
 0x197   : > { %v2706_v44 = vadd.f32 %v2674_v42, %v2608_v12  ;;  %v7292_v10 = vpop.eup %5819  ;;  %v2999_v46 = vadd.f32 %v2967_v15, %v2900_v59  ;;  %v3065_v4 = vmul.f32 %v7192_v27, %v7208_v53  ;;  %v1826_v52 = vsel %vm1825_vm3, %v7221_v54, %v1822_v28 }
 0x198   : > { %vm1828_vm4 = vcmp.eq.f32.partialorder %v1827_v18, 8.507059e+37  ;;  %v7300_v17 = vmul.f32 %v1333_v5, %v6993_v30  ;;  %v7308_v12 = vmul.f32 %v1318_v8, %v6929_v61  ;;  %v1336_v59 = vmul.f32 %v7292_v10, %v7244_v34  ;;  %v1567_v61 = vpop.f32.mrf.mxu1 }
 0x199   : > { %v7297_v49 = vadd.f32 %v2772_v56, %v2706_v44  ;;  %v1831_v23 = vsel %vm1828_vm4, %v1830_v43, %v1826_v52  ;;  %v7302_v6 = vadd.f32 %v3065_v4, %v2999_v46  ;;  %5825 = vrcp.f32 %v7290_v33 }
 0x19a   : > { %11076 = vst [vmem:[#allocation35_spill] sm:$0xff] %v7300_v17  ;;  %v7305_v41 = vmul.f32 %v1831_v23, %v7054_v29  ;;  %v5822_v0 = vpop.eup %5821  ;;  %v2413_v30 = vmul.f32 %v6998_v60, %v7205_v58  ;;  %v1469_v29 = vpack.c.bf16 %v7300_v17, %v7308_v12  ;;  %v2479_v38 = vmul.f32 %v6989_v57, %v7132_v1  ;;  %v807_v58 = vpop.f32.mrf.mxu0 }
 0x19b   : > { %11077 = vst [vmem:[#allocation36_spill] sm:$0xff] %v7308_v12  ;;  %v7320_v14 = vadd.f32 1.0, %v5822_v0  ;;  %v2577_v50 = vmul.f32 %v7007_v20, %v7313_v31  ;;  %v1337_v28 = vsub.f32 1.0, %v1336_v59  ;;  %v2869_v8 = vmul.f32 %v7151_v32, %v7313_v31 }
 0x19c   : > { %v5824_v54 = vpop.eup %5823  ;;  %2347 = vst [vmem:[#allocation2 + $0x68] sm:$0xff] %v7305_v41  ;;  %v2511_v15 = vadd.f32 %v2479_v38, %v2413_v30  ;;  %v7333_v5 = vadd.f32 %v6792_v7, %v1567_v61  ;;  %v7341_v46 = vadd.f32 %v6880_v35, %v807_v58  ;;  %v2773_v0 = vmul.f32 %v7080_v39, %v7305_v41 }
 0x19d   : > { %v7326_v18 = vadd.f32 1.0, %v5824_v54  ;;  %5827 = vrcp.f32 %v7320_v14  ;;  %v1338_v43 = vmul.f32 %v7292_v10, %v1337_v28  ;;  %v2901_v4 = vadd.f32 %v2869_v8, %v7240_v13 }
 0x19e   : > { %v2609_v44 = vadd.f32 %v2577_v50, %v2511_v15  ;;  %v3066_v59 = vmul.f32 %v7192_v27, %v7305_v41  ;;  %v1844_v54 = vand.u32 2147483648, %v7290_v33  ;;  %v5454_v30 = vmul.f32 -1.442695, %v7333_v5 }
 0x19f   : > { %v5826_v42 = vpop.eup %5825  ;;  %5829 = vrcp.f32 %v7326_v18  ;;  %v1339_v28 = vadd.f32 %v7292_v10, %v1338_v43  ;;  %vm1341_vm6 = vweird.f32 %v7292_v10  ;;  %vm1838_vm7 = vweird.f32 %v7290_v33 }
 0x1a0   : > { %v1834_v1 = vmul.f32 %v5826_v42, %v7290_v33  ;;  %vm1839_vm5 = vweird.f32 %v5826_v42  ;;  %v1842_v8 = vand.u32 2147483647, %v7290_v33  ;;  %vm1340_vm8 = vweird.f32 %v7244_v34 }
 0x1a1   : > { %5443 = vmatmul.msk.bf16.gmra.mxu1 %vm679_vm0, %v1469_v29  ;;  %vm1840_vm9 = vmor %vm1838_vm7, %vm1839_vm5  ;;  %v1845_v43 = vor.u32 1.1754944e-38, %v1844_v54  ;;  %5831 = vpow2.f32 %v5454_v30  ;;  %v5419_v30 = vmul.f32 -1.442695, %v7341_v46  ;;  %vm1355_vm14 = vweird.f32 %v7320_v14 }
 0x1a2   : > { %v1835_v23 = vsub.f32 1.0, %v1834_v1  ;;  %vm7368_vm10 = vmor %vm1340_vm8, %vm1341_vm6  ;;  %vm1843_vm11 = vcmp.eq.f32.partialorder %v1842_v8, 8.507059e+37  ;;  %vm1853_vm3 = vweird.f32 %v7326_v18 }
 0x1a3   : > { %v7337_v56 = vld [vmem:[#allocation2 + $0x67] sm:$0xff]  ;;  %v5828_v29 = vpop.eup %5827  ;;  %5833 = vpow2.f32 %v5419_v30 }
 0x1a4   : > { %v2675_v52 = vmul.f32 %v7069_v40, %v7337_v56  ;;  %v2968_v7 = vmul.f32 %v7181_v16, %v7337_v56  ;;  %v1836_v38 = vmul.f32 %v5826_v42, %v1835_v23  ;;  %vm1356_vm12 = vweird.f32 %v5828_v29 }
 0x1a5   : > { %v7354_v50 = vpop.eup %5829  ;;  %vm1357_vm15 = vmor %vm1355_vm14, %vm1356_vm12 }
 0x1a6   : > { %v2707_v61 = vadd.f32 %v2675_v52, %v2609_v44  ;;  %v3000_v13 = vadd.f32 %v2968_v7, %v2901_v4  ;;  %v1837_v1 = vadd.f32 %v5826_v42, %v1836_v38  ;;  %v1351_v44 = vmul.f32 %v5828_v29, %v7320_v14 }
 0x1a7   : > { %v1344_v4 = vand.u32 2147483647, %v7244_v34  ;;  %v1346_v52 = vand.u32 2147483648, %v7244_v34  ;;  %v1361_v34 = vand.u32 2147483648, %v7320_v14  ;;  %vm1854_vm1 = vweird.f32 %v7354_v50 }
 0x1a8   : > { %v7360_v58 = vadd.f32 %v2773_v0, %v2707_v61  ;;  %v7362_v15 = vadd.f32 %v3066_v59, %v3000_v13  ;;  %v1841_v33 = vsel %vm1840_vm9, %v5826_v42, %v1837_v1  ;;  %v1352_v23 = vsub.f32 1.0, %v1351_v44  ;;  %vm1855_vm4 = vmor %vm1853_vm3, %vm1854_vm1 }
 0x1a9   : > { %v1849_v0 = vmul.f32 %v7354_v50, %v7326_v18  ;;  %v1343_v59 = vsel %vm7368_vm10, %v7292_v10, %v1339_v28  ;;  %v1359_v61 = vand.u32 2147483647, %v7320_v14  ;;  %v1846_v54 = vsel %vm1843_vm11, %v1845_v43, %v1841_v33  ;;  %v7394_v14 = vld [vmem:[%s10928_s5 + $0x8] ss:$0 sm:$0xff] }
 0x1aa   : > { %v1353_v13 = vmul.f32 %v5828_v29, %v1352_v23  ;;  %vm1345_vm13 = vcmp.eq.f32.partialorder %v1344_v4, 8.507059e+37  ;;  %v1347_v42 = vor.u32 1.1754944e-38, %v1346_v52  ;;  %v7380_v1 = vmul.f32 %v1846_v54, %v7170_v55  ;;  %v5832_v55 = vpop.eup %5831  ;;  %v2544_v54 = vld [vmem:[#allocation2 + $0x51] sm:$0xff] }
 0x1ab   : > { %v1850_v38 = vsub.f32 1.0, %v1849_v0  ;;  %v1859_v28 = vand.u32 2147483648, %v7326_v18  ;;  %v1362_v43 = vor.u32 1.1754944e-38, %v1361_v34  ;;  %v1857_v4 = vand.u32 2147483647, %v7326_v18 }
 0x1ac   : > { %v1354_v44 = vadd.f32 %v5828_v29, %v1353_v13  ;;  %v1348_v8 = vsel %vm1345_vm13, %v1347_v42, %v1343_v59  ;;  %2348 = vst [vmem:[#allocation2 + $0x70] sm:$0xff] %v7380_v1  ;;  %v2414_v52 = vmul.f32 %v6998_v60, %v7275_v19  ;;  %vm1360_vm2 = vcmp.eq.f32.partialorder %v1359_v61, 8.507059e+37 }
 0x1ad   : > { %v1851_v10 = vmul.f32 %v7354_v50, %v1850_v38  ;;  %v2480_v0 = vmul.f32 %v6989_v57, %v7208_v53  ;;  %v7401_v59 = vmul.f32 %v1348_v8, %v7125_v21  ;;  %v1860_v34 = vor.u32 1.1754944e-38, %v1859_v28  ;;  %v5834_v8 = vpop.eup %5833 }
 0x1ae   : > { %v1358_v7 = vsel %vm1357_vm15, %v5828_v29, %v1354_v44  ;;  %vm1858_vm5 = vcmp.eq.f32.partialorder %v1857_v4, 8.507059e+37  ;;  %v7407_v61 = vadd.f32 1.0, %v5832_v55  ;;  %v3162_v18 = vmul.f32 %v7394_v14, %v7313_v31 }
 0x1af   : > { %v1852_v33 = vadd.f32 %v7354_v50, %v1851_v10  ;;  %v1363_v23 = vsel %vm1360_vm2, %v1362_v43, %v1358_v7  ;;  %11080 = vst [vmem:[#allocation37_spill] sm:$0xff] %v7401_v59  ;;  %v2512_v13 = vadd.f32 %v2480_v0, %v2414_v52  ;;  %v2578_v38 = vmul.f32 %v7007_v20, %v2544_v54 }
 0x1b0   : > { %v7404_v19 = vmul.f32 %v1363_v23, %v7228_v3  ;;  %5835 = vrcp.f32 %v7407_v61  ;;  %v3163_v30 = vmul.f32 %v7394_v14, %v2544_v54  ;;  %v3194_v44 = vadd.f32 %v3162_v18, %v7242_v45  ;;  %v809_v45 = vpop.f32.mrf.mxu0 }
 0x1b1   : > { %v1856_v29 = vsel %vm1855_vm4, %v7354_v50, %v1852_v33  ;;  %v2870_v50 = vmul.f32 %v7151_v32, %v2544_v54  ;;  %v2610_v31 = vadd.f32 %v2578_v38, %v2512_v13  ;;  %v2415_v4 = vmul.f32 %v6998_v60, %v7337_v56 }
 0x1b2   : > { %11081 = vst [vmem:[#allocation38_spill] sm:$0xff] %v7404_v19  ;;  %v1470_v21 = vpack.c.bf16 %v7404_v19, %v7401_v59  ;;  %v1861_v53 = vsel %vm1858_vm5, %v1860_v34, %v1856_v29  ;;  %v3195_v52 = vadd.f32 %v3163_v30, %v7302_v6  ;;  %v2481_v7 = vmul.f32 %v6989_v57, %v7305_v41 }
 0x1b3   : > { %v7414_v3 = vmul.f32 %v1861_v53, %v7231_v22  ;;  %v7417_v42 = vld [vmem:[#allocation2 + $0x6f] sm:$0xff]  ;;  %v7428_v22 = vld [vmem:[%s10929_s6] ss:$0 sm:$0xff]  ;;  %v2902_v43 = vadd.f32 %v2870_v50, %v7297_v49  ;;  %v2774_v23 = vmul.f32 %v7080_v39, %v7380_v1  ;;  %v3067_v34 = vmul.f32 %v7192_v27, %v7380_v1 }
 0x1b4   : > { %5444 = vmatmul.msk.bf16.gmra.mxu1 %vm679_vm0, %v1470_v21  ;;  %v7430_v10 = vld [vmem:[#allocation2 + $0x69] sm:$0xff]  ;;  %v2676_v28 = vmul.f32 %v7069_v40, %v7417_v42  ;;  %v2969_v55 = vmul.f32 %v7181_v16, %v7417_v42  ;;  %v7451_v54 = vadd.f32 %v7428_v22, %v3194_v44  ;;  %v7455_v41 = vadd.f32 1.0, %v5834_v8 }
 0x1b5   : > { %2349 = vst [vmem:[#allocation2 + $0x88] sm:$0xff] %v7414_v3  ;;  %v2579_v0 = vmul.f32 %v7007_v20, %v7430_v10  ;;  %v2871_v49 = vmul.f32 %v7151_v32, %v7430_v10  ;;  %v2513_v13 = vadd.f32 %v2481_v7, %v2415_v4  ;;  %v7460_v21 = vadd.f32 %v7428_v22, %v3195_v52  ;;  %v1570_v52 = vpop.f32.mrf.mxu1 }
 0x1b6   : > { %v2708_v33 = vadd.f32 %v2676_v28, %v2610_v31  ;;  %v3001_v56 = vadd.f32 %v2969_v55, %v2902_v43  ;;  %v5836_v29 = vpop.eup %5835  ;;  %v5479_v44 = vmul.f32 -1.442695, %v7451_v54  ;;  %5837 = vrcp.f32 %v7455_v41 }
 0x1b7   : > { %v2611_v38 = vadd.f32 %v2579_v0, %v2513_v13  ;;  %v2903_v50 = vadd.f32 %v2871_v49, %v7360_v58  ;;  %v1864_v28 = vmul.f32 %v5836_v29, %v7407_v61  ;;  %v7473_v8 = vadd.f32 %v6880_v35, %v809_v45 }
 0x1b8   : > { %v7453_v6 = vadd.f32 %v2774_v23, %v2708_v33  ;;  %v7457_v18 = vadd.f32 %v3067_v34, %v3001_v56  ;;  %v2775_v4 = vmul.f32 %v7080_v39, %v7414_v3  ;;  %v3068_v55 = vmul.f32 %v7192_v27, %v7414_v3  ;;  %v812_v56 = vpop.f32.mrf.mxu0 }
 0x1b9   : > { %v5480_v7 = vmul.f32 -1.442695, %v7460_v21  ;;  %v1865_v33 = vsub.f32 1.0, %v1864_v28  ;;  %v1872_v49 = vand.u32 2147483647, %v7407_v61  ;;  %v1874_v45 = vand.u32 2147483648, %v7407_v61 }
 0x1ba   : > { %vm1869_vm6 = vweird.f32 %v5836_v29  ;;  %v5420_v13 = vmul.f32 -1.442695, %v7473_v8  ;;  %5839 = vpow2.f32 %v5479_v44  ;;  %vm1868_vm7 = vweird.f32 %v7407_v61 }
 0x1bb   : > { %v1866_v34 = vmul.f32 %v5836_v29, %v1865_v33  ;;  %vm1870_vm8 = vmor %vm1868_vm7, %vm1869_vm6  ;;  %vm1873_vm9 = vcmp.eq.f32.partialorder %v1872_v49, 8.507059e+37  ;;  %vm1370_vm10 = vweird.f32 %v7455_v41 }
 0x1bc   : > { %v7462_v53 = vld [vmem:[#allocation2 + $0x87] sm:$0xff]  ;;  %5841 = vpow2.f32 %v5420_v13 }
 0x1bd   : > { %v2677_v31 = vmul.f32 %v7069_v40, %v7462_v53  ;;  %v2970_v30 = vmul.f32 %v7181_v16, %v7462_v53  ;;  %5843 = vpow2.f32 %v5480_v7 }
 0x1bf   : > { %v2709_v43 = vadd.f32 %v2677_v31, %v2611_v38  ;;  %v3002_v58 = vadd.f32 %v2970_v30, %v2903_v50  ;;  %v7490_v38 = vld [vmem:[%s10927_s4] ss:$0 sm:$0xff]  ;;  %v7496_v31 = vpop.eup %5837  ;;  %v1867_v30 = vadd.f32 %v5836_v29, %v1866_v34  ;;  %v1572_v34 = vpop.f32.mrf.mxu1 }
 0x1c0   : > { %v7493_v50 = vadd.f32 %v7490_v38, %v1570_v52  ;;  %v1366_v44 = vmul.f32 %v7496_v31, %v7455_v41  ;;  %v5840_v33 = vpop.eup %5839  ;;  %vm1371_vm11 = vweird.f32 %v7496_v31 }
 0x1c1   : > { %v7480_v23 = vadd.f32 %v2775_v4, %v2709_v43  ;;  %v7482_v0 = vadd.f32 %v3068_v55, %v3002_v58  ;;  %v7500_v43 = vadd.f32 %v6880_v35, %v812_v56  ;;  %v1875_v4 = vor.u32 1.1754944e-38, %v1874_v45  ;;  %vm7564_vm12 = vmor %vm1370_vm10, %vm1371_vm11 }
 0x1c2   : > { %v5455_v28 = vmul.f32 -1.442695, %v7493_v50  ;;  %v1871_v58 = vsel %vm1870_vm8, %v5836_v29, %v1867_v30  ;;  %v5842_v13 = vpop.eup %5841  ;;  %v2416_v35 = vmul.f32 %v6998_v60, %v7417_v42  ;;  %v2482_v45 = vmul.f32 %v6989_v57, %v7380_v1  ;;  %v814_v1 = vpop.f32.mrf.mxu0 }
 0x1c3   : > { %v1876_v55 = vsel %vm1873_vm9, %v1875_v4, %v1871_v58  ;;  %v5421_v52 = vmul.f32 -1.442695, %v7500_v43  ;;  %v5844_v29 = vpop.eup %5843  ;;  %v7511_v7 = vadd.f32 1.0, %v5842_v13  ;;  %v1367_v56 = vsub.f32 1.0, %v1366_v44  ;;  %v6219_v13 = vld [vmem:[%s11012_s2] ss:$0 sm:$0xff] }
 0x1c4   : > { %5845 = vpow2.f32 %v5455_v28  ;;  %v7505_v61 = vmul.f32 %v1876_v55, %v7333_v5  ;;  %v7515_v5 = vld [vmem:[#allocation2 + $0x71] sm:$0xff]  ;;  %v7518_v30 = vadd.f32 %v7490_v38, %v1572_v34  ;;  %v7520_v28 = vadd.f32 1.0, %v5840_v33 }
 0x1c5   : > { %5847 = vpow2.f32 %v5421_v52  ;;  %v2514_v4 = vadd.f32 %v2482_v45, %v2416_v35  ;;  %v7525_v42 = vadd.f32 1.0, %v5844_v29  ;;  %v2580_v58 = vmul.f32 %v7007_v20, %v7515_v5 }
 0x1c6   : > { %2350 = vst [vmem:[#allocation2 + $0x90] sm:$0xff] %v7505_v61  ;;  %5849 = vrcp.f32 %v7511_v7  ;;  %v1368_v57 = vmul.f32 %v7496_v31, %v1367_v56  ;;  %v5456_v44 = vmul.f32 -1.442695, %v7518_v30  ;;  %v2872_v20 = vmul.f32 %v7151_v32, %v7515_v5 }
 0x1c7   : > { %v2612_v33 = vadd.f32 %v2580_v58, %v2514_v4  ;;  %v7544_v35 = vadd.f32 %v6219_v13, %v814_v1  ;;  %v1575_v29 = vpop.f32.mrf.mxu1  ;;  %v2776_v4 = vmul.f32 %v7080_v39, %v7505_v61  ;;  %v1374_v1 = vand.u32 2147483647, %v7455_v41 }
 0x1c8   : > { %v1369_v45 = vadd.f32 %v7496_v31, %v1368_v57  ;;  %v2904_v58 = vadd.f32 %v2872_v20, %v7453_v6  ;;  %v1376_v13 = vand.u32 2147483648, %v7455_v41  ;;  %v7560_v57 = vadd.f32 %v7490_v38, %v1575_v29 }
 0x1c9   : > { %v5422_v20 = vmul.f32 -1.442695, %v7544_v35  ;;  %v3164_v29 = vmul.f32 %v7394_v14, %v7430_v10  ;;  %vm1375_vm13 = vcmp.eq.f32.partialorder %v1374_v1, 8.507059e+37  ;;  %vm1385_vm15 = vweird.f32 %v7511_v7 }
 0x1ca   : > { %v5846_v49 = vpop.eup %5845  ;;  %v1373_v41 = vsel %vm7564_vm12, %v7496_v31, %v1369_v45  ;;  %v1377_v51 = vor.u32 1.1754944e-38, %v1376_v13  ;;  %v5457_v2 = vmul.f32 -1.442695, %v7560_v57  ;;  %v1389_v31 = vand.u32 2147483647, %v7511_v7 }
 0x1cb   : > { %v7523_v60 = vadd.f32 1.0, %v5846_v49  ;;  %v5848_v52 = vpop.eup %5847  ;;  %v3196_v45 = vadd.f32 %v3164_v29, %v7362_v15 }
 0x1cc   : > { %v5850_v49 = vpop.eup %5849  ;;  %v7553_v59 = vadd.f32 1.0, %v5848_v52  ;;  %v1378_v6 = vsel %vm1375_vm13, %v1377_v51, %v1373_v41  ;;  %vm1390_vm3 = vcmp.eq.f32.partialorder %v1389_v31, 8.507059e+37  ;;  %v3165_v31 = vmul.f32 %v7394_v14, %v7515_v5 }
 0x1cd   : > { %v7530_v55 = vld [vmem:[#allocation2 + $0x8f] sm:$0xff]  ;;  %5851 = vrcp.f32 %v7523_v60  ;;  %v1381_v52 = vmul.f32 %v5850_v49, %v7511_v7  ;;  %vm1386_vm14 = vweird.f32 %v5850_v49  ;;  %v1889_v1 = vand.u32 2147483648, %v7523_v60 }
 0x1ce   : > { %5853 = vrcp.f32 %v7520_v28  ;;  %v2678_v34 = vmul.f32 %v7069_v40, %v7530_v55  ;;  %v2971_v19 = vmul.f32 %v7181_v16, %v7530_v55  ;;  %vm1387_vm1 = vmor %vm1385_vm15, %vm1386_vm14  ;;  %v1887_v25 = vand.u32 2147483647, %v7523_v60 }
 0x1cf   : > { %5855 = vrcp.f32 %v7525_v42  ;;  %vm1883_vm4 = vweird.f32 %v7523_v60  ;;  %v7602_v29 = vadd.f32 %v7428_v22, %v3196_v45  ;;  %v7605_v41 = vmul.f32 %v1378_v6, %v7341_v46 }
 0x1d0   : > { %v2710_v56 = vadd.f32 %v2678_v34, %v2612_v33  ;;  %5857 = vpow2.f32 %v5456_v44  ;;  %v3003_v34 = vadd.f32 %v2971_v19, %v2904_v58  ;;  %v3069_v44 = vmul.f32 %v7192_v27, %v7505_v61 }
 0x1d1   : > { %v1382_v19 = vsub.f32 1.0, %v1381_v52  ;;  %v1391_v58 = vand.u32 2147483648, %v7511_v7  ;;  %5859 = vrcp.f32 %v7553_v59  ;;  %11084 = vst [vmem:[#allocation39_spill] sm:$0xff] %v7605_v41  ;;  %vm1888_vm6 = vcmp.eq.f32.partialorder %v1887_v25, 8.507059e+37 }
 0x1d2   : > { %v7557_v17 = vadd.f32 %v2776_v4, %v2710_v56  ;;  %v7581_v12 = vadd.f32 %v3069_v44, %v3003_v34  ;;  %5861 = vpow2.f32 %v5422_v20  ;;  %vm1400_vm7 = vweird.f32 %v7553_v59 }
 0x1d3   : > { %v5852_v33 = vpop.eup %5851  ;;  %v1383_v26 = vmul.f32 %v5850_v49, %v1382_v19  ;;  %v1392_v52 = vor.u32 1.1754944e-38, %v1391_v58  ;;  %5863 = vpow2.f32 %v5457_v2  ;;  %v1890_v2 = vor.u32 1.1754944e-38, %v1889_v1 }
 0x1d4   : > { %v7572_v56 = vpop.eup %5853  ;;  %v1879_v24 = vmul.f32 %v5852_v33, %v7523_v60  ;;  %vm1884_vm2 = vweird.f32 %v5852_v33  ;;  %v5481_v1 = vmul.f32 -1.442695, %v7602_v29 }
 0x1d5   : > { %v7579_v4 = vpop.eup %5855  ;;  %v1384_v44 = vadd.f32 %v5850_v49, %v1383_v26  ;;  %v3391_v15 = vmul.f32 %v7572_v56, %v7520_v28  ;;  %vm1885_vm5 = vmor %vm1883_vm4, %vm1884_vm2  ;;  %vm3396_vm14 = vweird.f32 %v7572_v56  ;;  %vm3395_vm2 = vweird.f32 %v7520_v28 }
 0x1d6   : > { %v5858_v10 = vpop.eup %5857  ;;  %v1880_v34 = vsub.f32 1.0, %v1879_v24  ;;  %v3406_v26 = vmul.f32 %v7579_v4, %v7525_v42  ;;  %vm3410_vm4 = vweird.f32 %v7525_v42 }
 0x1d7   : > { %v7592_v19 = vadd.f32 1.0, %v5858_v10  ;;  %v7594_v48 = vpop.eup %5859  ;;  %v1388_v51 = vsel %vm1387_vm1, %v5850_v49, %v1384_v44  ;;  %v3392_v60 = vsub.f32 1.0, %v3391_v15  ;;  %v3197_v44 = vadd.f32 %v3165_v31, %v7457_v18 }
 0x1d8   : > { %v1881_v13 = vmul.f32 %v5852_v33, %v1880_v34  ;;  %v1393_v24 = vsel %vm1390_vm3, %v1392_v52, %v1388_v51  ;;  %v5862_v20 = vpop.eup %5861  ;;  %v1396_v10 = vmul.f32 %v7594_v48, %v7553_v59  ;;  %v3407_v34 = vsub.f32 1.0, %v3406_v26  ;;  %v7626_v52 = vld [vmem:[#allocation2 + $0x89] sm:$0xff] }
 0x1d9   : > { %v7608_v58 = vmul.f32 %v1393_v24, %v7473_v8  ;;  %5865 = vrcp.f32 %v7592_v19  ;;  %v7618_v8 = vpop.f32.mrf.mxu1  ;;  %v5864_v25 = vpop.eup %5863  ;;  %v7640_v18 = vmul.f32 %v7572_v56, %v3392_v60  ;;  %v7666_v31 = vadd.f32 %v7428_v22, %v3197_v44 }
 0x1da   : > { %v1882_v7 = vadd.f32 %v5852_v33, %v1881_v13  ;;  %v7634_v13 = vld [vmem:[%s10928_s5] ss:$0 sm:$0xff]  ;;  %v1397_v15 = vsub.f32 1.0, %v1396_v10  ;;  %v7660_v10 = vadd.f32 1.0, %v5864_v25  ;;  %v7663_v60 = vmul.f32 %v7579_v4, %v3407_v34 }
 0x1db   : > { %11085 = vst [vmem:[#allocation40_spill] sm:$0xff] %v7608_v58  ;;  %v1471_v46 = vpack.c.bf16 %v7608_v58, %v7605_v41  ;;  %v2418_v25 = vmul.f32 %v7634_v13, %v7530_v55  ;;  %v1406_v34 = vand.u32 2147483648, %v7553_v59  ;;  %v1902_v5 = vand.u32 2147483647, %v7592_v19 }
 0x1dc   : > { %v1886_v49 = vsel %vm1885_vm5, %v5852_v33, %v1882_v7  ;;  %v7623_v33 = vadd.f32 1.0, %v5862_v20  ;;  %v7648_v20 = vld [vmem:[%s10928_s5 + $0x1] ss:$0 sm:$0xff]  ;;  %v1398_v24 = vmul.f32 %v7594_v48, %v1397_v15  ;;  %v1904_v58 = vand.u32 2147483648, %v7592_v19 }
 0x1dd   : > { %v1891_v45 = vsel %vm1888_vm6, %v1890_v2, %v1886_v49  ;;  %5445 = vmatmul.msk.bf16.gmra.mxu1 %vm679_vm0, %v1471_v46  ;;  %v7655_v2 = vld [vmem:[%s10928_s5 + $0x2] ss:$0 sm:$0xff]  ;;  %v2484_v26 = vmul.f32 %v7648_v20, %v7505_v61  ;;  %vm1401_vm8 = vweird.f32 %v7594_v48  ;;  %vm1898_vm10 = vweird.f32 %v7592_v19 }
 0x1de   : > { %v7621_v6 = vmul.f32 %v1891_v45, %v7493_v50  ;;  %v2417_v50 = vmul.f32 %v7634_v13, %v7462_v53  ;;  %v2483_v53 = vmul.f32 %v7648_v20, %v7414_v3  ;;  %v2581_v49 = vmul.f32 %v7655_v2, %v7626_v52  ;;  %vm7703_vm13 = vmor %vm1400_vm7, %vm1401_vm8 }
 0x1df   : > { %v5866_v7 = vpop.eup %5865  ;;  %5867 = vrcp.f32 %v7623_v33  ;;  %v2873_v3 = vmul.f32 %v7151_v32, %v7626_v52  ;;  %vm1903_vm12 = vcmp.eq.f32.partialorder %v1902_v5, 8.507059e+37  ;;  %vm1415_vm3 = vweird.f32 %v7623_v33 }
 0x1e0   : > { %2351 = vst [vmem:[#allocation2 + $0xa8] sm:$0xff] %v7621_v6  ;;  %v1894_v46 = vmul.f32 %v5866_v7, %v7592_v19  ;;  %5869 = vpow2.f32 %v5481_v1  ;;  %v2515_v45 = vadd.f32 %v2483_v53, %v2417_v50  ;;  %vm1899_vm9 = vweird.f32 %v5866_v7 }
 0x1e1   : > { %5871 = vrcp.f32 %v7660_v10  ;;  %v2905_v1 = vadd.f32 %v2873_v3, %v7480_v23  ;;  %v1580_v55 = vpop.f32.mrf.mxu1  ;;  %v1407_v3 = vor.u32 1.1754944e-38, %v1406_v34  ;;  %v2777_v11 = vmul.f32 %v7080_v39, %v7621_v6  ;;  %vm1900_vm11 = vmor %vm1898_vm10, %vm1899_vm9 }
 0x1e2   : > { %v1895_v44 = vsub.f32 1.0, %v1894_v46  ;;  %v2613_v51 = vadd.f32 %v2581_v49, %v2515_v45  ;;  %v1399_v49 = vadd.f32 %v7594_v48, %v1398_v24  ;;  %v1404_v46 = vand.u32 2147483647, %v7553_v59 }
 0x1e3   : > { %v3070_v19 = vmul.f32 %v7192_v27, %v7621_v6  ;;  %vm1913_vm8 = vweird.f32 %v7660_v10  ;;  %vm3411_vm10 = vweird.f32 %v7579_v4 }
 0x1e4   : > { %v1896_v50 = vmul.f32 %v5866_v7, %v1895_v44  ;;  %vm1405_vm15 = vcmp.eq.f32.partialorder %v1404_v46, 8.507059e+37 }
 0x1e5   : > { %v5868_v15 = vpop.eup %5867 }
 0x1e6   : > { %v1897_v45 = vadd.f32 %v5866_v7, %v1896_v50  ;;  %v1411_v41 = vmul.f32 %v5868_v15, %v7623_v33  ;;  %v7693_v44 = vpop.eup %5869  ;;  %vm1416_vm1 = vweird.f32 %v5868_v15 }
 0x1e7   : > { %v7682_v61 = vld [vmem:[#allocation2 + $0xa7] sm:$0xff]  ;;  %v7711_v39 = vpop.eup %5871  ;;  %vm1417_vm5 = vmor %vm1415_vm3, %vm1416_vm1 }
 0x1e8   : > { %v2679_v53 = vmul.f32 %v7069_v40, %v7682_v61  ;;  %v2972_v23 = vmul.f32 %v7181_v16, %v7682_v61  ;;  %v1905_v40 = vor.u32 1.1754944e-38, %v1904_v58  ;;  %v1901_v50 = vsel %vm1900_vm11, %v5866_v7, %v1897_v45  ;;  %v7713_v58 = vld [vmem:[#allocation2 + $0x91] sm:$0xff] }
 0x1e9   : > { %v1909_v45 = vmul.f32 %v7711_v39, %v7660_v10  ;;  %v1582_v34 = vpop.f32.mrf.mxu1  ;;  %vm1914_vm7 = vweird.f32 %v7711_v39 }
 0x1ea   : > { %v2711_v47 = vadd.f32 %v2679_v53, %v2613_v51  ;;  %v3004_v24 = vadd.f32 %v2972_v23, %v2905_v1  ;;  %v7709_v51 = vadd.f32 %v7490_v38, %v7618_v8  ;;  %v1403_v1 = vsel %vm7703_vm13, %v7594_v48, %v1399_v49  ;;  %vm7779_vm11 = vmor %vm1913_vm8, %vm1914_vm7 }
 0x1eb   : > { %v1906_v59 = vsel %vm1903_vm12, %v1905_v40, %v1901_v50  ;;  %v1412_v53 = vsub.f32 1.0, %v1411_v41  ;;  %v1421_v8 = vand.u32 2147483648, %v7623_v33  ;;  %v5482_v48 = vmul.f32 -1.442695, %v7666_v31  ;;  %vm7802_vm12 = vmor %vm3395_vm2, %vm3396_vm14 }
 0x1ec   : > { %v7715_v5 = vadd.f32 %v2777_v11, %v2711_v47  ;;  %v7720_v23 = vadd.f32 %v3070_v19, %v3004_v24  ;;  %v7723_v7 = vmul.f32 %v1906_v59, %v7518_v30  ;;  %v1419_v47 = vand.u32 2147483647, %v7623_v33  ;;  %vm7823_vm14 = vmor %vm3410_vm4, %vm3411_vm10 }
 0x1ed   : > { %v1413_v11 = vmul.f32 %v5868_v15, %v1412_v53  ;;  %v2516_v41 = vadd.f32 %v2484_v26, %v2418_v25  ;;  %v2582_v49 = vmul.f32 %v7655_v2, %v7713_v58  ;;  %v1408_v30 = vsel %vm1405_vm15, %v1407_v3, %v1403_v1 }
 0x1ee   : > { %2352 = vst [vmem:[#allocation2 + $0xb0] sm:$0xff] %v7723_v7  ;;  %v2874_v40 = vmul.f32 %v7151_v32, %v7713_v58  ;;  %v1910_v46 = vsub.f32 1.0, %v1909_v45  ;;  %v3166_v26 = vmul.f32 %v7394_v14, %v7626_v52  ;;  %v1422_v25 = vor.u32 1.1754944e-38, %v1421_v8 }
 0x1ef   : > { %v1414_v24 = vadd.f32 %v5868_v15, %v1413_v11  ;;  %v5458_v3 = vmul.f32 -1.442695, %v7709_v51  ;;  %v7743_v19 = vadd.f32 %v7490_v38, %v1580_v55  ;;  %v7746_v50 = vmul.f32 %v1408_v30, %v7500_v43 }
 0x1f0   : > { %vm1420_vm6 = vcmp.eq.f32.partialorder %v1419_v47, 8.507059e+37  ;;  %v1911_v33 = vmul.f32 %v7711_v39, %v1910_v46  ;;  %v1919_v53 = vand.u32 2147483648, %v7660_v10  ;;  %v7757_v43 = vadd.f32 %v7490_v38, %v1582_v34  ;;  %v7790_v46 = vld [vmem:[%s10928_s5 + $0x3] ss:$0 sm:$0xff] }
 0x1f1   : > { %11088 = vst [vmem:[#allocation41_spill] sm:$0xff] %v7746_v50  ;;  %v1418_v32 = vsel %vm1417_vm5, %v5868_v15, %v1414_v24  ;;  %5873 = vpow2.f32 %v5458_v3  ;;  %v5459_v52 = vmul.f32 -1.442695, %v7743_v19  ;;  %v3198_v15 = vadd.f32 %v3166_v26, %v7482_v0 }
 0x1f2   : > { %v1423_v1 = vsel %vm1420_vm6, %v1422_v25, %v1418_v32  ;;  %v1912_v55 = vadd.f32 %v7711_v39, %v1911_v33  ;;  %v1917_v8 = vand.u32 2147483647, %v7660_v10  ;;  %v3394_v45 = vadd.f32 %v7572_v56, %v7640_v18 }
 0x1f3   : > { %v7752_v59 = vmul.f32 %v1423_v1, %v7544_v35  ;;  %5875 = vpow2.f32 %v5459_v52  ;;  %v11090_v35 = vand.u32 2147483647, %v7520_v28  ;;  %v3409_v47 = vadd.f32 %v7579_v4, %v7663_v60 }
 0x1f4   : > { %5877 = vpow2.f32 %v5482_v48  ;;  %v2614_v30 = vadd.f32 %v2582_v49, %v2516_v41  ;;  %v2906_v24 = vadd.f32 %v2874_v40, %v7557_v17  ;;  %v1916_v60 = vsel %vm7779_vm11, %v7711_v39, %v1912_v55 }
 0x1f5   : > { %11089 = vst [vmem:[#allocation42_spill] sm:$0xff] %v7752_v59  ;;  %vm7766_vm9 = vcmp.eq.f32.partialorder %v11090_v35, 8.507059e+37  ;;  %v7773_v0 = vld [vmem:[#allocation2 + $0xaf] sm:$0xff]  ;;  %v1472_v10 = vpack.c.bf16 %v7752_v59, %v7746_v50  ;;  %v1920_v3 = vor.u32 1.1754944e-38, %v1919_v53  ;;  %v5460_v48 = vmul.f32 -1.442695, %v7757_v43 }
 0x1f6   : > { %v2680_v26 = vmul.f32 %v7790_v46, %v7773_v0  ;;  %v2973_v25 = vmul.f32 %v7181_v16, %v7773_v0  ;;  %v7807_v41 = vadd.f32 1.0, %v7693_v44  ;;  %v7810_v49 = vadd.f32 %v7428_v22, %v3198_v15  ;;  %v7815_v16 = vld [vmem:[%s10928_s5 + $0x4] ss:$0 sm:$0xff] }
 0x1f7   : > { %5446 = vmatmul.msk.bf16.gmra.mxu1 %vm679_vm0, %v1472_v10  ;;  %v5874_v17 = vpop.eup %5873  ;;  %v2778_v40 = vmul.f32 %v7815_v16, %v7723_v7  ;;  %vm1918_vm13 = vcmp.eq.f32.partialorder %v1917_v8, 8.507059e+37  ;;  %v3071_v33 = vmul.f32 %v7192_v27, %v7723_v7  ;;  %v3398_v55 = vsel %vm7802_vm12, %v7572_v56, %v3394_v45 }
 0x1f8   : > { %v2712_v44 = vadd.f32 %v2680_v26, %v2614_v30  ;;  %v3005_v32 = vadd.f32 %v2973_v25, %v2906_v24  ;;  %v1921_v1 = vsel %vm1918_vm13, %v1920_v3, %v1916_v60  ;;  %v3413_v53 = vsel %vm7823_vm14, %v7579_v4, %v3409_v47  ;;  %v2549_v4 = vld [vmem:[#allocation2 + $0xa9] sm:$0xff] }
 0x1f9   : > { %v5876_v52 = vpop.eup %5875  ;;  %v7836_v15 = vmul.f32 %v1921_v1, %v7560_v57  ;;  %v7838_v8 = vadd.f32 1.0, %v5874_v17  ;;  %5879 = vpow2.f32 %v5460_v48  ;;  %v11099_v30 = vand.u32 2147483648, %v7520_v28  ;;  %v1585_v17 = vpop.f32.mrf.mxu1 }
 0x1fa   : > { %v7840_v35 = vadd.f32 %v2778_v40, %v2712_v44  ;;  %v7842_v10 = vadd.f32 %v3071_v33, %v3005_v32  ;;  %v7844_v27 = vadd.f32 1.0, %v5876_v52  ;;  %v5878_v18 = vpop.eup %5877  ;;  %v11100_v45 = vand.u32 2147483648, %v7525_v42 }
 0x1fb   : > { %v3402_v56 = vor.u32 1.1754944e-38, %v11099_v30  ;;  %5881 = vrcp.f32 %v7807_v41  ;;  %v5483_v57 = vmul.f32 -1.442695, %v7810_v49  ;;  %2353 = vst [vmem:[#allocation2 + $0xc8] sm:$0xff] %v7836_v15  ;;  %v11101_v47 = vand.u32 2147483647, %v7525_v42 }
 0x1fc   : > { %v3417_v24 = vor.u32 1.1754944e-38, %v11100_v45  ;;  %v3167_v60 = vmul.f32 %v7394_v14, %v7713_v58  ;;  %v2419_v28 = vmul.f32 %v7634_v13, %v7682_v61  ;;  %5883 = vrcp.f32 %v7838_v8  ;;  %v7872_v61 = vld [vmem:[%s10928_s5 + $0x5] ss:$0 sm:$0xff] }
 0x1fd   : > { %vm3415_vm15 = vcmp.eq.f32.partialorder %v11101_v47, 8.507059e+37  ;;  %v3403_v26 = vsel %vm7766_vm9, %v3402_v56, %v3398_v55  ;;  %5885 = vrcp.f32 %v7844_v27  ;;  %v7863_v3 = vadd.f32 1.0, %v5878_v18  ;;  %v7904_v56 = vld [vmem:[%s10928_s5 + $0x6] ss:$0 sm:$0xff] }
 0x1fe   : > { %v3418_v25 = vsel %vm3415_vm15, %v3417_v24, %v3413_v53  ;;  %v3199_v48 = vadd.f32 %v3167_v60, %v7581_v12  ;;  %v2485_v42 = vmul.f32 %v7648_v20, %v7621_v6  ;;  %v2583_v58 = vmul.f32 %v7655_v2, %v2549_v4 }
 0x1ff   : > { %5887 = vpow2.f32 %v5483_v57  ;;  %v2875_v11 = vmul.f32 %v7872_v61, %v2549_v4  ;;  %v5880_v39 = vpop.eup %5879  ;;  %v7876_v40 = vmul.f32 %v3403_v26, %v7451_v54  ;;  %v7881_v6 = vmul.f32 %v3418_v25, %v7460_v21 }
 0x200   : > { %v2517_v34 = vadd.f32 %v2485_v42, %v2419_v28  ;;  %v7884_v32 = vadd.f32 1.0, %v5880_v39  ;;  %v7887_v33 = vadd.f32 %v7490_v38, %v1585_v17  ;;  %v3431_v52 = vand.u32 2147483648, %v7807_v41 }
 0x201   : > { %11102 = vst [vmem:[#allocation43_spill] sm:$0xff] %v7876_v40  ;;  %v7878_v12 = vpop.eup %5881  ;;  %5889 = vrcp.f32 %v7863_v3  ;;  %v7892_v54 = vadd.f32 %v7428_v22, %v3199_v48  ;;  %v2907_v18 = vadd.f32 %v2875_v11, %v7715_v5  ;;  %v2779_v57 = vmul.f32 %v7815_v16, %v7836_v15  ;;  %v7914_v5 = vld [vmem:[%s10928_s5 + $0x7] ss:$0 sm:$0xff] }
 0x202   : > { %11103 = vst [vmem:[#allocation44_spill] sm:$0xff] %v7881_v6  ;;  %v5884_v1 = vpop.eup %5883  ;;  %v2615_v55 = vadd.f32 %v2583_v58, %v2517_v34  ;;  %v7894_v53 = vld [vmem:[#allocation2 + $0xc7] sm:$0xff]  ;;  %v3072_v47 = vmul.f32 %v7914_v5, %v7836_v15  ;;  %5891 = vrcp.f32 %v7884_v32  ;;  %v5461_v42 = vmul.f32 -1.442695, %v7887_v33 }
 0x203   : > { %v7896_v21 = vpop.eup %5885  ;;  %v2681_v30 = vmul.f32 %v7790_v46, %v7894_v53  ;;  %v2974_v45 = vmul.f32 %v7904_v56, %v7894_v53  ;;  %v1924_v24 = vmul.f32 %v5884_v1, %v7838_v8  ;;  %v3421_v58 = vmul.f32 %v7878_v12, %v7807_v41 }
 0x204   : > { %v1939_v60 = vmul.f32 %v7896_v21, %v7844_v27  ;;  %v5484_v17 = vmul.f32 -1.442695, %v7892_v54  ;;  %v3168_v11 = vmul.f32 %v7394_v14, %v2549_v4  ;;  %v1934_v50 = vand.u32 2147483648, %v7838_v8 }
 0x205   : > { %v5888_v28 = vpop.eup %5887  ;;  %v2713_v26 = vadd.f32 %v2681_v30, %v2615_v55  ;;  %v3006_v25 = vadd.f32 %v2974_v45, %v2907_v18  ;;  %v1925_v48 = vsub.f32 1.0, %v1924_v24  ;;  %v7933_v18 = vor.u32 1.1754944e-38, %v3431_v52 }
 0x206   : > { %v1940_v39 = vsub.f32 1.0, %v1939_v60  ;;  %v7935_v30 = vadd.f32 1.0, %v5888_v28  ;;  %vm1929_vm1 = vweird.f32 %v5884_v1  ;;  %v1932_v45 = vand.u32 2147483647, %v7838_v8 }
 0x207   : > { %v7926_v34 = vadd.f32 %v2779_v57, %v2713_v26  ;;  %v7928_v44 = vadd.f32 %v3072_v47, %v3006_v25  ;;  %v1926_v59 = vmul.f32 %v5884_v1, %v1925_v48  ;;  %v7931_v55 = vpop.eup %5889  ;;  %v1949_v57 = vand.u32 2147483648, %v7844_v27 }
 0x208   : > { %v1941_v4 = vmul.f32 %v7896_v21, %v1940_v39  ;;  %5893 = vpow2.f32 %v5461_v42  ;;  %v7940_v47 = vpop.eup %5891  ;;  %vm1928_vm2 = vweird.f32 %v7838_v8  ;;  %vm1944_vm3 = vweird.f32 %v7896_v21 }
 0x209   : > { %v1927_v24 = vadd.f32 %v5884_v1, %v1926_v59  ;;  %5895 = vpow2.f32 %v5484_v17  ;;  %v1947_v52 = vand.u32 2147483647, %v7844_v27  ;;  %v3422_v60 = vsub.f32 1.0, %v3421_v58  ;;  %vm1930_vm4 = vmor %vm1928_vm2, %vm1929_vm1  ;;  %v1587_v58 = vpop.f32.mrf.mxu1 }
 0x20a   : > { %v3200_v28 = vadd.f32 %v3168_v11, %v7720_v23  ;;  %v1935_v26 = vor.u32 1.1754944e-38, %v1934_v50  ;;  %vm1943_vm5 = vweird.f32 %v7844_v27  ;;  %vm1933_vm6 = vcmp.eq.f32.partialorder %v1932_v45, 8.507059e+37 }
 0x20b   : > { %v1931_v59 = vsel %vm1930_vm4, %v5884_v1, %v1927_v24  ;;  %v1942_v25 = vadd.f32 %v7896_v21, %v1941_v4  ;;  %v1954_v48 = vmul.f32 %v7940_v47, %v7884_v32  ;;  %vm3425_vm7 = vweird.f32 %v7807_v41  ;;  %vm1945_vm8 = vmor %vm1943_vm5, %vm1944_vm3  ;;  %v2550_v24 = vld [vmem:[#allocation2 + $0xb1] sm:$0xff] }
 0x20c   : > { %v3436_v8 = vmul.f32 %v7931_v55, %v7863_v3  ;;  %5897 = vrcp.f32 %v7935_v30  ;;  %v1936_v42 = vsel %vm1933_vm6, %v1935_v26, %v1931_v59  ;;  %v1950_v23 = vor.u32 1.1754944e-38, %v1949_v57 }
 0x20d   : > { %v7957_v50 = vmul.f32 %v1936_v42, %v7709_v51  ;;  %v1946_v27 = vsel %vm1945_vm8, %v7896_v21, %v1942_v25  ;;  %vm1948_vm9 = vcmp.eq.f32.partialorder %v1947_v52, 8.507059e+37  ;;  %v1955_v1 = vsub.f32 1.0, %v1954_v48 }
 0x20e   : > { %v5894_v17 = vpop.eup %5893  ;;  %v3423_v11 = vmul.f32 %v7878_v12, %v3422_v60  ;;  %v1951_v4 = vsel %vm1948_vm9, %v1950_v23, %v1946_v27  ;;  %v2420_v57 = vmul.f32 %v7634_v13, %v7773_v0  ;;  %v7966_v51 = vadd.f32 %v7428_v22, %v3200_v28 }
 0x20f   : > { %v5896_v26 = vpop.eup %5895  ;;  %2354 = vst [vmem:[#allocation2 + $0xd0] sm:$0xff] %v7957_v50  ;;  %v7970_v21 = vmul.f32 %v1951_v4, %v7743_v19  ;;  %v1964_v52 = vand.u32 2147483648, %v7884_v32  ;;  %v3437_v60 = vsub.f32 1.0, %v3436_v8  ;;  %v1956_v59 = vmul.f32 %v7940_v47, %v1955_v1 }
 0x210   : > { %vm1959_vm10 = vweird.f32 %v7940_v47  ;;  %v1962_v25 = vand.u32 2147483647, %v7884_v32  ;;  %vm3426_vm11 = vweird.f32 %v7878_v12  ;;  %v2486_v0 = vmul.f32 %v7648_v20, %v7723_v7 }
 0x211   : > { %v3169_v28 = vmul.f32 %v7394_v14, %v2550_v24  ;;  %2355 = vst [vmem:[#allocation2 + $0xe8] sm:$0xff] %v7970_v21  ;;  %v7981_v19 = vadd.f32 1.0, %v5894_v17  ;;  %v7986_v8 = vadd.f32 %v7878_v12, %v3423_v11  ;;  %v7988_v42 = vadd.f32 1.0, %v5896_v26  ;;  %vm8006_vm1 = vmor %vm3425_vm7, %vm3426_vm11 }
 0x212   : > { %v7983_v48 = vpop.eup %5897  ;;  %v1957_v23 = vadd.f32 %v7940_v47, %v1956_v59  ;;  %vm1958_vm12 = vweird.f32 %v7884_v32  ;;  %v2518_v27 = vadd.f32 %v2486_v0, %v2420_v57  ;;  %v5485_v14 = vmul.f32 -1.442695, %v7966_v51 }
 0x213   : > { %v3201_v7 = vadd.f32 %v3169_v28, %v7842_v10  ;;  %vm1960_vm13 = vmor %vm1958_vm12, %vm1959_vm10  ;;  %v1965_v1 = vor.u32 1.1754944e-38, %v1964_v52  ;;  %v3438_v17 = vmul.f32 %v7931_v55, %v3437_v60  ;;  %vm3441_vm14 = vweird.f32 %v7931_v55 }
 0x214   : > { %v1961_v11 = vsel %vm1960_vm13, %v7940_v47, %v1957_v23  ;;  %vm1963_vm15 = vcmp.eq.f32.partialorder %v1962_v25, 8.507059e+37  ;;  %v8000_v4 = vadd.f32 %v7490_v38, %v1587_v58  ;;  %v8012_v32 = vmul.f32 %v7983_v48, %v7935_v30  ;;  %v1590_v23 = vpop.f32.mrf.mxu1 }
 0x215   : > { %v2584_v26 = vmul.f32 %v7655_v2, %v2550_v24  ;;  %v1966_v57 = vsel %vm1963_vm15, %v1965_v1, %v1961_v11  ;;  %5899 = vrcp.f32 %v7981_v19  ;;  %vm3440_vm2 = vweird.f32 %v7863_v3 }
 0x216   : > { %5901 = vrcp.f32 %v7988_v42  ;;  %v2421_v58 = vmul.f32 %v7634_v13, %v7894_v53  ;;  %v2388_v52 = vld [vmem:[#allocation2 + $0xcf] sm:$0xff]  ;;  %v8027_v59 = vmul.f32 %v1966_v57, %v7757_v43  ;;  %v2876_v0 = vmul.f32 %v7872_v61, %v2550_v24  ;;  %vm8080_vm3 = vmor %vm3440_vm2, %vm3441_vm14 }
 0x217   : > { %v8024_v60 = vld [vmem:[#allocation2 + $0xc9] sm:$0xff]  ;;  %v2616_v25 = vadd.f32 %v2584_v26, %v2518_v27  ;;  %v8031_v28 = vadd.f32 %v7428_v22, %v3201_v7  ;;  %5903 = vpow2.f32 %v5485_v14  ;;  %v2487_v1 = vmul.f32 %v7648_v20, %v7836_v15 }
 0x218   : > { %v2585_v53 = vmul.f32 %v7655_v2, %v8024_v60  ;;  %v2682_v11 = vmul.f32 %v7790_v46, %v2388_v52  ;;  %2356 = vst [vmem:[#allocation2 + $0xf0] sm:$0xff] %v8027_v59  ;;  %v5462_v43 = vmul.f32 -1.442695, %v8000_v4  ;;  %v8041_v27 = vadd.f32 %v7931_v55, %v3438_v17  ;;  %v8047_v15 = vld [vmem:[#allocation2 + $0xe7] sm:$0xff] }
 0x219   : > { %v3452_v22 = vsub.f32 1.0, %v8012_v32  ;;  %v2422_v24 = vmul.f32 %v7634_v13, %v2388_v52  ;;  %v2877_v7 = vmul.f32 %v7872_v61, %v8024_v60  ;;  %v2908_v14 = vadd.f32 %v2876_v0, %v7840_v35  ;;  %v8062_v35 = vld [vmem:[#allocation2 + $0xd1] sm:$0xff] }
 0x21a   : > { %v2519_v26 = vadd.f32 %v2487_v1, %v2421_v58  ;;  %v2714_v57 = vadd.f32 %v2682_v11, %v2616_v25  ;;  %v2780_v45 = vmul.f32 %v7815_v16, %v7957_v50  ;;  %v5486_v17 = vmul.f32 -1.442695, %v8031_v28 }
 0x21b   : > { %v8052_v47 = vpop.eup %5899  ;;  %v2488_v32 = vmul.f32 %v7648_v20, %v7957_v50  ;;  %v2975_v39 = vmul.f32 %v7904_v56, %v2388_v52  ;;  %v3073_v9 = vmul.f32 %v7914_v5, %v7957_v50  ;;  %v2683_v0 = vmul.f32 %v7790_v46, %v8047_v15 }
 0x21c   : > { %v8060_v37 = vpop.eup %5901  ;;  %v2617_v58 = vadd.f32 %v2585_v53, %v2519_v26  ;;  %v2812_v25 = vadd.f32 %v2780_v45, %v2714_v57  ;;  %5905 = vpow2.f32 %v5462_v43  ;;  %v2909_v36 = vadd.f32 %v2877_v7, %v7926_v34  ;;  %v3962_v34 = vld [vmem:[%s10930_s7 + $0x78] sm:$0xff] }
 0x21d   : > { %v5904_v1 = vpop.eup %5903  ;;  %v2520_v11 = vadd.f32 %v2488_v32, %v2422_v24  ;;  %v3007_v63 = vadd.f32 %v2975_v39, %v2908_v14  ;;  %v2976_v52 = vmul.f32 %v7904_v56, %v8047_v15  ;;  %v2781_v50 = vmul.f32 %v7815_v16, %v7970_v21  ;;  %3964 = vmatpush.msrb.mxu1 %v3962_v34 }
 0x21e   : > { %v2715_v62 = vadd.f32 %v2683_v0, %v2617_v58  ;;  %v1969_v53 = vmul.f32 %v8052_v47, %v7981_v19  ;;  %v8074_v45 = vadd.f32 %v7490_v38, %v1590_v23  ;;  %v2586_v39 = vmul.f32 %v7655_v2, %v8062_v35 }
 0x21f   : > { %v8086_v43 = vadd.f32 %v3073_v9, %v3007_v63  ;;  %v3008_v24 = vadd.f32 %v2976_v52, %v2909_v36  ;;  %v3074_v7 = vmul.f32 %v7914_v5, %v7970_v21  ;;  %v8090_v14 = vld [vmem:[#allocation2 + $0xef] sm:$0xff]  ;;  %v11108_v23 = vand.u32 2147483647, %v7807_v41  ;;  %v1592_v52 = vpop.f32.mrf.mxu1 }
 0x220   : > { %v3443_v57 = vsel %vm8080_vm3, %v7931_v55, %v8041_v27  ;;  %v3466_v63 = vmul.f32 %v8060_v37, %v7988_v42  ;;  %v8104_v36 = vadd.f32 1.0, %v5904_v1  ;;  %v8106_v9 = vadd.f32 %v2781_v50, %v2715_v62 }
 0x221   : > { %vm8094_vm4 = vcmp.eq.f32.partialorder %v11108_v23, 8.507059e+37  ;;  %v2618_v32 = vadd.f32 %v2586_v39, %v2520_v11  ;;  %v2878_v41 = vmul.f32 %v7872_v61, %v8062_v35  ;;  %v8110_v58 = vadd.f32 %v3074_v7, %v3008_v24 }
 0x222   : > { %v2684_v0 = vmul.f32 %v7790_v46, %v8090_v14  ;;  %v5906_v23 = vpop.eup %5905  ;;  %v11111_v55 = vand.u32 2147483647, %v7863_v3  ;;  %v3453_v62 = vmul.f32 %v7983_v48, %v3452_v22  ;;  %5907 = vpow2.f32 %v5486_v17 }
 0x223   : > { %v1970_v1 = vsub.f32 1.0, %v1969_v53  ;;  %v5463_v11 = vmul.f32 -1.442695, %v8074_v45  ;;  %v2910_v50 = vadd.f32 %v2878_v41, %v2812_v25  ;;  %v2782_v24 = vmul.f32 %v7815_v16, %v8027_v59 }
 0x224   : > { %vm8116_vm5 = vcmp.eq.f32.partialorder %v11111_v55, 8.507059e+37  ;;  %v2716_v39 = vadd.f32 %v2684_v0, %v2618_v32  ;;  %v2977_v7 = vmul.f32 %v7904_v56, %v8090_v14  ;;  %vm3456_vm6 = vweird.f32 %v7983_v48 }
 0x225   : > { %v3467_v55 = vsub.f32 1.0, %v3466_v63  ;;  %5909 = vrcp.f32 %v8104_v36  ;;  %v8132_v22 = vadd.f32 %v7490_v38, %v1592_v52  ;;  %v3075_v53 = vmul.f32 %v7914_v5, %v8027_v59 }
 0x226   : > { %v8134_v17 = vadd.f32 %v2782_v24, %v2716_v39  ;;  %v3009_v25 = vadd.f32 %v2977_v7, %v2910_v50  ;;  %v1979_v32 = vand.u32 2147483648, %v7981_v19  ;;  %v1971_v41 = vmul.f32 %v8052_v47, %v1970_v1  ;;  %v8151_v50 = vld [vmem:[%s10928_s5 + $0x8] ss:$0 sm:$0xff] }
 0x227   : > { %vm1974_vm7 = vweird.f32 %v8052_v47  ;;  %v1977_v63 = vand.u32 2147483647, %v7981_v19  ;;  %v8142_v0 = vadd.f32 1.0, %v5906_v23  ;;  %v3454_v34 = vadd.f32 %v7983_v48, %v3453_v62 }
 0x228   : > { %v8145_v38 = vadd.f32 %v3075_v53, %v3009_v25  ;;  %vm1973_vm8 = vweird.f32 %v7981_v19  ;;  %5911 = vpow2.f32 %v5463_v11  ;;  %v5908_v52 = vpop.eup %5907  ;;  %v3170_v1 = vmul.f32 %v8151_v50, %v8024_v60 }
 0x229   : > { %v1972_v39 = vadd.f32 %v8052_v47, %v1971_v41  ;;  %5913 = vrcp.f32 %v8142_v0  ;;  %v5464_v23 = vmul.f32 -1.442695, %v8132_v22  ;;  %v11114_v19 = vsel %vm8006_vm1, %v7878_v12, %v7986_v8  ;;  %vm1975_vm9 = vmor %vm1973_vm8, %vm1974_vm7 }
 0x22a   : > { %v3433_v62 = vsel %vm8094_vm4, %v7933_v18, %v11114_v19  ;;  %v11115_v11 = vand.u32 2147483648, %v7863_v3  ;;  %v3461_v60 = vand.u32 2147483648, %v7935_v30  ;;  %v1980_v7 = vor.u32 1.1754944e-38, %v1979_v32 }
 0x22b   : > { %v8171_v25 = vpop.eup %5909  ;;  %vm3455_vm10 = vweird.f32 %v7935_v30  ;;  %v3459_v10 = vand.u32 2147483647, %v7935_v30  ;;  %v1976_v12 = vsel %vm1975_vm9, %v8052_v47, %v1972_v39  ;;  %vm1978_vm11 = vcmp.eq.f32.partialorder %v1977_v63, 8.507059e+37  ;;  %v3961_v30 = vld [vmem:[%s10930_s7 + $0x70] sm:$0xff]  ;;  %v8219_v39 = vld [vmem:[%s10929_s6] ss:$0 sm:$0xff] }
 0x22c   : > { %v3447_v24 = vor.u32 1.1754944e-38, %v11115_v11  ;;  %vm8180_vm12 = vmor %vm3455_vm10, %vm3456_vm6  ;;  %v3468_v8 = vmul.f32 %v8060_v37, %v3467_v55  ;;  %v8185_v26 = vadd.f32 1.0, %v5908_v52  ;;  %v1981_v53 = vsel %vm1978_vm11, %v1980_v7, %v1976_v12  ;;  %3965 = vmatpush.msrb.mxu1 %v3961_v30  ;;  %v1595_v12 = vpop.f32.mrf.mxu1 }
 0x22d   : > { %v8191_v47 = vmul.f32 %v3433_v62, %v7602_v29  ;;  %v3202_v27 = vadd.f32 %v3170_v1, %v7928_v44  ;;  %5915 = vpow2.f32 %v5464_v23  ;;  %v3462_v55 = vor.u32 1.1754944e-38, %v3461_v60 }
 0x22e   : > { %v3448_v18 = vsel %vm8116_vm5, %v3447_v24, %v3443_v57  ;;  %v3458_v57 = vsel %vm8180_vm12, %v7983_v48, %v3454_v34  ;;  %v5912_v32 = vpop.eup %5911  ;;  %v8198_v41 = vmul.f32 %v1981_v53, %v7887_v33  ;;  %v3902_v52 = vadd.f32 %v7881_v6, %v7876_v40 }
 0x22f   : > { %11118 = vst [vmem:[#allocation45_spill] sm:$0xff] %v8191_v47  ;;  %v8200_v63 = vpop.eup %5913  ;;  %v8205_v29 = vmul.f32 %v3448_v18, %v7666_v31  ;;  %vm3460_vm13 = vcmp.eq.f32.partialorder %v3459_v10, 8.507059e+37  ;;  %v3474_v48 = vand.u32 2147483647, %v7988_v42  ;;  %v3469_v44 = vadd.f32 %v8060_v37, %v3468_v8  ;;  %v2553_v10 = vld [vmem:[#allocation2 + $0xe9] sm:$0xff] }
 0x230   : > { %v3463_v34 = vsel %vm3460_vm13, %v3462_v55, %v3458_v57  ;;  %vm3471_vm14 = vweird.f32 %v8060_v37  ;;  %5917 = vrcp.f32 %v8185_v26  ;;  %2357 = vst [vmem:[#allocation2 + $0x108] sm:$0xff] %v8198_v41  ;;  %v3903_v33 = vadd.f32 %v3902_v52, %v8191_v47 }
 0x231   : > { %11119 = vst [vmem:[#allocation46_spill] sm:$0xff] %v8205_v29  ;;  %v3476_v1 = vand.u32 2147483648, %v7988_v42  ;;  %v3481_v31 = vmul.f32 %v8171_v25, %v8104_v36  ;;  %v8222_v23 = vadd.f32 %v8219_v39, %v3202_v27  ;;  %vm3470_vm15 = vweird.f32 %v7988_v42 }
 0x232   : > { %v1984_v19 = vmul.f32 %v8200_v63, %v8142_v0  ;;  %v8227_v62 = vadd.f32 1.0, %v5912_v32  ;;  %v3904_v24 = vadd.f32 %v3903_v33, %v8205_v29  ;;  %vm8230_vm1 = vmor %vm3470_vm15, %vm3471_vm14  ;;  %v8235_v7 = vmul.f32 %v3463_v34, %v7810_v49 }
 0x233   : > { %v5916_v11 = vpop.eup %5915  ;;  %v3473_v42 = vsel %vm8230_vm1, %v8060_v37, %v3469_v44  ;;  %vm3475_vm2 = vcmp.eq.f32.partialorder %v3474_v48, 8.507059e+37  ;;  %v2423_v18 = vmul.f32 %v7634_v13, %v8047_v15  ;;  %v3477_v8 = vor.u32 1.1754944e-38, %v3476_v1  ;;  %v8254_v37 = vld [vmem:[%s10927_s4] ss:$0 sm:$0xff] }
 0x234   : > { %11122 = vst [vmem:[#allocation47_spill] sm:$0xff] %v8235_v7  ;;  %v1985_v3 = vsub.f32 1.0, %v1984_v19  ;;  %v3482_v30 = vsub.f32 1.0, %v3481_v31  ;;  %v5487_v53 = vmul.f32 -1.442695, %v8222_v23  ;;  %v2489_v57 = vmul.f32 %v7648_v20, %v7970_v21 }
 0x235   : > { %v2587_v27 = vmul.f32 %v7655_v2, %v2553_v10  ;;  %5919 = vrcp.f32 %v8227_v62  ;;  %v8249_v32 = vadd.f32 1.0, %v5916_v11  ;;  %v8257_v15 = vadd.f32 %v8254_v37, %v1595_v12 }
 0x236   : > { %v8245_v49 = vpop.eup %5917  ;;  %v8259_v55 = vsel %vm3475_vm2, %v3477_v8, %v3473_v42  ;;  %v8262_v21 = vadd.f32 %v3904_v24, %v8235_v7  ;;  %v3171_v52 = vmul.f32 %v8151_v50, %v8062_v35  ;;  %v2879_v48 = vmul.f32 %v7872_v61, %v2553_v10 }
 0x237   : > { %v3491_v44 = vand.u32 2147483648, %v8104_v36  ;;  %v2521_v33 = vadd.f32 %v2489_v57, %v2423_v18  ;;  %v8269_v1 = vld [vmem:[#allocation2 + $0x107] sm:$0xff]  ;;  %v1986_v31 = vmul.f32 %v8200_v63, %v1985_v3  ;;  %v3483_v19 = vmul.f32 %v8171_v25, %v3482_v30 }
 0x238   : > { %v3496_v11 = vmul.f32 %v8245_v49, %v8185_v26  ;;  %v3203_v24 = vadd.f32 %v3171_v52, %v8086_v43  ;;  %5921 = vpow2.f32 %v5487_v53  ;;  %v1994_v60 = vand.u32 2147483648, %v8142_v0 }
 0x239   : > { %v2619_v35 = vadd.f32 %v2587_v27, %v2521_v33  ;;  %5923 = vrcp.f32 %v8249_v32  ;;  %v5465_v12 = vmul.f32 -1.442695, %v8257_v15  ;;  %v2911_v42 = vadd.f32 %v2879_v48, %v8106_v9 }
 0x23a   : > { %v2685_v18 = vmul.f32 %v7790_v46, %v8269_v1  ;;  %v2978_v3 = vmul.f32 %v7904_v56, %v8269_v1  ;;  %vm1989_vm3 = vweird.f32 %v8200_v63  ;;  %v3172_v43 = vmul.f32 %v8151_v50, %v2553_v10 }
 0x23b   : > { %v5920_v8 = vpop.eup %5919  ;;  %v1987_v30 = vadd.f32 %v8200_v63, %v1986_v31  ;;  %vm1988_vm4 = vweird.f32 %v8142_v0  ;;  %v1992_v53 = vand.u32 2147483647, %v8142_v0  ;;  %v2783_v9 = vmul.f32 %v7815_v16, %v8198_v41  ;;  %v2554_v0 = vld [vmem:[#allocation2 + $0xf1] sm:$0xff] }
 0x23c   : > { %v2717_v57 = vadd.f32 %v2685_v18, %v2619_v35  ;;  %v3010_v27 = vadd.f32 %v2978_v3, %v2911_v42  ;;  %v3076_v52 = vmul.f32 %v7914_v5, %v8198_v41  ;;  %v8293_v48 = vor.u32 1.1754944e-38, %v3491_v44  ;;  %vm8296_vm5 = vmor %vm1988_vm4, %vm1989_vm3 }
 0x23d   : > { %v1995_v31 = vor.u32 1.1754944e-38, %v1994_v60  ;;  %5925 = vpow2.f32 %v5465_v12  ;;  %v1991_v42 = vsel %vm8296_vm5, %v8200_v63, %v1987_v30  ;;  %v1999_v44 = vmul.f32 %v5920_v8, %v8227_v62 }
 0x23e   : > { %v5922_v34 = vpop.eup %5921  ;;  %v8300_v35 = vadd.f32 %v2783_v9, %v2717_v57  ;;  %v8302_v18 = vadd.f32 %v3076_v52, %v3010_v27  ;;  %v3497_v33 = vsub.f32 1.0, %v3496_v11  ;;  %v8311_v7 = vadd.f32 %v8219_v39, %v3203_v24 }
 0x23f   : > { %v8308_v3 = vpop.eup %5923  ;;  %v3204_v60 = vadd.f32 %v3172_v43, %v8110_v58  ;;  %vm1993_vm6 = vcmp.eq.f32.partialorder %v1992_v53, 8.507059e+37  ;;  %v8315_v12 = vadd.f32 %v8171_v25, %v3483_v19  ;;  %vm3485_vm7 = vweird.f32 %v8104_v36 }
 0x240   : > { %vm3486_vm8 = vweird.f32 %v8171_v25  ;;  %v1996_v57 = vsel %vm1993_vm6, %v1995_v31, %v1991_v42  ;;  %v2000_v63 = vsub.f32 1.0, %v1999_v44  ;;  %v2424_v30 = vmul.f32 %v7634_v13, %v8090_v14 }
 0x241   : > { %v3173_v11 = vmul.f32 %v8151_v50, %v2554_v0  ;;  %v8323_v24 = vmul.f32 %v1996_v57, %v8000_v4  ;;  %v2009_v58 = vand.u32 2147483648, %v8227_v62  ;;  %vm2004_vm9 = vweird.f32 %v5920_v8  ;;  %vm8370_vm2 = vmor %vm3485_vm7, %vm3486_vm8 }
 0x242   : > { %v2001_v43 = vmul.f32 %v5920_v8, %v2000_v63  ;;  %v2007_v19 = vand.u32 2147483647, %v8227_v62  ;;  %v2014_v53 = vmul.f32 %v8308_v3, %v8249_v32  ;;  %v3498_v27 = vmul.f32 %v8245_v49, %v3497_v33 }
 0x243   : > { %v5926_v9 = vpop.eup %5925  ;;  %v5488_v52 = vmul.f32 -1.442695, %v8311_v7  ;;  %v2490_v13 = vmul.f32 %v7648_v20, %v8027_v59  ;;  %v8334_v4 = vadd.f32 %v8219_v39, %v3204_v60  ;;  %2358 = vst [vmem:[#allocation2 + $0x110] sm:$0xff] %v8323_v24  ;;  %v3205_v14 = vadd.f32 %v3173_v11, %v8145_v38 }
 0x244   : > { %v2002_v10 = vadd.f32 %v5920_v8, %v2001_v43  ;;  %vm2003_vm10 = vweird.f32 %v8227_v62  ;;  %v2015_v31 = vsub.f32 1.0, %v2014_v53  ;;  %v8339_v42 = vadd.f32 1.0, %v5922_v34 }
 0x245   : > { %v2522_v44 = vadd.f32 %v2490_v13, %v2424_v30  ;;  %v2588_v33 = vmul.f32 %v7655_v2, %v2554_v0  ;;  %vm2005_vm11 = vmor %vm2003_vm10, %vm2004_vm9  ;;  %v2010_v57 = vor.u32 1.1754944e-38, %v2009_v58  ;;  %vm3501_vm12 = vweird.f32 %v8245_v49  ;;  %v8364_v58 = vpop.f32.mrf.mxu1 }
 0x246   : > { %v2006_v20 = vsel %vm2005_vm11, %v5920_v8, %v2002_v10  ;;  %vm2008_vm13 = vcmp.eq.f32.partialorder %v2007_v19, 8.507059e+37  ;;  %v2016_v59 = vmul.f32 %v8308_v3, %v2015_v31  ;;  %v8345_v60 = vadd.f32 1.0, %v5926_v9 }
 0x247   : > { %5927 = vpow2.f32 %v5488_v52  ;;  %v5489_v38 = vmul.f32 -1.442695, %v8334_v4  ;;  %v2011_v62 = vsel %vm2008_vm13, %v2010_v57, %v2006_v20  ;;  %vm2019_vm14 = vweird.f32 %v8308_v3  ;;  %v8423_v20 = vld [vmem:[%s10928_s5 + $0x2] ss:$0 sm:$0xff] }
 0x248   : > { %v11125_v34 = vand.u32 2147483647, %v8104_v36  ;;  %vm3500_vm1 = vweird.f32 %v8185_v26  ;;  %v8357_v8 = vadd.f32 %v8219_v39, %v3205_v14  ;;  %v8360_v63 = vmul.f32 %v2011_v62, %v8074_v45 }
 0x249   : > { %v2017_v30 = vadd.f32 %v8308_v3, %v2016_v59  ;;  %v2024_v11 = vand.u32 2147483648, %v8249_v32  ;;  %v2880_v19 = vmul.f32 %v7872_v61, %v2554_v0  ;;  %vm2018_vm3 = vweird.f32 %v8249_v32  ;;  %vm8453_vm6 = vmor %vm3500_vm1, %vm3501_vm12 }
 0x24a   : > { %vm8351_vm15 = vcmp.eq.f32.partialorder %v11125_v34, 8.507059e+37  ;;  %v2022_v45 = vand.u32 2147483647, %v8249_v32  ;;  %5929 = vrcp.f32 %v8345_v60  ;;  %v3488_v53 = vsel %vm8370_vm2, %v8171_v25, %v8315_v12  ;;  %v2392_v52 = vld [vmem:[#allocation2 + $0x10f] sm:$0xff]  ;;  %2359 = vst [vmem:[#allocation2 + $0x128] sm:$0xff] %v8360_v63  ;;  %vm8389_vm4 = vmor %vm2018_vm3, %vm2019_vm14 }
 0x24b   : > { %v8383_v9 = vadd.f32 %v8245_v49, %v3498_v27  ;;  %5931 = vrcp.f32 %v8339_v42  ;;  %v2620_v36 = vadd.f32 %v2588_v33, %v2522_v44  ;;  %v2912_v0 = vadd.f32 %v2880_v19, %v8134_v17  ;;  %v8397_v25 = vld [vmem:[%s10928_s5] ss:$0 sm:$0xff]  ;;  %v8401_v27 = vld [vmem:[#allocation2 + $0x109] sm:$0xff]  ;;  %v8412_v33 = vld [vmem:[%s10928_s5 + $0x1] ss:$0 sm:$0xff] }
 0x24c   : > { %5933 = vpow2.f32 %v5489_v38  ;;  %v2425_v12 = vmul.f32 %v8397_v25, %v8269_v1  ;;  %v2021_v13 = vsel %vm8389_vm4, %v8308_v3, %v2017_v30  ;;  %v5490_v14 = vmul.f32 -1.442695, %v8357_v8 }
 0x24d   : > { %v2686_v10 = vmul.f32 %v7790_v46, %v2392_v52  ;;  %v2979_v17 = vmul.f32 %v7904_v56, %v2392_v52  ;;  %v2025_v31 = vor.u32 1.1754944e-38, %v2024_v11  ;;  %v5928_v44 = vpop.eup %5927  ;;  %v2491_v1 = vmul.f32 %v8412_v33, %v8198_v41 }
 0x24e   : > { %v2784_v57 = vmul.f32 %v7815_v16, %v8323_v24  ;;  %v3077_v3 = vmul.f32 %v7914_v5, %v8323_v24  ;;  %vm2023_vm5 = vcmp.eq.f32.partialorder %v2022_v45, 8.507059e+37  ;;  %v2589_v59 = vmul.f32 %v8423_v20, %v8401_v27 }
 0x24f   : > { %v2718_v38 = vadd.f32 %v2686_v10, %v2620_v36  ;;  %v3011_v62 = vadd.f32 %v2979_v17, %v2912_v0  ;;  %v2026_v34 = vsel %vm2023_vm5, %v2025_v31, %v2021_v13  ;;  %v3506_v41 = vand.u32 2147483648, %v8185_v26 }
 0x250   : > { %v8427_v30 = vpop.eup %5929  ;;  %v2523_v11 = vadd.f32 %v2491_v1, %v2425_v12  ;;  %v2881_v43 = vmul.f32 %v7872_v61, %v8401_v27  ;;  %v8433_v19 = vmul.f32 %v2026_v34, %v8132_v22  ;;  %v2426_v32 = vmul.f32 %v8397_v25, %v2392_v52 }
 0x251   : > { %v8435_v45 = vpop.eup %5931  ;;  %v2816_v29 = vadd.f32 %v2784_v57, %v2718_v38  ;;  %v8438_v47 = vadd.f32 %v3077_v3, %v3011_v62  ;;  %v2029_v36 = vmul.f32 %v8427_v30, %v8345_v60  ;;  %v8444_v12 = vmul.f32 %v8259_v55, %v7892_v54  ;;  %v8463_v54 = vld [vmem:[#allocation2 + $0x127] sm:$0xff] }
 0x252   : > { %v5934_v0 = vpop.eup %5933  ;;  %v3493_v22 = vsel %vm8351_vm15, %v8293_v48, %v3488_v53  ;;  %v11135_v13 = vand.u32 2147483647, %v8185_v26  ;;  %5935 = vpow2.f32 %v5490_v14  ;;  %2360 = vst [vmem:[#allocation2 + $0x130] sm:$0xff] %v8433_v19  ;;  %v3503_v55 = vsel %vm8453_vm6, %v8245_v49, %v8383_v9  ;;  %v1600_v53 = vpop.f32.mrf.mxu1  ;;  %v2556_v14 = vld [vmem:[#allocation2 + $0x111] sm:$0xff]  ;;  %v3960_v49 = vld [vmem:[%s10930_s7 + $0x68] sm:$0xff] }
 0x253   : > { %11132 = vst [vmem:[#allocation48_spill] sm:$0xff] %v8444_v12  ;;  %v2492_v48 = vmul.f32 %v8412_v33, %v8323_v24  ;;  %v2621_v2 = vadd.f32 %v2589_v59, %v2523_v11  ;;  %v2687_v26 = vmul.f32 %v7790_v46, %v8463_v54  ;;  %v8474_v17 = vadd.f32 1.0, %v5928_v44  ;;  %3966 = vmatpush.msrb.mxu1 %v3960_v49 }
 0x254   : > { %vm8459_vm7 = vcmp.eq.f32.partialorder %v11135_v13, 8.507059e+37  ;;  %v2913_v31 = vadd.f32 %v2881_v43, %v8300_v35  ;;  %v2980_v1 = vmul.f32 %v7904_v56, %v8463_v54  ;;  %v2030_v57 = vsub.f32 1.0, %v2029_v36 }
 0x255   : > { %v3507_v3 = vor.u32 1.1754944e-38, %v3506_v41  ;;  %v2524_v38 = vadd.f32 %v2492_v48, %v2426_v32  ;;  %v2719_v24 = vadd.f32 %v2687_v26, %v2621_v2  ;;  %v2785_v9 = vmul.f32 %v7815_v16, %v8360_v63 }
 0x256   : > { %v3012_v44 = vadd.f32 %v2980_v1, %v2913_v31  ;;  %v3078_v59 = vmul.f32 %v7914_v5, %v8360_v63  ;;  %v2031_v35 = vmul.f32 %v8427_v30, %v2030_v57  ;;  %v8489_v62 = vadd.f32 %v8254_v37, %v8364_v58 }
 0x257   : > { %v3508_v34 = vsel %vm8459_vm7, %v3507_v3, %v3503_v55  ;;  %v8494_v41 = vmul.f32 %v3493_v22, %v7966_v51  ;;  %v2590_v11 = vmul.f32 %v8423_v20, %v2556_v14  ;;  %v8497_v43 = vadd.f32 %v2785_v9, %v2719_v24 }
 0x258   : > { %v5936_v32 = vpop.eup %5935  ;;  %v3511_v36 = vmul.f32 %v8435_v45, %v8339_v42  ;;  %5937 = vrcp.f32 %v8474_v17  ;;  %v8502_v52 = vadd.f32 1.0, %v5934_v0  ;;  %v8504_v58 = vadd.f32 %v3078_v59, %v3012_v44 }
 0x259   : > { %11138 = vst [vmem:[#allocation49_spill] sm:$0xff] %v8494_v41  ;;  %v2622_v13 = vadd.f32 %v2590_v11, %v2524_v38  ;;  %v2882_v10 = vmul.f32 %v7872_v61, %v2556_v14  ;;  %v3174_v51 = vmul.f32 %v8151_v50, %v8401_v27  ;;  %v8509_v22 = vld [vmem:[#allocation2 + $0x12f] sm:$0xff]  ;;  %v8512_v55 = vadd.f32 %v8254_v37, %v1600_v53 }
 0x25a   : > { %v2688_v48 = vmul.f32 %v7790_v46, %v8509_v22  ;;  %v2032_v2 = vadd.f32 %v8427_v30, %v2031_v35  ;;  %vm2034_vm8 = vweird.f32 %v8427_v30  ;;  %v5466_v0 = vmul.f32 -1.442695, %v8489_v62  ;;  %v1602_v49 = vpop.f32.mrf.mxu1 }
 0x25b   : > { %v8519_v26 = vadd.f32 1.0, %v5936_v32  ;;  %v2914_v61 = vadd.f32 %v2882_v10, %v2816_v29  ;;  %v2981_v27 = vmul.f32 %v7904_v56, %v8509_v22  ;;  %v2039_v31 = vand.u32 2147483648, %v8345_v60 }
 0x25c   : > { %v2720_v1 = vadd.f32 %v2688_v48, %v2622_v13  ;;  %v2786_v53 = vmul.f32 %v7815_v16, %v8433_v19  ;;  %vm2033_vm9 = vweird.f32 %v8345_v60  ;;  %v2037_v46 = vand.u32 2147483647, %v8345_v60 }
 0x25d   : > { %5939 = vrcp.f32 %v8502_v52  ;;  %v3206_v57 = vadd.f32 %v3174_v51, %v8302_v18  ;;  %v3013_v3 = vadd.f32 %v2981_v27, %v2914_v61  ;;  %vm8530_vm10 = vmor %vm2033_vm9, %vm2034_vm8  ;;  %v5467_v38 = vmul.f32 -1.442695, %v8512_v55  ;;  %v3959_v27 = vld [vmem:[%s10930_s7 + $0x60] sm:$0xff] }
 0x25e   : > { %v8535_v24 = vpop.eup %5937  ;;  %v8537_v9 = vadd.f32 %v2786_v53, %v2720_v1  ;;  %v3079_v16 = vmul.f32 %v7914_v5, %v8433_v19  ;;  %v2036_v60 = vsel %vm8530_vm10, %v8427_v30, %v2032_v2  ;;  %5941 = vpow2.f32 %v5466_v0  ;;  %v2557_v1 = vld [vmem:[#allocation2 + $0x129] sm:$0xff]  ;;  %3967 = vmatpush.msrb.mxu1 %v3959_v27 }
 0x25f   : > { %v3906_v18 = vadd.f32 %v8262_v21, %v8444_v12  ;;  %v3175_v44 = vmul.f32 %v8151_v50, %v2556_v14  ;;  %v2040_v59 = vor.u32 1.1754944e-38, %v2039_v31  ;;  %v8548_v35 = vmul.f32 %v3508_v34, %v8031_v28 }
 0x260   : > { %v3512_v11 = vsub.f32 1.0, %v3511_v36  ;;  %v8550_v32 = vadd.f32 %v3079_v16, %v3013_v3  ;;  %vm2038_vm11 = vcmp.eq.f32.partialorder %v2037_v46, 8.507059e+37  ;;  %v8554_v13 = vadd.f32 %v8219_v39, %v3206_v57 }
 0x261   : > { %11141 = vst [vmem:[#allocation50_spill] sm:$0xff] %v8548_v35  ;;  %v3207_v5 = vadd.f32 %v3175_v44, %v8438_v47  ;;  %v2041_v30 = vsel %vm2038_vm11, %v2040_v59, %v2036_v60  ;;  %5943 = vpow2.f32 %v5467_v38  ;;  %v3907_v10 = vadd.f32 %v3906_v18, %v8494_v41 }
 0x262   : > { %v3521_v21 = vand.u32 2147483648, %v8339_v42  ;;  %5945 = vrcp.f32 %v8519_v26  ;;  %v3519_v28 = vand.u32 2147483647, %v8339_v42  ;;  %v3526_v34 = vmul.f32 %v8535_v24, %v8474_v17  ;;  %v1605_v60 = vpop.f32.mrf.mxu1 }
 0x263   : > { %v8559_v14 = vpop.eup %5939  ;;  %v3536_v47 = vand.u32 2147483648, %v8474_v17  ;;  %v8566_v36 = vmul.f32 %v2041_v30, %v8257_v15  ;;  %v3513_v48 = vmul.f32 %v8435_v45, %v3512_v11  ;;  %v8570_v2 = vadd.f32 %v3907_v10, %v8548_v35 }
 0x264   : > { %v5942_v51 = vpop.eup %5941  ;;  %vm3515_vm12 = vweird.f32 %v8339_v42  ;;  %v8574_v0 = vadd.f32 %v8219_v39, %v3207_v5  ;;  %v5491_v61 = vmul.f32 -1.442695, %v8554_v13  ;;  %v3522_v15 = vor.u32 1.1754944e-38, %v3521_v21 }
 0x265   : > { %2361 = vst [vmem:[#allocation2 + $0x148] sm:$0xff] %v8566_v36  ;;  %v8582_v53 = vadd.f32 1.0, %v5942_v51  ;;  %v8585_v46 = vadd.f32 %v8254_v37, %v1602_v49  ;;  %vm3516_vm13 = vweird.f32 %v8435_v45  ;;  %vm8588_vm14 = vcmp.eq.f32.partialorder %v3519_v28, 8.507059e+37 }
 0x266   : > { %11142 = vst [vmem:[#allocation51_spill] sm:$0xff] %v8574_v0  ;;  %v3527_v29 = vsub.f32 1.0, %v3526_v34  ;;  %v8592_v38 = vor.u32 1.1754944e-38, %v3536_v47  ;;  %v3541_v16 = vmul.f32 %v8559_v14, %v8502_v52  ;;  %v3514_v44 = vadd.f32 %v8435_v45, %v3513_v48  ;;  %vm8619_vm1 = vmor %vm3515_vm12, %vm3516_vm13  ;;  %v8629_v48 = vld [vmem:[%s10928_s5 + $0x5] ss:$0 sm:$0xff] }
 0x267   : > { %v5944_v57 = vpop.eup %5943  ;;  %v2427_v59 = vmul.f32 %v8397_v25, %v8463_v54  ;;  %5947 = vrcp.f32 %v8582_v53  ;;  %vm3530_vm15 = vweird.f32 %v8474_v17  ;;  %v5492_v11 = vmul.f32 -1.442695, %v8574_v0 }
 0x268   : > { %v8596_v18 = vpop.eup %5945  ;;  %5949 = vpow2.f32 %v5491_v61  ;;  %v2493_v5 = vmul.f32 %v8412_v33, %v8360_v63  ;;  %v3176_v30 = vmul.f32 %v8151_v50, %v2557_v1  ;;  %v2591_v10 = vmul.f32 %v8423_v20, %v2557_v1 }
 0x269   : > { %v8609_v21 = vadd.f32 1.0, %v5944_v57  ;;  %v5468_v28 = vmul.f32 -1.442695, %v8585_v46  ;;  %v8613_v54 = vadd.f32 %v8254_v37, %v1605_v60  ;;  %v3528_v63 = vmul.f32 %v8535_v24, %v3527_v29 }
 0x26a   : > { %v3542_v47 = vsub.f32 1.0, %v3541_v16  ;;  %v3556_v51 = vmul.f32 %v8596_v18, %v8519_v26  ;;  %v2883_v61 = vmul.f32 %v8629_v48, %v2557_v1  ;;  %v3518_v42 = vsel %vm8619_vm1, %v8435_v45, %v3514_v44  ;;  %v8643_v16 = vld [vmem:[%s10928_s5 + $0x3] ss:$0 sm:$0xff]  ;;  %v1607_v3 = vpop.f32.mrf.mxu1 }
 0x26b   : > { %vm3531_vm2 = vweird.f32 %v8535_v24  ;;  %v2525_v27 = vadd.f32 %v2493_v5, %v2427_v59  ;;  %5951 = vrcp.f32 %v8609_v21  ;;  %v3208_v29 = vadd.f32 %v3176_v30, %v8504_v58 }
 0x26c   : > { %v8636_v57 = vld [vmem:[#allocation2 + $0x147] sm:$0xff]  ;;  %5953 = vpow2.f32 %v5492_v11  ;;  %v5469_v11 = vmul.f32 -1.442695, %v8613_v54  ;;  %v8654_v5 = vadd.f32 %v8535_v24, %v3528_v63  ;;  %v3543_v30 = vmul.f32 %v8559_v14, %v3542_v47  ;;  %v8670_v63 = vld [vmem:[%s10928_s5 + $0x4] ss:$0 sm:$0xff]  ;;  %vm8682_vm3 = vmor %vm3530_vm15, %vm3531_vm2 }
 0x26d   : > { %v2689_v1 = vmul.f32 %v8643_v16, %v8636_v57  ;;  %v2982_v45 = vmul.f32 %v7904_v56, %v8636_v57  ;;  %v8649_v60 = vpop.eup %5947  ;;  %v2623_v59 = vadd.f32 %v2591_v10, %v2525_v27  ;;  %5955 = vpow2.f32 %v5468_v28 }
 0x26e   : > { %v5950_v58 = vpop.eup %5949  ;;  %v3557_v34 = vsub.f32 1.0, %v3556_v51  ;;  %v2915_v49 = vadd.f32 %v2883_v61, %v8497_v43  ;;  %v8660_v56 = vsel %vm8588_vm14, %v3522_v15, %v3518_v42  ;;  %v8665_v27 = vadd.f32 %v8219_v39, %v3208_v29  ;;  %v8689_v29 = vld [vmem:[#allocation2 + $0x131] sm:$0xff] }
 0x26f   : > { %v2721_v28 = vadd.f32 %v2689_v1, %v2623_v59  ;;  %v2787_v43 = vmul.f32 %v8670_v63, %v8566_v36  ;;  %v2044_v15 = vmul.f32 %v8649_v60, %v8582_v53  ;;  %vm3546_vm4 = vweird.f32 %v8559_v14 }
 0x270   : > { %11147 = vst [vmem:[#allocation52_spill] sm:$0xff] %v8665_v27  ;;  %v3014_v47 = vadd.f32 %v2982_v45, %v2915_v49  ;;  %v8687_v42 = vadd.f32 1.0, %v5950_v58  ;;  %v8694_v49 = vld [vmem:[%s10928_s5 + $0x7] ss:$0 sm:$0xff]  ;;  %5957 = vpow2.f32 %v5469_v11  ;;  %v8703_v58 = vadd.f32 %v8559_v14, %v3543_v30 }
 0x271   : > { %v8676_v51 = vpop.eup %5951  ;;  %v3080_v1 = vmul.f32 %v8694_v49, %v8566_v36  ;;  %vm3545_vm5 = vweird.f32 %v8502_v52  ;;  %v3558_v10 = vmul.f32 %v8596_v18, %v3557_v34  ;;  %v8707_v31 = vadd.f32 %v2787_v43, %v2721_v28 }
 0x272   : > { %v5954_v45 = vpop.eup %5953  ;;  %v2428_v35 = vmul.f32 %v8397_v25, %v8509_v22  ;;  %v2045_v41 = vsub.f32 1.0, %v2044_v15  ;;  %v2059_v12 = vmul.f32 %v8676_v51, %v8609_v21  ;;  %vm3561_vm6 = vweird.f32 %v8596_v18  ;;  %vm8756_vm15 = vmor %vm3545_vm5, %vm3546_vm4 }
 0x273   : > { %v5956_v44 = vpop.eup %5955  ;;  %v8711_v11 = vadd.f32 %v3080_v1, %v3014_v47  ;;  %v3177_v30 = vmul.f32 %v8151_v50, %v8689_v29  ;;  %v5493_v59 = vmul.f32 -1.442695, %v8665_v27  ;;  %v2052_v34 = vand.u32 2147483647, %v8582_v53 }
 0x274   : > { %v2054_v28 = vand.u32 2147483648, %v8582_v53  ;;  %5959 = vrcp.f32 %v8687_v42  ;;  %v2046_v22 = vmul.f32 %v8649_v60, %v2045_v41  ;;  %vm2049_vm7 = vweird.f32 %v8649_v60 }
 0x275   : > { %v2060_v43 = vsub.f32 1.0, %v2059_v12  ;;  %v11150_v47 = vand.u32 2147483647, %v8474_v17  ;;  %v8730_v1 = vadd.f32 1.0, %v5954_v45  ;;  %vm2048_vm9 = vweird.f32 %v8582_v53 }
 0x276   : > { %v2069_v6 = vand.u32 2147483648, %v8609_v21  ;;  %v8734_v40 = vadd.f32 1.0, %v5956_v44  ;;  %v5958_v27 = vpop.eup %5957  ;;  %v2047_v41 = vadd.f32 %v8649_v60, %v2046_v22  ;;  %vm2064_vm10 = vweird.f32 %v8676_v51  ;;  %vm2050_vm11 = vmor %vm2048_vm9, %vm2049_vm7 }
 0x277   : > { %vm8726_vm8 = vcmp.eq.f32.partialorder %v11150_v47, 8.507059e+37  ;;  %v2061_v0 = vmul.f32 %v8676_v51, %v2060_v43  ;;  %v2067_v12 = vand.u32 2147483647, %v8609_v21  ;;  %v3209_v17 = vadd.f32 %v3177_v30, %v8550_v32  ;;  %v8748_v32 = vpop.f32.mrf.mxu1 }
 0x278   : > { %5961 = vpow2.f32 %v5493_v59  ;;  %vm2053_vm12 = vcmp.eq.f32.partialorder %v2052_v34, 8.507059e+37  ;;  %v2055_v45 = vor.u32 1.1754944e-38, %v2054_v28  ;;  %v2051_v53 = vsel %vm2050_vm11, %v8649_v60, %v2047_v41 }
 0x279   : > { %v2062_v44 = vadd.f32 %v8676_v51, %v2061_v0  ;;  %vm2063_vm13 = vweird.f32 %v8609_v21  ;;  %5963 = vrcp.f32 %v8734_v40  ;;  %v2070_v43 = vor.u32 1.1754944e-38, %v2069_v6 }
 0x27a   : > { %5965 = vrcp.f32 %v8730_v1  ;;  %v2056_v22 = vsel %vm2053_vm12, %v2055_v45, %v2051_v53  ;;  %vm2065_vm14 = vmor %vm2063_vm13, %vm2064_vm10  ;;  %v8746_v47 = vadd.f32 1.0, %v5958_v27  ;;  %v8750_v59 = vpop.eup %5959  ;;  %vm2068_vm1 = vcmp.eq.f32.partialorder %v2067_v12, 8.507059e+37 }
 0x27b   : > { %v8761_v21 = vmul.f32 %v2056_v22, %v8489_v62  ;;  %v2066_v60 = vsel %vm2065_vm14, %v8676_v51, %v2062_v44  ;;  %v8765_v6 = vadd.f32 %v8254_v37, %v1607_v3  ;;  %v3548_v27 = vsel %vm8756_vm15, %v8559_v14, %v8703_v58 }
 0x27c   : > { %v3559_v30 = vadd.f32 %v8596_v18, %v3558_v10  ;;  %v8773_v34 = vadd.f32 %v8219_v39, %v3209_v17  ;;  %v2071_v28 = vsel %vm2068_vm1, %v2070_v43, %v2066_v60  ;;  %v8777_v62 = vmul.f32 %v8660_v56, %v8222_v23 }
 0x27d   : > { %v11157_v51 = vand.u32 2147483647, %v8502_v52  ;;  %v11158_v3 = vand.u32 2147483648, %v8502_v52  ;;  %v2494_v12 = vmul.f32 %v8412_v33, %v8433_v19  ;;  %2362 = vst [vmem:[#allocation2 + $0x150] sm:$0xff] %v8761_v21  ;;  %vm3560_vm4 = vweird.f32 %v8519_v26 }
 0x27e   : > { %11155 = vst [vmem:[#allocation53_spill] sm:$0xff] %v8773_v34  ;;  %v5962_v14 = vpop.eup %5961  ;;  %v11159_v10 = vand.u32 2147483647, %v8519_v26  ;;  %v8794_v23 = vmul.f32 %v2071_v28, %v8512_v55  ;;  %5967 = vrcp.f32 %v8746_v47  ;;  %v11162_v19 = vsel %vm8682_vm3, %v8535_v24, %v8654_v5  ;;  %vm8809_vm7 = vmor %vm3560_vm4, %vm3561_vm6 }
 0x27f   : > { %11156 = vst [vmem:[#allocation54_spill] sm:$0xff] %v8777_v62  ;;  %vm3550_vm2 = vcmp.eq.f32.partialorder %v11157_v51, 8.507059e+37  ;;  %v3552_v41 = vor.u32 1.1754944e-38, %v11158_v3  ;;  %v8797_v52 = vpop.eup %5963  ;;  %v3538_v56 = vsel %vm8726_vm8, %v8592_v38, %v11162_v19  ;;  %v2526_v55 = vadd.f32 %v2494_v12, %v2428_v35 }
 0x280   : > { %vm8789_vm5 = vcmp.eq.f32.partialorder %v11159_v10, 8.507059e+37  ;;  %v5470_v53 = vmul.f32 -1.442695, %v8765_v6  ;;  %v8814_v44 = vpop.eup %5965  ;;  %v3563_v24 = vsel %vm8809_vm7, %v8596_v18, %v3559_v30  ;;  %v11165_v5 = vand.u32 2147483648, %v8519_v26  ;;  %2363 = vst [vmem:[#allocation2 + $0x168] sm:$0xff] %v8794_v23 }
 0x281   : > { %v3553_v17 = vsel %vm3550_vm2, %v3552_v41, %v3548_v27  ;;  %v8823_v38 = vmul.f32 %v8750_v59, %v8687_v42  ;;  %v5494_v15 = vmul.f32 -1.442695, %v8773_v34  ;;  %v8829_v35 = vadd.f32 %v8570_v2, %v8777_v62  ;;  %v8863_v41 = vpop.f32.mrf.mxu1 }
 0x282   : > { %v3567_v61 = vor.u32 1.1754944e-38, %v11165_v5  ;;  %v2592_v22 = vmul.f32 %v8423_v20, %v8689_v29  ;;  %v8833_v43 = vadd.f32 1.0, %v5962_v14  ;;  %v2429_v26 = vmul.f32 %v8397_v25, %v8636_v57 }
 0x283   : > { %v8838_v18 = vmul.f32 %v3538_v56, %v8311_v7  ;;  %v8841_v0 = vmul.f32 %v3553_v17, %v8334_v4  ;;  %v2884_v60 = vmul.f32 %v8629_v48, %v8689_v29  ;;  %v2074_v2 = vmul.f32 %v8797_v52, %v8734_v40 }
 0x284   : > { %v8849_v27 = vsel %vm8789_vm5, %v3567_v61, %v3563_v24  ;;  %v2624_v30 = vadd.f32 %v2592_v22, %v2526_v55  ;;  %v2495_v57 = vmul.f32 %v8412_v33, %v8566_v36  ;;  %5969 = vpow2.f32 %v5470_v53  ;;  %v8853_v7 = vpop.eup %5967  ;;  %v8861_v51 = vld [vmem:[#allocation2 + $0x14f] sm:$0xff] }
 0x285   : > { %11166 = vst [vmem:[#allocation55_spill] sm:$0xff] %v8838_v18  ;;  %v3572_v4 = vsub.f32 1.0, %v8823_v38  ;;  %v8858_v28 = vmul.f32 %v8814_v44, %v8730_v1  ;;  %v2916_v29 = vadd.f32 %v2884_v60, %v8537_v9  ;;  %5971 = vpow2.f32 %v5494_v15  ;;  %v2559_v3 = vld [vmem:[#allocation2 + $0x149] sm:$0xff]  ;;  %v8873_v9 = vld [vmem:[%s10928_s5 + $0x6] ss:$0 sm:$0xff] }
 0x286   : > { %11167 = vst [vmem:[#allocation56_spill] sm:$0xff] %v8841_v0  ;;  %5973 = vrcp.f32 %v8833_v43  ;;  %v2527_v36 = vadd.f32 %v2495_v57, %v2429_v26  ;;  %v2593_v12 = vmul.f32 %v8423_v20, %v2559_v3  ;;  %v2690_v14 = vmul.f32 %v8643_v16, %v8861_v51 }
 0x287   : > { %v2885_v10 = vmul.f32 %v8629_v48, %v2559_v3  ;;  %v2983_v58 = vmul.f32 %v8873_v9, %v8861_v51  ;;  %v2075_v19 = vsub.f32 1.0, %v2074_v2  ;;  %vm2078_vm3 = vweird.f32 %v8734_v40  ;;  %v8880_v45 = vld [vmem:[#allocation2 + $0x167] sm:$0xff] }
 0x288   : > { %v2722_v56 = vadd.f32 %v2690_v14, %v2624_v30  ;;  %v2788_v17 = vmul.f32 %v8670_v63, %v8761_v21  ;;  %v2082_v55 = vand.u32 2147483647, %v8734_v40  ;;  %v2089_v53 = vmul.f32 %v8853_v7, %v8746_v47 }
 0x289   : > { %v2625_v24 = vadd.f32 %v2593_v12, %v2527_v36  ;;  %v3015_v5 = vadd.f32 %v2983_v58, %v2916_v29  ;;  %v3081_v61 = vmul.f32 %v8694_v49, %v8761_v21  ;;  %v2084_v38 = vand.u32 2147483648, %v8734_v40 }
 0x28a   : > { %v5970_v15 = vpop.eup %5969  ;;  %v8888_v22 = vadd.f32 %v2788_v17, %v2722_v56  ;;  %v2917_v26 = vadd.f32 %v2885_v10, %v8707_v31  ;;  %v2691_v60 = vmul.f32 %v8643_v16, %v8880_v45  ;;  %v2984_v2 = vmul.f32 %v8873_v9, %v8880_v45  ;;  %v3958_v56 = vld [vmem:[%s10930_s7 + $0x58] sm:$0xff] }
 0x28b   : > { %v5972_v30 = vpop.eup %5971  ;;  %v8895_v57 = vadd.f32 %v3081_v61, %v3015_v5  ;;  %v2789_v29 = vmul.f32 %v8670_v63, %v8794_v23  ;;  %v2076_v36 = vmul.f32 %v8797_v52, %v2075_v19  ;;  %vm2079_vm6 = vweird.f32 %v8797_v52  ;;  %3968 = vmatpush.msrb.mxu1 %v3958_v56  ;;  %v2560_v56 = vld [vmem:[#allocation2 + $0x151] sm:$0xff] }
 0x28c   : > { %v8901_v12 = vpop.eup %5973  ;;  %v2723_v14 = vadd.f32 %v2691_v60, %v2625_v24  ;;  %v3016_v31 = vadd.f32 %v2984_v2, %v2917_v26  ;;  %v3082_v10 = vmul.f32 %v8694_v49, %v8794_v23  ;;  %v2090_v58 = vsub.f32 1.0, %v2089_v53  ;;  %vm2080_vm8 = vmor %vm2078_vm3, %vm2079_vm6 }
 0x28d   : > { %v2077_v17 = vadd.f32 %v8797_v52, %v2076_v36  ;;  %v2085_v5 = vor.u32 1.1754944e-38, %v2084_v38  ;;  %v2099_v61 = vand.u32 2147483648, %v8746_v47  ;;  %v8910_v19 = vadd.f32 1.0, %v5970_v15  ;;  %v1615_v15 = vpop.f32.mrf.mxu1 }
 0x28e   : > { %v8912_v62 = vadd.f32 %v2789_v29, %v2723_v14  ;;  %v8914_v24 = vadd.f32 %v3082_v10, %v3016_v31  ;;  %v2091_v53 = vmul.f32 %v8853_v7, %v2090_v58  ;;  %vm2094_vm9 = vweird.f32 %v8853_v7 }
 0x28f   : > { %v2081_v26 = vsel %vm2080_vm8, %v8797_v52, %v2077_v17  ;;  %vm2083_vm10 = vcmp.eq.f32.partialorder %v2082_v55, 8.507059e+37  ;;  %vm2093_vm11 = vweird.f32 %v8746_v47  ;;  %v2097_v38 = vand.u32 2147483647, %v8746_v47 }
 0x290   : > { %v3178_v60 = vmul.f32 %v8151_v50, %v2559_v3  ;;  %v2086_v2 = vsel %vm2083_vm10, %v2085_v5, %v2081_v26  ;;  %v2092_v29 = vadd.f32 %v8853_v7, %v2091_v53  ;;  %v8927_v40 = vadd.f32 %v8254_v37, %v8748_v32  ;;  %vm2095_vm12 = vmor %vm2093_vm11, %vm2094_vm9 }
 0x291   : > { %v3910_v36 = vadd.f32 %v8829_v35, %v8838_v18  ;;  %v3573_v52 = vmul.f32 %v8750_v59, %v3572_v4  ;;  %v8933_v55 = vmul.f32 %v2086_v2, %v8585_v46  ;;  %5975 = vrcp.f32 %v8910_v19  ;;  %v3957_v46 = vld [vmem:[%s10930_s7 + $0x50] sm:$0xff]  ;;  %v8993_v2 = vld [vmem:[%s10928_s5 + $0x8] ss:$0 sm:$0xff] }
 0x292   : > { %v8938_v50 = vmul.f32 %v8849_v27, %v8357_v8  ;;  %v3587_v47 = vsub.f32 1.0, %v8858_v28  ;;  %v2096_v32 = vsel %vm2095_vm12, %v8853_v7, %v2092_v29  ;;  %v2100_v3 = vor.u32 1.1754944e-38, %v2099_v61  ;;  %3969 = vmatpush.msrb.mxu1 %v3957_v46 }
 0x293   : > { %v3581_v14 = vand.u32 2147483648, %v8687_v42  ;;  %v2430_v35 = vmul.f32 %v8397_v25, %v8861_v51  ;;  %2364 = vst [vmem:[#allocation2 + $0x170] sm:$0xff] %v8933_v55  ;;  %vm2098_vm13 = vcmp.eq.f32.partialorder %v2097_v38, 8.507059e+37  ;;  %v3911_v8 = vadd.f32 %v3910_v36, %v8841_v0 }
 0x294   : > { %11168 = vst [vmem:[#allocation57_spill] sm:$0xff] %v8938_v50  ;;  %v3210_v27 = vadd.f32 %v3178_v60, %v8711_v11  ;;  %v2101_v4 = vsel %vm2098_vm13, %v2100_v3, %v2096_v32  ;;  %v5471_v7 = vmul.f32 -1.442695, %v8927_v40  ;;  %v8953_v28 = vadd.f32 %v8750_v59, %v3573_v52 }
 0x295   : > { %vm3576_vm14 = vweird.f32 %v8750_v59  ;;  %v2496_v51 = vmul.f32 %v8412_v33, %v8761_v21  ;;  %v8959_v31 = vmul.f32 %v2101_v4, %v8613_v54  ;;  %v8962_v10 = vadd.f32 %v3911_v8, %v8938_v50  ;;  %v3956_v8 = vld [vmem:[%s10930_s7 + $0x48] sm:$0xff] }
 0x296   : > { %vm3575_vm15 = vweird.f32 %v8687_v42  ;;  %v3588_v11 = vmul.f32 %v8814_v44, %v3587_v47  ;;  %v8966_v58 = vadd.f32 1.0, %v5972_v30  ;;  %v3579_v5 = vand.u32 2147483647, %v8687_v42  ;;  %3970 = vmatpush.msrb.mxu1 %v3956_v8 }
 0x297   : > { %v8968_v17 = vpop.eup %5975  ;;  %v8971_v61 = vor.u32 1.1754944e-38, %v3581_v14  ;;  %v2528_v54 = vadd.f32 %v2496_v51, %v2430_v35  ;;  %2365 = vst [vmem:[#allocation2 + $0x188] sm:$0xff] %v8959_v31  ;;  %vm8975_vm1 = vmor %vm3575_vm15, %vm3576_vm14  ;;  %v3601_v30 = vmul.f32 %v8901_v12, %v8833_v43  ;;  %v8983_v38 = vadd.f32 %v8219_v39, %v3210_v27  ;;  %v9000_v39 = vpop.f32.mrf.mxu1 }
 0x298   : > { %5977 = vpow2.f32 %v5471_v7  ;;  %v2594_v60 = vmul.f32 %v8423_v20, %v2560_v56  ;;  %v3179_v29 = vmul.f32 %v8993_v2, %v2560_v56  ;;  %v8998_v36 = vadd.f32 %v8254_v37, %v8863_v41 }
 0x299   : > { %11171 = vst [vmem:[#allocation58_spill] sm:$0xff] %v8983_v38  ;;  %v9003_v52 = vadd.f32 %v8814_v44, %v3588_v11  ;;  %5979 = vrcp.f32 %v8966_v58  ;;  %v2431_v47 = vmul.f32 %v8397_v25, %v8880_v45  ;;  %v2104_v14 = vmul.f32 %v8968_v17, %v8910_v19 }
 0x29a   : > { %v9008_v32 = vld [vmem:[#allocation2 + $0x16f] sm:$0xff]  ;;  %v2626_v35 = vadd.f32 %v2594_v60, %v2528_v54  ;;  %v3211_v41 = vadd.f32 %v3179_v29, %v8895_v57  ;;  %v9021_v27 = vadd.f32 %v8254_v37, %v1615_v15  ;;  %vm9023_vm2 = vcmp.eq.f32.partialorder %v3579_v5, 8.507059e+37 }
 0x29b   : > { %v9010_v3 = vld [vmem:[#allocation2 + $0x169] sm:$0xff]  ;;  %v2692_v46 = vmul.f32 %v8643_v16, %v9008_v32  ;;  %vm3591_vm4 = vweird.f32 %v8814_v44  ;;  %v3602_v4 = vsub.f32 1.0, %v3601_v30  ;;  %v2886_v7 = vmul.f32 %v8629_v48, %v2560_v56 }
 0x29c   : > { %v5495_v57 = vmul.f32 -1.442695, %v8983_v38  ;;  %v2497_v51 = vmul.f32 %v8412_v33, %v8794_v23  ;;  %v2595_v11 = vmul.f32 %v8423_v20, %v9010_v3  ;;  %v2790_v15 = vmul.f32 %v8670_v63, %v8933_v55 }
 0x29d   : > { %v2724_v37 = vadd.f32 %v2692_v46, %v2626_v35  ;;  %v5472_v5 = vmul.f32 -1.442695, %v8998_v36  ;;  %vm3590_vm5 = vweird.f32 %v8730_v1  ;;  %v2918_v56 = vadd.f32 %v2886_v7, %v8888_v22  ;;  %v9048_v35 = vld [vmem:[%s10929_s6] ss:$0 sm:$0xff] }
 0x29e   : > { %v5978_v54 = vpop.eup %5977  ;;  %v2887_v30 = vmul.f32 %v8629_v48, %v9010_v3  ;;  %v2985_v23 = vmul.f32 %v8873_v9, %v9008_v32  ;;  %v9043_v60 = vld [vmem:[#allocation2 + $0x187] sm:$0xff]  ;;  %v2105_v29 = vsub.f32 1.0, %v2104_v14  ;;  %v9051_v46 = vadd.f32 %v9048_v35, %v3211_v41  ;;  %vm9102_vm8 = vmor %vm3590_vm5, %vm3591_vm4 }
 0x29f   : > { %v2529_v8 = vadd.f32 %v2497_v51, %v2431_v47  ;;  %v9053_v21 = vadd.f32 %v2790_v15, %v2724_v37  ;;  %v5473_v22 = vmul.f32 -1.442695, %v9021_v27  ;;  %v9056_v7 = vpop.eup %5979  ;;  %5981 = vpow2.f32 %v5495_v57 }
 0x2a0   : > { %11174 = vst [vmem:[#allocation59_spill] sm:$0xff] %v9051_v46  ;;  %v3017_v26 = vadd.f32 %v2985_v23, %v2918_v56  ;;  %v3083_v14 = vmul.f32 %v8694_v49, %v8933_v55  ;;  %v2114_v42 = vand.u32 2147483648, %v8910_v19  ;;  %v2693_v0 = vmul.f32 %v8643_v16, %v9043_v60  ;;  %v9074_v56 = vpop.f32.mrf.mxu1 }
 0x2a1   : > { %v2627_v50 = vadd.f32 %v2595_v11, %v2529_v8  ;;  %v9063_v41 = vadd.f32 1.0, %v5978_v54  ;;  %5983 = vpow2.f32 %v5472_v5  ;;  %v2919_v47 = vadd.f32 %v2887_v30, %v8912_v62 }
 0x2a2   : > { %v9066_v51 = vadd.f32 %v3083_v14, %v3017_v26  ;;  %v2986_v57 = vmul.f32 %v8873_v9, %v9043_v60  ;;  %v2106_v37 = vmul.f32 %v8968_v17, %v2105_v29  ;;  %v3603_v15 = vmul.f32 %v8901_v12, %v3602_v4 }
 0x2a3   : > { %vm2109_vm7 = vweird.f32 %v8968_v17  ;;  %v2112_v11 = vand.u32 2147483647, %v8910_v19  ;;  %5985 = vpow2.f32 %v5473_v22  ;;  %v2725_v54 = vadd.f32 %v2693_v0, %v2627_v50 }
 0x2a4   : > { %v2791_v62 = vmul.f32 %v8670_v63, %v8959_v31  ;;  %v3018_v26 = vadd.f32 %v2986_v57, %v2919_v47  ;;  %v3084_v5 = vmul.f32 %v8694_v49, %v8959_v31  ;;  %v11175_v4 = vsel %vm8975_vm1, %v8750_v59, %v8953_v28 }
 0x2a5   : > { %v3583_v30 = vsel %vm9023_vm2, %v8971_v61, %v11175_v4  ;;  %v2107_v23 = vadd.f32 %v8968_v17, %v2106_v37  ;;  %vm2108_vm3 = vweird.f32 %v8910_v19  ;;  %5987 = vrcp.f32 %v9063_v41  ;;  %v5982_v0 = vpop.eup %5981 }
 0x2a6   : > { %v5496_v50 = vmul.f32 -1.442695, %v9051_v46  ;;  %v9092_v29 = vadd.f32 %v2791_v62, %v2725_v54  ;;  %v9094_v8 = vadd.f32 %v3084_v5, %v3018_v26  ;;  %vm2110_vm6 = vmor %vm2108_vm3, %vm2109_vm7  ;;  %v2115_v59 = vor.u32 1.1754944e-38, %v2114_v42 }
 0x2a7   : > { %v5984_v28 = vpop.eup %5983  ;;  %v11178_v61 = vand.u32 2147483648, %v8730_v1  ;;  %v3616_v45 = vmul.f32 %v9056_v7, %v8966_v58  ;;  %v2111_v22 = vsel %vm2110_vm6, %v8968_v17, %v2107_v23  ;;  %vm2113_vm9 = vcmp.eq.f32.partialorder %v2112_v11, 8.507059e+37 }
 0x2a8   : > { %v3593_v42 = vsel %vm9102_vm8, %v8814_v44, %v9003_v52  ;;  %v3604_v14 = vadd.f32 %v8901_v12, %v3603_v15  ;;  %vm3606_vm10 = vweird.f32 %v8901_v12  ;;  %v2116_v47 = vsel %vm2113_vm9, %v2115_v59, %v2111_v22  ;;  %v11183_v59 = vld [vmem:[#allocation51_spill] sm:$0xff] }
 0x2a9   : > { %v3597_v53 = vor.u32 1.1754944e-38, %v11178_v61  ;;  %v5986_v57 = vpop.eup %5985  ;;  %v9118_v37 = vmul.f32 %v3583_v30, %v8554_v13  ;;  %v3609_v54 = vand.u32 2147483647, %v8833_v43  ;;  %v3611_v62 = vand.u32 2147483648, %v8833_v43  ;;  %v9151_v30 = vld [vmem:[%s10927_s4] ss:$0 sm:$0xff] }
 0x2aa   : > { %v9123_v17 = vmul.f32 %v2116_v47, %v8765_v6  ;;  %v11180_v11 = vand.u32 2147483647, %v8730_v1  ;;  %vm3605_vm12 = vweird.f32 %v8833_v43  ;;  %5989 = vpow2.f32 %v5496_v50  ;;  %v1622_v50 = vpop.f32.mrf.mxu1  ;;  %v2562_v61 = vld [vmem:[#allocation2 + $0x171] sm:$0xff] }
 0x2ab   : > { %11179 = vst [vmem:[#allocation60_spill] sm:$0xff] %v9118_v37  ;;  %v9128_v44 = vadd.f32 1.0, %v5984_v28  ;;  %v9130_v52 = vpop.eup %5987  ;;  %vm9132_vm13 = vmor %vm3605_vm12, %vm3606_vm10  ;;  %v3617_v26 = vsub.f32 1.0, %v3616_v45  ;;  %v9136_v5 = vadd.f32 1.0, %v5982_v0  ;;  %v2432_v6 = vmul.f32 %v8397_v25, %v9008_v32 }
 0x2ac   : > { %vm3595_vm11 = vcmp.eq.f32.partialorder %v11180_v11, 8.507059e+37  ;;  %2366 = vst [vmem:[#allocation2 + $0x190] sm:$0xff] %v9123_v17  ;;  %v3608_v1 = vsel %vm9132_vm13, %v8901_v12, %v3604_v14  ;;  %v2119_v43 = vmul.f32 %v9130_v52, %v9063_v41  ;;  %v9146_v4 = vadd.f32 1.0, %v5986_v57 }
 0x2ad   : > { %v3598_v15 = vsel %vm3595_vm11, %v3597_v53, %v3593_v42  ;;  %v9155_v23 = vadd.f32 %v9151_v30, %v9000_v39  ;;  %v9159_v32 = vadd.f32 %v8962_v10, %v9118_v37  ;;  %vm3610_vm14 = vcmp.eq.f32.partialorder %v3609_v54, 8.507059e+37 }
 0x2ae   : > { %v3612_v12 = vor.u32 1.1754944e-38, %v3611_v62  ;;  %v2498_v0 = vmul.f32 %v8412_v33, %v8933_v55  ;;  %v9164_v28 = vmul.f32 %v3598_v15, %v11183_v59  ;;  %v2120_v53 = vsub.f32 1.0, %v2119_v43  ;;  %v3955_v55 = vld [vmem:[%s10930_s7 + $0x40] sm:$0xff] }
 0x2af   : > { %5991 = vrcp.f32 %v9128_v44  ;;  %v9171_v10 = vmul.f32 %v9056_v7, %v3617_v26  ;;  %v2499_v42 = vmul.f32 %v8412_v33, %v8959_v31  ;;  %3971 = vmatpush.msrb.mxu1 %v3955_v55  ;;  %v5474_v47 = vmul.f32 -1.442695, %v9155_v23 }
 0x2b0   : > { %v9168_v39 = vsel %vm3610_vm14, %v3612_v12, %v3608_v1  ;;  %5993 = vrcp.f32 %v9136_v5  ;;  %v2530_v45 = vadd.f32 %v2498_v0, %v2432_v6  ;;  %v5990_v22 = vpop.eup %5989  ;;  %v2121_v14 = vmul.f32 %v9130_v52, %v2120_v53 }
 0x2b1   : > { %5995 = vrcp.f32 %v9146_v4  ;;  %v2596_v57 = vmul.f32 %v8423_v20, %v2562_v61  ;;  %v2888_v54 = vmul.f32 %v8629_v48, %v2562_v61  ;;  %v3180_v62 = vmul.f32 %v8993_v2, %v9010_v3 }
 0x2b2   : > { %v2129_v11 = vand.u32 2147483648, %v9063_v41  ;;  %v2122_v33 = vadd.f32 %v9130_v52, %v2121_v14  ;;  %vm2124_vm15 = vweird.f32 %v9130_v52  ;;  %v2127_v31 = vand.u32 2147483647, %v9063_v41 }
 0x2b3   : > { %v9187_v15 = vld [vmem:[#allocation2 + $0x18f] sm:$0xff]  ;;  %5997 = vpow2.f32 %v5474_v47  ;;  %v9192_v13 = vadd.f32 1.0, %v5990_v22  ;;  %v2628_v26 = vadd.f32 %v2596_v57, %v2530_v45  ;;  %v3181_v20 = vmul.f32 %v8993_v2, %v2562_v61  ;;  %v1625_v47 = vpop.f32.mrf.mxu1 }
 0x2b4   : > { %v2433_v6 = vmul.f32 %v8397_v25, %v9043_v60  ;;  %v2920_v1 = vadd.f32 %v2888_v54, %v9053_v21  ;;  %v2694_v43 = vmul.f32 %v8643_v16, %v9187_v15  ;;  %v2987_v12 = vmul.f32 %v8873_v9, %v9187_v15 }
 0x2b5   : > { %v9197_v3 = vpop.eup %5991  ;;  %vm2123_vm1 = vweird.f32 %v9063_v41  ;;  %v9208_v59 = vadd.f32 %v3180_v62, %v8914_v24  ;;  %v2792_v25 = vmul.f32 %v8670_v63, %v9123_v17  ;;  %v3085_v60 = vmul.f32 %v8694_v49, %v9123_v17 }
 0x2b6   : > { %v9205_v0 = vpop.eup %5993  ;;  %vm2125_vm2 = vmor %vm2123_vm1, %vm2124_vm15  ;;  %v2130_v21 = vor.u32 1.1754944e-38, %v2129_v11  ;;  %v2726_v53 = vadd.f32 %v2694_v43, %v2628_v26  ;;  %v3019_v45 = vadd.f32 %v2987_v12, %v2920_v1  ;;  %vm2128_vm4 = vcmp.eq.f32.partialorder %v2127_v31, 8.507059e+37 }
 0x2b7   : > { %v9216_v61 = vpop.eup %5995  ;;  %v2126_v41 = vsel %vm2125_vm2, %v9130_v52, %v2122_v33  ;;  %v9220_v24 = vadd.f32 %v3181_v20, %v9066_v51  ;;  %v2531_v55 = vadd.f32 %v2499_v42, %v2433_v6  ;;  %v2134_v14 = vmul.f32 %v9197_v3, %v9128_v44  ;;  %v9235_v51 = vld [vmem:[#allocation2 + $0x189] sm:$0xff] }
 0x2b8   : > { %v2131_v22 = vsel %vm2128_vm4, %v2130_v21, %v2126_v41  ;;  %v9224_v54 = vadd.f32 %v2792_v25, %v2726_v53  ;;  %v9226_v62 = vadd.f32 %v3085_v60, %v3019_v45  ;;  %v9233_v52 = vadd.f32 %v9151_v30, %v9074_v56  ;;  %v3954_v25 = vld [vmem:[%s10930_s7 + $0x38] sm:$0xff] }
 0x2b9   : > { %v5998_v57 = vpop.eup %5997  ;;  %v9229_v11 = vmul.f32 %v2131_v22, %v8927_v40  ;;  %v2135_v42 = vsub.f32 1.0, %v2134_v14  ;;  %v2149_v33 = vmul.f32 %v9216_v61, %v9146_v4  ;;  %v9242_v26 = vadd.f32 %v9151_v30, %v1622_v50  ;;  %v9255_v50 = vld [vmem:[%s10928_s5 + $0x2] ss:$0 sm:$0xff]  ;;  %3972 = vmatpush.msrb.mxu1 %v3954_v25 }
 0x2ba   : > { %v9239_v31 = vadd.f32 1.0, %v5998_v57  ;;  %vm2138_vm5 = vweird.f32 %v9128_v44  ;;  %v2142_v40 = vand.u32 2147483647, %v9128_v44  ;;  %v2144_v56 = vand.u32 2147483648, %v9128_v44 }
 0x2bb   : > { %2367 = vst [vmem:[#allocation2 + $0x1a8] sm:$0xff] %v9229_v11  ;;  %v2157_v20 = vand.u32 2147483647, %v9146_v4  ;;  %v2136_v6 = vmul.f32 %v9197_v3, %v2135_v42  ;;  %vm2139_vm7 = vweird.f32 %v9197_v3  ;;  %v2150_v1 = vsub.f32 1.0, %v2149_v33 }
 0x2bc   : > { %5999 = vrcp.f32 %v9239_v31  ;;  %v2597_v43 = vmul.f32 %v9255_v50, %v9235_v51  ;;  %vm2154_vm3 = vweird.f32 %v9216_v61  ;;  %v2159_v12 = vand.u32 2147483648, %v9146_v4  ;;  %vm2140_vm6 = vmor %vm2138_vm5, %vm2139_vm7 }
 0x2bd   : > { %v5475_v60 = vmul.f32 -1.442695, %v9233_v52  ;;  %v2137_v21 = vadd.f32 %v9197_v3, %v2136_v6  ;;  %v2151_v53 = vmul.f32 %v9216_v61, %v2150_v1  ;;  %v5476_v45 = vmul.f32 -1.442695, %v9242_v26 }
 0x2be   : > { %v9269_v41 = vadd.f32 %v9151_v30, %v1625_v47  ;;  %v2889_v22 = vmul.f32 %v8629_v48, %v9235_v51  ;;  %v2145_v14 = vor.u32 1.1754944e-38, %v2144_v56  ;;  %vm2153_vm8 = vweird.f32 %v9146_v4  ;;  %v9283_v47 = vld [vmem:[%s10928_s5] ss:$0 sm:$0xff] }
 0x2bf   : > { %6001 = vpow2.f32 %v5475_v60  ;;  %v2141_v57 = vsel %vm2140_vm6, %v9197_v3, %v2137_v21  ;;  %vm2143_vm9 = vcmp.eq.f32.partialorder %v2142_v40, 8.507059e+37  ;;  %v2152_v42 = vadd.f32 %v9216_v61, %v2151_v53  ;;  %vm2155_vm10 = vmor %vm2153_vm8, %vm2154_vm3  ;;  %v1627_v60 = vpop.f32.mrf.mxu1 }
 0x2c0   : > { %6003 = vpow2.f32 %v5476_v45  ;;  %v2434_v33 = vmul.f32 %v9283_v47, %v9187_v15  ;;  %v2146_v44 = vsel %vm2143_vm9, %v2145_v14, %v2141_v57  ;;  %vm2158_vm11 = vcmp.eq.f32.partialorder %v2157_v20, 8.507059e+37  ;;  %v9312_v45 = vld [vmem:[#allocation2 + $0x191] sm:$0xff] }
 0x2c1   : > { %v2160_v4 = vor.u32 1.1754944e-38, %v2159_v12  ;;  %v2629_v3 = vadd.f32 %v2597_v43, %v2531_v55  ;;  %v9292_v6 = vmul.f32 %v2146_v44, %v8998_v36  ;;  %v2156_v1 = vsel %vm2155_vm10, %v9216_v61, %v2152_v42  ;;  %v9302_v55 = vld [vmem:[%s10928_s5 + $0x1] ss:$0 sm:$0xff] }
 0x2c2   : > { %v9289_v56 = vpop.eup %5999  ;;  %v2401_v40 = vld [vmem:[#allocation2 + $0x1a7] sm:$0xff]  ;;  %v5477_v25 = vmul.f32 -1.442695, %v9269_v41  ;;  %v2921_v15 = vadd.f32 %v2889_v22, %v9092_v29  ;;  %v2500_v36 = vmul.f32 %v9302_v55, %v9123_v17  ;;  %v2793_v61 = vmul.f32 %v8670_v63, %v9229_v11 }
 0x2c3   : > { %v2695_v21 = vmul.f32 %v8643_v16, %v2401_v40  ;;  %v2988_v53 = vmul.f32 %v8873_v9, %v2401_v40  ;;  %v2161_v20 = vsel %vm2158_vm11, %v2160_v4, %v2156_v1  ;;  %v3086_v43 = vmul.f32 %v8694_v49, %v9229_v11  ;;  %2368 = vst [vmem:[#allocation2 + $0x1b0] sm:$0xff] %v9292_v6 }
 0x2c4   : > { %v2264_v29 = vmul.f32 %v2161_v20, %v9021_v27  ;;  %v2164_v57 = vmul.f32 %v9289_v56, %v9239_v31  ;;  %v9317_v17 = vadd.f32 %v9151_v30, %v1627_v60  ;;  %v9321_v44 = vadd.f32 %v9048_v35, %v9208_v59 }
 0x2c5   : > { %v6002_v12 = vpop.eup %6001  ;;  %v2727_v22 = vadd.f32 %v2695_v21, %v2629_v3  ;;  %v3020_v14 = vadd.f32 %v2988_v53, %v2921_v15  ;;  %v9325_v4 = vadd.f32 %v9048_v35, %v9220_v24  ;;  %v2532_v27 = vadd.f32 %v2500_v36, %v2434_v33  ;;  %v3953_v3 = vld [vmem:[%s10930_s7 + $0x30] sm:$0xff] }
 0x2c6   : > { %v6004_v42 = vpop.eup %6003  ;;  %11184 = vst [vmem:[#allocation51_spill] sm:$0xff] %v9321_v44  ;;  %6005 = vpow2.f32 %v5477_v25  ;;  %v2165_v60 = vsub.f32 1.0, %v2164_v57  ;;  %v9334_v15 = vadd.f32 1.0, %v6002_v12  ;;  %3973 = vmatpush.msrb.mxu1 %v3953_v3  ;;  %v2598_v59 = vmul.f32 %v9255_v50, %v9312_v45 }
 0x2c7   : > { %11185 = vst [vmem:[#allocation61_spill] sm:$0xff] %v9325_v4  ;;  %v9330_v1 = vadd.f32 %v2793_v61, %v2727_v22  ;;  %v9332_v30 = vadd.f32 %v3086_v43, %v3020_v14  ;;  %v2890_v24 = vmul.f32 %v8629_v48, %v9312_v45  ;;  %v2172_v33 = vand.u32 2147483647, %v9239_v31 }
 0x2c8   : > { %2369 = vst [vmem:[#allocation2 + $0x1c8] sm:$0xff] %v2264_v29  ;;  %v9341_v21 = vadd.f32 1.0, %v6004_v42  ;;  %v2166_v25 = vmul.f32 %v9289_v56, %v2165_v60  ;;  %v2174_v53 = vand.u32 2147483648, %v9239_v31  ;;  %6007 = vrcp.f32 %v9334_v15 }
 0x2c9   : > { %v5478_v20 = vmul.f32 -1.442695, %v9317_v17  ;;  %v9348_v36 = vmul.f32 -1.442695, %v9321_v44  ;;  %v9351_v61 = vmul.f32 -1.442695, %v9325_v4  ;;  %v2435_v48 = vmul.f32 %v9283_v47, %v2401_v40 }
 0x2ca   : > { %6009 = vrcp.f32 %v9341_v21  ;;  %v2630_v43 = vadd.f32 %v2598_v59, %v2532_v27  ;;  %v2922_v12 = vadd.f32 %v2890_v24, %v9224_v54  ;;  %v2501_v22 = vmul.f32 %v9302_v55, %v9229_v11  ;;  %v2402_v14 = vld [vmem:[#allocation2 + $0x1af] sm:$0xff]  ;;  %v3951_v11 = vld [vmem:[%s10930_s7 + $0x20] sm:$0xff]  ;;  %v3950_v44 = vld [vmem:[%s10930_s7 + $0x18] sm:$0xff] }
 0x2cb   : > { %v9358_v57 = vld [vmem:[#allocation2 + $0x1a9] sm:$0xff]  ;;  %vm2168_vm12 = vweird.f32 %v9239_v31  ;;  %v2696_v60 = vmul.f32 %v8643_v16, %v2402_v14  ;;  %v2167_v40 = vadd.f32 %v9289_v56, %v2166_v25  ;;  %vm2169_vm13 = vweird.f32 %v9289_v56 }
 0x2cc   : > { %v6006_v42 = vpop.eup %6005  ;;  %v2599_v3 = vmul.f32 %v9255_v50, %v9358_v57  ;;  %v3952_v54 = vld [vmem:[%s10930_s7 + $0x28] sm:$0xff]  ;;  %v2502_v27 = vmul.f32 %v9302_v55, %v9292_v6  ;;  %vm9376_vm14 = vcmp.eq.f32.partialorder %v2172_v33, 8.507059e+37  ;;  %v2175_v25 = vor.u32 1.1754944e-38, %v2174_v53  ;;  %vm2170_vm15 = vmor %vm2168_vm12, %vm2169_vm13 }
 0x2cd   : > { %6011 = vpow2.f32 %v5478_v20  ;;  %3974 = vmatpush.msrb.mxu1 %v3952_v54  ;;  %v2533_v19 = vadd.f32 %v2501_v22, %v2435_v48  ;;  %v2728_v37 = vadd.f32 %v2696_v60, %v2630_v43  ;;  %v2794_v18 = vmul.f32 %v8670_v63, %v9292_v6 }
 0x2ce   : > { %v3087_v4 = vmul.f32 %v8694_v49, %v9292_v6  ;;  %v9387_v46 = vpop.eup %6007  ;;  %v9390_v33 = vmul.f32 %v9302_v55, %v2264_v29  ;;  %v2795_v20 = vmul.f32 %v8670_v63, %v2264_v29  ;;  %v9396_v48 = vmul.f32 %v8694_v49, %v2264_v29  ;;  %v3948_v29 = vld [vmem:[%s10930_s7 + $0x8] sm:$0xff] }
 0x2cf   : > { %v9374_v59 = vld [vmem:[#allocation2 + $0x1c7] sm:$0xff]  ;;  %3975 = vmatpush.msrb.mxu1 %v3951_v11  ;;  %v2631_v43 = vadd.f32 %v2599_v3, %v2533_v19  ;;  %v9404_v22 = vadd.f32 %v2794_v18, %v2728_v37  ;;  %v2171_v60 = vsel %vm2170_vm15, %v9289_v56, %v2167_v40  ;;  %v9407_v54 = vadd.f32 1.0, %v6006_v42  ;;  %v9431_v11 = vld [vmem:[#allocation2 + $0x1b1] sm:$0xff] }
 0x2d0   : > { %v2697_v53 = vmul.f32 %v8643_v16, %v9374_v59  ;;  %v9402_v6 = vpop.eup %6009  ;;  %v3949_v16 = vld [vmem:[%s10930_s7 + $0x10] sm:$0xff]  ;;  %v2989_v63 = vmul.f32 %v8873_v9, %v2402_v14  ;;  %v2176_v49 = vsel %vm9376_vm14, %v2175_v25, %v2171_v60  ;;  %v2179_v31 = vmul.f32 %v9387_v46, %v9334_v15 }
 0x2d1   : > { %vm2183_vm1 = vweird.f32 %v9334_v15  ;;  %3976 = vmatpush.msrb.mxu1 %v3950_v44  ;;  %v9419_v37 = vmul.f32 %v2176_v49, %v9155_v23  ;;  %v2187_v19 = vand.u32 2147483647, %v9334_v15  ;;  %v2194_v56 = vmul.f32 %v9402_v6, %v9341_v21 }
 0x2d2   : > { %v2729_v18 = vadd.f32 %v2697_v53, %v2631_v43  ;;  %v2180_v3 = vsub.f32 1.0, %v2179_v31  ;;  %v2189_v40 = vand.u32 2147483648, %v9334_v15  ;;  %vm2198_vm2 = vweird.f32 %v9341_v21  ;;  %v3947_v53 = vld [vmem:[%s10930_s7] sm:$0xff] }
 0x2d3   : > { %v6012_v42 = vpop.eup %6011  ;;  %v2202_v44 = vand.u32 2147483647, %v9341_v21  ;;  %3977 = vmatpush.msrb.mxu1 %v3949_v16  ;;  %v2436_v23 = vmul.f32 %v9283_v47, %v2402_v14  ;;  %2370 = vst [vmem:[#allocation2 + $0x1d0] sm:$0xff] %v9419_v37  ;;  %v2195_v24 = vsub.f32 1.0, %v2194_v56  ;;  %v2204_v25 = vand.u32 2147483648, %v9341_v21 }
 0x2d4   : > { %6013 = vrcp.f32 %v9407_v54  ;;  %v9442_v43 = vld [vmem:[%s10928_s5 + $0x5] ss:$0 sm:$0xff]  ;;  %v3021_v60 = vadd.f32 %v2989_v63, %v2922_v12  ;;  %v2181_v16 = vmul.f32 %v9387_v46, %v2180_v3  ;;  %vm2184_vm4 = vweird.f32 %v9387_v46 }
 0x2d5   : > { %v2891_v14 = vmul.f32 %v9442_v43, %v9358_v57  ;;  %3978 = vmatpush.msrb.mxu1 %v3948_v29  ;;  %v2196_v49 = vmul.f32 %v9402_v6, %v2195_v24  ;;  %vm2199_vm5 = vweird.f32 %v9402_v6  ;;  %v9450_v31 = vadd.f32 1.0, %v6012_v42  ;;  %vm2185_vm3 = vmor %vm2183_vm1, %vm2184_vm4 }
 0x2d6   : > { %v9452_v56 = vadd.f32 %v2795_v20, %v2729_v18  ;;  %v2600_v38 = vmul.f32 %v9255_v50, %v9431_v11  ;;  %v2892_v34 = vmul.f32 %v9442_v43, %v9431_v11  ;;  %v2182_v12 = vadd.f32 %v9387_v46, %v2181_v16  ;;  %vm2200_vm6 = vmor %vm2198_vm2, %vm2199_vm5 }
 0x2d7   : > { %vm2188_vm7 = vcmp.eq.f32.partialorder %v2187_v19, 8.507059e+37  ;;  %3979 = vmatpush.msrb.mxu1 %v3947_v53  ;;  %v2534_v63 = vadd.f32 %v2502_v27, %v2436_v23  ;;  %v2190_v29 = vor.u32 1.1754944e-38, %v2189_v40  ;;  %v2197_v42 = vadd.f32 %v9402_v6, %v2196_v49 }
 0x2d8   : > { %6015 = vrcp.f32 %v9450_v31  ;;  %v2437_v20 = vmul.f32 %v9283_v47, %v9374_v59  ;;  %v2186_v18 = vsel %vm2185_vm3, %v9387_v46, %v2182_v12  ;;  %v2205_v19 = vor.u32 1.1754944e-38, %v2204_v25 }
 0x2d9   : > { %v9470_v27 = vadd.f32 %v3087_v4, %v3021_v60  ;;  %v2923_v3 = vadd.f32 %v2891_v14, %v9330_v1  ;;  %v2191_v40 = vsel %vm2188_vm7, %v2190_v29, %v2186_v18  ;;  %v2201_v23 = vsel %vm2200_vm6, %v9402_v6, %v2197_v42  ;;  %v9484_v1 = vld [vmem:[%s10928_s5 + $0x3] ss:$0 sm:$0xff] }
 0x2da   : > { %v6014_v15 = vpop.eup %6013  ;;  %vm2203_vm8 = vcmp.eq.f32.partialorder %v2202_v44, 8.507059e+37  ;;  %v2404_v24 = vld [vmem:[#allocation2 + $0x1cf] sm:$0xff]  ;;  %v9475_v53 = vmul.f32 %v2191_v40, %v9233_v52  ;;  %v2217_v21 = vand.u32 2147483647, %v9407_v54  ;;  %v2632_v49 = vadd.f32 %v2600_v38, %v2534_v63  ;;  %v9494_v38 = vld [vmem:[%s10928_s5 + $0x4] ss:$0 sm:$0xff] }
 0x2db   : > { %11188 = vst [vmem:[#allocation62_spill] sm:$0xff] %v9470_v27  ;;  %v2206_v46 = vsel %vm2203_vm8, %v2205_v19, %v2201_v23  ;;  %v2209_v16 = vmul.f32 %v6014_v15, %v9407_v54  ;;  %v2990_v4 = vmul.f32 %v8873_v9, %v9374_v59  ;;  %v2698_v6 = vmul.f32 %v9484_v1, %v2404_v24  ;;  %v9506_v42 = vld [vmem:[#allocation2 + $0x1c9] sm:$0xff] }
 0x2dc   : > { %v2219_v44 = vand.u32 2147483648, %v9407_v54  ;;  %v2535_v52 = vadd.f32 %v9390_v33, %v2437_v20  ;;  %v2504_v25 = vmul.f32 %v9302_v55, %v9419_v37  ;;  %v2796_v59 = vmul.f32 %v9494_v38, %v9419_v37  ;;  %2371 = vst [vmem:[#allocation2 + $0x1e8] sm:$0xff] %v9475_v53 }
 0x2dd   : > { %v9500_v14 = vmul.f32 %v2206_v46, %v9242_v26  ;;  %v2991_v12 = vmul.f32 %v8873_v9, %v2404_v24  ;;  %v2210_v33 = vsub.f32 1.0, %v2209_v16  ;;  %vm2213_vm9 = vweird.f32 %v9407_v54  ;;  %v9514_v46 = vld [vmem:[#allocation2 + $0x1d1] sm:$0xff] }
 0x2de   : > { %v6016_v60 = vpop.eup %6015  ;;  %v2924_v63 = vadd.f32 %v2892_v34, %v9404_v22  ;;  %v2438_v29 = vmul.f32 %v9283_v47, %v2404_v24  ;;  %vm9509_vm10 = vcmp.eq.f32.partialorder %v2217_v21, 8.507059e+37  ;;  %v2730_v18 = vadd.f32 %v2698_v6, %v2632_v49  ;;  %v9523_v49 = vld [vmem:[%s10928_s5 + $0x7] ss:$0 sm:$0xff] }
 0x2df   : > { %2372 = vst [vmem:[#allocation2 + $0x1f0] sm:$0xff] %v9500_v14  ;;  %v2224_v26 = vmul.f32 %v6016_v60, %v9450_v31  ;;  %v2211_v19 = vmul.f32 %v6014_v15, %v2210_v33  ;;  %vm2214_vm11 = vweird.f32 %v6014_v15  ;;  %v2220_v40 = vor.u32 1.1754944e-38, %v2219_v44 }
 0x2e0   : > { %v3022_v23 = vadd.f32 %v2990_v4, %v2923_v3  ;;  %vm2228_vm12 = vweird.f32 %v9450_v31  ;;  %v2234_v22 = vand.u32 2147483648, %v9450_v31  ;;  %v2828_v24 = vadd.f32 %v2796_v59, %v2730_v18  ;;  %vm2215_vm13 = vmor %vm2213_vm9, %vm2214_vm11 }
 0x2e1   : > { %v2225_v34 = vsub.f32 1.0, %v2224_v26  ;;  %v2601_v16 = vmul.f32 %v9255_v50, %v9506_v42  ;;  %v2212_v21 = vadd.f32 %v6014_v15, %v2211_v19  ;;  %v3023_v27 = vadd.f32 %v2991_v12, %v2924_v63 }
 0x2e2   : > { %v3089_v3 = vmul.f32 %v9523_v49, %v9419_v37  ;;  %vm2229_vm14 = vweird.f32 %v6016_v60  ;;  %v2232_v6 = vand.u32 2147483647, %v9450_v31  ;;  %v2536_v44 = vadd.f32 %v2504_v25, %v2438_v29 }
 0x2e3   : > { %v2226_v4 = vmul.f32 %v6016_v60, %v2225_v34  ;;  %v2602_v59 = vmul.f32 %v9255_v50, %v9514_v46  ;;  %v2405_v12 = vld [vmem:[#allocation2 + $0x1e7] sm:$0xff]  ;;  %v2216_v33 = vsel %vm2215_vm13, %v6014_v15, %v2212_v21  ;;  %v9533_v63 = vadd.f32 %v9396_v48, %v3022_v23  ;;  %vm2230_vm15 = vmor %vm2228_vm12, %vm2229_vm14 }
 0x2e4   : > { %v9535_v26 = vadd.f32 %v3089_v3, %v3023_v27  ;;  %v2893_v37 = vmul.f32 %v9442_v43, %v9506_v42  ;;  %v2699_v54 = vmul.f32 %v9484_v1, %v2405_v12  ;;  %v2221_v18 = vsel %vm9509_vm10, %v2220_v40, %v2216_v33 }
 0x2e5   : > { %v2227_v19 = vadd.f32 %v6016_v60, %v2226_v4  ;;  %6017 = vpow2.f32 %v9348_v36  ;;  %v9544_v29 = vmul.f32 %v2221_v18, %v9269_v41  ;;  %v2235_v48 = vor.u32 1.1754944e-38, %v2234_v22 }
 0x2e6   : > { %v2406_v25 = vld [vmem:[#allocation2 + $0x1ef] sm:$0xff]  ;;  %v2633_v27 = vadd.f32 %v2601_v16, %v2535_v52  ;;  %vm2233_vm1 = vcmp.eq.f32.partialorder %v2232_v6, 8.507059e+37  ;;  %v2634_v23 = vadd.f32 %v2602_v59, %v2536_v44  ;;  %v2992_v34 = vmul.f32 %v8873_v9, %v2405_v12 }
 0x2e7   : > { %v2231_v15 = vsel %vm2230_vm15, %v6016_v60, %v2227_v19  ;;  %2373 = vst [vmem:[#allocation2 + $0x208] sm:$0xff] %v9544_v29  ;;  %v2700_v36 = vmul.f32 %v9484_v1, %v2406_v25  ;;  %v2797_v41 = vmul.f32 %v9494_v38, %v9475_v53  ;;  %6019 = vpow2.f32 %v9351_v61 }
 0x2e8   : > { %v2236_v20 = vsel %vm2233_vm1, %v2235_v48, %v2231_v15  ;;  %v2731_v40 = vadd.f32 %v2699_v54, %v2633_v27  ;;  %v2894_v52 = vmul.f32 %v9442_v43, %v9514_v46  ;;  %v2925_v60 = vadd.f32 %v2893_v37, %v9452_v56  ;;  %v11191_v37 = vld [vmem:[#allocation52_spill] sm:$0xff] }
 0x2e9   : > { %v9556_v31 = vmul.f32 %v2236_v20, %v9317_v17  ;;  %v3182_v22 = vmul.f32 %v8993_v2, %v9235_v51  ;;  %v2732_v16 = vadd.f32 %v2700_v36, %v2634_v23  ;;  %v2798_v21 = vmul.f32 %v9494_v38, %v9500_v14  ;;  %v2569_v27 = vld [vmem:[#allocation2 + $0x1e9] sm:$0xff] }
 0x2ea   : > { %v9565_v3 = vadd.f32 %v2797_v41, %v2731_v40  ;;  %v2926_v61 = vadd.f32 %v2894_v52, %v2828_v24  ;;  %v2993_v17 = vmul.f32 %v8873_v9, %v2406_v25  ;;  %v3024_v4 = vadd.f32 %v2992_v34, %v2925_v60 }
 0x2eb   : > { %2374 = vst [vmem:[#allocation2 + $0x210] sm:$0xff] %v9556_v31  ;;  %v3090_v6 = vmul.f32 %v9523_v49, %v9475_v53  ;;  %v6018_v44 = vpop.eup %6017  ;;  %v3619_v56 = vadd.f32 %v9056_v7, %v9171_v10  ;;  %vm3621_vm2 = vweird.f32 %v9056_v7  ;;  %6021 = vrcp.f32 %v9192_v13 }
 0x2ec   : > { %v9575_v51 = vadd.f32 %v2798_v21, %v2732_v16  ;;  %v3626_v59 = vand.u32 2147483648, %v8966_v58  ;;  %v3025_v33 = vadd.f32 %v2993_v17, %v2926_v61  ;;  %v3091_v9 = vmul.f32 %v9523_v49, %v9500_v14 }
 0x2ed   : > { %v9580_v24 = vadd.f32 %v3090_v6, %v3024_v4  ;;  %vm3620_vm4 = vweird.f32 %v8966_v58  ;;  %v9585_v54 = vmul.f32 %v9168_v39, %v11191_v37  ;;  %v6020_v10 = vpop.eup %6019  ;;  %v3914_v18 = vadd.f32 %v9159_v32, %v9164_v28 }
 0x2ee   : > { %vm9589_vm5 = vmor %vm3620_vm4, %vm3621_vm2  ;;  %v3214_v48 = vadd.f32 %v3182_v22, %v9094_v8  ;;  %v9594_v15 = vadd.f32 %v3091_v9, %v3025_v33  ;;  %v11194_v39 = vand.u32 2147483647, %v8966_v58  ;;  %v2439_v34 = vmul.f32 %v9283_v47, %v2405_v12  ;;  %v2667_v41 = vld [vmem:[#allocation2 + $0x207] sm:$0xff]  ;;  %v2570_v22 = vld [vmem:[#allocation2 + $0x1f1] sm:$0xff] }
 0x2ef   : > { %v3623_v23 = vsel %vm9589_vm5, %v9056_v7, %v3619_v56  ;;  %v2440_v32 = vmul.f32 %v9283_v47, %v2406_v25  ;;  %v3627_v20 = vor.u32 1.1754944e-38, %v3626_v59  ;;  %v9605_v36 = vmul.f32 %v9205_v0, %v9136_v5  ;;  %v2962_v59 = vld [vmem:[#allocation2 + $0x227] sm:$0xff]  ;;  %v2963_v33 = vld [vmem:[#allocation2 + $0x22f] sm:$0xff] }
 0x2f0   : > { %vm3625_vm7 = vcmp.eq.f32.partialorder %v11194_v39, 8.507059e+37  ;;  %v9607_v8 = vadd.f32 1.0, %v6018_v44  ;;  %v3183_v40 = vmul.f32 %v8993_v2, %v9312_v45  ;;  %v9614_v58 = vadd.f32 %v3914_v18, %v9585_v54 }
 0x2f1   : > { %v9611_v52 = vpop.eup %6021  ;;  %v2505_v7 = vmul.f32 %v9302_v55, %v9475_v53  ;;  %v2506_v47 = vmul.f32 %v9302_v55, %v9500_v14  ;;  %v2603_v12 = vmul.f32 %v9255_v50, %v2569_v27  ;;  %v9621_v25 = vsel %vm3625_vm7, %v3627_v20, %v3623_v23 }
 0x2f2   : > { %v9623_v60 = vadd.f32 1.0, %v6020_v10  ;;  %v3215_v45 = vadd.f32 %v3183_v40, %v9226_v62  ;;  %v2668_v16 = vld [vmem:[#allocation2 + $0x20f] sm:$0xff]  ;;  %v9627_v21 = vadd.f32 %v9048_v35, %v3214_v48  ;;  %v3184_v61 = vmul.f32 %v8993_v2, %v9358_v57 }
 0x2f3   : > { %v2537_v53 = vadd.f32 %v2505_v7, %v2439_v34  ;;  %v2538_v17 = vadd.f32 %v2506_v47, %v2440_v32  ;;  %v2701_v55 = vmul.f32 %v9484_v1, %v2667_v41  ;;  %v3632_v14 = vsub.f32 1.0, %v9605_v36  ;;  %v2863_v37 = vld [vmem:[#allocation2 + $0x209] sm:$0xff]  ;;  %v11195_v32 = vld [vmem:[#allocation62_spill] sm:$0xff] }
 0x2f4   : > { %v3639_v4 = vand.u32 2147483647, %v9136_v5  ;;  %v9636_v6 = vmul.f32 %v9611_v52, %v9192_v13  ;;  %6023 = vrcp.f32 %v9607_v8  ;;  %v2604_v62 = vmul.f32 %v9255_v50, %v2570_v22 }
 0x2f5   : > { %v2635_v44 = vadd.f32 %v2603_v12, %v2537_v53  ;;  %v2702_v56 = vmul.f32 %v9484_v1, %v2668_v16  ;;  %v2895_v57 = vmul.f32 %v9442_v43, %v2569_v27  ;;  %6025 = vrcp.f32 %v9623_v60  ;;  %v6249_v1 = vld [vmem:[%s10928_s5 + $0x6] ss:$0 sm:$0xff] }
 0x2f6   : > { %v3185_v9 = vmul.f32 %v8993_v2, %v9431_v11  ;;  %v9646_v10 = vadd.f32 %v9048_v35, %v3215_v45  ;;  %v5499_v18 = vmul.f32 -1.442695, %v9627_v21  ;;  %v2636_v19 = vadd.f32 %v2604_v62, %v2538_v17  ;;  %v6250_v53 = vld [vmem:[#allocation2] sm:$0xff] }
 0x2f7   : > { %v2733_v50 = vadd.f32 %v2701_v55, %v2635_v44  ;;  %v2994_v48 = vmul.f32 %v6249_v1, %v2667_v41  ;;  %v3216_v23 = vadd.f32 %v3184_v61, %v9332_v30  ;;  %v2996_v39 = vmul.f32 %v6249_v1, %v2962_v59 }
 0x2f8   : > { %v2997_v34 = vmul.f32 %v6249_v1, %v2963_v33  ;;  %v3186_v11 = vmul.f32 %v8993_v2, %v9506_v42  ;;  %v3217_v20 = vadd.f32 %v3185_v9, %v11195_v32  ;;  %v2734_v40 = vadd.f32 %v2702_v56, %v2636_v19  ;;  %v2864_v56 = vld [vmem:[#allocation2 + $0x211] sm:$0xff] }
 0x2f9   : > { %v2799_v7 = vmul.f32 %v9494_v38, %v9544_v29  ;;  %v2897_v47 = vmul.f32 %v9442_v43, %v2863_v37  ;;  %v2927_v12 = vadd.f32 %v2895_v57, %v9565_v3  ;;  %v2800_v30 = vmul.f32 %v9494_v38, %v9556_v31 }
 0x2fa   : > { %v9660_v45 = vpop.eup %6023  ;;  %v2896_v41 = vmul.f32 %v9442_v43, %v2570_v22  ;;  %v2995_v61 = vmul.f32 %v6249_v1, %v2668_v16  ;;  %v9666_v42 = vmul.f32 %v6250_v53, %v9523_v49  ;;  %v3188_v62 = vmul.f32 %v8993_v2, %v2569_v27 }
 0x2fb   : > { %v2831_v17 = vadd.f32 %v2799_v7, %v2733_v50  ;;  %v3026_v55 = vadd.f32 %v2994_v48, %v2927_v12  ;;  %v9670_v44 = vadd.f32 %v9048_v35, %v3216_v23  ;;  %v9672_v3 = vpop.eup %6025  ;;  %v3187_v38 = vmul.f32 %v8993_v2, %v9514_v46 }
 0x2fc   : > { %v2928_v57 = vadd.f32 %v2896_v41, %v9575_v51  ;;  %v3218_v16 = vadd.f32 %v3186_v11, %v9533_v63  ;;  %v9679_v59 = vadd.f32 %v9048_v35, %v3217_v20  ;;  %v2832_v33 = vadd.f32 %v2800_v30, %v2734_v40  ;;  %v3158_v20 = vld [vmem:[#allocation2 + $0x229] sm:$0xff] }
 0x2fd   : > { %v2929_v9 = vadd.f32 %v2897_v47, %v2831_v17  ;;  %v3092_v27 = vmul.f32 %v9523_v49, %v9544_v29  ;;  %v3190_v19 = vmul.f32 %v8993_v2, %v2863_v37  ;;  %v3189_v1 = vmul.f32 %v8993_v2, %v2570_v22 }
 0x2fe   : > { %v3027_v50 = vadd.f32 %v2995_v61, %v2928_v57  ;;  %v3219_v51 = vadd.f32 %v3187_v38, %v9535_v26  ;;  %v5500_v48 = vmul.f32 -1.442695, %v9646_v10  ;;  %v2898_v46 = vmul.f32 %v9442_v43, %v2864_v56 }
 0x2ff   : > { %v3124_v63 = vadd.f32 %v3092_v27, %v3026_v55  ;;  %v3220_v23 = vadd.f32 %v3188_v62, %v9580_v24  ;;  %v5501_v11 = vmul.f32 -1.442695, %v9670_v44  ;;  %v3093_v32 = vmul.f32 %v9523_v49, %v9556_v31 }
 0x300   : > { %v3221_v29 = vadd.f32 %v3189_v1, %v9594_v15  ;;  %v9694_v37 = vadd.f32 %v9048_v35, %v3218_v16  ;;  %v5502_v2 = vmul.f32 -1.442695, %v9679_v59  ;;  %v2930_v26 = vadd.f32 %v2898_v46, %v2832_v33 }
 0x301   : > { %v3028_v22 = vadd.f32 %v2996_v39, %v2929_v9  ;;  %v3222_v40 = vadd.f32 %v3190_v19, %v3124_v63  ;;  %6027 = vpow2.f32 %v5499_v18  ;;  %vm3635_vm3 = vweird.f32 %v9136_v5  ;;  %v6251_v18 = vld [vmem:[%s10928_s5 + $0x8] ss:$0 sm:$0xff] }
 0x302   : > { %v3647_v43 = vsub.f32 1.0, %v9636_v6  ;;  %v3125_v24 = vadd.f32 %v3093_v32, %v3027_v50  ;;  %v9700_v7 = vadd.f32 %v9048_v35, %v3219_v51  ;;  %6029 = vpow2.f32 %v5500_v48  ;;  %v6252_v51 = vld [vmem:[%s10929_s6] ss:$0 sm:$0xff] }
 0x303   : > { %v3633_v49 = vmul.f32 %v9205_v0, %v3632_v14  ;;  %v3641_v31 = vand.u32 2147483648, %v9136_v5  ;;  %v9707_v15 = vadd.f32 %v9048_v35, %v3220_v23  ;;  %6031 = vpow2.f32 %v5501_v11  ;;  %v3159_v14 = vld [vmem:[#allocation2 + $0x231] sm:$0xff] }
 0x304   : > { %v3191_v6 = vmul.f32 %v6251_v18, %v2864_v56  ;;  %v3192_v39 = vmul.f32 %v6251_v18, %v3158_v20  ;;  %v9713_v47 = vadd.f32 %v9048_v35, %v3221_v29  ;;  %6033 = vpow2.f32 %v5502_v2 }
 0x305   : > { %v3029_v12 = vadd.f32 %v2997_v34, %v2930_v26  ;;  %v3126_v36 = vadd.f32 %v9666_v42, %v3028_v22  ;;  %v9717_v30 = vadd.f32 %v9048_v35, %v3222_v40  ;;  %v5503_v41 = vmul.f32 -1.442695, %v9694_v37 }
 0x306   : > { %v3648_v61 = vmul.f32 %v9611_v52, %v3647_v43  ;;  %vm3650_vm6 = vweird.f32 %v9192_v13  ;;  %v3223_v53 = vadd.f32 %v3191_v6, %v3125_v24  ;;  %v5504_v17 = vmul.f32 -1.442695, %v9700_v7 }
 0x307   : > { %v6028_v55 = vpop.eup %6027  ;;  %vm3636_vm8 = vweird.f32 %v9205_v0  ;;  %vm9726_vm9 = vcmp.eq.f32.partialorder %v3639_v4, 8.507059e+37  ;;  %v3656_v35 = vand.u32 2147483648, %v9192_v13  ;;  %v5505_v62 = vmul.f32 -1.442695, %v9707_v15 }
 0x308   : > { %v3661_v56 = vmul.f32 %v9660_v45, %v9607_v8  ;;  %v6030_v57 = vpop.eup %6029  ;;  %v3634_v38 = vadd.f32 %v9205_v0, %v3633_v49  ;;  %vm3651_vm10 = vweird.f32 %v9611_v52  ;;  %v3193_v16 = vmul.f32 %v6251_v18, %v3159_v14  ;;  %vm9751_vm11 = vmor %vm3635_vm3, %vm3636_vm8 }
 0x309   : > { %v5506_v33 = vmul.f32 -1.442695, %v9713_v47  ;;  %v6032_v9 = vpop.eup %6031  ;;  %v3127_v4 = vadd.f32 %v9666_v42, %v3029_v12  ;;  %v3224_v27 = vadd.f32 %v3192_v39, %v3126_v36  ;;  %6035 = vpow2.f32 %v5503_v41  ;;  %vm9769_vm12 = vmor %vm3650_vm6, %vm3651_vm10  ;;  %v11202_v39 = vld [vmem:[#allocation53_spill] sm:$0xff] }
 0x30a   : > { %v5507_v19 = vmul.f32 -1.442695, %v9717_v30  ;;  %v6034_v50 = vpop.eup %6033  ;;  %v3649_v1 = vadd.f32 %v9611_v52, %v3648_v61  ;;  %v9743_v48 = vadd.f32 %v6252_v51, %v3223_v53  ;;  %6037 = vpow2.f32 %v5504_v17 }
 0x30b   : > { %v9745_v46 = vadd.f32 1.0, %v6028_v55  ;;  %6039 = vpow2.f32 %v5505_v62  ;;  %v9755_v63 = vadd.f32 1.0, %v6030_v57  ;;  %v3662_v23 = vsub.f32 1.0, %v3661_v56 }
 0x30c   : > { %v3676_v11 = vmul.f32 %v9672_v3, %v9623_v60  ;;  %v3638_v32 = vsel %vm9751_vm11, %v9205_v0, %v3634_v38  ;;  %v3654_v29 = vand.u32 2147483647, %v9192_v13  ;;  %6041 = vpow2.f32 %v5506_v33 }
 0x30d   : > { %v9763_v2 = vadd.f32 1.0, %v6032_v9  ;;  %v3225_v26 = vadd.f32 %v3193_v16, %v3127_v4  ;;  %v9773_v22 = vadd.f32 %v6252_v51, %v3224_v27  ;;  %6043 = vpow2.f32 %v5507_v19  ;;  %v11203_v16 = vld [vmem:[#allocation58_spill] sm:$0xff]  ;;  %v11204_v27 = vld [vmem:[#allocation59_spill] sm:$0xff] }
 0x30e   : > { %v9775_v20 = vadd.f32 1.0, %v6034_v50  ;;  %v3642_v0 = vor.u32 1.1754944e-38, %v3641_v31  ;;  %v3653_v40 = vsel %vm9769_vm12, %v9611_v52, %v3649_v1  ;;  %v5508_v43 = vmul.f32 -1.442695, %v9743_v48 }
 0x30f   : > { %6045 = vrcp.f32 %v9745_v46  ;;  %v6036_v13 = vpop.eup %6035  ;;  %v3657_v24 = vor.u32 1.1754944e-38, %v3656_v35  ;;  %v3663_v49 = vmul.f32 %v9660_v45, %v3662_v23  ;;  %v3677_v18 = vsub.f32 1.0, %v3676_v11 }
 0x310   : > { %6047 = vrcp.f32 %v9755_v63  ;;  %v6038_v6 = vpop.eup %6037  ;;  %v9786_v12 = vmul.f32 %v9621_v25, %v11202_v39  ;;  %v3643_v31 = vsel %vm9726_vm9, %v3642_v0, %v3638_v32  ;;  %vm3655_vm13 = vcmp.eq.f32.partialorder %v3654_v29, 8.507059e+37 }
 0x311   : > { %6049 = vrcp.f32 %v9763_v2  ;;  %v6040_v52 = vpop.eup %6039  ;;  %v3658_v36 = vsel %vm3655_vm13, %v3657_v24, %v3653_v40  ;;  %v9791_v14 = vadd.f32 %v6252_v51, %v3225_v26  ;;  %v5509_v41 = vmul.f32 -1.442695, %v9773_v22 }
 0x312   : > { %6051 = vrcp.f32 %v9775_v20  ;;  %v6042_v61 = vpop.eup %6041  ;;  %v9795_v53 = vadd.f32 1.0, %v6036_v13  ;;  %v3669_v25 = vand.u32 2147483647, %v9607_v8  ;;  %v3671_v17 = vand.u32 2147483648, %v9607_v8 }
 0x313   : > { %6053 = vpow2.f32 %v5508_v43  ;;  %v6044_v55 = vpop.eup %6043  ;;  %v9799_v34 = vadd.f32 1.0, %v6038_v6  ;;  %v3664_v35 = vadd.f32 %v9660_v45, %v3663_v49  ;;  %vm3666_vm14 = vweird.f32 %v9660_v45 }
 0x314   : > { %v3678_v62 = vmul.f32 %v9672_v3, %v3677_v18  ;;  %v9808_v57 = vadd.f32 %v9614_v58, %v9786_v12  ;;  %v9813_v33 = vmul.f32 %v3643_v31, %v11203_v16  ;;  %6055 = vpow2.f32 %v5509_v41 }
 0x315   : > { %v9804_v56 = vpop.eup %6045  ;;  %v5510_v9 = vmul.f32 -1.442695, %v9791_v14  ;;  %vm3665_vm15 = vweird.f32 %v9607_v8  ;;  %v9820_v19 = vmul.f32 %v3658_v36, %v11204_v27  ;;  %vm9826_vm2 = vcmp.eq.f32.partialorder %v3669_v25, 8.507059e+37 }
 0x316   : > { %v9810_v38 = vpop.eup %6047  ;;  %vm9822_vm1 = vmor %vm3665_vm15, %vm3666_vm14  ;;  %v3672_v1 = vor.u32 1.1754944e-38, %v3671_v17  ;;  %6057 = vrcp.f32 %v9795_v53  ;;  %v3679_v42 = vadd.f32 %v9672_v3, %v3678_v62  ;;  %vm3681_vm4 = vweird.f32 %v9672_v3 }
 0x317   : > { %v9817_v4 = vpop.eup %6049  ;;  %v3668_v8 = vsel %vm9822_vm1, %v9660_v45, %v3664_v35  ;;  %6059 = vrcp.f32 %v9799_v34  ;;  %vm3680_vm5 = vweird.f32 %v9623_v60  ;;  %v3684_v11 = vand.u32 2147483647, %v9623_v60 }
 0x318   : > { %v9831_v51 = vpop.eup %6051  ;;  %v3686_v32 = vand.u32 2147483648, %v9623_v60  ;;  %v3691_v29 = vmul.f32 %v9804_v56, %v9745_v46  ;;  %6061 = vpow2.f32 %v5510_v9  ;;  %v9844_v5 = vadd.f32 1.0, %v6040_v52  ;;  %vm9856_vm7 = vmor %vm3680_vm5, %vm3681_vm4 }
 0x319   : > { %v6054_v23 = vpop.eup %6053  ;;  %v3706_v45 = vmul.f32 %v9810_v38, %v9755_v63  ;;  %v3721_v26 = vmul.f32 %v9817_v4, %v9763_v2  ;;  %v9850_v0 = vadd.f32 1.0, %v6042_v61  ;;  %v9854_v40 = vsel %vm9826_vm2, %v3672_v1, %v3668_v8 }
 0x31a   : > { %v3701_v43 = vand.u32 2147483648, %v9745_v46  ;;  %v3736_v13 = vmul.f32 %v9831_v51, %v9775_v20  ;;  %v6056_v24 = vpop.eup %6055  ;;  %v9863_v49 = vadd.f32 1.0, %v6044_v55  ;;  %v9865_v18 = vadd.f32 1.0, %v6054_v23 }
 0x31b   : > { %v3683_v6 = vsel %vm9856_vm7, %v9672_v3, %v3679_v42  ;;  %v3716_v39 = vand.u32 2147483648, %v9755_v63  ;;  %vm3685_vm3 = vcmp.eq.f32.partialorder %v3684_v11, 8.507059e+37  ;;  %v3687_v52 = vor.u32 1.1754944e-38, %v3686_v32 }
 0x31c   : > { %v9871_v31 = vpop.eup %6057  ;;  %v3692_v36 = vsub.f32 1.0, %v3691_v29  ;;  %v3699_v41 = vand.u32 2147483647, %v9745_v46  ;;  %vm3695_vm6 = vweird.f32 %v9745_v46  ;;  %v3707_v25 = vsub.f32 1.0, %v3706_v45 }
 0x31d   : > { %v9874_v61 = vpop.eup %6059  ;;  %v3714_v17 = vand.u32 2147483647, %v9755_v63  ;;  %v3722_v55 = vsub.f32 1.0, %v3721_v26  ;;  %6063 = vrcp.f32 %v9844_v5  ;;  %v9879_v3 = vadd.f32 1.0, %v6056_v24 }
 0x31e   : > { %v9881_v35 = vsel %vm3685_vm3, %v3687_v52, %v3683_v6  ;;  %v9883_v62 = vor.u32 1.1754944e-38, %v3701_v43  ;;  %vm3710_vm8 = vweird.f32 %v9755_v63  ;;  %v3737_v16 = vsub.f32 1.0, %v3736_v13  ;;  %v6062_v9 = vpop.eup %6061 }
 0x31f   : > { %v9886_v27 = vor.u32 1.1754944e-38, %v3716_v39  ;;  %v3731_v50 = vand.u32 2147483648, %v9763_v2  ;;  %v3746_v58 = vand.u32 2147483648, %v9775_v20  ;;  %v3751_v1 = vmul.f32 %v9871_v31, %v9795_v53 }
 0x320   : > { %v3693_v8 = vmul.f32 %v9804_v56, %v3692_v36  ;;  %v3729_v42 = vand.u32 2147483647, %v9763_v2  ;;  %v3744_v23 = vand.u32 2147483647, %v9775_v20  ;;  %v3766_v11 = vmul.f32 %v9874_v61, %v9799_v34 }
 0x321   : > { %v3708_v32 = vmul.f32 %v9810_v38, %v3707_v25  ;;  %v3723_v29 = vmul.f32 %v9817_v4, %v3722_v55  ;;  %vm3725_vm9 = vweird.f32 %v9763_v2  ;;  %6065 = vrcp.f32 %v9850_v0  ;;  %v11238_v2 = vld [vmem:[#allocation61_spill] sm:$0xff] }
 0x322   : > { %v9901_v45 = vadd.f32 1.0, %v6062_v9  ;;  %vm3696_vm10 = vweird.f32 %v9804_v56  ;;  %vm9904_vm11 = vcmp.eq.f32.partialorder %v3699_v41, 8.507059e+37  ;;  %v3738_v60 = vmul.f32 %v9831_v51, %v3737_v16 }
 0x323   : > { %vm3740_vm12 = vweird.f32 %v9775_v20  ;;  %v9910_v43 = vpop.eup %6063  ;;  %vm3711_vm13 = vweird.f32 %v9810_v38  ;;  %vm9913_vm14 = vcmp.eq.f32.partialorder %v3714_v17, 8.507059e+37  ;;  %v3732_v24 = vor.u32 1.1754944e-38, %v3731_v50  ;;  %vm9936_vm4 = vmor %vm3695_vm6, %vm3696_vm10 }
 0x324   : > { %v3747_v6 = vor.u32 1.1754944e-38, %v3746_v58  ;;  %v3752_v39 = vsub.f32 1.0, %v3751_v1  ;;  %v3694_v52 = vadd.f32 %v9804_v56, %v3693_v8  ;;  %vm9918_vm15 = vcmp.eq.f32.partialorder %v3729_v42, 8.507059e+37  ;;  %vm9951_vm7 = vmor %vm3710_vm8, %vm3711_vm13 }
 0x325   : > { %vm9922_vm1 = vcmp.eq.f32.partialorder %v3744_v23, 8.507059e+37  ;;  %v3759_v25 = vand.u32 2147483647, %v9795_v53  ;;  %v3767_v55 = vsub.f32 1.0, %v3766_v11  ;;  %6067 = vrcp.f32 %v9863_v49 }
 0x326   : > { %v3709_v17 = vadd.f32 %v9810_v38, %v3708_v32  ;;  %v3724_v16 = vadd.f32 %v9817_v4, %v3723_v29  ;;  %vm3726_vm2 = vweird.f32 %v9817_v4  ;;  %v3761_v9 = vand.u32 2147483648, %v9795_v53 }
 0x327   : > { %v3739_v58 = vadd.f32 %v9831_v51, %v3738_v60  ;;  %vm3741_vm5 = vweird.f32 %v9831_v51  ;;  %v3781_v1 = vmul.f32 %v9910_v43, %v9844_v5  ;;  %6069 = vrcp.f32 %v9865_v18  ;;  %v9945_v8 = vpop.eup %6065  ;;  %vm9964_vm10 = vmor %vm3725_vm9, %vm3726_vm2 }
 0x328   : > { %v3753_v42 = vmul.f32 %v9871_v31, %v3752_v39  ;;  %vm3755_vm3 = vweird.f32 %v9795_v53  ;;  %vm3770_vm6 = vweird.f32 %v9799_v34  ;;  %v3774_v23 = vand.u32 2147483647, %v9799_v34  ;;  %vm9981_vm8 = vmor %vm3740_vm12, %vm3741_vm5 }
 0x329   : > { %v3698_v11 = vsel %vm9936_vm4, %v9804_v56, %v3694_v52  ;;  %v3768_v32 = vmul.f32 %v9874_v61, %v3767_v55  ;;  %v3776_v29 = vand.u32 2147483648, %v9799_v34  ;;  %6071 = vrcp.f32 %v9879_v3 }
 0x32a   : > { %v3713_v60 = vsel %vm9951_vm7, %v9810_v38, %v3709_v17  ;;  %v3728_v56 = vsel %vm9964_vm10, %v9817_v4, %v3724_v16  ;;  %vm9985_vm9 = vcmp.eq.f32.partialorder %v3759_v25, 8.507059e+37  ;;  %v3762_v52 = vor.u32 1.1754944e-38, %v3761_v9 }
 0x32b   : > { %v3791_v55 = vand.u32 2147483648, %v9844_v5  ;;  %v9990_v38 = vpop.eup %6067  ;;  %v3743_v4 = vsel %vm9981_vm8, %v9831_v51, %v3739_v58  ;;  %v3782_v17 = vsub.f32 1.0, %v3781_v1  ;;  %v3796_v20 = vmul.f32 %v9945_v8, %v9850_v0 }
 0x32c   : > { %6073 = vrcp.f32 %v9901_v45  ;;  %v3703_v25 = vsel %vm9904_vm11, %v9883_v62, %v3698_v11  ;;  %v3754_v16 = vadd.f32 %v9871_v31, %v3753_v42  ;;  %vm3756_vm12 = vweird.f32 %v9871_v31  ;;  %v11235_v11 = vld [vmem:[#allocation51_spill] sm:$0xff] }
 0x32d   : > { %vm10003_vm13 = vcmp.eq.f32.partialorder %v3774_v23, 8.507059e+37  ;;  %v10007_v50 = vpop.eup %6069  ;;  %v3718_v51 = vsel %vm9913_vm14, %v9886_v27, %v3713_v60  ;;  %v3769_v58 = vadd.f32 %v9874_v61, %v3768_v32  ;;  %vm3771_vm2 = vweird.f32 %v9874_v61  ;;  %vm10026_vm14 = vmor %vm3755_vm3, %vm3756_vm12 }
 0x32e   : > { %v3777_v26 = vor.u32 1.1754944e-38, %v3776_v29  ;;  %vm3785_vm11 = vweird.f32 %v9844_v5  ;;  %v3733_v62 = vsel %vm9918_vm15, %v3732_v24, %v3728_v56  ;;  %v3748_v1 = vsel %vm9922_vm1, %v3747_v6, %v3743_v4  ;;  %vm10037_vm1 = vmor %vm3770_vm6, %vm3771_vm2 }
 0x32f   : > { %v3789_v46 = vand.u32 2147483647, %v9844_v5  ;;  %v3811_v42 = vmul.f32 %v9990_v38, %v9863_v49  ;;  %v10022_v13 = vpop.eup %6071  ;;  %v3783_v23 = vmul.f32 %v9910_v43, %v3782_v17  ;;  %vm3786_vm15 = vweird.f32 %v9910_v43 }
 0x330   : > { %v3792_v24 = vor.u32 1.1754944e-38, %v3791_v55  ;;  %v3797_v36 = vsub.f32 1.0, %v3796_v20  ;;  %v3758_v6 = vsel %vm10026_vm14, %v9871_v31, %v3754_v16  ;;  %v3826_v53 = vmul.f32 %v10007_v50, %v9865_v18  ;;  %vm10087_vm3 = vmor %vm3785_vm11, %vm3786_vm15 }
 0x331   : > { %v10045_v63 = vmul.f32 %v9854_v40, %v11235_v11  ;;  %v3917_v32 = vadd.f32 %v9808_v57, %v9813_v33  ;;  %v3773_v34 = vsel %vm10037_vm1, %v9874_v61, %v3769_v58  ;;  %vm3800_vm4 = vweird.f32 %v9850_v0 }
 0x332   : > { %v10049_v29 = vpop.eup %6073  ;;  %v3804_v31 = vand.u32 2147483647, %v9850_v0  ;;  %v3806_v60 = vand.u32 2147483648, %v9850_v0  ;;  %vm10057_vm5 = vcmp.eq.f32.partialorder %v3789_v46, 8.507059e+37  ;;  %v3812_v40 = vsub.f32 1.0, %v3811_v42 }
 0x333   : > { %v3841_v57 = vmul.f32 %v10022_v13, %v9879_v3  ;;  %v10065_v55 = vmul.f32 %v9881_v35, %v11238_v2  ;;  %v3918_v61 = vadd.f32 %v3917_v32, %v9820_v19  ;;  %v3763_v4 = vsel %vm9985_vm9, %v3762_v52, %v3758_v6 }
 0x334   : > { %v3784_v17 = vadd.f32 %v9910_v43, %v3783_v23  ;;  %v3798_v20 = vmul.f32 %v9945_v8, %v3797_v36  ;;  %v3819_v16 = vand.u32 2147483647, %v9863_v49  ;;  %v3827_v58 = vsub.f32 1.0, %v3826_v53 }
 0x335   : > { %v3856_v46 = vmul.f32 %v10049_v29, %v9901_v45  ;;  %v10076_v42 = vmul.f32 %v3703_v25, %v9627_v21  ;;  %v3919_v35 = vadd.f32 %v3918_v61, %v10045_v63  ;;  %v3778_v27 = vsel %vm10003_vm13, %v3777_v26, %v3773_v34 }
 0x336   : > { %v3807_v39 = vor.u32 1.1754944e-38, %v3806_v60  ;;  %vm3815_vm7 = vweird.f32 %v9863_v49  ;;  %v3821_v52 = vand.u32 2147483648, %v9863_v49  ;;  %vm10091_vm6 = vcmp.eq.f32.partialorder %v3804_v31, 8.507059e+37 }
 0x337   : > { %v3813_v25 = vmul.f32 %v9990_v38, %v3812_v40  ;;  %v3842_v9 = vsub.f32 1.0, %v3841_v57  ;;  %v10097_v26 = vmul.f32 %v3718_v51, %v9646_v10  ;;  %v3920_v36 = vadd.f32 %v3919_v35, %v10065_v55 }
 0x338   : > { %v3788_v5 = vsel %vm10087_vm3, %v9910_v43, %v3784_v17  ;;  %v3799_v6 = vadd.f32 %v9945_v8, %v3798_v20  ;;  %vm3801_vm10 = vweird.f32 %v9945_v8  ;;  %vm3830_vm8 = vweird.f32 %v9865_v18 }
 0x339   : > { %vm10106_vm9 = vcmp.eq.f32.partialorder %v3819_v16, 8.507059e+37  ;;  %v3828_v53 = vmul.f32 %v10007_v50, %v3827_v58  ;;  %v3857_v10 = vsub.f32 1.0, %v3856_v46  ;;  %v10112_v51 = vmul.f32 %v3733_v62, %v9670_v44  ;;  %vm10120_vm13 = vmor %vm3800_vm4, %vm3801_vm10 }
 0x33a   : > { %v3921_v11 = vadd.f32 %v3920_v36, %v10076_v42  ;;  %vm3816_vm12 = vweird.f32 %v9990_v38  ;;  %v3822_v43 = vor.u32 1.1754944e-38, %v3821_v52  ;;  %v3834_v32 = vand.u32 2147483647, %v9865_v18 }
 0x33b   : > { %v3836_v34 = vand.u32 2147483648, %v9865_v18  ;;  %v3814_v60 = vadd.f32 %v9990_v38, %v3813_v25  ;;  %v3843_v44 = vmul.f32 %v10022_v13, %v3842_v9  ;;  %v10127_v62 = vmul.f32 %v3748_v1, %v9679_v59  ;;  %vm10147_vm14 = vmor %vm3815_vm7, %vm3816_vm12 }
 0x33c   : > { %v3922_v40 = vadd.f32 %v3921_v11, %v10097_v26  ;;  %v3793_v57 = vsel %vm10057_vm5, %v3792_v24, %v3788_v5  ;;  %v3803_v0 = vsel %vm10120_vm13, %v9945_v8, %v3799_v6  ;;  %vm3831_vm2 = vweird.f32 %v10007_v50  ;;  %v4004_v24 = vld [vmem:[%s10932_s9] sm:$0xff] }
 0x33d   : > { %vm3845_vm11 = vweird.f32 %v9879_v3  ;;  %v3829_v2 = vadd.f32 %v10007_v50, %v3828_v53  ;;  %v3858_v61 = vmul.f32 %v10049_v29, %v3857_v10  ;;  %v10140_v59 = vmul.f32 %v3763_v4, %v9694_v37  ;;  %vm10171_vm4 = vmor %vm3830_vm8, %vm3831_vm2  ;;  %4025 = vmatpush.msra.mxu2 %v4004_v24  ;;  %v11254_v24 = vld [vmem:[#allocation44_spill] sm:$0xff] }
 0x33e   : > { %v3923_v1 = vadd.f32 %v3922_v40, %v10112_v51  ;;  %vm10151_vm15 = vcmp.eq.f32.partialorder %v3834_v32, 8.507059e+37  ;;  %vm3846_vm1 = vweird.f32 %v10022_v13  ;;  %v3849_v56 = vand.u32 2147483647, %v9879_v3 }
 0x33f   : > { %v3818_v37 = vsel %vm10147_vm14, %v9990_v38, %v3814_v60  ;;  %v3844_v4 = vadd.f32 %v10022_v13, %v3843_v44  ;;  %v10162_v49 = vmul.f32 %v3778_v27, %v9700_v7  ;;  %v3808_v20 = vsel %vm10091_vm6, %v3807_v39, %v3803_v0  ;;  %vm3847_vm7 = vmor %vm3845_vm11, %vm3846_vm1 }
 0x340   : > { %v3924_v17 = vadd.f32 %v3923_v1, %v10127_v62  ;;  %v3851_v38 = vand.u32 2147483648, %v9879_v3  ;;  %vm3861_vm5 = vweird.f32 %v10049_v29  ;;  %v10178_v7 = vmul.f32 %v3793_v57, %v9707_v15  ;;  %v3963_v1 = vld [vmem:[%s10931_s8] sm:$0x1] }
 0x341   : > { %v3833_v58 = vsel %vm10171_vm4, %v10007_v50, %v3829_v2  ;;  %v3859_v46 = vadd.f32 %v10049_v29, %v3858_v61  ;;  %v6319_v18 = vmov 256.0   ;;  %v3823_v27 = vsel %vm10106_vm9, %v3822_v43, %v3818_v37 }
 0x342   : > { %v3925_v35 = vadd.f32 %v3924_v17, %v10140_v59  ;;  %6075 = vrcp.f32 %v6319_v18  ;;  %v3837_v39 = vor.u32 1.1754944e-38, %v3836_v34  ;;  %vm3860_vm3 = vweird.f32 %v9901_v45 }
 0x343   : > { %v3866_v15 = vand.u32 2147483648, %v9901_v45  ;;  %v3848_v50 = vsel %vm3847_vm7, %v10022_v13, %v3844_v4  ;;  %v3864_v52 = vand.u32 2147483647, %v9901_v45  ;;  %v10196_v23 = vmul.f32 %v3808_v20, %v9713_v47  ;;  %vm3862_vm6 = vmor %vm3860_vm3, %vm3861_vm5 }
 0x344   : > { %v3926_v21 = vadd.f32 %v3925_v35, %v10162_v49  ;;  %v3838_v25 = vsel %vm10151_vm15, %v3837_v39, %v3833_v58  ;;  %v3852_v9 = vor.u32 1.1754944e-38, %v3851_v38  ;;  %vm3850_vm10 = vcmp.eq.f32.partialorder %v3849_v56, 8.507059e+37 }
 0x345   : > { %v3863_v3 = vsel %vm3862_vm6, %v10049_v29, %v3859_v46  ;;  %v10205_v36 = vmul.f32 %v3823_v27, %v9717_v30  ;;  %v3867_v47 = vor.u32 1.1754944e-38, %v3866_v15  ;;  %vm3865_vm8 = vcmp.eq.f32.partialorder %v3864_v52, 8.507059e+37  ;;  %v4005_v52 = vld [vmem:[%s10933_s10] sm:$0x1] }
 0x346   : > { %v3927_v45 = vadd.f32 %v3926_v21, %v10178_v7  ;;  %v3853_v13 = vsel %vm3850_vm10, %v3852_v9, %v3848_v50  ;;  %v10209_v6 = vmul.f32 %v3838_v25, %v9743_v48  ;;  %vm4006_vm14 = vcmask 64512   ;;  %v5633_v21 = vld [vmem:[%s10934_s11 + $0x38] sm:$0xff] }
 0x347   : > { %v3868_v53 = vsel %vm3865_vm8, %v3867_v47, %v3863_v3  ;;  %v10213_v10 = vmul.f32 %v3853_v13, %v9773_v22  ;;  %4166 = vmatpush.bf16.msra.mxu3 %v5633_v21  ;;  %v5632_v3 = vld [vmem:[%s10934_s11 + $0x30] sm:$0xff]  ;;  %v5631_v13 = vld [vmem:[%s10934_s11 + $0x28] sm:$0xff]  ;;  %v5630_v47 = vld [vmem:[%s10934_s11 + $0x20] sm:$0xff] }
 0x348   : > { %v6076_v5 = vpop.eup %6075  ;;  %v3928_v41 = vadd.f32 %v3927_v45, %v10196_v23  ;;  %v10217_v30 = vmul.f32 %v3868_v53, %v9791_v14  ;;  %v5629_v53 = vld [vmem:[%s10934_s11 + $0x18] sm:$0xff] }
 0x349   : > { %v3940_v11 = vmul.f32 256.0, %v6076_v5  ;;  %vm3944_vm9 = vweird.f32 %v6076_v5  ;;  %v11261_v21 = vld [vmem:[#allocation54_spill] sm:$0xff] }
 0x34a   : > { %v3929_v29 = vadd.f32 %v3928_v41, %v10205_v36 }
 0x34b   : > { %v3941_v34 = vsub.f32 1.0, %v3940_v11  ;;  %4167 = vmatpush.bf16.msra.mxu3 %v5632_v3 }
 0x34c   : > { %v3930_v43 = vadd.f32 %v3929_v29, %v10209_v6  ;;  %v5628_v29 = vld [vmem:[%s10934_s11 + $0x10] sm:$0xff] }
 0x34d   : > { %v3942_v60 = vmul.f32 %v6076_v5, %v3941_v34 }
 0x34e   : > { %v3931_v32 = vadd.f32 %v3930_v43, %v10213_v10 }
 0x34f   : > { %v3943_v57 = vadd.f32 %v6076_v5, %v3942_v60  ;;  %4168 = vmatpush.bf16.msra.mxu3 %v5631_v13  ;;  %v11263_v13 = vld [vmem:[#allocation56_spill] sm:$0xff] }
 0x350   : > { %v3932_v48 = vadd.f32 %v3931_v32, %v10217_v30  ;;  %v5627_v32 = vld [vmem:[%s10934_s11 + $0x8] sm:$0xff] }
 0x351   : > { %v10222_v2 = vsel %vm3944_vm9, %v6076_v5, %v3943_v57 }
 0x352   : > { %v3933_v31 = vrot.slane %v3932_v48, 4 }
 0x353   : > { %4169 = vmatpush.bf16.msra.mxu3 %v5630_v47 }
 0x354   : > { %v3934_v44 = vadd.f32 %v3933_v31, %v3932_v48 }
 0x356   : > { %v3935_v40 = vrot.slane %v3934_v44, 2 }
 0x357   : > { %4170 = vmatpush.bf16.msra.mxu3 %v5629_v53 }
 0x358   : > { %v3936_v22 = vadd.f32 %v3935_v40, %v3934_v44  ;;  %v5626_v44 = vld [vmem:[%s10934_s11] sm:$0xff] }
 0x35a   : > { %v3937_v0 = vrot.slane %v3936_v22, 1 }
 0x35b   : > { %4171 = vmatpush.bf16.msra.mxu3 %v5628_v29  ;;  %v11265_v29 = vld [vmem:[#allocation60_spill] sm:$0xff] }
 0x35c   : > { %v3938_v61 = vadd.f32 %v3937_v0, %v3936_v22 }
 0x35e   : > { %v3946_v14 = vmul.f32 %v10222_v2, %v3938_v61 }
 0x35f   : > { %4172 = vmatpush.bf16.msra.mxu3 %v5627_v32 }
 0x360   : > { %3980 = vmatmul.f32.vlgmr.msrb.gmra.mxu1 %v3946_v14  ;;  %v11253_v14 = vld [vmem:[#allocation43_spill] sm:$0xff] }
 0x363   : > { %4173 = vmatpush.bf16.msra.mxu3 %v5626_v44  ;;  %v5634_v44 = vld [vmem:[%s10936_s13] sm:$0xff] }
 0x3dd   : > { %v3981_v8 = vpop.f32.mrf.mxu1 }
 0x3de   : > { %v3982_v56 = vadd.f32 %v3981_v8, %v3963_v1 }
 0x3e0   : > { %v5511_v37 = vmul.f32 -1.442695, %v3982_v56 }
 0x3e2   : > { %6077 = vpow2.f32 %v5511_v37  ;;  %v11255_v37 = vld [vmem:[#allocation45_spill] sm:$0xff] }
 0x3e8   : > { %v6078_v4 = vpop.eup %6077 }
 0x3e9   : > { %v3987_v17 = vadd.f32 1.0, %v6078_v4 }
 0x3eb   : > { %6079 = vrcp.f32 %v3987_v17  ;;  %v3999_v58 = vand.u32 2147483648, %v3987_v17  ;;  %v3997_v35 = vand.u32 2147483647, %v3987_v17  ;;  %vm3993_vm13 = vweird.f32 %v3987_v17 }
 0x3ed   : > { %v4000_v27 = vor.u32 1.1754944e-38, %v3999_v58  ;;  %vm3998_vm11 = vcmp.eq.f32.partialorder %v3997_v35, 8.507059e+37 }
 0x3f1   : > { %v6080_v20 = vpop.eup %6079 }
 0x3f2   : > { %v3989_v16 = vmul.f32 %v6080_v20, %v3987_v17  ;;  %vm3994_vm12 = vweird.f32 %v6080_v20  ;;  %v11256_v17 = vld [vmem:[#allocation46_spill] sm:$0xff] }
 0x3f3   : > { %vm3995_vm2 = vmor %vm3993_vm13, %vm3994_vm12  ;;  %vm5100_vm13 = vcmask 523264  }
 0x3f4   : > { %v3990_v38 = vsub.f32 1.0, %v3989_v16 }
 0x3f6   : > { %v3991_v46 = vmul.f32 %v6080_v20, %v3990_v38  ;;  %v11257_v38 = vld [vmem:[#allocation47_spill] sm:$0xff] }
 0x3f8   : > { %v3992_v18 = vadd.f32 %v6080_v20, %v3991_v46  ;;  %v11258_v46 = vld [vmem:[#allocation48_spill] sm:$0xff] }
 0x3fa   : > { %v3996_v39 = vsel %vm3995_vm2, %v6080_v20, %v3992_v18 }
 0x3fb   : > { %v4001_v15 = vsel %vm3998_vm11, %v4000_v27, %v3996_v39  ;;  %v11259_v27 = vld [vmem:[#allocation49_spill] sm:$0xff] }
 0x3fc   : > { %v4003_v50 = vmul.f32 %v4001_v15, %v3982_v56  ;;  %v11260_v15 = vld [vmem:[#allocation50_spill] sm:$0xff] }
 0x3fe   : > { %5512 = vmatmul.msk.f32.vlgmr.msra.gmra.mxu2 %vm4006_vm14, %v4003_v50 }
 0x481   : > { %v4027_v25 = vpop.f32.mrf.mxu2 }
 0x482   : > { %v4028_v9 = vadd.f32 %v4027_v25, %v4005_v52 }
 0x484   : > { %v5513_v45 = vmul.f32 -1.442695, %v4028_v9  ;;  %v11262_v9 = vld [vmem:[#allocation55_spill] sm:$0xff] }
 0x486   : > { %6081 = vpow2.f32 %v5513_v45 }
 0x48c   : > { %v6082_v5 = vpop.eup %6081 }
 0x48d   : > { %v4033_v41 = vadd.f32 1.0, %v6082_v5  ;;  %v11264_v5 = vld [vmem:[#allocation57_spill] sm:$0xff] }
 0x48f   : > { %6083 = vrcp.f32 %v4033_v41  ;;  %v4045_v48 = vand.u32 2147483648, %v4033_v41  ;;  %v4043_v60 = vand.u32 2147483647, %v4033_v41  ;;  %vm4039_vm1 = vweird.f32 %v4033_v41 }
 0x491   : > { %v4046_v57 = vor.u32 1.1754944e-38, %v4045_v48  ;;  %vm4044_vm5 = vcmp.eq.f32.partialorder %v4043_v60, 8.507059e+37 }
 0x495   : > { %v6084_v11 = vpop.eup %6083 }
 0x496   : > { %v4035_v43 = vmul.f32 %v6084_v11, %v4033_v41  ;;  %vm4040_vm15 = vweird.f32 %v6084_v11 }
 0x497   : > { %vm4041_vm4 = vmor %vm4039_vm1, %vm4040_vm15 }
 0x498   : > { %v4036_v34 = vsub.f32 1.0, %v4035_v43 }
 0x49a   : > { %v4037_v31 = vmul.f32 %v6084_v11, %v4036_v34  ;;  %v5635_v34 = vld [vmem:[%s10936_s13 + $0x8] sm:$0xff] }
 0x49b   : > { %4377 = vmatpush.bf16.msrb.mxu2 %v5635_v34 }
 0x49c   : > { %v4038_v40 = vadd.f32 %v6084_v11, %v4037_v31 }
 0x49e   : > { %v4042_v22 = vsel %vm4041_vm4, %v6084_v11, %v4038_v40 }
 0x49f   : > { %v4047_v0 = vsel %vm4044_vm5, %v4046_v57, %v4042_v22  ;;  %4378 = vmatpush.bf16.msrb.mxu2 %v5634_v44 }
 0x4a0   : > { %v10258_v61 = vperm.slane %v4047_v0, 0 }
 0x4a2   : > { %v4050_v1 = vmul.f32 %v10258_v61, %v11253_v14  ;;  %v4051_v8 = vmul.f32 %v10258_v61, %v11254_v24  ;;  %v4052_v4 = vmul.f32 %v10258_v61, %v11255_v37  ;;  %v4053_v20 = vmul.f32 %v10258_v61, %v11256_v17 }
 0x4a3   : > { %v4054_v58 = vmul.f32 %v10258_v61, %v11257_v38  ;;  %v4055_v35 = vmul.f32 %v10258_v61, %v11258_v46  ;;  %v4056_v39 = vmul.f32 %v10258_v61, %v11259_v27  ;;  %v4057_v50 = vmul.f32 %v10258_v61, %v11260_v15 }
 0x4a4   : > { %v4082_v56 = vpack.c.bf16 %v4051_v8, %v4050_v1  ;;  %v4083_v16 = vpack.c.bf16 %v4053_v20, %v4052_v4  ;;  %v4058_v25 = vmul.f32 %v10258_v61, %v11261_v21  ;;  %v4059_v3 = vmul.f32 %v10258_v61, %v11262_v9  ;;  %v11267_v8 = vld [vmem:[#allocation12_spill] sm:$0xff] }
 0x4a5   : > { %v4084_v18 = vpack.c.bf16 %v4055_v35, %v4054_v58  ;;  %v4085_v52 = vpack.c.bf16 %v4057_v50, %v4056_v39  ;;  %v4060_v47 = vmul.f32 %v10258_v61, %v11263_v13  ;;  %v4061_v41 = vmul.f32 %v10258_v61, %v11264_v5  ;;  %v11268_v58 = vld [vmem:[#allocation13_spill] sm:$0xff]  ;;  %v11269_v35 = vld [vmem:[#allocation14_spill] sm:$0xff] }
 0x4a6   : > { %4174 = vmatmul.bf16.vlgmr.msra.gmra.mxu3 %v4082_v56  ;;  %v4086_v45 = vpack.c.bf16 %v4059_v3, %v4058_v25  ;;  %v4062_v11 = vmul.f32 %v10258_v61, %v11265_v29  ;;  %v4063_v43 = vmul.f32 %v10258_v61, %v9164_v28  ;;  %v4064_v48 = vmul.f32 %v10258_v61, %v9585_v54  ;;  %v10305_v54 = vld [vmem:[%s10935_s12] ss:$0 sm:$0xff]  ;;  %v11270_v25 = vld [vmem:[#allocation15_spill] sm:$0xff]  ;;  %v11271_v3 = vld [vmem:[#allocation16_spill] sm:$0xff] }
 0x4a7   : > { %v4087_v53 = vpack.c.bf16 %v4061_v41, %v4060_v47  ;;  %v4065_v31 = vmul.f32 %v10258_v61, %v9786_v12  ;;  %v4066_v28 = vmul.f32 %v10258_v61, %v9813_v33  ;;  %v4067_v40 = vmul.f32 %v10258_v61, %v9820_v19  ;;  %v11266_v19 = vld [vmem:[#allocation11_spill] sm:$0xff] }
 0x4a8   : > { %v4088_v32 = vpack.c.bf16 %v4063_v43, %v4062_v11  ;;  %v4068_v0 = vmul.f32 %v10258_v61, %v10045_v63  ;;  %v4069_v14 = vmul.f32 %v10258_v61, %v10065_v55  ;;  %v4070_v63 = vmul.f32 %v10258_v61, %v10076_v42  ;;  %v11272_v11 = vld [vmem:[#allocation17_spill] sm:$0xff] }
 0x4a9   : > { %v4089_v60 = vpack.c.bf16 %v4065_v31, %v4064_v48  ;;  %v4090_v57 = vpack.c.bf16 %v4067_v40, %v4066_v28  ;;  %v4071_v55 = vmul.f32 %v10258_v61, %v10097_v26  ;;  %v4072_v42 = vmul.f32 %v10258_v61, %v10112_v51 }
 0x4aa   : > { %v4091_v37 = vpack.c.bf16 %v4069_v14, %v4068_v0  ;;  %v4073_v26 = vmul.f32 %v10258_v61, %v10127_v62  ;;  %v4074_v51 = vmul.f32 %v10258_v61, %v10140_v59  ;;  %v4075_v62 = vmul.f32 %v10258_v61, %v10162_v49 }
 0x4ab   : > { %v4092_v27 = vpack.c.bf16 %v4071_v55, %v4070_v63  ;;  %v4076_v59 = vmul.f32 %v10258_v61, %v10178_v7  ;;  %v4077_v49 = vmul.f32 %v10258_v61, %v10196_v23  ;;  %v4078_v7 = vmul.f32 %v10258_v61, %v10205_v36 }
 0x4ac   : > { %v4093_v13 = vpack.c.bf16 %v4073_v26, %v4072_v42  ;;  %v4094_v48 = vpack.c.bf16 %v4075_v62, %v4074_v51  ;;  %v4079_v23 = vmul.f32 %v10258_v61, %v10209_v6  ;;  %v4080_v36 = vmul.f32 %v10258_v61, %v10213_v10 }
 0x4ad   : > { %v4095_v14 = vpack.c.bf16 %v4077_v49, %v4076_v59  ;;  %v4081_v6 = vmul.f32 %v10258_v61, %v10217_v30  ;;  %v11281_v61 = vld [vmem:[#allocation26_spill] sm:$0xff]  ;;  %v11285_v49 = vld [vmem:[#allocation29_spill] sm:$0xff] }
 0x4b6   : > { %4179 = vmatmul.bf16.gmra.mxu3 %v4083_v16 }
 0x4c6   : > { %4184 = vmatmul.bf16.gmra.mxu3 %v4084_v18 }
 0x4d6   : > { %4189 = vmatmul.bf16.gmra.mxu3 %v4085_v52 }
 0x4e6   : > { %4194 = vmatmul.bf16.gmra.mxu3 %v4086_v45 }
 0x4f6   : > { %4199 = vmatmul.bf16.gmra.mxu3 %v4087_v53 }
 0x506   : > { %4204 = vmatmul.bf16.gmra.mxu3 %v4088_v32  ;;  %v11273_v32 = vld [vmem:[#allocation18_spill] sm:$0xff] }
 0x516   : > { %4209 = vmatmul.bf16.gmra.mxu3 %v4089_v60 }
 0x526   : > { %4214 = vmatmul.bf16.gmra.mxu3 %v4090_v57  ;;  %v11274_v57 = vld [vmem:[#allocation19_spill] sm:$0xff] }
 0x529   : > { %v4175_v22 = vpop.f32.mrf.mxu3 }
 0x52a   : > { %v4176_v12 = vadd.f32 %v10305_v54, %v4175_v22 }
 0x52c   : > { %v4255_v24 = vadd.f32 %v4176_v12, %v11266_v19  ;;  %v11275_v12 = vld [vmem:[#allocation20_spill] sm:$0xff] }
 0x531   : > { %v4177_v33 = vpop.f32.mrf.mxu3 }
 0x532   : > { %v4178_v1 = vadd.f32 %v10305_v54, %v4177_v33 }
 0x534   : > { %v4256_v56 = vadd.f32 %v4178_v1, %v11267_v8 }
 0x536   : > { %v4287_v4 = vpack.c.bf16 %v4256_v56, %v4255_v24  ;;  %4219 = vmatmul.bf16.gmra.mxu3 %v4091_v37  ;;  %v11276_v56 = vld [vmem:[#allocation21_spill] sm:$0xff] }
 0x538   : > { %5554 = vmatmul.msk.bf16.vlgmr.msrb.gmra.mxu2 %vm679_vm0, %v4287_v4  ;;  %v11277_v4 = vld [vmem:[#allocation22_spill] sm:$0xff] }
 0x539   : > { %v4180_v17 = vpop.f32.mrf.mxu3 }
 0x53a   : > { %v4181_v20 = vadd.f32 %v10305_v54, %v4180_v17 }
 0x53c   : > { %v4257_v46 = vadd.f32 %v4181_v20, %v11268_v58  ;;  %v4096_v20 = vpack.c.bf16 %v4079_v23, %v4078_v7 }
 0x541   : > { %v4182_v16 = vpop.f32.mrf.mxu3 }
 0x542   : > { %v4183_v38 = vadd.f32 %v10305_v54, %v4182_v16 }
 0x544   : > { %v4258_v18 = vadd.f32 %v4183_v38, %v11269_v35 }
 0x546   : > { %4224 = vmatmul.bf16.gmra.mxu3 %v4092_v27  ;;  %v4288_v39 = vpack.c.bf16 %v4258_v18, %v4257_v46  ;;  %v11278_v46 = vld [vmem:[#allocation23_spill] sm:$0xff]  ;;  %v11279_v18 = vld [vmem:[#allocation24_spill] sm:$0xff] }
 0x548   : > { %5555 = vmatmul.msk.bf16.gmra.mxu2 %vm679_vm0, %v4288_v39  ;;  %v4097_v39 = vpack.c.bf16 %v4081_v6, %v4080_v36  ;;  %v11287_v36 = vld [vmem:[#allocation31_spill] sm:$0xff] }
 0x549   : > { %v4185_v15 = vpop.f32.mrf.mxu3 }
 0x54a   : > { %v4186_v50 = vadd.f32 %v10305_v54, %v4185_v15 }
 0x54c   : > { %v4259_v9 = vadd.f32 %v4186_v50, %v11270_v25 }
 0x551   : > { %v4187_v52 = vpop.f32.mrf.mxu3 }
 0x552   : > { %v4188_v21 = vadd.f32 %v10305_v54, %v4187_v52  ;;  %v11280_v52 = vld [vmem:[#allocation25_spill] sm:$0xff] }
 0x554   : > { %v4260_v45 = vadd.f32 %v4188_v21, %v11271_v3 }
 0x556   : > { %4229 = vmatmul.bf16.gmra.mxu3 %v4093_v13  ;;  %v4289_v47 = vpack.c.bf16 %v4260_v45, %v4259_v9 }
 0x558   : > { %5556 = vmatmul.msk.bf16.gmra.mxu2 %vm679_vm0, %v4289_v47  ;;  %v11282_v47 = vld [vmem:[#allocation28_spill] sm:$0xff] }
 0x559   : > { %v4190_v5 = vpop.f32.mrf.mxu3 }
 0x55a   : > { %v4191_v41 = vadd.f32 %v10305_v54, %v4190_v5 }
 0x55c   : > { %v4261_v43 = vadd.f32 %v4191_v41, %v11272_v11  ;;  %v11283_v41 = vld [vmem:[#allocation27_spill] sm:$0xff] }
 0x561   : > { %v4192_v53 = vpop.f32.mrf.mxu3 }
 0x562   : > { %v4193_v29 = vadd.f32 %v10305_v54, %v4192_v53  ;;  %v10383_v53 = vld [vmem:[%s10937_s14] ss:$0 sm:$0xff] }
 0x564   : > { %v4262_v34 = vadd.f32 %v4193_v29, %v11273_v32 }
 0x566   : > { %4234 = vmatmul.bf16.gmra.mxu3 %v4094_v48  ;;  %v4290_v31 = vpack.c.bf16 %v4262_v34, %v4261_v43 }
 0x568   : > { %5557 = vmatmul.msk.bf16.gmra.mxu2 %vm679_vm0, %v4290_v31 }
 0x569   : > { %v4195_v60 = vpop.f32.mrf.mxu3 }
 0x56a   : > { %v4196_v44 = vadd.f32 %v10305_v54, %v4195_v60 }
 0x56c   : > { %v4263_v22 = vadd.f32 %v4196_v44, %v11274_v57  ;;  %v11284_v44 = vld [vmem:[#allocation30_spill] sm:$0xff] }
 0x571   : > { %v4197_v28 = vpop.f32.mrf.mxu3 }
 0x572   : > { %v4198_v40 = vadd.f32 %v10305_v54, %v4197_v28 }
 0x574   : > { %v4264_v0 = vadd.f32 %v4198_v40, %v11275_v12 }
 0x576   : > { %4239 = vmatmul.bf16.gmra.mxu3 %v4095_v14  ;;  %v4291_v33 = vpack.c.bf16 %v4264_v0, %v4263_v22 }
 0x578   : > { %5558 = vmatmul.msk.bf16.gmra.mxu2 %vm679_vm0, %v4291_v33 }
 0x579   : > { %v4200_v1 = vpop.f32.mrf.mxu3 }
 0x57a   : > { %v4201_v19 = vadd.f32 %v10305_v54, %v4200_v1 }
 0x57c   : > { %v4265_v37 = vadd.f32 %v4201_v19, %v11276_v56 }
 0x581   : > { %v4202_v24 = vpop.f32.mrf.mxu3 }
 0x582   : > { %v4203_v8 = vadd.f32 %v10305_v54, %v4202_v24 }
 0x584   : > { %v4266_v17 = vadd.f32 %v4203_v8, %v11277_v4 }
 0x586   : > { %4244 = vmatmul.bf16.gmra.mxu3 %v4096_v20  ;;  %v4292_v63 = vpack.c.bf16 %v4266_v17, %v4265_v37 }
 0x588   : > { %5559 = vmatmul.msk.bf16.gmra.mxu2 %vm679_vm0, %v4292_v63 }
 0x589   : > { %v4205_v55 = vpop.f32.mrf.mxu3 }
 0x58a   : > { %v4206_v16 = vadd.f32 %v10305_v54, %v4205_v55  ;;  %v11286_v55 = vld [vmem:[#allocation32_spill] sm:$0xff] }
 0x58c   : > { %v4267_v35 = vadd.f32 %v4206_v16, %v11278_v46 }
 0x591   : > { %v4207_v38 = vpop.f32.mrf.mxu3 }
 0x592   : > { %v4208_v58 = vadd.f32 %v10305_v54, %v4207_v38 }
 0x594   : > { %v4268_v27 = vadd.f32 %v4208_v58, %v11279_v18 }
 0x596   : > { %4249 = vmatmul.bf16.gmra.mxu3 %v4097_v39  ;;  %v4293_v15 = vpack.c.bf16 %v4268_v27, %v4267_v35 }
 0x598   : > { %5560 = vmatmul.msk.bf16.gmra.mxu2 %vm679_vm0, %v4293_v15 }
 0x599   : > { %v4210_v50 = vpop.f32.mrf.mxu3 }
 0x59a   : > { %v4211_v42 = vadd.f32 %v10305_v54, %v4210_v50 }
 0x59c   : > { %v4269_v30 = vadd.f32 %v4211_v42, %v11280_v52 }
 0x5a1   : > { %v4212_v26 = vpop.f32.mrf.mxu3 }
 0x5a2   : > { %v4213_v10 = vadd.f32 %v10305_v54, %v4212_v26 }
 0x5a4   : > { %v4270_v21 = vadd.f32 %v4213_v10, %v11281_v61 }
 0x5a6   : > { %v4294_v25 = vpack.c.bf16 %v4270_v21, %v4269_v30 }
 0x5a8   : > { %5561 = vmatmul.msk.bf16.gmra.mxu2 %vm679_vm0, %v4294_v25 }
 0x5a9   : > { %v4215_v9 = vpop.f32.mrf.mxu3 }
 0x5aa   : > { %v4216_v3 = vadd.f32 %v10305_v54, %v4215_v9 }
 0x5ac   : > { %v4271_v5 = vadd.f32 %v4216_v3, %v11282_v47 }
 0x5b1   : > { %v4217_v45 = vpop.f32.mrf.mxu3 }
 0x5b2   : > { %v4218_v13 = vadd.f32 %v10305_v54, %v4217_v45 }
 0x5b4   : > { %v4272_v51 = vadd.f32 %v4218_v13, %v11283_v41 }
 0x5b6   : > { %v4295_v62 = vpack.c.bf16 %v4272_v51, %v4271_v5 }
 0x5b8   : > { %5562 = vmatmul.msk.bf16.gmra.mxu2 %vm679_vm0, %v4295_v62 }
 0x5b9   : > { %v4220_v29 = vpop.f32.mrf.mxu3 }
 0x5ba   : > { %v4221_v34 = vadd.f32 %v10305_v54, %v4220_v29 }
 0x5bb   : > { %v4380_v11 = vpop.f32.mrf.mxu2 }
 0x5bc   : > { %v10386_v43 = vadd.f32 %v10383_v53, %v4380_v11  ;;  %v4273_v59 = vadd.f32 %v4221_v34, %v11284_v44 }
 0x5be   : > { %v5570_v32 = vmul.f32 -1.442695, %v10386_v43 }
 0x5c0   : > { %6085 = vpow2.f32 %v5570_v32 }
 0x5c1   : > { %v4222_v48 = vpop.f32.mrf.mxu3 }
 0x5c2   : > { %v4223_v31 = vadd.f32 %v10305_v54, %v4222_v48 }
 0x5c3   : > { %v4382_v60 = vpop.f32.mrf.mxu2 }
 0x5c4   : > { %v4274_v28 = vadd.f32 %v4223_v31, %v11285_v49  ;;  %v10394_v40 = vadd.f32 %v10383_v53, %v4382_v60 }
 0x5c6   : > { %v6086_v57 = vpop.eup %6085  ;;  %v5571_v22 = vmul.f32 -1.442695, %v10394_v40  ;;  %v4296_v12 = vpack.c.bf16 %v4274_v28, %v4273_v59 }
 0x5c7   : > { %v4556_v0 = vadd.f32 1.0, %v6086_v57 }
 0x5c8   : > { %6087 = vpow2.f32 %v5571_v22  ;;  %5563 = vmatmul.msk.bf16.gmra.mxu2 %vm679_vm0, %v4296_v12 }
 0x5c9   : > { %6089 = vrcp.f32 %v4556_v0  ;;  %v4225_v14 = vpop.f32.mrf.mxu3  ;;  %v4599_v35 = vand.u32 2147483648, %v4556_v0  ;;  %vm4593_vm3 = vweird.f32 %v4556_v0  ;;  %v4597_v15 = vand.u32 2147483647, %v4556_v0 }
 0x5ca   : > { %v4226_v56 = vadd.f32 %v10305_v54, %v4225_v14 }
 0x5cb   : > { %v4385_v33 = vpop.f32.mrf.mxu2  ;;  %v4600_v52 = vor.u32 1.1754944e-38, %v4599_v35  ;;  %vm4598_vm10 = vcmp.eq.f32.partialorder %v4597_v15, 8.507059e+37 }
 0x5cc   : > { %v10399_v1 = vadd.f32 %v10383_v53, %v4385_v33  ;;  %v4275_v16 = vadd.f32 %v4226_v56, %v11286_v55  ;;  %v11288_v33 = vld [vmem:[#allocation33_spill] sm:$0xff] }
 0x5ce   : > { %v6088_v19 = vpop.eup %6087  ;;  %v5572_v7 = vmul.f32 -1.442695, %v10399_v1 }
 0x5cf   : > { %v6090_v23 = vpop.eup %6089  ;;  %v4557_v24 = vadd.f32 1.0, %v6088_v19 }
 0x5d0   : > { %v4589_v8 = vmul.f32 %v6090_v23, %v4556_v0  ;;  %6091 = vpow2.f32 %v5572_v7  ;;  %vm4594_vm7 = vweird.f32 %v6090_v23 }
 0x5d1   : > { %6093 = vrcp.f32 %v4557_v24  ;;  %v4227_v37 = vpop.f32.mrf.mxu3  ;;  %vm4595_vm6 = vmor %vm4593_vm3, %vm4594_vm7  ;;  %v4614_v61 = vand.u32 2147483648, %v4557_v24  ;;  %v4612_v3 = vand.u32 2147483647, %v4557_v24  ;;  %vm4608_vm9 = vweird.f32 %v4557_v24 }
 0x5d2   : > { %v4590_v4 = vsub.f32 1.0, %v4589_v8  ;;  %v4228_v17 = vadd.f32 %v10305_v54, %v4227_v37 }
 0x5d3   : > { %v4387_v20 = vpop.f32.mrf.mxu2  ;;  %v4615_v51 = vor.u32 1.1754944e-38, %v4614_v61  ;;  %vm4613_vm2 = vcmp.eq.f32.partialorder %v4612_v3, 8.507059e+37 }
 0x5d4   : > { %v4591_v63 = vmul.f32 %v6090_v23, %v4590_v4  ;;  %v4276_v6 = vadd.f32 %v4228_v17, %v11287_v36  ;;  %v10407_v38 = vadd.f32 %v10383_v53, %v4387_v20 }
 0x5d6   : > { %v6092_v58 = vpop.eup %6091  ;;  %v4592_v46 = vadd.f32 %v6090_v23, %v4591_v63  ;;  %v5573_v18 = vmul.f32 -1.442695, %v10407_v38  ;;  %v4297_v27 = vpack.c.bf16 %v4276_v6, %v4275_v16 }
 0x5d7   : > { %v6094_v39 = vpop.eup %6093  ;;  %v4558_v50 = vadd.f32 1.0, %v6092_v58 }
 0x5d8   : > { %v4604_v42 = vmul.f32 %v6094_v39, %v4557_v24  ;;  %6095 = vpow2.f32 %v5573_v18  ;;  %5564 = vmatmul.msk.bf16.gmra.mxu2 %vm679_vm0, %v4297_v27  ;;  %v4596_v26 = vsel %vm4595_vm6, %v6090_v23, %v4592_v46  ;;  %vm4609_vm8 = vweird.f32 %v6094_v39  ;;  %v5178_v23 = vld [vmem:[%s10938_s15 + $0x38] sm:$0xff] }
 0x5d9   : > { %6097 = vrcp.f32 %v4558_v50  ;;  %v4230_v10 = vpop.f32.mrf.mxu3  ;;  %v4601_v25 = vsel %vm4598_vm10, %v4600_v52, %v4596_v26  ;;  %vm4610_vm12 = vmor %vm4608_vm9, %vm4609_vm8  ;;  %v4627_v59 = vand.u32 2147483647, %v4558_v50  ;;  %v4629_v49 = vand.u32 2147483648, %v4558_v50  ;;  %5191 = vmatpush.msrb.mxu0 %v5178_v23 }
 0x5da   : > { %v4605_v30 = vsub.f32 1.0, %v4604_v42  ;;  %v5068_v41 = vmul.f32 %v4601_v25, %v10386_v43  ;;  %v4231_v48 = vadd.f32 %v10305_v54, %v4230_v10  ;;  %vm4623_vm14 = vweird.f32 %v4558_v50 }
 0x5db   : > { %v4390_v21 = vpop.f32.mrf.mxu2  ;;  %v4630_v37 = vor.u32 1.1754944e-38, %v4629_v49  ;;  %vm4628_vm1 = vcmp.eq.f32.partialorder %v4627_v59, 8.507059e+37 }
 0x5dc   : > { %v4606_v9 = vmul.f32 %v6094_v39, %v4605_v30  ;;  %v10412_v45 = vadd.f32 %v10383_v53, %v4390_v21  ;;  %v5101_v43 = vsel %vm5100_vm13, %v5068_v41, 0.0  ;;  %v4277_v19 = vadd.f32 %v4231_v48, %v11288_v33  ;;  %v11291_v48 = vld [vmem:[#allocation35_spill] sm:$0xff] }
 0x5de   : > { %v6096_v13 = vpop.eup %6095  ;;  %v4607_v47 = vadd.f32 %v6094_v39, %v4606_v9  ;;  %v5574_v29 = vmul.f32 -1.442695, %v10412_v45 }
 0x5df   : > { %v6098_v5 = vpop.eup %6097  ;;  %v10415_v62 = vadd.f32 1.0, %v6096_v13 }
 0x5e0   : > { %v4611_v11 = vsel %vm4610_vm12, %v6094_v39, %v4607_v47  ;;  %v4619_v32 = vmul.f32 %v6098_v5, %v4558_v50  ;;  %vm4624_vm11 = vweird.f32 %v6098_v5 }
 0x5e1   : > { %v4616_v34 = vsel %vm4613_vm2, %v4615_v51, %v4611_v11  ;;  %6099 = vrcp.f32 %v10415_v62  ;;  %v4232_v31 = vpop.f32.mrf.mxu3  ;;  %vm4625_vm15 = vmor %vm4623_vm14, %vm4624_vm11  ;;  %v4642_v46 = vand.u32 2147483647, %v10415_v62  ;;  %v4644_v35 = vand.u32 2147483648, %v10415_v62 }
 0x5e2   : > { %v5069_v60 = vmul.f32 %v4616_v34, %v10394_v40  ;;  %v4620_v44 = vsub.f32 1.0, %v4619_v32  ;;  %6101 = vpow2.f32 %v5574_v29  ;;  %v4233_v28 = vadd.f32 %v10305_v54, %v4232_v31  ;;  %v11289_v40 = vld [vmem:[#allocation34_spill] sm:$0xff]  ;;  %v11290_v32 = vld [vmem:[#allocation36_spill] sm:$0xff] }
 0x5e3   : > { %v4392_v57 = vpop.f32.mrf.mxu2  ;;  %vm4638_vm5 = vweird.f32 %v10415_v62  ;;  %v4645_v10 = vor.u32 1.1754944e-38, %v4644_v35  ;;  %vm4643_vm3 = vcmp.eq.f32.partialorder %v4642_v46, 8.507059e+37 }
 0x5e4   : > { %v5102_v22 = vsel %vm5100_vm13, %v5069_v60, 0.0  ;;  %v4621_v12 = vmul.f32 %v6098_v5, %v4620_v44  ;;  %v10425_v0 = vadd.f32 %v10383_v53, %v4392_v57  ;;  %v4278_v7 = vadd.f32 %v4233_v28, %v11289_v40 }
 0x5e5   : > { %v5103_v14 = vadd.f32 %v5102_v22, %v5101_v43 }
 0x5e6   : > { %v4622_v24 = vadd.f32 %v6098_v5, %v4621_v12  ;;  %v5575_v8 = vmul.f32 -1.442695, %v10425_v0  ;;  %v4298_v4 = vpack.c.bf16 %v4278_v7, %v4277_v19 }
 0x5e7   : > { %v6100_v56 = vpop.eup %6099 }
 0x5e8   : > { %v6102_v17 = vpop.eup %6101  ;;  %v4626_v20 = vsel %vm4625_vm15, %v6098_v5, %v4622_v24  ;;  %v4634_v63 = vmul.f32 %v6100_v56, %v10415_v62  ;;  %6103 = vpow2.f32 %v5575_v8  ;;  %5565 = vmatmul.msk.bf16.gmra.mxu2 %vm679_vm0, %v4298_v4  ;;  %vm4639_vm4 = vweird.f32 %v6100_v56 }
 0x5e9   : > { %v4631_v55 = vsel %vm4628_vm1, %v4630_v37, %v4626_v20  ;;  %v4560_v16 = vadd.f32 1.0, %v6102_v17  ;;  %v4235_v36 = vpop.f32.mrf.mxu3  ;;  %vm4640_vm7 = vmor %vm4638_vm5, %vm4639_vm4 }
 0x5ea   : > { %v5070_v6 = vmul.f32 %v4631_v55, %v10399_v1  ;;  %v4635_v58 = vsub.f32 1.0, %v4634_v63  ;;  %v4236_v25 = vadd.f32 %v10305_v54, %v4235_v36 }
 0x5eb   : > { %6105 = vrcp.f32 %v4560_v16  ;;  %v4395_v18 = vpop.f32.mrf.mxu2  ;;  %v4659_v11 = vand.u32 2147483648, %v4560_v16  ;;  %vm4653_vm10 = vweird.f32 %v4560_v16 }
 0x5ec   : > { %v5104_v27 = vsel %vm5100_vm13, %v5070_v6, 0.0  ;;  %v4636_v39 = vmul.f32 %v6100_v56, %v4635_v58  ;;  %v10440_v15 = vadd.f32 %v10383_v53, %v4395_v18  ;;  %v4279_v34 = vadd.f32 %v4236_v25, %v11290_v32 }
 0x5ed   : > { %v5105_v50 = vadd.f32 %v5104_v27, %v5103_v14  ;;  %v4660_v12 = vor.u32 1.1754944e-38, %v4659_v11  ;;  %v5177_v11 = vld [vmem:[%s10938_s15 + $0x30] sm:$0xff] }
 0x5ee   : > { %v6104_v42 = vpop.eup %6103  ;;  %v4637_v26 = vadd.f32 %v6100_v56, %v4636_v39  ;;  %v5576_v1 = vmul.f32 -1.442695, %v10440_v15  ;;  %5192 = vmatpush.msrb.mxu0 %v5177_v11 }
 0x5ef   : > { %v4561_v52 = vadd.f32 1.0, %v6104_v42 }
 0x5f0   : > { %v4641_v30 = vsel %vm4640_vm7, %v6100_v56, %v4637_v26  ;;  %6107 = vpow2.f32 %v5576_v1  ;;  %v11292_v1 = vld [vmem:[#allocation37_spill] sm:$0xff] }
 0x5f1   : > { %v6106_v61 = vpop.eup %6105  ;;  %v4646_v21 = vsel %vm4643_vm3, %v4645_v10, %v4641_v30  ;;  %6109 = vrcp.f32 %v4561_v52  ;;  %v4237_v9 = vpop.f32.mrf.mxu3  ;;  %v4672_v7 = vand.u32 2147483647, %v4561_v52  ;;  %v4674_v23 = vand.u32 2147483648, %v4561_v52 }
 0x5f2   : > { %v5071_v3 = vmul.f32 %v4646_v21, %v10407_v38  ;;  %v4649_v13 = vmul.f32 %v6106_v61, %v4560_v16  ;;  %v4238_v47 = vadd.f32 %v10305_v54, %v4237_v9  ;;  %vm4654_vm6 = vweird.f32 %v6106_v61  ;;  %v11293_v21 = vld [vmem:[#allocation38_spill] sm:$0xff] }
 0x5f3   : > { %v4397_v5 = vpop.f32.mrf.mxu2  ;;  %v4657_v38 = vand.u32 2147483647, %v4560_v16  ;;  %vm4655_vm8 = vmor %vm4653_vm10, %vm4654_vm6  ;;  %vm4668_vm2 = vweird.f32 %v4561_v52  ;;  %v4675_v36 = vor.u32 1.1754944e-38, %v4674_v23  ;;  %vm4673_vm14 = vcmp.eq.f32.partialorder %v4672_v7, 8.507059e+37 }
 0x5f4   : > { %v5106_v41 = vsel %vm5100_vm13, %v5071_v3, 0.0  ;;  %v4650_v51 = vsub.f32 1.0, %v4649_v13  ;;  %v10449_v62 = vadd.f32 %v10383_v53, %v4397_v5  ;;  %v4280_v31 = vadd.f32 %v4238_v47, %v11291_v48 }
 0x5f5   : > { %v5107_v29 = vadd.f32 %v5106_v41, %v5105_v50  ;;  %vm4658_vm9 = vcmp.eq.f32.partialorder %v4657_v38, 8.507059e+37 }
 0x5f6   : > { %v6108_v60 = vpop.eup %6107  ;;  %v4651_v44 = vmul.f32 %v6106_v61, %v4650_v51  ;;  %v5577_v43 = vmul.f32 -1.442695, %v10449_v62  ;;  %v4299_v28 = vpack.c.bf16 %v4280_v31, %v4279_v34 }
 0x5f7   : > { %v6110_v59 = vpop.eup %6109  ;;  %v10454_v49 = vadd.f32 1.0, %v6108_v60 }
 0x5f8   : > { %v4652_v57 = vadd.f32 %v6106_v61, %v4651_v44  ;;  %v4664_v22 = vmul.f32 %v6110_v59, %v4561_v52  ;;  %6111 = vpow2.f32 %v5577_v43  ;;  %5566 = vmatmul.msk.bf16.gmra.mxu2 %vm679_vm0, %v4299_v28  ;;  %vm4669_vm12 = vweird.f32 %v6110_v59 }
 0x5f9   : > { %6113 = vrcp.f32 %v10454_v49  ;;  %v4240_v14 = vpop.f32.mrf.mxu3  ;;  %vm4670_vm11 = vmor %vm4668_vm2, %vm4669_vm12  ;;  %v4687_v42 = vand.u32 2147483647, %v10454_v49  ;;  %v4689_v26 = vand.u32 2147483648, %v10454_v49  ;;  %vm4683_vm1 = vweird.f32 %v10454_v49 }
 0x5fa   : > { %v4656_v33 = vsel %vm4655_vm8, %v6106_v61, %v4652_v57  ;;  %v4665_v19 = vsub.f32 1.0, %v4664_v22  ;;  %v4241_v58 = vadd.f32 %v10305_v54, %v4240_v14 }
 0x5fb   : > { %v4661_v40 = vsel %vm4658_vm9, %v4660_v12, %v4656_v33  ;;  %v4400_v24 = vpop.f32.mrf.mxu2  ;;  %v4690_v41 = vor.u32 1.1754944e-38, %v4689_v26  ;;  %vm4688_vm5 = vcmp.eq.f32.partialorder %v4687_v42, 8.507059e+37 }
 0x5fc   : > { %v5072_v8 = vmul.f32 %v4661_v40, %v10412_v45  ;;  %v4666_v56 = vmul.f32 %v6110_v59, %v4665_v19  ;;  %v10460_v37 = vadd.f32 %v10383_v53, %v4400_v24  ;;  %v4281_v10 = vadd.f32 %v4241_v58, %v11292_v1 }
 0x5fe   : > { %v6112_v4 = vpop.eup %6111  ;;  %v5108_v17 = vsel %vm5100_vm13, %v5072_v8, 0.0  ;;  %v4667_v20 = vadd.f32 %v6110_v59, %v4666_v56  ;;  %v5578_v63 = vmul.f32 -1.442695, %v10460_v37 }
 0x5ff   : > { %v6114_v55 = vpop.eup %6113  ;;  %v5109_v16 = vadd.f32 %v5108_v17, %v5107_v29  ;;  %v4563_v6 = vadd.f32 1.0, %v6112_v4 }
 0x600   : > { %v4671_v45 = vsel %vm4670_vm11, %v6110_v59, %v4667_v20  ;;  %v4679_v46 = vmul.f32 %v6114_v55, %v10454_v49  ;;  %6115 = vpow2.f32 %v5578_v63  ;;  %vm4684_vm15 = vweird.f32 %v6114_v55 }
 0x601   : > { %v4676_v35 = vsel %vm4673_vm14, %v4675_v36, %v4671_v45  ;;  %6117 = vrcp.f32 %v4563_v6  ;;  %v4242_v18 = vpop.f32.mrf.mxu3  ;;  %vm4685_vm4 = vmor %vm4683_vm1, %vm4684_vm15  ;;  %v4702_v38 = vand.u32 2147483647, %v4563_v6  ;;  %v4704_v43 = vand.u32 2147483648, %v4563_v6 }
 0x602   : > { %v5073_v27 = vmul.f32 %v4676_v35, %v10425_v0  ;;  %v4680_v39 = vsub.f32 1.0, %v4679_v46  ;;  %v4243_v50 = vadd.f32 %v10305_v54, %v4242_v18  ;;  %vm4698_vm3 = vweird.f32 %v4563_v6  ;;  %v11295_v46 = vld [vmem:[#allocation40_spill] sm:$0xff] }
 0x603   : > { %v4402_v52 = vpop.f32.mrf.mxu2  ;;  %vm4703_vm10 = vcmp.eq.f32.partialorder %v4702_v38, 8.507059e+37 }
 0x604   : > { %v5110_v30 = vsel %vm5100_vm13, %v5073_v27, 0.0  ;;  %v4681_v61 = vmul.f32 %v6114_v55, %v4680_v39  ;;  %v4282_v25 = vadd.f32 %v4243_v50, %v11293_v21  ;;  %v10474_v3 = vadd.f32 %v10383_v53, %v4402_v52 }
 0x605   : > { %v5111_v9 = vadd.f32 %v5110_v30, %v5109_v16  ;;  %v11294_v16 = vld [vmem:[#allocation39_spill] sm:$0xff] }
 0x606   : > { %v6116_v0 = vpop.eup %6115  ;;  %v4682_v13 = vadd.f32 %v6114_v55, %v4681_v61  ;;  %v4300_v47 = vpack.c.bf16 %v4282_v25, %v4281_v10  ;;  %v5579_v29 = vmul.f32 -1.442695, %v10474_v3 }
 0x607   : > { %v6118_v5 = vpop.eup %6117  ;;  %v4564_v51 = vadd.f32 1.0, %v6116_v0 }
 0x608   : > { %v4686_v32 = vsel %vm4685_vm4, %v6114_v55, %v4682_v13  ;;  %v4694_v34 = vmul.f32 %v6118_v5, %v4563_v6  ;;  %5567 = vmatmul.msk.bf16.gmra.mxu2 %vm679_vm0, %v4300_v47  ;;  %vm4699_vm7 = vweird.f32 %v6118_v5 }
 0x609   : > { %v4691_v48 = vsel %vm4688_vm5, %v4690_v41, %v4686_v32  ;;  %6119 = vrcp.f32 %v4564_v51  ;;  %v4245_v31 = vpop.f32.mrf.mxu3  ;;  %vm4700_vm6 = vmor %vm4698_vm3, %vm4699_vm7  ;;  %v4717_v20 = vand.u32 2147483647, %v4564_v51  ;;  %v4719_v55 = vand.u32 2147483648, %v4564_v51 }
 0x60a   : > { %v5074_v60 = vmul.f32 %v4691_v48, %v10440_v15  ;;  %v4695_v44 = vsub.f32 1.0, %v4694_v34  ;;  %6121 = vpow2.f32 %v5579_v29  ;;  %v4705_v15 = vor.u32 1.1754944e-38, %v4704_v43 }
 0x60b   : > { %v4405_v59 = vpop.f32.mrf.mxu2  ;;  %v4246_v19 = vadd.f32 %v10305_v54, %v4245_v31  ;;  %vm4713_vm9 = vweird.f32 %v4564_v51  ;;  %v4720_v26 = vor.u32 1.1754944e-38, %v4719_v55  ;;  %vm4718_vm2 = vcmp.eq.f32.partialorder %v4717_v20, 8.507059e+37 }
 0x60c   : > { %v5112_v49 = vsel %vm5100_vm13, %v5074_v60, 0.0  ;;  %v4696_v28 = vmul.f32 %v6118_v5, %v4695_v44  ;;  %v10485_v57 = vadd.f32 %v10383_v53, %v4405_v59 }
 0x60d   : > { %v5113_v22 = vadd.f32 %v5112_v49, %v5111_v9  ;;  %v4283_v36 = vadd.f32 %v4246_v19, %v11294_v16 }
 0x60e   : > { %v4697_v12 = vadd.f32 %v6118_v5, %v4696_v28  ;;  %v5580_v14 = vmul.f32 -1.442695, %v10485_v57 }
 0x60f   : > { %v6120_v33 = vpop.eup %6119 }
 0x610   : > { %v6122_v40 = vpop.eup %6121  ;;  %v4701_v7 = vsel %vm4700_vm6, %v6118_v5, %v4697_v12  ;;  %v4709_v23 = vmul.f32 %v6120_v33, %v4564_v51  ;;  %6123 = vpow2.f32 %v5580_v14  ;;  %vm4714_vm8 = vweird.f32 %v6120_v33  ;;  %v11296_v14 = vld [vmem:[#allocation41_spill] sm:$0xff] }
 0x611   : > { %v4706_v24 = vsel %vm4703_vm10, %v4705_v15, %v4701_v7  ;;  %v4565_v8 = vadd.f32 1.0, %v6122_v40  ;;  %v4247_v56 = vpop.f32.mrf.mxu3  ;;  %vm4715_vm12 = vmor %vm4713_vm9, %vm4714_vm8  ;;  %v11297_v7 = vld [vmem:[#allocation42_spill] sm:$0xff] }
 0x612   : > { %v5075_v4 = vmul.f32 %v4706_v24, %v10449_v62  ;;  %v4710_v17 = vsub.f32 1.0, %v4709_v23  ;;  %v4248_v63 = vadd.f32 %v10305_v54, %v4247_v56 }
 0x613   : > { %6125 = vrcp.f32 %v4565_v8  ;;  %v4407_v6 = vpop.f32.mrf.mxu2  ;;  %v4732_v41 = vand.u32 2147483647, %v4565_v8  ;;  %v4734_v51 = vand.u32 2147483648, %v4565_v8  ;;  %vm4728_vm14 = vweird.f32 %v4565_v8 }
 0x614   : > { %v5114_v58 = vsel %vm5100_vm13, %v5075_v4, 0.0  ;;  %v4711_v45 = vmul.f32 %v6120_v33, %v4710_v17  ;;  %v4284_v35 = vadd.f32 %v4248_v63, %v11295_v46  ;;  %v10495_v18 = vadd.f32 %v10383_v53, %v4407_v6 }
 0x615   : > { %v5115_v27 = vadd.f32 %v5114_v58, %v5113_v22  ;;  %vm4733_vm1 = vcmp.eq.f32.partialorder %v4732_v41, 8.507059e+37  ;;  %v4735_v44 = vor.u32 1.1754944e-38, %v4734_v51 }
 0x616   : > { %v6124_v62 = vpop.eup %6123  ;;  %v4712_v39 = vadd.f32 %v6120_v33, %v4711_v45  ;;  %v4301_v50 = vpack.c.bf16 %v4284_v35, %v4283_v36  ;;  %v5581_v42 = vmul.f32 -1.442695, %v10495_v18 }
 0x617   : > { %v4566_v1 = vadd.f32 1.0, %v6124_v62 }
 0x618   : > { %v4716_v10 = vsel %vm4715_vm12, %v6120_v33, %v4712_v39  ;;  %6127 = vpow2.f32 %v5581_v42  ;;  %5568 = vmatmul.msk.bf16.gmra.mxu2 %vm679_vm0, %v4301_v50 }
 0x619   : > { %v6126_v52 = vpop.eup %6125  ;;  %v4721_v30 = vsel %vm4718_vm2, %v4720_v26, %v4716_v10  ;;  %6129 = vrcp.f32 %v4566_v1  ;;  %v4250_v61 = vpop.f32.mrf.mxu3  ;;  %v4747_v49 = vand.u32 2147483647, %v4566_v1  ;;  %v4749_v12 = vand.u32 2147483648, %v4566_v1 }
 0x61a   : > { %v5076_v21 = vmul.f32 %v4721_v30, %v10460_v37  ;;  %v4724_v25 = vmul.f32 %v6126_v52, %v4565_v8  ;;  %vm4729_vm11 = vweird.f32 %v6126_v52  ;;  %v4251_v37 = vadd.f32 %v10305_v54, %v4250_v61  ;;  %v5176_v8 = vld [vmem:[%s10938_s15 + $0x28] sm:$0xff] }
 0x61b   : > { %v4410_v9 = vpop.f32.mrf.mxu2  ;;  %vm4730_vm15 = vmor %vm4728_vm14, %vm4729_vm11  ;;  %vm4743_vm5 = vweird.f32 %v4566_v1  ;;  %5193 = vmatpush.msrb.mxu0 %v5176_v8  ;;  %v4750_v55 = vor.u32 1.1754944e-38, %v4749_v12  ;;  %vm4748_vm3 = vcmp.eq.f32.partialorder %v4747_v49, 8.507059e+37 }
 0x61c   : > { %v5116_v0 = vsel %vm5100_vm13, %v5076_v21, 0.0  ;;  %v4725_v13 = vsub.f32 1.0, %v4724_v25  ;;  %v10503_v47 = vadd.f32 %v10383_v53, %v4410_v9  ;;  %v4285_v33 = vadd.f32 %v4251_v37, %v11296_v14 }
 0x61d   : > { %v5117_v5 = vadd.f32 %v5116_v0, %v5115_v27 }
 0x61e   : > { %v6128_v29 = vpop.eup %6127  ;;  %v4726_v11 = vmul.f32 %v6126_v52, %v4725_v13  ;;  %v5582_v32 = vmul.f32 -1.442695, %v10503_v47 }
 0x61f   : > { %v6130_v34 = vpop.eup %6129  ;;  %v10506_v48 = vadd.f32 1.0, %v6128_v29 }
 0x620   : > { %v4727_v31 = vadd.f32 %v6126_v52, %v4726_v11  ;;  %v4739_v60 = vmul.f32 %v6130_v34, %v4566_v1  ;;  %6131 = vpow2.f32 %v5582_v32  ;;  %vm4744_vm4 = vweird.f32 %v6130_v34 }
 0x621   : > { %6133 = vrcp.f32 %v10506_v48  ;;  %v4252_v38 = vpop.f32.mrf.mxu3  ;;  %vm4745_vm7 = vmor %vm4743_vm5, %vm4744_vm4  ;;  %v4762_v35 = vand.u32 2147483647, %v10506_v48  ;;  %v4764_v27 = vand.u32 2147483648, %v10506_v48 }
 0x622   : > { %v4731_v43 = vsel %vm4730_vm15, %v6126_v52, %v4727_v31  ;;  %v4740_v59 = vsub.f32 1.0, %v4739_v60  ;;  %v4253_v28 = vadd.f32 %v10305_v54, %v4252_v38 }
 0x623   : > { %v4736_v22 = vsel %vm4733_vm1, %v4735_v44, %v4731_v43  ;;  %v4412_v15 = vpop.f32.mrf.mxu2  ;;  %v4765_v30 = vor.u32 1.1754944e-38, %v4764_v27  ;;  %vm4763_vm8 = vcmp.eq.f32.partialorder %v4762_v35, 8.507059e+37  ;;  %v5175_v35 = vld [vmem:[%s10938_s15 + $0x20] sm:$0xff] }
 0x624   : > { %v5077_v19 = vmul.f32 %v4736_v22, %v10474_v3  ;;  %v4741_v40 = vmul.f32 %v6130_v34, %v4740_v59  ;;  %v4286_v23 = vadd.f32 %v4253_v28, %v11297_v7  ;;  %v10515_v24 = vadd.f32 %v10383_v53, %v4412_v15  ;;  %5194 = vmatpush.msrb.mxu0 %v5175_v35 }
 0x626   : > { %v6132_v54 = vpop.eup %6131  ;;  %v5118_v56 = vsel %vm5100_vm13, %v5077_v19, 0.0  ;;  %v4742_v4 = vadd.f32 %v6130_v34, %v4741_v40  ;;  %v4302_v17 = vpack.c.bf16 %v4286_v23, %v4285_v33  ;;  %v5583_v20 = vmul.f32 -1.442695, %v10515_v24 }
 0x627   : > { %v6134_v3 = vpop.eup %6133  ;;  %v5119_v63 = vadd.f32 %v5118_v56, %v5117_v5  ;;  %v4568_v16 = vadd.f32 1.0, %v6132_v54 }
 0x628   : > { %v4746_v36 = vsel %vm4745_vm7, %v6130_v34, %v4742_v4  ;;  %v4754_v6 = vmul.f32 %v6134_v3, %v10506_v48  ;;  %6135 = vpow2.f32 %v5583_v20  ;;  %5569 = vmatmul.msk.bf16.gmra.mxu2 %vm679_vm0, %v4302_v17  ;;  %vm4759_vm6 = vweird.f32 %v6134_v3 }
 0x629   : > { %v4751_v58 = vsel %vm4748_vm3, %v4750_v55, %v4746_v36  ;;  %6137 = vrcp.f32 %v4568_v16  ;;  %vm4758_vm0 = vweird.f32 %v10506_v48  ;;  %v4777_v5 = vand.u32 2147483647, %v4568_v16 }
 0x62a   : > { %v5078_v45 = vmul.f32 %v4751_v58, %v10485_v57  ;;  %v4755_v46 = vsub.f32 1.0, %v4754_v6  ;;  %vm4760_vm10 = vmor %vm4758_vm0, %vm4759_vm6  ;;  %v4779_v41 = vand.u32 2147483648, %v4568_v16  ;;  %vm4773_vm12 = vweird.f32 %v4568_v16 }
 0x62b   : > { %v4415_v62 = vpop.f32.mrf.mxu2  ;;  %vm4778_vm11 = vcmp.eq.f32.partialorder %v4777_v5, 8.507059e+37 }
 0x62c   : > { %v5120_v39 = vsel %vm5100_vm13, %v5078_v45, 0.0  ;;  %v4756_v50 = vmul.f32 %v6134_v3, %v4755_v46  ;;  %v10530_v42 = vadd.f32 %v10383_v53, %v4415_v62 }
 0x62d   : > { %v5121_v26 = vadd.f32 %v5120_v39, %v5119_v63 }
 0x62e   : > { %v6136_v1 = vpop.eup %6135  ;;  %v4757_v10 = vadd.f32 %v6134_v3, %v4756_v50  ;;  %v5584_v57 = vmul.f32 -1.442695, %v10530_v42 }
 0x62f   : > { %v6138_v52 = vpop.eup %6137  ;;  %v4569_v61 = vadd.f32 1.0, %v6136_v1 }
 0x630   : > { %v4761_v21 = vsel %vm4760_vm10, %v6134_v3, %v4757_v10  ;;  %v4769_v25 = vmul.f32 %v6138_v52, %v4568_v16  ;;  %6139 = vpow2.f32 %v5584_v57  ;;  %vm4774_vm9 = vweird.f32 %v6138_v52 }
 0x631   : > { %v4766_v9 = vsel %vm4763_vm8, %v4765_v30, %v4761_v21  ;;  %6141 = vrcp.f32 %v4569_v61  ;;  %vm4775_vm2 = vmor %vm4773_vm12, %vm4774_vm9  ;;  %v4792_v22 = vand.u32 2147483647, %v4569_v61  ;;  %v4794_v12 = vand.u32 2147483648, %v4569_v61 }
 0x632   : > { %v5079_v0 = vmul.f32 %v4766_v9, %v10495_v18  ;;  %v4770_v13 = vsub.f32 1.0, %v4769_v25  ;;  %v4780_v18 = vor.u32 1.1754944e-38, %v4779_v41  ;;  %vm4788_vm15 = vweird.f32 %v4569_v61 }
 0x633   : > { %v4417_v51 = vpop.f32.mrf.mxu2  ;;  %vm4793_vm4 = vcmp.eq.f32.partialorder %v4792_v22, 8.507059e+37 }
 0x634   : > { %v5122_v29 = vsel %vm5100_vm13, %v5079_v0, 0.0  ;;  %v4771_v11 = vmul.f32 %v6138_v52, %v4770_v13  ;;  %v10537_v32 = vadd.f32 %v10383_v53, %v4417_v51 }
 0x635   : > { %v5123_v34 = vadd.f32 %v5122_v29, %v5121_v26 }
 0x636   : > { %v6140_v48 = vpop.eup %6139  ;;  %v4772_v37 = vadd.f32 %v6138_v52, %v4771_v11  ;;  %v5585_v31 = vmul.f32 -1.442695, %v10537_v32 }
 0x637   : > { %v6142_v60 = vpop.eup %6141  ;;  %v4570_v44 = vadd.f32 1.0, %v6140_v48 }
 0x638   : > { %v4776_v38 = vsel %vm4775_vm2, %v6138_v52, %v4772_v37  ;;  %v4784_v43 = vmul.f32 %v6142_v60, %v4569_v61  ;;  %6143 = vpow2.f32 %v5585_v31  ;;  %vm4789_vm14 = vweird.f32 %v6142_v60 }
 0x639   : > { %v4781_v59 = vsel %vm4778_vm11, %v4780_v18, %v4776_v38  ;;  %6145 = vrcp.f32 %v4570_v44  ;;  %vm4790_vm1 = vmor %vm4788_vm15, %vm4789_vm14  ;;  %v4807_v55 = vand.u32 2147483647, %v4570_v44  ;;  %v4809_v16 = vand.u32 2147483648, %v4570_v44 }
 0x63a   : > { %v5080_v49 = vmul.f32 %v4781_v59, %v10503_v47  ;;  %v4785_v28 = vsub.f32 1.0, %v4784_v43  ;;  %v4795_v47 = vor.u32 1.1754944e-38, %v4794_v12  ;;  %vm4803_vm7 = vweird.f32 %v4570_v44 }
 0x63b   : > { %v4420_v14 = vpop.f32.mrf.mxu2  ;;  %v4810_v50 = vor.u32 1.1754944e-38, %v4809_v16  ;;  %vm4808_vm6 = vcmp.eq.f32.partialorder %v4807_v55, 8.507059e+37 }
 0x63c   : > { %v5124_v33 = vsel %vm5100_vm13, %v5080_v49, 0.0  ;;  %v4786_v15 = vmul.f32 %v6142_v60, %v4785_v28  ;;  %v10543_v19 = vadd.f32 %v10383_v53, %v4420_v14 }
 0x63d   : > { %v5125_v40 = vadd.f32 %v5124_v33, %v5123_v34 }
 0x63e   : > { %v6144_v7 = vpop.eup %6143  ;;  %v4787_v23 = vadd.f32 %v6142_v60, %v4786_v15  ;;  %v5586_v8 = vmul.f32 -1.442695, %v10543_v19 }
 0x63f   : > { %v6146_v54 = vpop.eup %6145  ;;  %v4571_v56 = vadd.f32 1.0, %v6144_v7 }
 0x640   : > { %v4791_v4 = vsel %vm4790_vm1, %v6142_v60, %v4787_v23  ;;  %v4799_v17 = vmul.f32 %v6146_v54, %v4570_v44  ;;  %6147 = vpow2.f32 %v5586_v8  ;;  %vm4804_vm5 = vweird.f32 %v6146_v54 }
 0x641   : > { %v4796_v20 = vsel %vm4793_vm4, %v4795_v47, %v4791_v4  ;;  %6149 = vrcp.f32 %v4571_v56  ;;  %vm4805_vm3 = vmor %vm4803_vm7, %vm4804_vm5  ;;  %v4822_v61 = vand.u32 2147483647, %v4571_v56  ;;  %v4824_v21 = vand.u32 2147483648, %v4571_v56 }
 0x642   : > { %v5081_v3 = vmul.f32 %v4796_v20, %v10515_v24  ;;  %v4800_v63 = vsub.f32 1.0, %v4799_v17  ;;  %vm4818_vm10 = vweird.f32 %v4571_v56 }
 0x643   : > { %v4422_v36 = vpop.f32.mrf.mxu2  ;;  %vm4823_vm9 = vcmp.eq.f32.partialorder %v4822_v61, 8.507059e+37 }
 0x644   : > { %v5126_v6 = vsel %vm5100_vm13, %v5081_v3, 0.0  ;;  %v4801_v58 = vmul.f32 %v6146_v54, %v4800_v63  ;;  %v10549_v45 = vadd.f32 %v10383_v53, %v4422_v36 }
 0x645   : > { %v5127_v46 = vadd.f32 %v5126_v6, %v5125_v40 }
 0x646   : > { %v6148_v27 = vpop.eup %6147  ;;  %v4802_v62 = vadd.f32 %v6146_v54, %v4801_v58  ;;  %v5587_v24 = vmul.f32 -1.442695, %v10549_v45 }
 0x647   : > { %v6150_v39 = vpop.eup %6149  ;;  %v4572_v26 = vadd.f32 1.0, %v6148_v27 }
 0x648   : > { %v4806_v1 = vsel %vm4805_vm3, %v6146_v54, %v4802_v62  ;;  %v4814_v10 = vmul.f32 %v6150_v39, %v4571_v56  ;;  %6151 = vpow2.f32 %v5587_v24  ;;  %vm4819_vm0 = vweird.f32 %v6150_v39 }
 0x649   : > { %v4811_v57 = vsel %vm4808_vm6, %v4810_v50, %v4806_v1  ;;  %6153 = vrcp.f32 %v4572_v26  ;;  %vm4820_vm8 = vmor %vm4818_vm10, %vm4819_vm0  ;;  %v4837_v44 = vand.u32 2147483647, %v4572_v26  ;;  %v4839_v38 = vand.u32 2147483648, %v4572_v26 }
 0x64a   : > { %v5082_v52 = vmul.f32 %v4811_v57, %v10530_v42  ;;  %v4815_v30 = vsub.f32 1.0, %v4814_v10  ;;  %v4825_v42 = vor.u32 1.1754944e-38, %v4824_v21  ;;  %vm4833_vm2 = vweird.f32 %v4572_v26 }
 0x64b   : > { %v4425_v25 = vpop.f32.mrf.mxu2  ;;  %vm4838_vm14 = vcmp.eq.f32.partialorder %v4837_v44, 8.507059e+37 }
 0x64c   : > { %v5128_v9 = vsel %vm5100_vm13, %v5082_v52, 0.0  ;;  %v4816_v0 = vmul.f32 %v6150_v39, %v4815_v30  ;;  %v10558_v13 = vadd.f32 %v10383_v53, %v4425_v25  ;;  %v5174_v52 = vld [vmem:[%s10938_s15 + $0x18] sm:$0xff] }
 0x64d   : > { %v5129_v5 = vadd.f32 %v5128_v9, %v5127_v46  ;;  %5195 = vmatpush.msrb.mxu0 %v5174_v52 }
 0x64e   : > { %v6152_v41 = vpop.eup %6151  ;;  %v4817_v51 = vadd.f32 %v6150_v39, %v4816_v0  ;;  %v5588_v29 = vmul.f32 -1.442695, %v10558_v13 }
 0x64f   : > { %v6154_v11 = vpop.eup %6153  ;;  %v4573_v34 = vadd.f32 1.0, %v6152_v41 }
 0x650   : > { %v4821_v48 = vsel %vm4820_vm8, %v6150_v39, %v4817_v51  ;;  %v4829_v37 = vmul.f32 %v6154_v11, %v4572_v26  ;;  %6155 = vpow2.f32 %v5588_v29  ;;  %vm4834_vm12 = vweird.f32 %v6154_v11 }
 0x651   : > { %v4826_v31 = vsel %vm4823_vm9, %v4825_v42, %v4821_v48  ;;  %6157 = vrcp.f32 %v4573_v34  ;;  %vm4835_vm11 = vmor %vm4833_vm2, %vm4834_vm12  ;;  %v4852_v56 = vand.u32 2147483647, %v4573_v34  ;;  %v4854_v4 = vand.u32 2147483648, %v4573_v34 }
 0x652   : > { %v5083_v60 = vmul.f32 %v4826_v31, %v10537_v32  ;;  %v4830_v18 = vsub.f32 1.0, %v4829_v37  ;;  %v4840_v32 = vor.u32 1.1754944e-38, %v4839_v38  ;;  %vm4848_vm1 = vweird.f32 %v4573_v34 }
 0x653   : > { %v4427_v43 = vpop.f32.mrf.mxu2  ;;  %vm4853_vm5 = vcmp.eq.f32.partialorder %v4852_v56, 8.507059e+37 }
 0x654   : > { %v5130_v59 = vsel %vm5100_vm13, %v5083_v60, 0.0  ;;  %v4831_v49 = vmul.f32 %v6154_v11, %v4830_v18  ;;  %v10564_v28 = vadd.f32 %v10383_v53, %v4427_v43 }
 0x655   : > { %v5131_v22 = vadd.f32 %v5130_v59, %v5129_v5 }
 0x656   : > { %v6156_v12 = vpop.eup %6155  ;;  %v4832_v14 = vadd.f32 %v6154_v11, %v4831_v49  ;;  %v5589_v33 = vmul.f32 -1.442695, %v10564_v28 }
 0x657   : > { %v6158_v15 = vpop.eup %6157  ;;  %v4574_v40 = vadd.f32 1.0, %v6156_v12 }
 0x658   : > { %v4836_v7 = vsel %vm4835_vm11, %v6154_v11, %v4832_v14  ;;  %v4844_v23 = vmul.f32 %v6158_v15, %v4573_v34  ;;  %6159 = vpow2.f32 %v5589_v33  ;;  %vm4849_vm15 = vweird.f32 %v6158_v15 }
 0x659   : > { %v4841_v8 = vsel %vm4838_vm14, %v4840_v32, %v4836_v7  ;;  %6161 = vrcp.f32 %v4574_v40  ;;  %vm4850_vm4 = vmor %vm4848_vm1, %vm4849_vm15  ;;  %v4869_v39 = vand.u32 2147483648, %v4574_v40  ;;  %v4867_v10 = vand.u32 2147483647, %v4574_v40 }
 0x65a   : > { %v5084_v54 = vmul.f32 %v4841_v8, %v10543_v19  ;;  %v4845_v47 = vsub.f32 1.0, %v4844_v23  ;;  %v4855_v19 = vor.u32 1.1754944e-38, %v4854_v4  ;;  %vm4863_vm3 = vweird.f32 %v4574_v40 }
 0x65b   : > { %v4430_v17 = vpop.f32.mrf.mxu2  ;;  %vm4868_vm0 = vcmp.eq.f32.partialorder %v4867_v10, 8.507059e+37 }
 0x65c   : > { %v5132_v20 = vsel %vm5100_vm13, %v5084_v54, 0.0  ;;  %v4846_v3 = vmul.f32 %v6158_v15, %v4845_v47  ;;  %v10570_v63 = vadd.f32 %v10383_v53, %v4430_v17 }
 0x65d   : > { %v5133_v55 = vadd.f32 %v5132_v20, %v5131_v22 }
 0x65e   : > { %v6160_v16 = vpop.eup %6159  ;;  %v4847_v36 = vadd.f32 %v6158_v15, %v4846_v3  ;;  %v5590_v6 = vmul.f32 -1.442695, %v10570_v63 }
 0x65f   : > { %v6162_v58 = vpop.eup %6161  ;;  %v4575_v46 = vadd.f32 1.0, %v6160_v16 }
 0x660   : > { %v4851_v35 = vsel %vm4850_vm4, %v6158_v15, %v4847_v36  ;;  %v4859_v27 = vmul.f32 %v6162_v58, %v4574_v40  ;;  %6163 = vpow2.f32 %v5590_v6  ;;  %vm4864_vm7 = vweird.f32 %v6162_v58  ;;  %v10585_v40 = vld [vmem:[%s10937_s14] ss:$0 sm:$0xff] }
 0x661   : > { %v4856_v62 = vsel %vm4853_vm5, %v4855_v19, %v4851_v35  ;;  %6165 = vrcp.f32 %v4575_v46  ;;  %vm4865_vm6 = vmor %vm4863_vm3, %vm4864_vm7  ;;  %v4884_v29 = vand.u32 2147483648, %v4575_v46  ;;  %v4882_v34 = vand.u32 2147483647, %v4575_v46 }
 0x662   : > { %v5085_v24 = vmul.f32 %v4856_v62, %v10549_v45  ;;  %v4860_v53 = vsub.f32 1.0, %v4859_v27  ;;  %v4870_v45 = vor.u32 1.1754944e-38, %v4869_v39  ;;  %vm4878_vm8 = vweird.f32 %v4575_v46 }
 0x663   : > { %v4432_v50 = vpop.f32.mrf.mxu2  ;;  %v4885_v18 = vor.u32 1.1754944e-38, %v4884_v29  ;;  %vm4883_vm12 = vcmp.eq.f32.partialorder %v4882_v34, 8.507059e+37 }
 0x664   : > { %v5134_v26 = vsel %vm5100_vm13, %v5085_v24, 0.0  ;;  %v4861_v1 = vmul.f32 %v6162_v58, %v4860_v53  ;;  %v10588_v7 = vadd.f32 %v10585_v40, %v4432_v50 }
 0x665   : > { %v5135_v57 = vadd.f32 %v5134_v26, %v5133_v55 }
 0x666   : > { %v6164_v30 = vpop.eup %6163  ;;  %v4862_v61 = vadd.f32 %v6162_v58, %v4861_v1  ;;  %v5591_v47 = vmul.f32 -1.442695, %v10588_v7 }
 0x667   : > { %v6166_v21 = vpop.eup %6165  ;;  %v4576_v25 = vadd.f32 1.0, %v6164_v30 }
 0x668   : > { %v4866_v9 = vsel %vm4865_vm6, %v6162_v58, %v4862_v61  ;;  %v4874_v0 = vmul.f32 %v6166_v21, %v4575_v46  ;;  %vm4879_vm10 = vweird.f32 %v6166_v21  ;;  %v5173_v58 = vld [vmem:[%s10938_s15 + $0x10] sm:$0xff] }
 0x669   : > { %v4871_v5 = vsel %vm4868_vm0, %v4870_v45, %v4866_v9  ;;  %6167 = vrcp.f32 %v4576_v25  ;;  %vm4880_vm9 = vmor %vm4878_vm8, %vm4879_vm10  ;;  %v4899_v49 = vand.u32 2147483648, %v4576_v25  ;;  %v4897_v14 = vand.u32 2147483647, %v4576_v25  ;;  %5196 = vmatpush.msrb.mxu0 %v5173_v58 }
 0x66a   : > { %v5086_v41 = vmul.f32 %v4871_v5, %v10558_v13  ;;  %v4875_v51 = vsub.f32 1.0, %v4874_v0  ;;  %vm4893_vm11 = vweird.f32 %v4576_v25  ;;  %6169 = vpow2.f32 %v5591_v47 }
 0x66b   : > { %v4435_v48 = vpop.f32.mrf.mxu2  ;;  %vm4898_vm15 = vcmp.eq.f32.partialorder %v4897_v14, 8.507059e+37 }
 0x66c   : > { %v5136_v11 = vsel %vm5100_vm13, %v5086_v41, 0.0  ;;  %v4876_v42 = vmul.f32 %v6166_v21, %v4875_v51  ;;  %v10593_v56 = vadd.f32 %v10585_v40, %v4435_v48 }
 0x66d   : > { %v5137_v37 = vadd.f32 %v5136_v11, %v5135_v57 }
 0x66e   : > { %v4877_v31 = vadd.f32 %v6166_v21, %v4876_v42  ;;  %v5592_v3 = vmul.f32 -1.442695, %v10593_v56 }
 0x66f   : > { %v6168_v60 = vpop.eup %6167 }
 0x670   : > { %v4881_v44 = vsel %vm4880_vm9, %v6166_v21, %v4877_v31  ;;  %v4889_v38 = vmul.f32 %v6168_v60, %v4576_v25  ;;  %vm4894_vm2 = vweird.f32 %v6168_v60  ;;  %6171 = vpow2.f32 %v5592_v3  ;;  %v6170_v16 = vpop.eup %6169 }
 0x671   : > { %v4886_v43 = vsel %vm4883_vm12, %v4885_v18, %v4881_v44  ;;  %vm4895_vm14 = vmor %vm4893_vm11, %vm4894_vm2  ;;  %v10609_v19 = vadd.f32 1.0, %v6170_v16 }
 0x672   : > { %v5087_v13 = vmul.f32 %v4886_v43, %v10564_v28  ;;  %v4890_v59 = vsub.f32 1.0, %v4889_v38  ;;  %v4900_v28 = vor.u32 1.1754944e-38, %v4899_v49 }
 0x673   : > { %v4437_v33 = vpop.f32.mrf.mxu2  ;;  %v4914_v43 = vand.u32 2147483648, %v10609_v19  ;;  %vm4908_vm4 = vweird.f32 %v10609_v19 }
 0x674   : > { %v5138_v22 = vsel %vm5100_vm13, %v5087_v13, 0.0  ;;  %v4891_v12 = vmul.f32 %v6168_v60, %v4890_v59  ;;  %v10600_v55 = vadd.f32 %v10585_v40, %v4437_v33  ;;  %v4912_v59 = vand.u32 2147483647, %v10609_v19 }
 0x675   : > { %v5139_v15 = vadd.f32 %v5138_v22, %v5137_v37 }
 0x676   : > { %v4892_v32 = vadd.f32 %v6168_v60, %v4891_v12  ;;  %v6172_v46 = vpop.eup %6171  ;;  %vm4913_vm3 = vcmp.eq.f32.partialorder %v4912_v59, 8.507059e+37 }
 0x677   : > { %v10616_v62 = vadd.f32 1.0, %v6172_v46 }
 0x678   : > { %v4896_v23 = vsel %vm4895_vm14, %v6168_v60, %v4892_v32 }
 0x679   : > { %v4901_v8 = vsel %vm4898_vm15, %v4900_v28, %v4896_v23  ;;  %v4915_v28 = vor.u32 1.1754944e-38, %v4914_v43  ;;  %vm4923_vm6 = vweird.f32 %v10616_v62  ;;  %v4929_v47 = vand.u32 2147483648, %v10616_v62 }
 0x67a   : > { %v5088_v54 = vmul.f32 %v4901_v8, %v10570_v63  ;;  %v5593_v63 = vmul.f32 -1.442695, %v10600_v55 }
 0x67b   : > { %v4440_v17 = vpop.f32.mrf.mxu2 }
 0x67c   : > { %v5140_v4 = vsel %vm5100_vm13, %v5088_v54, 0.0  ;;  %v10604_v6 = vadd.f32 %v10585_v40, %v4440_v17  ;;  %6173 = vpow2.f32 %v5593_v63  ;;  %v4927_v54 = vand.u32 2147483647, %v10616_v62 }
 0x67d   : > { %v10596_v20 = vadd.f32 %v5140_v4, %v5139_v15  ;;  %6175 = vrcp.f32 %v10609_v19  ;;  %v5172_v4 = vld [vmem:[%s10938_s15 + $0x8] sm:$0xff] }
 0x67e   : > { %v5594_v35 = vmul.f32 -1.442695, %v10604_v6  ;;  %5197 = vmatpush.msrb.mxu0 %v5172_v4  ;;  %vm4928_vm10 = vcmp.eq.f32.partialorder %v4927_v54, 8.507059e+37 }
 0x680   : > { %6177 = vpow2.f32 %v5594_v35 }
 0x681   : > { %6179 = vrcp.f32 %v10616_v62 }
 0x682   : > { %v6174_v39 = vpop.eup %6173 }
 0x683   : > { %v4442_v36 = vpop.f32.mrf.mxu2  ;;  %v6176_v26 = vpop.eup %6175  ;;  %v10623_v1 = vadd.f32 1.0, %v6174_v39 }
 0x684   : > { %v10613_v27 = vadd.f32 %v10585_v40, %v4442_v36  ;;  %v4904_v52 = vmul.f32 %v6176_v26, %v10609_v19  ;;  %vm4909_vm1 = vweird.f32 %v6176_v26 }
 0x685   : > { %vm10658_vm5 = vmor %vm4908_vm4, %vm4909_vm1  ;;  %vm4938_vm9 = vweird.f32 %v10623_v1 }
 0x686   : > { %v5595_v53 = vmul.f32 -1.442695, %v10613_v27  ;;  %v6178_v57 = vpop.eup %6177  ;;  %v4905_v0 = vsub.f32 1.0, %v4904_v52 }
 0x687   : > { %v10630_v21 = vpop.eup %6179  ;;  %v10633_v45 = vadd.f32 1.0, %v6178_v57 }
 0x688   : > { %6181 = vpow2.f32 %v5595_v53  ;;  %v4919_v5 = vmul.f32 %v10630_v21, %v10616_v62  ;;  %v4906_v29 = vmul.f32 %v6176_v26, %v4905_v0  ;;  %vm4924_vm7 = vweird.f32 %v10630_v21 }
 0x689   : > { %6183 = vrcp.f32 %v10623_v1  ;;  %vm4925_vm0 = vmor %vm4923_vm6, %vm4924_vm7  ;;  %v4944_v53 = vand.u32 2147483648, %v10623_v1  ;;  %v4942_v0 = vand.u32 2147483647, %v10623_v1  ;;  %vm4953_vm14 = vweird.f32 %v10633_v45 }
 0x68a   : > { %v4920_v34 = vsub.f32 1.0, %v4919_v5  ;;  %v4907_v18 = vadd.f32 %v6176_v26, %v4906_v29  ;;  %v4957_v29 = vand.u32 2147483647, %v10633_v45 }
 0x68b   : > { %v4445_v24 = vpop.f32.mrf.mxu2  ;;  %v4945_v5 = vor.u32 1.1754944e-38, %v4944_v53  ;;  %vm4943_vm11 = vcmp.eq.f32.partialorder %v4942_v0, 8.507059e+37 }
 0x68c   : > { %v10620_v50 = vadd.f32 %v10585_v40, %v4445_v24  ;;  %v4921_v13 = vmul.f32 %v10630_v21, %v4920_v34  ;;  %v4911_v14 = vsel %vm10658_vm5, %v6176_v26, %v4907_v18  ;;  %v4930_v24 = vor.u32 1.1754944e-38, %v4929_v47 }
 0x68d   : > { %v4916_v3 = vsel %vm4913_vm3, %v4915_v28, %v4911_v14  ;;  %vm10740_vm1 = vcmp.eq.f32.partialorder %v4957_v29, 8.507059e+37 }
 0x68e   : > { %v5596_v10 = vmul.f32 -1.442695, %v10620_v50  ;;  %v6182_v9 = vpop.eup %6181  ;;  %v4922_v23 = vadd.f32 %v10630_v21, %v4921_v13  ;;  %v5089_v62 = vmul.f32 %v4916_v3, %v10588_v7 }
 0x68f   : > { %v10639_v41 = vadd.f32 1.0, %v6182_v9  ;;  %v10641_v51 = vpop.eup %6183 }
 0x690   : > { %6185 = vpow2.f32 %v5596_v10  ;;  %v4934_v37 = vmul.f32 %v10641_v51, %v10623_v1  ;;  %v4926_v46 = vsel %vm4925_vm0, %v10630_v21, %v4922_v23  ;;  %vm4939_vm8 = vweird.f32 %v10641_v51 }
 0x691   : > { %v4931_v26 = vsel %vm4928_vm10, %v4930_v24, %v4926_v46  ;;  %vm10707_vm12 = vmor %vm4938_vm9, %vm4939_vm8  ;;  %vm4968_vm5 = vweird.f32 %v10639_v41 }
 0x692   : > { %v4935_v22 = vsub.f32 1.0, %v4934_v37 }
 0x693   : > { %v4447_v30 = vpop.f32.mrf.mxu2 }
 0x694   : > { %v10628_v61 = vadd.f32 %v10585_v40, %v4447_v30  ;;  %v4936_v16 = vmul.f32 %v10641_v51, %v4935_v22 }
 0x696   : > { %v5597_v25 = vmul.f32 -1.442695, %v10628_v61  ;;  %v6186_v42 = vpop.eup %6185  ;;  %v4937_v39 = vadd.f32 %v10641_v51, %v4936_v16 }
 0x697   : > { %v10650_v44 = vadd.f32 1.0, %v6186_v42  ;;  %v5090_v42 = vmul.f32 %v4931_v26, %v10593_v56  ;;  %v4959_v56 = vand.u32 2147483648, %v10633_v45 }
 0x698   : > { %6187 = vpow2.f32 %v5597_v25  ;;  %v5142_v25 = vsel %vm5100_vm13, %v5089_v62, 0.0  ;;  %v4941_v34 = vsel %vm10707_vm12, %v10641_v51, %v4937_v39 }
 0x699   : > { %6189 = vrcp.f32 %v10633_v45  ;;  %v5143_v59 = vadd.f32 %v5142_v25, %v10596_v20  ;;  %v5144_v49 = vsel %vm5100_vm13, %v5090_v42, 0.0  ;;  %v4946_v22 = vsel %vm4943_vm11, %v4945_v5, %v4941_v34 }
 0x69a   : > { %6191 = vrcp.f32 %v10639_v41  ;;  %v4972_v20 = vand.u32 2147483647, %v10639_v41  ;;  %v4960_v54 = vor.u32 1.1754944e-38, %v4959_v56  ;;  %v5091_v16 = vmul.f32 %v4946_v22, %v10600_v55 }
 0x69b   : > { %v4450_v11 = vpop.f32.mrf.mxu2  ;;  %v10754_v3 = vadd.f32 %v5144_v49, %v5143_v59  ;;  %vm4983_vm0 = vweird.f32 %v10650_v44 }
 0x69c   : > { %v10644_v48 = vadd.f32 %v10585_v40, %v4450_v11  ;;  %vm10765_vm3 = vcmp.eq.f32.partialorder %v4972_v20, 8.507059e+37 }
 0x69e   : > { %v5598_v31 = vmul.f32 -1.442695, %v10644_v48  ;;  %v6188_v60 = vpop.eup %6187 }
 0x69f   : > { %v10652_v38 = vpop.eup %6189  ;;  %v10662_v12 = vadd.f32 1.0, %v6188_v60 }
 0x6a0   : > { %6193 = vpow2.f32 %v5598_v31  ;;  %v4949_v33 = vmul.f32 %v10652_v38, %v10633_v45  ;;  %v10669_v32 = vpop.eup %6191  ;;  %vm4954_vm2 = vweird.f32 %v10652_v38 }
 0x6a1   : > { %6195 = vrcp.f32 %v10650_v44  ;;  %v4964_v58 = vmul.f32 %v10669_v32, %v10639_v41  ;;  %vm10736_vm15 = vmor %vm4953_vm14, %vm4954_vm2  ;;  %vm4969_vm4 = vweird.f32 %v10669_v32  ;;  %vm4998_vm2 = vweird.f32 %v10662_v12 }
 0x6a2   : > { %6197 = vrcp.f32 %v10662_v12  ;;  %v4950_v63 = vsub.f32 1.0, %v4949_v33  ;;  %vm10761_vm7 = vmor %vm4968_vm5, %vm4969_vm4 }
 0x6a3   : > { %v4452_v15 = vpop.f32.mrf.mxu2  ;;  %v4965_v57 = vsub.f32 1.0, %v4964_v58 }
 0x6a4   : > { %v10674_v8 = vadd.f32 %v10585_v40, %v4452_v15  ;;  %v4951_v10 = vmul.f32 %v10652_v38, %v4950_v63 }
 0x6a5   : > { %v4966_v1 = vmul.f32 %v10669_v32, %v4965_v57  ;;  %v5146_v57 = vsel %vm5100_vm13, %v5091_v16, 0.0 }
 0x6a6   : > { %v6194_v17 = vpop.eup %6193  ;;  %v5599_v36 = vmul.f32 -1.442695, %v10674_v8  ;;  %v4952_v60 = vadd.f32 %v10652_v38, %v4951_v10 }
 0x6a7   : > { %v10687_v19 = vadd.f32 1.0, %v6194_v17  ;;  %v10690_v35 = vpop.eup %6195  ;;  %v4967_v15 = vadd.f32 %v10669_v32, %v4966_v1 }
 0x6a8   : > { %6199 = vpow2.f32 %v5599_v36  ;;  %v10698_v30 = vpop.eup %6197  ;;  %v4979_v7 = vmul.f32 %v10690_v35, %v10650_v44  ;;  %v4956_v45 = vsel %vm10736_vm15, %v10652_v38, %v4952_v60  ;;  %v4974_v38 = vand.u32 2147483648, %v10639_v41 }
 0x6a9   : > { %6201 = vrcp.f32 %v10687_v19  ;;  %v4994_v18 = vmul.f32 %v10698_v30, %v10662_v12  ;;  %v4961_v63 = vsel %vm10740_vm1, %v4960_v54, %v4956_v45  ;;  %v4971_v41 = vsel %vm10761_vm7, %v10669_v32, %v4967_v15  ;;  %v5171_v15 = vld [vmem:[%s10938_s15] sm:$0xff] }
 0x6aa   : > { %v4980_v13 = vsub.f32 1.0, %v4979_v7  ;;  %vm4984_vm6 = vweird.f32 %v10690_v35  ;;  %v4989_v7 = vand.u32 2147483648, %v10650_v44  ;;  %v5092_v32 = vmul.f32 %v4961_v63, %v10604_v6  ;;  %5198 = vmatpush.msrb.mxu0 %v5171_v15 }
 0x6ab   : > { %v4455_v52 = vpop.f32.mrf.mxu2  ;;  %v4995_v28 = vsub.f32 1.0, %v4994_v18  ;;  %vm10797_vm8 = vmor %vm4983_vm0, %vm4984_vm6  ;;  %vm4999_vm9 = vweird.f32 %v10698_v30  ;;  %v5002_v6 = vand.u32 2147483647, %v10662_v12  ;;  %v5019_v60 = vand.u32 2147483648, %v10687_v19 }
 0x6ac   : > { %v10704_v21 = vadd.f32 %v10585_v40, %v4455_v52  ;;  %v4981_v47 = vmul.f32 %v10690_v35, %v4980_v13  ;;  %v4975_v52 = vor.u32 1.1754944e-38, %v4974_v38  ;;  %v4990_v34 = vor.u32 1.1754944e-38, %v4989_v7  ;;  %vm10815_vm11 = vmor %vm4998_vm2, %vm4999_vm9 }
 0x6ad   : > { %v4996_v24 = vmul.f32 %v10698_v30, %v4995_v28  ;;  %v5148_v18 = vsel %vm5100_vm13, %v5092_v32, 0.0  ;;  %vm5013_vm14 = vweird.f32 %v10687_v19  ;;  %v5017_v13 = vand.u32 2147483647, %v10687_v19 }
 0x6ae   : > { %v6200_v11 = vpop.eup %6199  ;;  %v5600_v37 = vmul.f32 -1.442695, %v10704_v21  ;;  %v4982_v39 = vadd.f32 %v10690_v35, %v4981_v47  ;;  %v4976_v0 = vsel %vm10765_vm3, %v4975_v52, %v4971_v41  ;;  %vm10826_vm15 = vcmp.eq.f32.partialorder %v5002_v6, 8.507059e+37 }
 0x6af   : > { %v10719_v31 = vpop.eup %6201  ;;  %v10725_v43 = vadd.f32 1.0, %v6200_v11  ;;  %v4997_v29 = vadd.f32 %v10698_v30, %v4996_v24  ;;  %v5093_v56 = vmul.f32 %v4976_v0, %v10613_v27  ;;  %v5020_v20 = vor.u32 1.1754944e-38, %v5019_v60 }
 0x6b0   : > { %v5009_v51 = vmul.f32 %v10719_v31, %v10687_v19  ;;  %6203 = vpow2.f32 %v5600_v37  ;;  %vm5014_vm12 = vweird.f32 %v10719_v31  ;;  %v5004_v37 = vand.u32 2147483648, %v10662_v12 }
 0x6b1   : > { %6205 = vrcp.f32 %v10725_v43  ;;  %v5001_v12 = vsel %vm10815_vm11, %v10698_v30, %v4997_v29  ;;  %vm10832_vm1 = vmor %vm5013_vm14, %vm5014_vm12  ;;  %v5034_v45 = vand.u32 2147483648, %v10725_v43  ;;  %vm5018_vm5 = vcmp.eq.f32.partialorder %v5017_v13, 8.507059e+37 }
 0x6b2   : > { %v5010_v4 = vsub.f32 1.0, %v5009_v51  ;;  %v5005_v33 = vor.u32 1.1754944e-38, %v5004_v37  ;;  %vm5028_vm7 = vweird.f32 %v10725_v43  ;;  %v5150_v63 = vsel %vm5100_vm13, %v5093_v56, 0.0 }
 0x6b3   : > { %v4457_v23 = vpop.f32.mrf.mxu2  ;;  %v5035_v58 = vor.u32 1.1754944e-38, %v5034_v45 }
 0x6b4   : > { %v10752_v17 = vadd.f32 %v10585_v40, %v4457_v23  ;;  %v4987_v40 = vand.u32 2147483647, %v10650_v44  ;;  %v5011_v26 = vmul.f32 %v10719_v31, %v5010_v4  ;;  %v4986_v44 = vsel %vm10797_vm8, %v10690_v35, %v4982_v39 }
 0x6b5   : > { %v5006_v54 = vsel %vm10826_vm15, %v5005_v33, %v5001_v12  ;;  %vm5203_vm15 = vcmask 139264  }
 0x6b6   : > { %v6204_v36 = vpop.eup %6203  ;;  %v5601_v55 = vmul.f32 -1.442695, %v10752_v17  ;;  %vm10789_vm10 = vcmp.eq.f32.partialorder %v4987_v40, 8.507059e+37  ;;  %v5012_v11 = vadd.f32 %v10719_v31, %v5011_v26  ;;  %v5095_v46 = vmul.f32 %v5006_v54, %v10628_v61 }
 0x6b7   : > { %v10771_v62 = vpop.eup %6205  ;;  %v10778_v53 = vadd.f32 1.0, %v6204_v36  ;;  %v4991_v59 = vsel %vm10789_vm10, %v4990_v34, %v4986_v44  ;;  %v5147_v36 = vadd.f32 %v5146_v57, %v10754_v3 }
 0x6b8   : > { %v5024_v10 = vmul.f32 %v10771_v62, %v10725_v43  ;;  %6207 = vpow2.f32 %v5601_v55  ;;  %v5016_v19 = vsel %vm10832_vm1, %v10719_v31, %v5012_v11  ;;  %vm5029_vm4 = vweird.f32 %v10771_v62 }
 0x6b9   : > { %6209 = vrcp.f32 %v10778_v53  ;;  %v5032_v31 = vand.u32 2147483647, %v10725_v43  ;;  %v5094_v23 = vmul.f32 %v4991_v59, %v10620_v50  ;;  %v5021_v47 = vsel %vm5018_vm5, %v5020_v20, %v5016_v19  ;;  %vm10856_vm3 = vmor %vm5028_vm7, %vm5029_vm4 }
 0x6ba   : > { %v5025_v9 = vsub.f32 1.0, %v5024_v10  ;;  %v5049_v16 = vand.u32 2147483648, %v10778_v53  ;;  %v5047_v50 = vand.u32 2147483647, %v10778_v53  ;;  %vm5043_vm10 = vweird.f32 %v10778_v53 }
 0x6bb   : > { %vm5033_vm0 = vcmp.eq.f32.partialorder %v5032_v31, 8.507059e+37  ;;  %v5149_v41 = vadd.f32 %v5148_v18, %v5147_v36  ;;  %v5096_v24 = vmul.f32 %v5021_v47, %v10644_v48  ;;  %v5152_v26 = vsel %vm5100_vm13, %v5094_v23, 0.0 }
 0x6bc   : > { %v5026_v42 = vmul.f32 %v10771_v62, %v5025_v9  ;;  %v5050_v39 = vor.u32 1.1754944e-38, %v5049_v16  ;;  %vm5048_vm9 = vcmp.eq.f32.partialorder %v5047_v50, 8.507059e+37  ;;  %v5154_v61 = vsel %vm5100_vm13, %v5095_v46, 0.0 }
 0x6bd   : > { %v5151_v57 = vadd.f32 %v5150_v63, %v5149_v41  ;;  %v5156_v25 = vsel %vm5100_vm13, %v5096_v24, 0.0 }
 0x6be   : > { %v6208_v1 = vpop.eup %6207  ;;  %v5027_v14 = vadd.f32 %v10771_v62, %v5026_v42 }
 0x6bf   : > { %v6210_v51 = vpop.eup %6209  ;;  %v10836_v22 = vadd.f32 1.0, %v6208_v1  ;;  %v5153_v32 = vadd.f32 %v5152_v26, %v5151_v57 }
 0x6c0   : > { %v5039_v30 = vmul.f32 %v6210_v51, %v10778_v53  ;;  %v5031_v43 = vsel %vm10856_vm3, %v10771_v62, %v5027_v14  ;;  %vm5044_vm6 = vweird.f32 %v6210_v51 }
 0x6c1   : > { %6211 = vrcp.f32 %v10836_v22  ;;  %v5036_v62 = vsel %vm5033_vm0, %v5035_v58, %v5031_v43  ;;  %vm5045_vm8 = vmor %vm5043_vm10, %vm5044_vm6  ;;  %v5064_v48 = vand.u32 2147483648, %v10836_v22  ;;  %v5062_v5 = vand.u32 2147483647, %v10836_v22 }
 0x6c2   : > { %v5040_v28 = vsub.f32 1.0, %v5039_v30  ;;  %v5097_v7 = vmul.f32 %v5036_v62, %v10674_v8  ;;  %v5155_v29 = vadd.f32 %v5154_v61, %v5153_v32  ;;  %vm5058_vm2 = vweird.f32 %v10836_v22 }
 0x6c3   : > { %v5065_v8 = vor.u32 1.1754944e-38, %v5064_v48  ;;  %vm5063_vm14 = vcmp.eq.f32.partialorder %v5062_v5, 8.507059e+37 }
 0x6c4   : > { %v5041_v38 = vmul.f32 %v6210_v51, %v5040_v28  ;;  %v5158_v6 = vsel %vm5100_vm13, %v5097_v7, 0.0  ;;  %v5157_v11 = vadd.f32 %v5156_v25, %v5155_v29 }
 0x6c6   : > { %v5042_v40 = vadd.f32 %v6210_v51, %v5041_v38  ;;  %v5159_v37 = vadd.f32 %v5158_v6, %v5157_v11 }
 0x6c7   : > { %v6212_v55 = vpop.eup %6211 }
 0x6c8   : > { %v5046_v10 = vsel %vm5045_vm8, %v6210_v51, %v5042_v40  ;;  %v5054_v3 = vmul.f32 %v6212_v55, %v10836_v22  ;;  %vm5059_vm12 = vweird.f32 %v6212_v55  ;;  %v5179_v22 = vld [vmem:[%s10939_s16] sm:$0x1] }
 0x6c9   : > { %v5051_v52 = vsel %vm5048_vm9, %v5050_v39, %v5046_v10  ;;  %vm5060_vm11 = vmor %vm5058_vm2, %vm5059_vm12 }
 0x6ca   : > { %v5055_v53 = vsub.f32 1.0, %v5054_v3  ;;  %v5098_v9 = vmul.f32 %v5051_v52, %v10704_v21 }
 0x6cc   : > { %v5056_v0 = vmul.f32 %v6212_v55, %v5055_v53  ;;  %v5160_v42 = vsel %vm5100_vm13, %v5098_v9, 0.0 }
 0x6cd   : > { %v5161_v1 = vadd.f32 %v5160_v42, %v5159_v37 }
 0x6ce   : > { %v5057_v44 = vadd.f32 %v6212_v55, %v5056_v0 }
 0x6d0   : > { %v5061_v34 = vsel %vm5060_vm11, %v6212_v55, %v5057_v44 }
 0x6d1   : > { %v5066_v60 = vsel %vm5063_vm14, %v5065_v8, %v5061_v34 }
 0x6d2   : > { %v5099_v21 = vmul.f32 %v5066_v60, %v10752_v17 }
 0x6d4   : > { %v5162_v18 = vsel %vm5100_vm13, %v5099_v21, 0.0 }
 0x6d5   : > { %v5163_v56 = vadd.f32 %v5162_v18, %v5161_v1 }
 0x6d7   : > { %v5164_v35 = vrot.slane %v5163_v56, 4 }
 0x6d9   : > { %v5165_v13 = vadd.f32 %v5164_v35, %v5163_v56 }
 0x6db   : > { %v5166_v51 = vrot.slane %v5165_v13, 2 }
 0x6dd   : > { %v5167_v59 = vadd.f32 %v5166_v51, %v5165_v13 }
 0x6df   : > { %v5168_v12 = vrot.slane %v5167_v59, 1 }
 0x6e1   : > { %v5169_v49 = vadd.f32 %v5168_v12, %v5167_v59 }
 0x6e3   : > { %v5170_v27 = vmul.f32 %v5169_v49, %v10222_v2 }
 0x6e5   : > { %5602 = vmatmul.msk.f32.vlgmr.msrb.gmra.mxu0 %vm5100_vm13, %v5170_v27 }
 0x762   : > { %v5200_v19 = vpop.f32.mrf.mxu0 }
 0x763   : > { %v5201_v17 = vadd.f32 %v5200_v19, %v5179_v22 }
 0x765   : > { %v5204_v14 = vsel %vm5203_vm15, %v5201_v17, -inf }
 0x766   : > { %5205 = vmax.xlane.f32.xlu0 %v5204_v14 }
 0x7d9   : > { %v5206_v30 = vpop.xlane.xlu0 %5205 }
 0x7da   : > { %v5207_v33 = vsub.f32 %v5201_v17, %v5206_v30 }
 0x7dc   : > { %v5208_v20 = vmul.f32 1.442695, %v5207_v33 }
 0x7de   : > { %6213 = vpow2.f32 %v5208_v20 }
 0x7e4   : > { %v6214_v45 = vpop.eup %6213 }
 0x7e5   : > { %v5210_v2 = vsel %vm5203_vm15, %v6214_v45, 0.0 }
 0x7e6   : > { %5211 = vadd.xlane.f32.xlu0 %v5210_v2 }
 0x859   : > { %v5212_v15 = vpop.xlane.xlu0 %5211 }
 0x85a   : > { %6215 = vrcp.f32 %v5212_v15  ;;  %v5224_v54 = vand.u32 2147483648, %v5212_v15  ;;  %v5222_v4 = vand.u32 2147483647, %v5212_v15  ;;  %vm5218_vm1 = vweird.f32 %v5212_v15 }
 0x85c   : > { %v5225_v43 = vor.u32 1.1754944e-38, %v5224_v54  ;;  %vm5223_vm5 = vcmp.eq.f32.partialorder %v5222_v4, 8.507059e+37 }
 0x860   : > { %v6216_v31 = vpop.eup %6215 }
 0x861   : > { %v5214_v28 = vmul.f32 %v6216_v31, %v5212_v15  ;;  %vm5219_vm13 = vweird.f32 %v6216_v31 }
 0x862   : > { %vm5220_vm4 = vmor %vm5218_vm1, %vm5219_vm13 }
 0x863   : > { %v5215_v23 = vsub.f32 1.0, %v5214_v28 }
 0x865   : > { %v5216_v47 = vmul.f32 %v6216_v31, %v5215_v23 }
 0x867   : > { %v5217_v16 = vadd.f32 %v6216_v31, %v5216_v47 }
 0x869   : > { %v5221_v38 = vsel %vm5220_vm4, %v6216_v31, %v5217_v16 }
 0x86a   : > { %v5226_v50 = vsel %vm5223_vm5, %v5225_v43, %v5221_v38 }
 0x86b   : > { %v5227_v36 = vmul.f32 %v6214_v45, %v5226_v50 }
 0x86d   : > { %5228 = vst.msk [vmem:[%s540_s21] sm:$0x1] %vm5203_vm15, %v5227_v36 }
 0x86e   : > { %6281 = shalt.err (!%p6278_p3)
}
 0x86f   : > { %5636 = dma.vmem_to_hbm [thread:$0]  (%p6448_p5), %s5241_s22, 16, %s5243_s24, %s5230_s29  }
 0x870 PF: > { %s11322_s26 = sld [smem:[#allocation6_spill]]  ;;  %p5642_p4 = scmp.ge.s32.totalorder %s6316_s27, 2 }
 0x872   : > { %p5639_p7 = pnand %p5642_p4, %p6452_p6 }
 0x874   : > { %p5640_p8 = pneg %p5639_p7 }
 0x876   : > { %s5254_s3 = sand.u32 1, %s11322_s26  }
 0x877   : > { %s5255_s18 = scalar_lea.sflag [#allocation4], %s5254_s3 }
 0x878   : > { %6299 = dma.done.wait (%p5640_p8), %s5255_s18, 16  }
 0x879   : > { %6301 = vsyncadd (%p5640_p8), %s5255_s18, 4294967280  ;;  %s11324_s27 = sld [smem:[#allocation8_spill]]  ;;  %s11327_s24 = smov %s6308_s25 }
 0x87a   : > { %s11325_s2 = sld [smem:[#allocation7_spill]] }
 0x87b   : > { %s11326_s26 = sld [smem:[#allocation9_spill]] }
 0x87f   : > { %p27_p9 = scmp.ge.s32.totalorder %s11324_s27, 4  }
 0x880   : > { %s11328_s25 = smov %s11325_s2 }
 0x881   :  { %29 = sbr.rel (!%p27_p9) target bundleno = 8 (0x8), region = 125 }
 0x886   :  { %5260 = vsyncpa [#allocation4], 1 }
 0x887   :  { %5262 = vsyncpa [#allocation4 + $0x1], 1 }

</bundles_post_ra>
